<compile_context>
chip_gen: v7x
topology: tpu7x:2x2x1
jax: 0.10.0
libtpu: 0.0.40
codegen_flags: <defaults>
</compile_context>

<pallas_src>
import functools

import jax
import jax.numpy as jnp
from jax.experimental import pallas as pl
from jax.experimental.pallas import tpu as pltpu

BN_EPS = 1e-5


def _round_up(x, m):
    return (x + m - 1) // m * m


# --------------------------------------------------------------------------
# Conv (im2col) matmul with fused bias + ReLU (BN scale folded into weights)
# --------------------------------------------------------------------------
def _matmul_bias_kernel(x_ref, w_ref, b_ref, o_ref, *, relu):
    acc = jnp.dot(x_ref[...], w_ref[...], preferred_element_type=jnp.float32)
    y = acc + b_ref[...]
    if relu:
        y = jnp.maximum(y, 0.0)
    o_ref[...] = y.astype(o_ref.dtype)


def matmul_bias(x, w, bias, *, relu, num_m_blocks=2, out_dtype=jnp.bfloat16):
    """out = relu_opt(x @ w + bias).  Two parallel row blocks (v7x megacore)."""
    M, K = x.shape
    Kw, N = w.shape
    assert K == Kw
    tm = _round_up(-(-M // num_m_blocks), 8)
    Mp = tm * num_m_blocks
    x = x.astype(jnp.bfloat16)
    if Mp != M:
        x = jnp.pad(x, ((0, Mp - M), (0, 0)))
    out = pl.pallas_call(
        functools.partial(_matmul_bias_kernel, relu=relu),
        out_shape=jax.ShapeDtypeStruct((Mp, N), out_dtype),
        grid=(num_m_blocks,),
        in_specs=[
            pl.BlockSpec((tm, K), lambda i: (i, 0)),
            pl.BlockSpec((K, N), lambda i: (0, 0)),
            pl.BlockSpec((1, N), lambda i: (0, 0)),
        ],
        out_specs=pl.BlockSpec((tm, N), lambda i: (i, 0)),
        compiler_params=pltpu.CompilerParams(
            dimension_semantics=("parallel",)),
    )(x, w.astype(jnp.bfloat16), bias.reshape(1, N).astype(jnp.float32))
    return out[:M]


def im2col(x_nhwc, k, stride, pad):
    N, H, W, C = x_nhwc.shape
    if pad:
        x_nhwc = jnp.pad(x_nhwc, ((0, 0), (pad, pad), (pad, pad), (0, 0)))
    Hp, Wp = H + 2 * pad, W + 2 * pad
    OH = (Hp - k) // stride + 1
    OW = (Wp - k) // stride + 1
    cols = []
    for ky in range(k):
        for kx in range(k):
            cols.append(
                x_nhwc[:, ky:ky + stride * (OH - 1) + 1:stride,
                       kx:kx + stride * (OW - 1) + 1:stride, :])
    patches = jnp.concatenate(cols, axis=-1)   # (N, OH, OW, k*k*C), order (ky,kx,c)
    return patches.reshape(N * OH * OW, k * k * C), (N, OH, OW)


def conv2d_bn_relu(x_nhwc, w_oihw, conv_b, gamma, beta, mean, var,
                   *, stride, pad):
    cout, cin, k, _ = w_oihw.shape
    patches, (n, oh, ow) = im2col(x_nhwc, k, stride, pad)
    scale = gamma / jnp.sqrt(var + BN_EPS)
    bias = scale * (conv_b - mean) + beta
    # Fold the BN scale into the matmul weight columns at trace time.
    w_mat = jnp.transpose(w_oihw, (2, 3, 1, 0)).reshape(k * k * cin, cout)
    w_mat = w_mat * scale[None, :]
    out = matmul_bias(patches, w_mat, bias, relu=True)
    return out.reshape(n, oh, ow, cout)


# --------------------------------------------------------------------------
# Sub-pixel decomposition of ConvTranspose2d(k=4, s=2, p=1, bias=False)
# --------------------------------------------------------------------------
def _subpixel_patches(x_nhwc, w_iohw):
    """Parity-major stride-1 patches / weights for ConvTranspose2d(4,2,1).

    Output parity (oh%2, ow%2) selects a 2x2 subset of the 4x4 kernel, so the
    deconv is 4 independent stride-1 2x2 convs with K = 4*Cin.
    Row order inside a parity block: n*H*W + m*W + nw for output pixel
    (oh, ow) = (2m+pr, 2nw+pc); parity index p = 2*pr + pc.
    """
    # TODO(synk): only the k=4 / stride=2 / pad=1 config (the module default,
    # _get_deconv_cfg(4)) is implemented by this sub-pixel path.
    N, H, W, Cin = x_nhwc.shape
    assert w_iohw.shape[0] == Cin and w_iohw.shape[2] == 4 and w_iohw.shape[3] == 4
    xp = jnp.pad(x_nhwc, ((0, 0), (1, 1), (1, 1), (0, 0)))
    patch_list, w_list = [], []
    for pr in (0, 1):
        kh = (3, 1) if pr == 0 else (2, 0)
        for pc in (0, 1):
            kw = (3, 1) if pc == 0 else (2, 0)
            cols, wrows = [], []
            for dh in (0, 1):
                for dw in (0, 1):
                    cols.append(
                        xp[:, pr + dh:pr + dh + H, pc + dw:pc + dw + W, :])
                    wrows.append(w_iohw[:, :, kh[dh], kw[dw]])   # (Cin, Cout)
            patch_list.append(
                jnp.concatenate(cols, axis=-1).reshape(N * H * W, 4 * Cin))
            w_list.append(jnp.concatenate(wrows, axis=0))        # (4*Cin, Cout)
    patches = jnp.stack(patch_list).astype(jnp.bfloat16)         # (4, M, 4*Cin)
    w_mats = jnp.stack(w_list)                                   # (4, 4*Cin, Cout)
    return patches, w_mats


def _deconv_parity_kernel(x_ref, w_ref, b_ref, o_ref):
    acc = jnp.dot(x_ref[0], w_ref[0], preferred_element_type=jnp.float32)
    o_ref[0] = jnp.maximum(acc + b_ref[...], 0.0).astype(o_ref.dtype)


def deconv_bn_relu_subpixel(x_nhwc, w_iohw, gamma, beta, mean, var,
                            out_dtype=jnp.bfloat16):
    """ConvTranspose2d(4,2,1,bias=False) + BN + ReLU. grid=(4,), one block/parity."""
    N, H, W, Cin = x_nhwc.shape
    Cout = w_iohw.shape[1]
    patches, w_mats = _subpixel_patches(x_nhwc, w_iohw)
    scale = (gamma / jnp.sqrt(var + BN_EPS)).astype(jnp.float32)
    bias = (beta - scale * mean).astype(jnp.float32).reshape(1, Cout)
    w_mats = (w_mats * scale[None, None, :]).astype(jnp.bfloat16)

    M = N * H * W
    Kd = 4 * Cin
    out_par = pl.pallas_call(
        _deconv_parity_kernel,
        out_shape=jax.ShapeDtypeStruct((4, M, Cout), out_dtype),
        grid=(4,),
        in_specs=[
            pl.BlockSpec((1, M, Kd), lambda p: (p, 0, 0)),
            pl.BlockSpec((1, Kd, Cout), lambda p: (p, 0, 0)),
            pl.BlockSpec((1, Cout), lambda p: (0, 0)),
        ],
        out_specs=pl.BlockSpec((1, M, Cout), lambda p: (p, 0, 0)),
        compiler_params=pltpu.CompilerParams(
            dimension_semantics=("parallel",)),
    )(patches, w_mats, bias)

    # Reassemble: out[n, 2m+pr, 2nw+pc, c] = out_par[2*pr+pc, n*H*W+m*W+nw, c]
    out = out_par.reshape(2, 2, N, H, W, Cout)
    out = jnp.transpose(out, (2, 3, 0, 4, 1, 5)).reshape(N, 2 * H, 2 * W, Cout)
    return out


# --------------------------------------------------------------------------
# Fused: last deconv + BN + ReLU + final 1x1 conv + (x*heatmap) + fc
# --------------------------------------------------------------------------
def _final_fused_kernel(x_ref, w_ref, b_ref, wf_ref, bf_ref, h_ref,
                        wfct_ref, bfc_ref, o_ref, acc_ref):
    p = pl.program_id(1)

    @pl.when(p == 0)
    def _():
        acc_ref[...] = jnp.zeros_like(acc_ref)

    # Deconv parity class: relu(patch @ w_scaled + bn_bias)         (HW, Cout)
    y = jnp.dot(x_ref[0], w_ref[0], preferred_element_type=jnp.float32)
    y = jnp.maximum(y + b_ref[...], 0.0)
    # Final 1x1 conv                                                 (HW, J)
    z = jnp.dot(y.astype(jnp.bfloat16), wf_ref[...],
                preferred_element_type=jnp.float32) + bf_ref[...]
    # x * heatmap, then fc contraction over this parity's pixels     (F, J)
    prod = (z * h_ref[0].astype(jnp.float32)).astype(jnp.bfloat16)
    acc_ref[...] += jnp.dot(wfct_ref[0], prod,
                            preferred_element_type=jnp.float32)

    @pl.when(p == pl.num_programs(1) - 1)
    def _():
        o_ref[0] = acc_ref[...] + bfc_ref[...]


def final_deconv_mul_fc(x_nhwc, w_iohw, gamma, beta, mean, var,
                        final_w_oi11, final_b, fc_w, fc_b, heatmap_nchw):
    N, H, W, Cin = x_nhwc.shape
    Cout = w_iohw.shape[1]
    J = final_w_oi11.shape[0]
    F = fc_w.shape[0]
    OH, OW = 2 * H, 2 * W
    assert heatmap_nchw.shape == (N, J, OH, OW)
    assert fc_w.shape[1] == OH * OW

    patches, w_mats = _subpixel_patches(x_nhwc, w_iohw)   # (4,M,Kd), (4,Kd,Cout)
    scale = (gamma / jnp.sqrt(var + BN_EPS)).astype(jnp.float32)
    bias = (beta - scale * mean).astype(jnp.float32).reshape(1, Cout)
    w_mats = (w_mats * scale[None, None, :]).astype(jnp.bfloat16)

    final_w = final_w_oi11.reshape(J, Cin if False else final_w_oi11.shape[1])
    final_w = final_w.T.astype(jnp.bfloat16)               # (Cout, J)
    final_b2 = final_b.reshape(1, J).astype(jnp.float32)

    # Heatmap in parity-major layout matching the sub-pixel patch rows.
    h_par = jnp.transpose(
        heatmap_nchw.reshape(N, J, H, 2, W, 2),             # n j m pr nw pc
        (3, 5, 0, 2, 4, 1)).reshape(4, N * H * W, J).astype(jnp.bfloat16)

    # fc weight permuted to parity-major pixel order, pre-transposed to (F, HW)
    # so the in-kernel contraction is a plain matmul (no in-kernel transpose).
    wfct_par = jnp.transpose(
        fc_w.reshape(F, H, 2, W, 2),                         # f m pr nw pc
        (2, 4, 0, 1, 3)).reshape(4, F, H * W).astype(jnp.bfloat16)
    bfc = fc_b.reshape(F, 1).astype(jnp.float32)

    HW = H * W
    Kd = 4 * Cin

    out_t = pl.pallas_call(
        _final_fused_kernel,
        out_shape=jax.ShapeDtypeStruct((N, F, J), jnp.float32),
        grid=(N, 4),                                   # batch parallel, parity = reduction
        in_specs=[
            pl.BlockSpec((1, HW, Kd), lambda i, p: (p, i, 0)),
            pl.BlockSpec((1, Kd, Cout), lambda i, p: (p, 0, 0)),
            pl.BlockSpec((1, Cout), lambda i, p: (0, 0)),
            pl.BlockSpec((Cout, J), lambda i, p: (0, 0)),
            pl.BlockSpec((1, J), lambda i, p: (0, 0)),
            pl.BlockSpec((1, HW, J), lambda i, p: (p, i, 0)),
            pl.BlockSpec((1, F, HW), lambda i, p: (p, 0, 0)),
            pl.BlockSpec((F, 1), lambda i, p: (0, 0)),
        ],
        out_specs=pl.BlockSpec((1, F, J), lambda i, p: (i, 0, 0)),
        scratch_shapes=[pltpu.VMEM((F, J), jnp.float32)],
        compiler_params=pltpu.CompilerParams(
            dimension_semantics=("parallel", "arbitrary")),
    )(patches, w_mats, bias, final_w, final_b2, h_par, wfct_par, bfc)

    return jnp.transpose(out_t, (0, 2, 1))               # (N, J, F)


# --------------------------------------------------------------------------
# Parameter construction (deterministic, synthetic)
# --------------------------------------------------------------------------
def init_params(key, in_channels, out_channels,
                conv_filters=(8, 16, 32), conv_kernels=(3, 3, 3),
                deconv_filters=(32, 32, 32), deconv_kernels=(4, 4, 4),
                fc_in=64 * 64, fc_out=128, std=0.05):
    params = {'conv': [], 'deconv': []}
    c = in_channels
    for cf, ck in zip(conv_filters, conv_kernels):
        key, k1, k2, k3, k4, k5 = jax.random.split(key, 6)
        params['conv'].append(dict(
            w=std * jax.random.normal(k1, (cf, c, ck, ck), jnp.float32),
            b=std * jax.random.normal(k2, (cf,), jnp.float32),
            gamma=1.0 + 0.1 * jax.random.normal(k3, (cf,), jnp.float32),
            beta=0.1 * jax.random.normal(k4, (cf,), jnp.float32),
            mean=0.01 * jax.random.normal(k5, (cf,), jnp.float32),
            var=jnp.ones((cf,), jnp.float32),
        ))
        c = cf
    for df, dk in zip(deconv_filters, deconv_kernels):
        key, k1, k3, k4, k5 = jax.random.split(key, 5)
        params['deconv'].append(dict(
            w=std * jax.random.normal(k1, (c, df, dk, dk), jnp.float32),
            gamma=1.0 + 0.1 * jax.random.normal(k3, (df,), jnp.float32),
            beta=0.1 * jax.random.normal(k4, (df,), jnp.float32),
            mean=0.01 * jax.random.normal(k5, (df,), jnp.float32),
            var=jnp.ones((df,), jnp.float32),
        ))
        c = df
    key, k1, k2, k3, k4 = jax.random.split(key, 5)
    params['final'] = dict(
        w=std * jax.random.normal(k1, (out_channels, c, 1, 1), jnp.float32),
        b=std * jax.random.normal(k2, (out_channels,), jnp.float32),
    )
    params['fc'] = dict(  # torch nn.Linear layout: (out_features, in_features)
        w=std * jax.random.normal(k3, (fc_out, fc_in), jnp.float32),
        b=std * jax.random.normal(k4, (fc_out,), jnp.float32),
    )
    return params


# --------------------------------------------------------------------------
# Forward
# --------------------------------------------------------------------------
def topdown_feature_head_forward(params, x_nchw, heatmap_nchw):
    # _transform_inputs with input_transform=None on a single tensor: identity.
    x = jnp.transpose(x_nchw, (0, 2, 3, 1)).astype(jnp.bfloat16)  # NCHW -> NHWC

    # conv_layers: 3 x (Conv2d k=3 s=2 p=1 + BN + ReLU)
    for p in params['conv']:
        k = p['w'].shape[2]
        x = conv2d_bn_relu(x, p['w'], p['b'], p['gamma'], p['beta'],
                           p['mean'], p['var'], stride=2, pad=(k - 1) // 2)

    # deconv_layers 1..L-1: ConvTranspose2d(4,2,1,bias=False) + BN + ReLU
    for p in params['deconv'][:-1]:
        x = deconv_bn_relu_subpixel(x, p['w'], p['gamma'], p['beta'],
                                    p['mean'], p['var'])

    # Last deconv + BN + ReLU + final 1x1 conv + (x*heatmap) + Linear(4096,128)
    # fused into a single pallas_call.
    p = params['deconv'][-1]
    pf = params['final']
    feat = final_deconv_mul_fc(
        x, p['w'], p['gamma'], p['beta'], p['mean'], p['var'],
        pf['w'], pf['b'], params['fc']['w'], params['fc']['b'], heatmap_nchw)
    return feat                                            # (N, num_joints, 128)


if __name__ == "__main__":
    key = jax.random.PRNGKey(0)
    kx, kh, kp = jax.random.split(key, 3)

    # Small channel config; spatial 64x64 is required by the hard-coded
    # nn.Linear(64*64, 128) in the module.
    N, C_in, H, W = 2, 4, 64, 64
    num_joints = 8  # out_channels

    x = jax.random.normal(kx, (N, C_in, H, W), jnp.float32)
    heatmap = jax.random.uniform(kh, (N, num_joints, H, W), jnp.float32)

    params = init_params(kp, in_channels=C_in, out_channels=num_joints)

    fwd = jax.jit(topdown_feature_head_forward)
    out = jax.block_until_ready(fwd(params, x, heatmap))

    assert out.shape == (N, num_joints, 128), out.shape
    assert jnp.all(jnp.isfinite(out))
    print("KERNEL_OK")
</pallas_src>

<mosaic_0001>
module attributes {stable_mosaic.version = 11 : i64} {
  func.func @_matmul_bias_kernel(%arg0: i32, %arg1: memref<1024x36xbf16, #tpu.memory_space<vmem>>, %arg2: memref<36x8xbf16, #tpu.memory_space<vmem>>, %arg3: memref<1x8xf32, #tpu.memory_space<vmem>>, %arg4: memref<1024x8xbf16, #tpu.memory_space<vmem>>) attributes {dimension_semantics = [#tpu.dimension_semantics<parallel>], iteration_bounds = array<i64: 2>, scalar_prefetch = 0 : i64, scratch_operands = 0 : i64, tpu.core_type = #tpu.core_type<tc>, window_params = [{transform_indices = @transform_0, window_bounds = array<i64: 1024, 36>}, {pipeline_mode = #tpu.pipeline_mode<synchronous>, transform_indices = @transform_1, window_bounds = array<i64: 36, 8>}, {pipeline_mode = #tpu.pipeline_mode<synchronous>, transform_indices = @transform_2, window_bounds = array<i64: 1, 8>}, {transform_indices = @transform_3, window_bounds = array<i64: 1024, 8>}]} {
    %c0 = arith.constant 0 : index
    %c0_0 = arith.constant 0 : index
    %0 = vector.load %arg1[%c0, %c0_0] : memref<1024x36xbf16, #tpu.memory_space<vmem>>, vector<1024x36xbf16>
    %c0_1 = arith.constant 0 : index
    %c0_2 = arith.constant 0 : index
    %1 = vector.load %arg2[%c0_1, %c0_2] : memref<36x8xbf16, #tpu.memory_space<vmem>>, vector<36x8xbf16>
    %cst = arith.constant dense<0.000000e+00> : vector<1024x8xf32>
    %2 = tpu.matmul %0, %1, %cst {dimension_numbers = #tpu.dot_dimension_numbers<[1], [0], [0], [1], [0, 0, 1, 1], [], []>} : vector<1024x36xbf16>, vector<36x8xbf16>, vector<1024x8xf32> -> vector<1024x8xf32>
    %c0_3 = arith.constant 0 : index
    %c0_4 = arith.constant 0 : index
    %3 = vector.load %arg3[%c0_3, %c0_4] : memref<1x8xf32, #tpu.memory_space<vmem>>, vector<1x8xf32>
    %4 = vector.broadcast %3 : vector<1x8xf32> to vector<1024x8xf32>
    %5 = arith.addf %2, %4 : vector<1024x8xf32>
    %cst_5 = arith.constant 0.000000e+00 : f32
    %6 = vector.broadcast %cst_5 : f32 to vector<1024x8xf32>
    %7 = arith.maximumf %5, %6 : vector<1024x8xf32>
    %8 = arith.truncf %7 : vector<1024x8xf32> to vector<1024x8xbf16>
    %c0_6 = arith.constant 0 : index
    %c0_7 = arith.constant 0 : index
    %9 = vector.load %arg4[%c0_6, %c0_7] : memref<1024x8xbf16, #tpu.memory_space<vmem>>, vector<1024x8xbf16>
    tpu.vector_store %arg4[%c0_6, %c0_7], %8 {strides = array<i32>} : memref<1024x8xbf16, #tpu.memory_space<vmem>>, vector<1024x8xbf16>,
    return
  }
  func.func @transform_0(%arg0: i32) -> (i32, i32) {
    %c0_i32 = arith.constant 0 : i32
    %c0_i32_0 = arith.constant 0 : i32
    return %arg0, %c0_i32 : i32, i32
  }
  func.func @transform_1(%arg0: i32) -> (i32, i32) {
    %c0_i32 = arith.constant 0 : i32
    %c0_i32_0 = arith.constant 0 : i32
    %c0_i32_1 = arith.constant 0 : i32
    return %c0_i32, %c0_i32_0 : i32, i32
  }
  func.func @transform_2(%arg0: i32) -> (i32, i32) {
    %c0_i32 = arith.constant 0 : i32
    %c0_i32_0 = arith.constant 0 : i32
    %c0_i32_1 = arith.constant 0 : i32
    return %c0_i32, %c0_i32_0 : i32, i32
  }
  func.func @transform_3(%arg0: i32) -> (i32, i32) {
    %c0_i32 = arith.constant 0 : i32
    %c0_i32_0 = arith.constant 0 : i32
    return %arg0, %c0_i32 : i32, i32
  }
}

module attributes {stable_mosaic.version = 11 : i64} {
  func.func @_matmul_bias_kernel(%arg0: i32, %arg1: memref<256x72xbf16, #tpu.memory_space<vmem>>, %arg2: memref<72x16xbf16, #tpu.memory_space<vmem>>, %arg3: memref<1x16xf32, #tpu.memory_space<vmem>>, %arg4: memref<256x16xbf16, #tpu.memory_space<vmem>>) attributes {dimension_semantics = [#tpu.dimension_semantics<parallel>], iteration_bounds = array<i64: 2>, scalar_prefetch = 0 : i64, scratch_operands = 0 : i64, tpu.core_type = #tpu.core_type<tc>, window_params = [{transform_indices = @transform_0, window_bounds = array<i64: 256, 72>}, {pipeline_mode = #tpu.pipeline_mode<synchronous>, transform_indices = @transform_1, window_bounds = array<i64: 72, 16>}, {pipeline_mode = #tpu.pipeline_mode<synchronous>, transform_indices = @transform_2, window_bounds = array<i64: 1, 16>}, {transform_indices = @transform_3, window_bounds = array<i64: 256, 16>}]} {
    %c0 = arith.constant 0 : index
    %c0_0 = arith.constant 0 : index
    %0 = vector.load %arg1[%c0, %c0_0] : memref<256x72xbf16, #tpu.memory_space<vmem>>, vector<256x72xbf16>
    %c0_1 = arith.constant 0 : index
    %c0_2 = arith.constant 0 : index
    %1 = vector.load %arg2[%c0_1, %c0_2] : memref<72x16xbf16, #tpu.memory_space<vmem>>, vector<72x16xbf16>
    %cst = arith.constant dense<0.000000e+00> : vector<256x16xf32>
    %2 = tpu.matmul %0, %1, %cst {dimension_numbers = #tpu.dot_dimension_numbers<[1], [0], [0], [1], [0, 0, 1, 1], [], []>} : vector<256x72xbf16>, vector<72x16xbf16>, vector<256x16xf32> -> vector<256x16xf32>
    %c0_3 = arith.constant 0 : index
    %c0_4 = arith.constant 0 : index
    %3 = vector.load %arg3[%c0_3, %c0_4] : memref<1x16xf32, #tpu.memory_space<vmem>>, vector<1x16xf32>
    %4 = vector.broadcast %3 : vector<1x16xf32> to vector<256x16xf32>
    %5 = arith.addf %2, %4 : vector<256x16xf32>
    %cst_5 = arith.constant 0.000000e+00 : f32
    %6 = vector.broadcast %cst_5 : f32 to vector<256x16xf32>
    %7 = arith.maximumf %5, %6 : vector<256x16xf32>
    %8 = arith.truncf %7 : vector<256x16xf32> to vector<256x16xbf16>
    %c0_6 = arith.constant 0 : index
    %c0_7 = arith.constant 0 : index
    %9 = vector.load %arg4[%c0_6, %c0_7] : memref<256x16xbf16, #tpu.memory_space<vmem>>, vector<256x16xbf16>
    tpu.vector_store %arg4[%c0_6, %c0_7], %8 {strides = array<i32>} : memref<256x16xbf16, #tpu.memory_space<vmem>>, vector<256x16xbf16>,
    return
  }
  func.func @transform_0(%arg0: i32) -> (i32, i32) {
    %c0_i32 = arith.constant 0 : i32
    %c0_i32_0 = arith.constant 0 : i32
    return %arg0, %c0_i32 : i32, i32
  }
  func.func @transform_1(%arg0: i32) -> (i32, i32) {
    %c0_i32 = arith.constant 0 : i32
    %c0_i32_0 = arith.constant 0 : i32
    %c0_i32_1 = arith.constant 0 : i32
    return %c0_i32, %c0_i32_0 : i32, i32
  }
  func.func @transform_2(%arg0: i32) -> (i32, i32) {
    %c0_i32 = arith.constant 0 : i32
    %c0_i32_0 = arith.constant 0 : i32
    %c0_i32_1 = arith.constant 0 : i32
    return %c0_i32, %c0_i32_0 : i32, i32
  }
  func.func @transform_3(%arg0: i32) -> (i32, i32) {
    %c0_i32 = arith.constant 0 : i32
    %c0_i32_0 = arith.constant 0 : i32
    return %arg0, %c0_i32 : i32, i32
  }
}

module attributes {stable_mosaic.version = 11 : i64} {
  func.func @_matmul_bias_kernel(%arg0: i32, %arg1: memref<64x144xbf16, #tpu.memory_space<vmem>>, %arg2: memref<144x32xbf16, #tpu.memory_space<vmem>>, %arg3: memref<1x32xf32, #tpu.memory_space<vmem>>, %arg4: memref<64x32xbf16, #tpu.memory_space<vmem>>) attributes {dimension_semantics = [#tpu.dimension_semantics<parallel>], iteration_bounds = array<i64: 2>, scalar_prefetch = 0 : i64, scratch_operands = 0 : i64, tpu.core_type = #tpu.core_type<tc>, window_params = [{transform_indices = @transform_0, window_bounds = array<i64: 64, 144>}, {pipeline_mode = #tpu.pipeline_mode<synchronous>, transform_indices = @transform_1, window_bounds = array<i64: 144, 32>}, {pipeline_mode = #tpu.pipeline_mode<synchronous>, transform_indices = @transform_2, window_bounds = array<i64: 1, 32>}, {transform_indices = @transform_3, window_bounds = array<i64: 64, 32>}]} {
    %c0 = arith.constant 0 : index
    %c0_0 = arith.constant 0 : index
    %0 = vector.load %arg1[%c0, %c0_0] : memref<64x144xbf16, #tpu.memory_space<vmem>>, vector<64x144xbf16>
    %c0_1 = arith.constant 0 : index
    %c0_2 = arith.constant 0 : index
    %1 = vector.load %arg2[%c0_1, %c0_2] : memref<144x32xbf16, #tpu.memory_space<vmem>>, vector<144x32xbf16>
    %cst = arith.constant dense<0.000000e+00> : vector<64x32xf32>
    %2 = tpu.matmul %0, %1, %cst {dimension_numbers = #tpu.dot_dimension_numbers<[1], [0], [0], [1], [0, 0, 1, 1], [], []>} : vector<64x144xbf16>, vector<144x32xbf16>, vector<64x32xf32> -> vector<64x32xf32>
    %c0_3 = arith.constant 0 : index
    %c0_4 = arith.constant 0 : index
    %3 = vector.load %arg3[%c0_3, %c0_4] : memref<1x32xf32, #tpu.memory_space<vmem>>, vector<1x32xf32>
    %4 = vector.broadcast %3 : vector<1x32xf32> to vector<64x32xf32>
    %5 = arith.addf %2, %4 : vector<64x32xf32>
    %cst_5 = arith.constant 0.000000e+00 : f32
    %6 = vector.broadcast %cst_5 : f32 to vector<64x32xf32>
    %7 = arith.maximumf %5, %6 : vector<64x32xf32>
    %8 = arith.truncf %7 : vector<64x32xf32> to vector<64x32xbf16>
    %c0_6 = arith.constant 0 : index
    %c0_7 = arith.constant 0 : index
    %9 = vector.load %arg4[%c0_6, %c0_7] : memref<64x32xbf16, #tpu.memory_space<vmem>>, vector<64x32xbf16>
    tpu.vector_store %arg4[%c0_6, %c0_7], %8 {strides = array<i32>} : memref<64x32xbf16, #tpu.memory_space<vmem>>, vector<64x32xbf16>,
    return
  }
  func.func @transform_0(%arg0: i32) -> (i32, i32) {
    %c0_i32 = arith.constant 0 : i32
    %c0_i32_0 = arith.constant 0 : i32
    return %arg0, %c0_i32 : i32, i32
  }
  func.func @transform_1(%arg0: i32) -> (i32, i32) {
    %c0_i32 = arith.constant 0 : i32
    %c0_i32_0 = arith.constant 0 : i32
    %c0_i32_1 = arith.constant 0 : i32
    return %c0_i32, %c0_i32_0 : i32, i32
  }
  func.func @transform_2(%arg0: i32) -> (i32, i32) {
    %c0_i32 = arith.constant 0 : i32
    %c0_i32_0 = arith.constant 0 : i32
    %c0_i32_1 = arith.constant 0 : i32
    return %c0_i32, %c0_i32_0 : i32, i32
  }
  func.func @transform_3(%arg0: i32) -> (i32, i32) {
    %c0_i32 = arith.constant 0 : i32
    %c0_i32_0 = arith.constant 0 : i32
    return %arg0, %c0_i32 : i32, i32
  }
}

module attributes {stable_mosaic.version = 11 : i64} {
  func.func @_deconv_parity_kernel(%arg0: i32, %arg1: memref<1x128x128xbf16, #tpu.memory_space<vmem>>, %arg2: memref<1x128x32xbf16, #tpu.memory_space<vmem>>, %arg3: memref<1x32xf32, #tpu.memory_space<vmem>>, %arg4: memref<1x128x32xbf16, #tpu.memory_space<vmem>>) attributes {dimension_semantics = [#tpu.dimension_semantics<parallel>], iteration_bounds = array<i64: 4>, scalar_prefetch = 0 : i64, scratch_operands = 0 : i64, tpu.core_type = #tpu.core_type<tc>, window_params = [{transform_indices = @transform_0, window_bounds = array<i64: 1, 128, 128>}, {transform_indices = @transform_1, window_bounds = array<i64: 1, 128, 32>}, {pipeline_mode = #tpu.pipeline_mode<synchronous>, transform_indices = @transform_2, window_bounds = array<i64: 1, 32>}, {transform_indices = @transform_3, window_bounds = array<i64: 1, 128, 32>}]} {
    %c0 = arith.constant 0 : index
    %c0_0 = arith.constant 0 : index
    %c0_1 = arith.constant 0 : index
    %0 = vector.load %arg1[%c0, %c0_0, %c0_1] : memref<1x128x128xbf16, #tpu.memory_space<vmem>>, vector<1x128x128xbf16>
    %1 = vector.shape_cast %0 : vector<1x128x128xbf16> to vector<128x128xbf16>
    %c0_2 = arith.constant 0 : index
    %c0_3 = arith.constant 0 : index
    %c0_4 = arith.constant 0 : index
    %2 = vector.load %arg2[%c0_2, %c0_3, %c0_4] : memref<1x128x32xbf16, #tpu.memory_space<vmem>>, vector<1x128x32xbf16>
    %3 = vector.shape_cast %2 : vector<1x128x32xbf16> to vector<128x32xbf16>
    %cst = arith.constant dense<0.000000e+00> : vector<128x32xf32>
    %4 = tpu.matmul %1, %3, %cst {dimension_numbers = #tpu.dot_dimension_numbers<[1], [0], [0], [1], [0, 0, 1, 1], [], []>} : vector<128x128xbf16>, vector<128x32xbf16>, vector<128x32xf32> -> vector<128x32xf32>
    %c0_5 = arith.constant 0 : index
    %c0_6 = arith.constant 0 : index
    %5 = vector.load %arg3[%c0_5, %c0_6] : memref<1x32xf32, #tpu.memory_space<vmem>>, vector<1x32xf32>
    %6 = vector.broadcast %5 : vector<1x32xf32> to vector<128x32xf32>
    %7 = arith.addf %4, %6 : vector<128x32xf32>
    %cst_7 = arith.constant 0.000000e+00 : f32
    %8 = vector.broadcast %cst_7 : f32 to vector<128x32xf32>
    %9 = arith.maximumf %7, %8 : vector<128x32xf32>
    %10 = arith.truncf %9 : vector<128x32xf32> to vector<128x32xbf16>
    %c0_8 = arith.constant 0 : index
    %c0_9 = arith.constant 0 : index
    %c0_10 = arith.constant 0 : index
    %11 = vector.load %arg4[%c0_8, %c0_9, %c0_10] : memref<1x128x32xbf16, #tpu.memory_space<vmem>>, vector<1x128x32xbf16>
    %12 = vector.shape_cast %11 : vector<1x128x32xbf16> to vector<128x32xbf16>
    %13 = vector.shape_cast %10 : vector<128x32xbf16> to vector<1x128x32xbf16>
    tpu.vector_store %arg4[%c0_8, %c0_9, %c0_10], %13 {strides = array<i32>} : memref<1x128x32xbf16, #tpu.memory_space<vmem>>, vector<1x128x32xbf16>,
    return
  }
  func.func @transform_0(%arg0: i32) -> (i32, i32, i32) {
    %c0_i32 = arith.constant 0 : i32
    %c0_i32_0 = arith.constant 0 : i32
    %c0_i32_1 = arith.constant 0 : i32
    return %arg0, %c0_i32, %c0_i32_0 : i32, i32, i32
  }
  func.func @transform_1(%arg0: i32) -> (i32, i32, i32) {
    %c0_i32 = arith.constant 0 : i32
    %c0_i32_0 = arith.constant 0 : i32
    %c0_i32_1 = arith.constant 0 : i32
    return %arg0, %c0_i32, %c0_i32_0 : i32, i32, i32
  }
  func.func @transform_2(%arg0: i32) -> (i32, i32) {
    %c0_i32 = arith.constant 0 : i32
    %c0_i32_0 = arith.constant 0 : i32
    %c0_i32_1 = arith.constant 0 : i32
    return %c0_i32, %c0_i32_0 : i32, i32
  }
  func.func @transform_3(%arg0: i32) -> (i32, i32, i32) {
    %c0_i32 = arith.constant 0 : i32
    %c0_i32_0 = arith.constant 0 : i32
    %c0_i32_1 = arith.constant 0 : i32
    return %arg0, %c0_i32, %c0_i32_0 : i32, i32, i32
  }
}

module attributes {stable_mosaic.version = 11 : i64} {
  func.func @_deconv_parity_kernel(%arg0: i32, %arg1: memref<1x512x128xbf16, #tpu.memory_space<vmem>>, %arg2: memref<1x128x32xbf16, #tpu.memory_space<vmem>>, %arg3: memref<1x32xf32, #tpu.memory_space<vmem>>, %arg4: memref<1x512x32xbf16, #tpu.memory_space<vmem>>) attributes {dimension_semantics = [#tpu.dimension_semantics<parallel>], iteration_bounds = array<i64: 4>, scalar_prefetch = 0 : i64, scratch_operands = 0 : i64, tpu.core_type = #tpu.core_type<tc>, window_params = [{transform_indices = @transform_0, window_bounds = array<i64: 1, 512, 128>}, {transform_indices = @transform_1, window_bounds = array<i64: 1, 128, 32>}, {pipeline_mode = #tpu.pipeline_mode<synchronous>, transform_indices = @transform_2, window_bounds = array<i64: 1, 32>}, {transform_indices = @transform_3, window_bounds = array<i64: 1, 512, 32>}]} {
    %c0 = arith.constant 0 : index
    %c0_0 = arith.constant 0 : index
    %c0_1 = arith.constant 0 : index
    %0 = vector.load %arg1[%c0, %c0_0, %c0_1] : memref<1x512x128xbf16, #tpu.memory_space<vmem>>, vector<1x512x128xbf16>
    %1 = vector.shape_cast %0 : vector<1x512x128xbf16> to vector<512x128xbf16>
    %c0_2 = arith.constant 0 : index
    %c0_3 = arith.constant 0 : index
    %c0_4 = arith.constant 0 : index
    %2 = vector.load %arg2[%c0_2, %c0_3, %c0_4] : memref<1x128x32xbf16, #tpu.memory_space<vmem>>, vector<1x128x32xbf16>
    %3 = vector.shape_cast %2 : vector<1x128x32xbf16> to vector<128x32xbf16>
    %cst = arith.constant dense<0.000000e+00> : vector<512x32xf32>
    %4 = tpu.matmul %1, %3, %cst {dimension_numbers = #tpu.dot_dimension_numbers<[1], [0], [0], [1], [0, 0, 1, 1], [], []>} : vector<512x128xbf16>, vector<128x32xbf16>, vector<512x32xf32> -> vector<512x32xf32>
    %c0_5 = arith.constant 0 : index
    %c0_6 = arith.constant 0 : index
    %5 = vector.load %arg3[%c0_5, %c0_6] : memref<1x32xf32, #tpu.memory_space<vmem>>, vector<1x32xf32>
    %6 = vector.broadcast %5 : vector<1x32xf32> to vector<512x32xf32>
    %7 = arith.addf %4, %6 : vector<512x32xf32>
    %cst_7 = arith.constant 0.000000e+00 : f32
    %8 = vector.broadcast %cst_7 : f32 to vector<512x32xf32>
    %9 = arith.maximumf %7, %8 : vector<512x32xf32>
    %10 = arith.truncf %9 : vector<512x32xf32> to vector<512x32xbf16>
    %c0_8 = arith.constant 0 : index
    %c0_9 = arith.constant 0 : index
    %c0_10 = arith.constant 0 : index
    %11 = vector.load %arg4[%c0_8, %c0_9, %c0_10] : memref<1x512x32xbf16, #tpu.memory_space<vmem>>, vector<1x512x32xbf16>
    %12 = vector.shape_cast %11 : vector<1x512x32xbf16> to vector<512x32xbf16>
    %13 = vector.shape_cast %10 : vector<512x32xbf16> to vector<1x512x32xbf16>
    tpu.vector_store %arg4[%c0_8, %c0_9, %c0_10], %13 {strides = array<i32>} : memref<1x512x32xbf16, #tpu.memory_space<vmem>>, vector<1x512x32xbf16>,
    return
  }
  func.func @transform_0(%arg0: i32) -> (i32, i32, i32) {
    %c0_i32 = arith.constant 0 : i32
    %c0_i32_0 = arith.constant 0 : i32
    %c0_i32_1 = arith.constant 0 : i32
    return %arg0, %c0_i32, %c0_i32_0 : i32, i32, i32
  }
  func.func @transform_1(%arg0: i32) -> (i32, i32, i32) {
    %c0_i32 = arith.constant 0 : i32
    %c0_i32_0 = arith.constant 0 : i32
    %c0_i32_1 = arith.constant 0 : i32
    return %arg0, %c0_i32, %c0_i32_0 : i32, i32, i32
  }
  func.func @transform_2(%arg0: i32) -> (i32, i32) {
    %c0_i32 = arith.constant 0 : i32
    %c0_i32_0 = arith.constant 0 : i32
    %c0_i32_1 = arith.constant 0 : i32
    return %c0_i32, %c0_i32_0 : i32, i32
  }
  func.func @transform_3(%arg0: i32) -> (i32, i32, i32) {
    %c0_i32 = arith.constant 0 : i32
    %c0_i32_0 = arith.constant 0 : i32
    %c0_i32_1 = arith.constant 0 : i32
    return %arg0, %c0_i32, %c0_i32_0 : i32, i32, i32
  }
}

module attributes {stable_mosaic.version = 11 : i64} {
  func.func @_final_fused_kernel(%arg0: i32, %arg1: i32, %arg2: memref<1x1024x128xbf16, #tpu.memory_space<vmem>>, %arg3: memref<1x128x32xbf16, #tpu.memory_space<vmem>>, %arg4: memref<1x32xf32, #tpu.memory_space<vmem>>, %arg5: memref<32x8xbf16, #tpu.memory_space<vmem>>, %arg6: memref<1x8xf32, #tpu.memory_space<vmem>>, %arg7: memref<1x1024x8xbf16, #tpu.memory_space<vmem>>, %arg8: memref<1x128x1024xbf16, #tpu.memory_space<vmem>>, %arg9: memref<128x1xf32, #tpu.memory_space<vmem>>, %arg10: memref<1x128x8xf32, #tpu.memory_space<vmem>>, %arg11: memref<128x8xf32, #tpu.memory_space<vmem>>) attributes {dimension_semantics = [#tpu.dimension_semantics<parallel>, #tpu.dimension_semantics<arbitrary>], iteration_bounds = array<i64: 2, 4>, scalar_prefetch = 0 : i64, scratch_operands = 1 : i64, tpu.core_type = #tpu.core_type<tc>, window_params = [{transform_indices = @transform_0, window_bounds = array<i64: 1, 1024, 128>}, {transform_indices = @transform_1, window_bounds = array<i64: 1, 128, 32>}, {pipeline_mode = #tpu.pipeline_mode<synchronous>, transform_indices = @transform_2, window_bounds = array<i64: 1, 32>}, {pipeline_mode = #tpu.pipeline_mode<synchronous>, transform_indices = @transform_3, window_bounds = array<i64: 32, 8>}, {pipeline_mode = #tpu.pipeline_mode<synchronous>, transform_indices = @transform_4, window_bounds = array<i64: 1, 8>}, {transform_indices = @transform_5, window_bounds = array<i64: 1, 1024, 8>}, {transform_indices = @transform_6, window_bounds = array<i64: 1, 128, 1024>}, {pipeline_mode = #tpu.pipeline_mode<synchronous>, transform_indices = @transform_7, window_bounds = array<i64: 128, 1>}, {transform_indices = @transform_8, window_bounds = array<i64: 1, 128, 8>}]} {
    %c0_i32 = arith.constant 0 : i32
    %0 = arith.cmpi eq, %arg1, %c0_i32 : i32
    %1 = arith.extui %0 : i1 to i32
    %c0_i32_0 = arith.constant 0 : i32
    %2 = arith.cmpi ne, %1, %c0_i32_0 : i32
    scf.if %2 {
      %cst_26 = arith.constant 0.000000e+00 : f32
      %33 = vector.broadcast %cst_26 : f32 to vector<128x8xf32>
      %c0_27 = arith.constant 0 : index
      %c0_28 = arith.constant 0 : index
      %34 = vector.load %arg11[%c0_27, %c0_28] : memref<128x8xf32, #tpu.memory_space<vmem>>, vector<128x8xf32>
      tpu.vector_store %arg11[%c0_27, %c0_28], %33 {strides = array<i32>} : memref<128x8xf32, #tpu.memory_space<vmem>>, vector<128x8xf32>,
    } else {
    }
    %c0 = arith.constant 0 : index
    %c0_1 = arith.constant 0 : index
    %c0_2 = arith.constant 0 : index
    %3 = vector.load %arg2[%c0, %c0_1, %c0_2] : memref<1x1024x128xbf16, #tpu.memory_space<vmem>>, vector<1x1024x128xbf16>
    %4 = vector.shape_cast %3 : vector<1x1024x128xbf16> to vector<1024x128xbf16>
    %c0_3 = arith.constant 0 : index
    %c0_4 = arith.constant 0 : index
    %c0_5 = arith.constant 0 : index
    %5 = vector.load %arg3[%c0_3, %c0_4, %c0_5] : memref<1x128x32xbf16, #tpu.memory_space<vmem>>, vector<1x128x32xbf16>
    %6 = vector.shape_cast %5 : vector<1x128x32xbf16> to vector<128x32xbf16>
    %cst = arith.constant dense<0.000000e+00> : vector<1024x32xf32>
    %7 = tpu.matmul %4, %6, %cst {dimension_numbers = #tpu.dot_dimension_numbers<[1], [0], [0], [1], [0, 0, 1, 1], [], []>} : vector<1024x128xbf16>, vector<128x32xbf16>, vector<1024x32xf32> -> vector<1024x32xf32>
    %c0_6 = arith.constant 0 : index
    %c0_7 = arith.constant 0 : index
    %8 = vector.load %arg4[%c0_6, %c0_7] : memref<1x32xf32, #tpu.memory_space<vmem>>, vector<1x32xf32>
    %9 = vector.broadcast %8 : vector<1x32xf32> to vector<1024x32xf32>
    %10 = arith.addf %7, %9 : vector<1024x32xf32>
    %cst_8 = arith.constant 0.000000e+00 : f32
    %11 = vector.broadcast %cst_8 : f32 to vector<1024x32xf32>
    %12 = arith.maximumf %10, %11 : vector<1024x32xf32>
    %13 = arith.truncf %12 : vector<1024x32xf32> to vector<1024x32xbf16>
    %c0_9 = arith.constant 0 : index
    %c0_10 = arith.constant 0 : index
    %14 = vector.load %arg5[%c0_9, %c0_10] : memref<32x8xbf16, #tpu.memory_space<vmem>>, vector<32x8xbf16>
    %cst_11 = arith.constant dense<0.000000e+00> : vector<1024x8xf32>
    %15 = tpu.matmul %13, %14, %cst_11 {dimension_numbers = #tpu.dot_dimension_numbers<[1], [0], [0], [1], [0, 0, 1, 1], [], []>} : vector<1024x32xbf16>, vector<32x8xbf16>, vector<1024x8xf32> -> vector<1024x8xf32>
    %c0_12 = arith.constant 0 : index
    %c0_13 = arith.constant 0 : index
    %16 = vector.load %arg6[%c0_12, %c0_13] : memref<1x8xf32, #tpu.memory_space<vmem>>, vector<1x8xf32>
    %17 = vector.broadcast %16 : vector<1x8xf32> to vector<1024x8xf32>
    %18 = arith.addf %15, %17 : vector<1024x8xf32>
    %c0_14 = arith.constant 0 : index
    %c0_15 = arith.constant 0 : index
    %c0_16 = arith.constant 0 : index
    %19 = vector.load %arg7[%c0_14, %c0_15, %c0_16] : memref<1x1024x8xbf16, #tpu.memory_space<vmem>>, vector<1x1024x8xbf16>
    %20 = vector.shape_cast %19 : vector<1x1024x8xbf16> to vector<1024x8xbf16>
    %21 = arith.extf %20 : vector<1024x8xbf16> to vector<1024x8xf32>
    %22 = arith.mulf %18, %21 : vector<1024x8xf32>
    %23 = arith.truncf %22 : vector<1024x8xf32> to vector<1024x8xbf16>
    %c0_17 = arith.constant 0 : index
    %c0_18 = arith.constant 0 : index
    %24 = vector.load %arg11[%c0_17, %c0_18] : memref<128x8xf32, #tpu.memory_space<vmem>>, vector<128x8xf32>
    %c0_19 = arith.constant 0 : index
    %c0_20 = arith.constant 0 : index
    %c0_21 = arith.constant 0 : index
    %25 = vector.load %arg8[%c0_19, %c0_20, %c0_21] : memref<1x128x1024xbf16, #tpu.memory_space<vmem>>, vector<1x128x1024xbf16>
    %26 = vector.shape_cast %25 : vector<1x128x1024xbf16> to vector<128x1024xbf16>
    %cst_22 = arith.constant dense<0.000000e+00> : vector<128x8xf32>
    %27 = tpu.matmul %26, %23, %cst_22 {dimension_numbers = #tpu.dot_dimension_numbers<[1], [0], [0], [1], [0, 0, 1, 1], [], []>} : vector<128x1024xbf16>, vector<1024x8xbf16>, vector<128x8xf32> -> vector<128x8xf32>
    %28 = arith.addf %24, %27 : vector<128x8xf32>
    %c0_23 = arith.constant 0 : index
    %c0_24 = arith.constant 0 : index
    %29 = vector.load %arg11[%c0_23, %c0_24] : memref<128x8xf32, #tpu.memory_space<vmem>>, vector<128x8xf32>
    tpu.vector_store %arg11[%c0_23, %c0_24], %28 {strides = array<i32>} : memref<128x8xf32, #tpu.memory_space<vmem>>, vector<128x8xf32>,
    %c3_i32 = arith.constant 3 : i32
    %30 = arith.cmpi eq, %arg1, %c3_i32 : i32
    %31 = arith.extui %30 : i1 to i32
    %c0_i32_25 = arith.constant 0 : i32
    %32 = arith.cmpi ne, %31, %c0_i32_25 : i32
    scf.if %32 {
      %c0_26 = arith.constant 0 : index
      %c0_27 = arith.constant 0 : index
      %33 = vector.load %arg11[%c0_26, %c0_27] : memref<128x8xf32, #tpu.memory_space<vmem>>, vector<128x8xf32>
      %c0_28 = arith.constant 0 : index
      %c0_29 = arith.constant 0 : index
      %34 = vector.load %arg9[%c0_28, %c0_29] : memref<128x1xf32, #tpu.memory_space<vmem>>, vector<128x1xf32>
      %35 = vector.broadcast %34 : vector<128x1xf32> to vector<128x8xf32>
      %36 = arith.addf %33, %35 : vector<128x8xf32>
      %c0_30 = arith.constant 0 : index
      %c0_31 = arith.constant 0 : index
      %c0_32 = arith.constant 0 : index
      %37 = vector.load %arg10[%c0_30, %c0_31, %c0_32] : memref<1x128x8xf32, #tpu.memory_space<vmem>>, vector<1x128x8xf32>
      %38 = vector.shape_cast %37 : vector<1x128x8xf32> to vector<128x8xf32>
      %39 = vector.shape_cast %36 : vector<128x8xf32> to vector<1x128x8xf32>
      tpu.vector_store %arg10[%c0_30, %c0_31, %c0_32], %39 {strides = array<i32>} : memref<1x128x8xf32, #tpu.memory_space<vmem>>, vector<1x128x8xf32>,
    } else {
    }
    return
  }
  func.func @transform_0(%arg0: i32, %arg1: i32) -> (i32, i32, i32) {
    %c0_i32 = arith.constant 0 : i32
    %c0_i32_0 = arith.constant 0 : i32
    return %arg1, %arg0, %c0_i32 : i32, i32, i32
  }
  func.func @transform_1(%arg0: i32, %arg1: i32) -> (i32, i32, i32) {
    %c0_i32 = arith.constant 0 : i32
    %c0_i32_0 = arith.constant 0 : i32
    %c0_i32_1 = arith.constant 0 : i32
    return %arg1, %c0_i32, %c0_i32_0 : i32, i32, i32
  }
  func.func @transform_2(%arg0: i32, %arg1: i32) -> (i32, i32) {
    %c0_i32 = arith.constant 0 : i32
    %c0_i32_0 = arith.constant 0 : i32
    %c0_i32_1 = arith.constant 0 : i32
    return %c0_i32, %c0_i32_0 : i32, i32
  }
  func.func @transform_3(%arg0: i32, %arg1: i32) -> (i32, i32) {
    %c0_i32 = arith.constant 0 : i32
    %c0_i32_0 = arith.constant 0 : i32
    %c0_i32_1 = arith.constant 0 : i32
    return %c0_i32, %c0_i32_0 : i32, i32
  }
  func.func @transform_4(%arg0: i32, %arg1: i32) -> (i32, i32) {
    %c0_i32 = arith.constant 0 : i32
    %c0_i32_0 = arith.constant 0 : i32
    %c0_i32_1 = arith.constant 0 : i32
    return %c0_i32, %c0_i32_0 : i32, i32
  }
  func.func @transform_5(%arg0: i32, %arg1: i32) -> (i32, i32, i32) {
    %c0_i32 = arith.constant 0 : i32
    %c0_i32_0 = arith.constant 0 : i32
    return %arg1, %arg0, %c0_i32 : i32, i32, i32
  }
  func.func @transform_6(%arg0: i32, %arg1: i32) -> (i32, i32, i32) {
    %c0_i32 = arith.constant 0 : i32
    %c0_i32_0 = arith.constant 0 : i32
    %c0_i32_1 = arith.constant 0 : i32
    return %arg1, %c0_i32, %c0_i32_0 : i32, i32, i32
  }
  func.func @transform_7(%arg0: i32, %arg1: i32) -> (i32, i32) {
    %c0_i32 = arith.constant 0 : i32
    %c0_i32_0 = arith.constant 0 : i32
    %c0_i32_1 = arith.constant 0 : i32
    return %c0_i32, %c0_i32_0 : i32, i32
  }
  func.func @transform_8(%arg0: i32, %arg1: i32) -> (i32, i32, i32) {
    %c0_i32 = arith.constant 0 : i32
    %c0_i32_0 = arith.constant 0 : i32
    %c0_i32_1 = arith.constant 0 : i32
    return %arg0, %c0_i32, %c0_i32_0 : i32, i32, i32
  }
}

</mosaic_0001>

<bundles_post_ra>
// kernel: topdown_feature_head_forward.6
= control target key start
LH: loop header
LB: loop body
LE: loop exit
PB: predicated region body
PF: predicated region fallthrough
CT: control target
= control target key end

     0   :  { %s2929_s12 = smov 0   ;;  %s3488_s0 = inlined_call_operand.vmem [shape: bf16[2048,36], index: 0, kind: input, shape index: {}]   ;;  %s3489_s1 = inlined_call_operand.vmem [shape: bf16[36,8], index: 1, kind: input, shape index: {}]   ;;  %s3490_s2 = inlined_call_operand.vmem [shape: f32[1,8], index: 2, kind: input, shape index: {}]   ;;  %s3491_s3 = inlined_call_operand.vmem [shape: bf16[2048,8], index: 3, kind: output, shape index: {}]  }
   0x1 LB: > { %s2217_s13 = sadd.s32 4294967295, %s2907_s12   ;;  %p2221_p0 = scmp.ge.s32.totalorder %s2907_s12, 1  ;;  %s2907_s12 = sphi %s2929_s12, %s13_s12  }
   0x2   : > { %p138_p1 = scmp.lt.s32.totalorder %s2907_s12, 3 }
   0x4   : > { %p139_p2 = pnand %p2221_p0, %p138_p1 }
   0x5   : > { %v2833_v0 = vld [vmem:[%s3489_s1] sm:$0xff] (!%p139_p2)   ;;  %v2834_v1 = vld [vmem:[%s3489_s1 + $0x8] sm:$0xff] (!%p139_p2)   ;;  %s2222_s18 = sshll.u32 (!%p139_p2), %s2217_s13, 7  ;;  %v2835_v2 = vld [vmem:[%s3489_s1 + $0x10] ss:$0 sps:$4 sm:$0x33] (!%p139_p2)  }
   0x6   : > { %142 = sbr.rel (%p139_p2) target bundleno = 361 (0x169), region = 32  ;;  %2683 = vmatprep.subr.bf16.mxu0 (!%p139_p2), %v2833_v0  ;;  %2817 = vmatprep.subr.bf16.mxu1 (!%p139_p2), %v2833_v0  ;;  %p163_p3 = scmp.lt.s32.totalorder (!%p139_p2), %s2222_s18, 255  ;;  %vm843_vm0 = vcmask (!%p139_p2), 1041408   ;;  %vm650_vm1 = vcmask (!%p139_p2), 293888   ;;  %vm2032_vm2 = vcmask (!%p139_p2), 60416  }
   0x7   : > { %2684 = vmatpush3.bf16.msra.mxu0 (!%p139_p2), %v2833_v0  ;;  %2820 = vmatpush3.bf16.msra.mxu1 (!%p139_p2), %v2833_v0  ;;  %v845_v3 = vsel (!%p139_p2), %vm843_vm0, %v2835_v2, 0 }
   0x8   : > { %2685 = vmatprep.subr.bf16.mxu0 (!%p139_p2), %v2834_v1  ;;  %2818 = vmatprep.subr.bf16.mxu1 (!%p139_p2), %v2834_v1 }
   0xb   : > { %2686 = vmatpush3.bf16.msra.mxu0 (!%p139_p2), %v2834_v1  ;;  %2821 = vmatpush3.bf16.msra.mxu1 (!%p139_p2), %v2834_v1 }
   0xc   : > { %2823 = vmatprep.subr.msk.bf16.mxu0 (!%p139_p2), %vm843_vm0, %v2835_v2  ;;  %2824 = vmatprep.subr.msk.bf16.mxu1 (!%p139_p2), %vm843_vm0, %v2835_v2 }
   0xd   : > { %s3493_s18 = smov (!%p163_p3, %s2222_s18), 255 }
   0xe   : > { %s2223_s21 = sshll.u32 %s3493_s18, 2 }
   0xf   : > { %s2954_s24 = scalar_lea.vmem %s3488_s0, %s2223_s21  ;;  %2688 = vmatpush3.bf16.msra.mxu0 %v845_v3  ;;  %2822 = vmatpush3.bf16.msra.mxu1 %v845_v3  ;;  %s3100_s29 = scalar_lea.vmem %s3491_s3, %s2223_s21 }
  0x10   : > { %v2836_v4 = vld [vmem:[%s2954_s24] sm:$0xff]   ;;  %v2838_v6 = vld [vmem:[%s2954_s24 + $0x8] sm:$0xff]   ;;  %v2840_v8 = vld [vmem:[%s2954_s24 + $0x10] sm:$0xff]  }
  0x11   : > { %v2837_v5 = vld [vmem:[%s2954_s24 + $0x100] sm:$0xff]   ;;  %2689 = vmatprep.mubr.msk.bf16.mxu0 %vm650_vm1, %v2836_v4  ;;  %v2839_v7 = vld [vmem:[%s2954_s24 + $0x108] sm:$0xff]   ;;  %v2841_v9 = vld [vmem:[%s2954_s24 + $0x110] sm:$0xff]  }
  0x12   : > { %2753 = vmatprep.mubr.msk.bf16.mxu1 %vm650_vm1, %v2837_v5  ;;  %2690 = vmatmul.mubr.msk.bf16.vlgmr.msra.gmra.mrb[0].mxu0 %vm650_vm1, %v2838_v6  ;;  %v2842_v10 = vld [vmem:[%s2954_s24 + $0x18] sm:$0xff]   ;;  %v2844_v12 = vld [vmem:[%s2954_s24 + $0x20] sm:$0xff]   ;;  %v2846_v14 = vld [vmem:[%s2954_s24 + $0x28] sm:$0xff]  }
  0x13   : > { %2754 = vmatmul.mubr.msk.bf16.vlgmr.msra.gmra.mrb[0].mxu1 %vm650_vm1, %v2839_v7  ;;  %2693 = vmatprep.mubr.msk.bf16.mxu0 %vm650_vm1, %v2840_v8  ;;  %v2843_v11 = vld [vmem:[%s2954_s24 + $0x118] sm:$0xff]   ;;  %v2845_v13 = vld [vmem:[%s2954_s24 + $0x120] sm:$0xff]   ;;  %v2847_v15 = vld [vmem:[%s2954_s24 + $0x128] sm:$0xff]  }
  0x14   : > { %2757 = vmatprep.mubr.msk.bf16.mxu1 %vm650_vm1, %v2841_v9  ;;  %v2848_v16 = vld [vmem:[%s2954_s24 + $0x30] sm:$0xff]   ;;  %v2850_v18 = vld [vmem:[%s2954_s24 + $0x38] sm:$0xff]   ;;  %v2852_v20 = vld [vmem:[%s2954_s24 + $0x40] sm:$0xff]  }
  0x15   : > { %v2849_v17 = vld [vmem:[%s2954_s24 + $0x130] sm:$0xff]   ;;  %v2851_v19 = vld [vmem:[%s2954_s24 + $0x138] sm:$0xff]   ;;  %v2853_v21 = vld [vmem:[%s2954_s24 + $0x140] sm:$0xff]  }
  0x16   : > { %v2854_v22 = vld [vmem:[%s2954_s24 + $0x48] sm:$0xff]   ;;  %v2856_v24 = vld [vmem:[%s2954_s24 + $0x50] sm:$0xff]   ;;  %v2858_v26 = vld [vmem:[%s2954_s24 + $0x58] sm:$0xff]  }
  0x17   : > { %v2855_v23 = vld [vmem:[%s2954_s24 + $0x148] sm:$0xff]   ;;  %v2857_v25 = vld [vmem:[%s2954_s24 + $0x150] sm:$0xff]   ;;  %v2859_v27 = vld [vmem:[%s2954_s24 + $0x158] sm:$0xff]  }
  0x18   : > { %v2860_v28 = vld [vmem:[%s2954_s24 + $0x60] sm:$0xff]   ;;  %v2862_v30 = vld [vmem:[%s2954_s24 + $0x68] sm:$0xff]   ;;  %v2864_v32 = vld [vmem:[%s2954_s24 + $0x70] sm:$0xff]  }
  0x19   : > { %v2861_v29 = vld [vmem:[%s2954_s24 + $0x160] sm:$0xff]   ;;  %v2863_v31 = vld [vmem:[%s2954_s24 + $0x168] sm:$0xff]   ;;  %v2865_v33 = vld [vmem:[%s2954_s24 + $0x170] sm:$0xff]  }
  0x1a   : > { %2694 = vmatmul.mubr.msk.bf16.gmra.mrb[4].mxu0 %vm650_vm1, %v2842_v10  ;;  %v2866_v34 = vld [vmem:[%s2954_s24 + $0x78] sm:$0xff]   ;;  %v2868_v36 = vld [vmem:[%s2954_s24 + $0x80] sm:$0xff]   ;;  %v2870_v38 = vld [vmem:[%s2954_s24 + $0x88] sm:$0xff]  }
  0x1b   : > { %2758 = vmatmul.mubr.msk.bf16.gmra.mrb[4].mxu1 %vm650_vm1, %v2843_v11  ;;  %2697 = vmatprep.mubr.msk.bf16.mxu0 %vm650_vm1, %v2844_v12  ;;  %v2867_v35 = vld [vmem:[%s2954_s24 + $0x178] sm:$0xff]   ;;  %v2869_v37 = vld [vmem:[%s2954_s24 + $0x180] sm:$0xff]   ;;  %v2871_v39 = vld [vmem:[%s2954_s24 + $0x188] sm:$0xff]  }
  0x1c   : > { %2761 = vmatprep.mubr.msk.bf16.mxu1 %vm650_vm1, %v2845_v13  ;;  %v2872_v40 = vld [vmem:[%s2954_s24 + $0x90] sm:$0xff]   ;;  %v2874_v42 = vld [vmem:[%s2954_s24 + $0x98] sm:$0xff]   ;;  %v2876_v44 = vld [vmem:[%s2954_s24 + $0xa0] sm:$0xff]  }
  0x1d   : > { %v2873_v41 = vld [vmem:[%s2954_s24 + $0x190] sm:$0xff]   ;;  %v2875_v43 = vld [vmem:[%s2954_s24 + $0x198] sm:$0xff]   ;;  %v2877_v45 = vld [vmem:[%s2954_s24 + $0x1a0] sm:$0xff]  }
  0x1e   : > { %v2878_v46 = vld [vmem:[%s2954_s24 + $0xa8] sm:$0xff]   ;;  %v2880_v48 = vld [vmem:[%s2954_s24 + $0xb0] sm:$0xff]   ;;  %v2882_v50 = vld [vmem:[%s2954_s24 + $0xb8] sm:$0xff]  }
  0x1f   : > { %v2879_v47 = vld [vmem:[%s2954_s24 + $0x1a8] sm:$0xff]   ;;  %v2881_v49 = vld [vmem:[%s2954_s24 + $0x1b0] sm:$0xff]   ;;  %v2883_v51 = vld [vmem:[%s2954_s24 + $0x1b8] sm:$0xff]  }
  0x20   : > { %v2884_v52 = vld [vmem:[%s2954_s24 + $0xc0] sm:$0xff]   ;;  %v2886_v54 = vld [vmem:[%s2954_s24 + $0xc8] sm:$0xff]   ;;  %v2888_v56 = vld [vmem:[%s2954_s24 + $0xd0] sm:$0xff]  }
  0x21   : > { %v2885_v53 = vld [vmem:[%s2954_s24 + $0x1c0] sm:$0xff]   ;;  %v2887_v55 = vld [vmem:[%s2954_s24 + $0x1c8] sm:$0xff]   ;;  %v2889_v57 = vld [vmem:[%s2954_s24 + $0x1d0] sm:$0xff]  }
  0x22   : > { %2698 = vmatmul.mubr.msk.bf16.gmra.mrb[8].mxu0 %vm650_vm1, %v2846_v14  ;;  %v2890_v58 = vld [vmem:[%s2954_s24 + $0xd8] sm:$0xff]   ;;  %v2892_v60 = vld [vmem:[%s2954_s24 + $0xe0] sm:$0xff]   ;;  %v2894_v62 = vld [vmem:[%s2954_s24 + $0xe8] sm:$0xff]  }
  0x23   : > { %2762 = vmatmul.mubr.msk.bf16.gmra.mrb[8].mxu1 %vm650_vm1, %v2847_v15  ;;  %2701 = vmatprep.mubr.msk.bf16.mxu0 %vm650_vm1, %v2848_v16  ;;  %v2891_v59 = vld [vmem:[%s2954_s24 + $0x1d8] sm:$0xff]   ;;  %v2893_v61 = vld [vmem:[%s2954_s24 + $0x1e0] sm:$0xff]   ;;  %v2895_v63 = vld [vmem:[%s2954_s24 + $0x1e8] sm:$0xff]  }
  0x24   : > { %2765 = vmatprep.mubr.msk.bf16.mxu1 %vm650_vm1, %v2849_v17  ;;  %v2896_v0 = vld [vmem:[%s2954_s24 + $0xf0] sm:$0xff]   ;;  %v2898_v2 = vld [vmem:[%s2954_s24 + $0xf8] sm:$0xff]   ;;  %v3087_v4 = vld [vmem:[%s3490_s2] ss:$0 sm:$0xff] }
  0x25   : > { %v2897_v1 = vld [vmem:[%s2954_s24 + $0x1f0] sm:$0xff]   ;;  %v2899_v3 = vld [vmem:[%s2954_s24 + $0x1f8] sm:$0xff]  }
  0x2a   : > { %2702 = vmatmul.mubr.msk.bf16.gmra.mrb[12].mxu0 %vm650_vm1, %v2850_v18 }
  0x2b   : > { %2766 = vmatmul.mubr.msk.bf16.gmra.mrb[12].mxu1 %vm650_vm1, %v2851_v19  ;;  %2705 = vmatprep.mubr.msk.bf16.mxu0 %vm650_vm1, %v2852_v20 }
  0x2c   : > { %2769 = vmatprep.mubr.msk.bf16.mxu1 %vm650_vm1, %v2853_v21 }
  0x32   : > { %2706 = vmatmul.mubr.msk.bf16.gmra.mrb[16].mxu0 %vm650_vm1, %v2854_v22 }
  0x33   : > { %2770 = vmatmul.mubr.msk.bf16.gmra.mrb[16].mxu1 %vm650_vm1, %v2855_v23  ;;  %2709 = vmatprep.mubr.msk.bf16.mxu0 %vm650_vm1, %v2856_v24 }
  0x34   : > { %2773 = vmatprep.mubr.msk.bf16.mxu1 %vm650_vm1, %v2857_v25 }
  0x3a   : > { %2710 = vmatmul.mubr.msk.bf16.gmra.mrb[20].mxu0 %vm650_vm1, %v2858_v26 }
  0x3b   : > { %2774 = vmatmul.mubr.msk.bf16.gmra.mrb[20].mxu1 %vm650_vm1, %v2859_v27  ;;  %2713 = vmatprep.mubr.msk.bf16.mxu0 %vm650_vm1, %v2860_v28 }
  0x3c   : > { %2777 = vmatprep.mubr.msk.bf16.mxu1 %vm650_vm1, %v2861_v29 }
  0x42   : > { %2714 = vmatmul.mubr.msk.bf16.gmra.mrb[24].mxu0 %vm650_vm1, %v2862_v30 }
  0x43   : > { %2778 = vmatmul.mubr.msk.bf16.gmra.mrb[24].mxu1 %vm650_vm1, %v2863_v31  ;;  %2717 = vmatprep.mubr.msk.bf16.mxu0 %vm650_vm1, %v2864_v32 }
  0x44   : > { %2781 = vmatprep.mubr.msk.bf16.mxu1 %vm650_vm1, %v2865_v33 }
  0x4a   : > { %2718 = vmatmul.mubr.msk.bf16.gmra.mrb[28].mxu0 %vm650_vm1, %v2866_v34 }
  0x4b   : > { %2782 = vmatmul.mubr.msk.bf16.gmra.mrb[28].mxu1 %vm650_vm1, %v2867_v35  ;;  %2721 = vmatprep.mubr.msk.bf16.mxu0 %vm650_vm1, %v2868_v36 }
  0x4c   : > { %2785 = vmatprep.mubr.msk.bf16.mxu1 %vm650_vm1, %v2869_v37 }
  0x52   : > { %2722 = vmatmul.mubr.msk.bf16.gmra.mrb[32].mxu0 %vm650_vm1, %v2870_v38 }
  0x53   : > { %2786 = vmatmul.mubr.msk.bf16.gmra.mrb[32].mxu1 %vm650_vm1, %v2871_v39  ;;  %2725 = vmatprep.mubr.msk.bf16.mxu0 %vm650_vm1, %v2872_v40 }
  0x54   : > { %2789 = vmatprep.mubr.msk.bf16.mxu1 %vm650_vm1, %v2873_v41 }
  0x5a   : > { %2726 = vmatmul.mubr.msk.bf16.gmra.mrb[36].mxu0 %vm650_vm1, %v2874_v42 }
  0x5b   : > { %2790 = vmatmul.mubr.msk.bf16.gmra.mrb[36].mxu1 %vm650_vm1, %v2875_v43  ;;  %2729 = vmatprep.mubr.msk.bf16.mxu0 %vm650_vm1, %v2876_v44 }
  0x5c   : > { %2793 = vmatprep.mubr.msk.bf16.mxu1 %vm650_vm1, %v2877_v45 }
  0x62   : > { %2730 = vmatmul.mubr.msk.bf16.gmra.mrb[40].mxu0 %vm650_vm1, %v2878_v46 }
  0x63   : > { %2794 = vmatmul.mubr.msk.bf16.gmra.mrb[40].mxu1 %vm650_vm1, %v2879_v47  ;;  %2733 = vmatprep.mubr.msk.bf16.mxu0 %vm650_vm1, %v2880_v48 }
  0x64   : > { %2797 = vmatprep.mubr.msk.bf16.mxu1 %vm650_vm1, %v2881_v49 }
  0x6a   : > { %2734 = vmatmul.mubr.msk.bf16.gmra.mrb[44].mxu0 %vm650_vm1, %v2882_v50 }
  0x6b   : > { %2798 = vmatmul.mubr.msk.bf16.gmra.mrb[44].mxu1 %vm650_vm1, %v2883_v51  ;;  %2737 = vmatprep.mubr.msk.bf16.mxu0 %vm650_vm1, %v2884_v52 }
  0x6c   : > { %2801 = vmatprep.mubr.msk.bf16.mxu1 %vm650_vm1, %v2885_v53 }
  0x72   : > { %2738 = vmatmul.mubr.msk.bf16.gmra.mrb[48].mxu0 %vm650_vm1, %v2886_v54 }
  0x73   : > { %2802 = vmatmul.mubr.msk.bf16.gmra.mrb[48].mxu1 %vm650_vm1, %v2887_v55  ;;  %2741 = vmatprep.mubr.msk.bf16.mxu0 %vm650_vm1, %v2888_v56 }
  0x74   : > { %2805 = vmatprep.mubr.msk.bf16.mxu1 %vm650_vm1, %v2889_v57 }
  0x7a   : > { %2742 = vmatmul.mubr.msk.bf16.gmra.mrb[52].mxu0 %vm650_vm1, %v2890_v58 }
  0x7b   : > { %2806 = vmatmul.mubr.msk.bf16.gmra.mrb[52].mxu1 %vm650_vm1, %v2891_v59  ;;  %2745 = vmatprep.mubr.msk.bf16.mxu0 %vm650_vm1, %v2892_v60 }
  0x7c   : > { %2809 = vmatprep.mubr.msk.bf16.mxu1 %vm650_vm1, %v2893_v61 }
  0x82   : > { %2746 = vmatmul.mubr.msk.bf16.gmra.mrb[56].mxu0 %vm650_vm1, %v2894_v62 }
  0x83   : > { %2810 = vmatmul.mubr.msk.bf16.gmra.mrb[56].mxu1 %vm650_vm1, %v2895_v63  ;;  %2749 = vmatprep.mubr.msk.bf16.mxu0 %vm650_vm1, %v2896_v0 }
  0x84   : > { %2813 = vmatprep.mubr.msk.bf16.mxu1 %vm650_vm1, %v2897_v1 }
  0x8a   : > { %2750 = vmatmul.mubr.msk.bf16.gmra.mrb[60].mxu0 %vm650_vm1, %v2898_v2 }
  0x8b   : > { %2814 = vmatmul.mubr.msk.bf16.gmra.mrb[60].mxu1 %vm650_vm1, %v2899_v3 }
  0xe5   : > { %v2691_v5 = vpop.f32.mrb[0].mxu0 }
  0xe6   : > { %v2755_v6 = vpop.f32.mrb[0].mxu1  ;;  %v890_v7 = vadd.f32 %v2691_v5, %v3087_v4  ;;  %v881_v9 = vpop.f32.mrb[1].mxu0 }
  0xe7   : > { %v1146_v8 = vadd.f32 %v2755_v6, %v3087_v4  ;;  %v1137_v10 = vpop.f32.mrb[1].mxu1  ;;  %v882_v11 = vadd.f32 %v3087_v4, %v881_v9  ;;  %v2692_v13 = vpop.f32.mrb[2].mxu0 }
  0xe8   : > { %v1138_v12 = vadd.f32 %v3087_v4, %v1137_v10  ;;  %v2756_v14 = vpop.f32.mrb[2].mxu1  ;;  %v1394_v15 = vmax.f32 %v890_v7, 0.0  ;;  %v893_v17 = vadd.f32 %v2692_v13, %v3087_v4  ;;  %v884_v19 = vpop.f32.mrb[3].mxu0 }
  0xe9   : > { %v1458_v16 = vmax.f32 %v1146_v8, 0.0  ;;  %v1149_v18 = vadd.f32 %v2756_v14, %v3087_v4  ;;  %v1140_v20 = vpop.f32.mrb[3].mxu1  ;;  %v1392_v21 = vmax.f32 %v882_v11, 0.0  ;;  %v885_v23 = vadd.f32 %v3087_v4, %v884_v19 }
  0xea   : > { %v1456_v22 = vmax.f32 %v1138_v12, 0.0  ;;  %v1141_v24 = vadd.f32 %v3087_v4, %v1140_v20  ;;  %v2490_v25 = vpack.c.bf16 %v1394_v15, %v1394_v15  ;;  %v1395_v27 = vmax.f32 %v893_v17, 0.0 }
  0xeb   : > { %v2554_v26 = vpack.c.bf16 %v1458_v16, %v1458_v16  ;;  %v1459_v28 = vmax.f32 %v1149_v18, 0.0  ;;  %v2488_v29 = vpack.c.bf16 %v1392_v21, %v1392_v21  ;;  %v1393_v31 = vmax.f32 %v885_v23, 0.0 }
  0xec   : > { %v2552_v30 = vpack.c.bf16 %v1456_v22, %v1456_v22  ;;  %v1457_v32 = vmax.f32 %v1141_v24, 0.0  ;;  %2035 = vst.msk [vmem:[%s3100_s29 + $0x8] sm:$0xf] %vm2032_vm2, %v2490_v25  ;;  %v2491_v33 = vpack.c.bf16 %v1395_v27, %v1395_v27 }
  0xed   : > { %2099 = vst.msk [vmem:[%s3100_s29 + $0x108] sm:$0xf] %vm2032_vm2, %v2554_v26  ;;  %v2555_v34 = vpack.c.bf16 %v1459_v28, %v1459_v28  ;;  %2033 = vst.msk [vmem:[%s3100_s29] sm:$0xf] %vm2032_vm2, %v2488_v29  ;;  %v2489_v35 = vpack.c.bf16 %v1393_v31, %v1393_v31  ;;  %v2695_v37 = vpop.f32.mrb[4].mxu0 }
  0xee   : > { %2097 = vst.msk [vmem:[%s3100_s29 + $0x100] sm:$0xf] %vm2032_vm2, %v2552_v30  ;;  %v2553_v36 = vpack.c.bf16 %v1457_v32, %v1457_v32  ;;  %v2759_v38 = vpop.f32.mrb[4].mxu1  ;;  %2036 = vst.msk [vmem:[%s3100_s29 + $0xc] sm:$0xf] %vm2032_vm2, %v2491_v33  ;;  %v906_v39 = vadd.f32 %v2695_v37, %v3087_v4  ;;  %v897_v41 = vpop.f32.mrb[5].mxu0 }
  0xef   : > { %2100 = vst.msk [vmem:[%s3100_s29 + $0x10c] sm:$0xf] %vm2032_vm2, %v2555_v34  ;;  %v1162_v40 = vadd.f32 %v2759_v38, %v3087_v4  ;;  %v1153_v42 = vpop.f32.mrb[5].mxu1  ;;  %2034 = vst.msk [vmem:[%s3100_s29 + $0x4] sm:$0xf] %vm2032_vm2, %v2489_v35  ;;  %v898_v43 = vadd.f32 %v3087_v4, %v897_v41  ;;  %v2696_v45 = vpop.f32.mrb[6].mxu0 }
  0xf0   : > { %2098 = vst.msk [vmem:[%s3100_s29 + $0x104] sm:$0xf] %vm2032_vm2, %v2553_v36  ;;  %v1154_v44 = vadd.f32 %v3087_v4, %v1153_v42  ;;  %v2760_v46 = vpop.f32.mrb[6].mxu1  ;;  %v1398_v47 = vmax.f32 %v906_v39, 0.0  ;;  %v909_v49 = vadd.f32 %v2696_v45, %v3087_v4  ;;  %v900_v51 = vpop.f32.mrb[7].mxu0 }
  0xf1   : > { %v1462_v48 = vmax.f32 %v1162_v40, 0.0  ;;  %v1165_v50 = vadd.f32 %v2760_v46, %v3087_v4  ;;  %v1156_v52 = vpop.f32.mrb[7].mxu1  ;;  %v1396_v53 = vmax.f32 %v898_v43, 0.0  ;;  %v901_v55 = vadd.f32 %v3087_v4, %v900_v51 }
  0xf2   : > { %v1460_v54 = vmax.f32 %v1154_v44, 0.0  ;;  %v1157_v56 = vadd.f32 %v3087_v4, %v1156_v52  ;;  %v2494_v57 = vpack.c.bf16 %v1398_v47, %v1398_v47  ;;  %v1399_v59 = vmax.f32 %v909_v49, 0.0 }
  0xf3   : > { %v2558_v58 = vpack.c.bf16 %v1462_v48, %v1462_v48  ;;  %v1463_v60 = vmax.f32 %v1165_v50, 0.0  ;;  %v2492_v61 = vpack.c.bf16 %v1396_v53, %v1396_v53  ;;  %v1397_v63 = vmax.f32 %v901_v55, 0.0 }
  0xf4   : > { %v2556_v62 = vpack.c.bf16 %v1460_v54, %v1460_v54  ;;  %v1461_v0 = vmax.f32 %v1157_v56, 0.0  ;;  %2039 = vst.msk [vmem:[%s3100_s29 + $0x18] sm:$0xf] %vm2032_vm2, %v2494_v57  ;;  %v2495_v1 = vpack.c.bf16 %v1399_v59, %v1399_v59 }
  0xf5   : > { %2103 = vst.msk [vmem:[%s3100_s29 + $0x118] sm:$0xf] %vm2032_vm2, %v2558_v58  ;;  %v2559_v2 = vpack.c.bf16 %v1463_v60, %v1463_v60  ;;  %2037 = vst.msk [vmem:[%s3100_s29 + $0x10] sm:$0xf] %vm2032_vm2, %v2492_v61  ;;  %v2493_v3 = vpack.c.bf16 %v1397_v63, %v1397_v63  ;;  %v2699_v6 = vpop.f32.mrb[8].mxu0 }
  0xf6   : > { %2101 = vst.msk [vmem:[%s3100_s29 + $0x110] sm:$0xf] %vm2032_vm2, %v2556_v62  ;;  %v2557_v5 = vpack.c.bf16 %v1461_v0, %v1461_v0  ;;  %v2763_v7 = vpop.f32.mrb[8].mxu1  ;;  %2040 = vst.msk [vmem:[%s3100_s29 + $0x1c] sm:$0xf] %vm2032_vm2, %v2495_v1  ;;  %v922_v8 = vadd.f32 %v2699_v6, %v3087_v4  ;;  %v913_v10 = vpop.f32.mrb[9].mxu0 }
  0xf7   : > { %2104 = vst.msk [vmem:[%s3100_s29 + $0x11c] sm:$0xf] %vm2032_vm2, %v2559_v2  ;;  %v1178_v9 = vadd.f32 %v2763_v7, %v3087_v4  ;;  %v1169_v11 = vpop.f32.mrb[9].mxu1  ;;  %2038 = vst.msk [vmem:[%s3100_s29 + $0x14] sm:$0xf] %vm2032_vm2, %v2493_v3  ;;  %v914_v12 = vadd.f32 %v3087_v4, %v913_v10  ;;  %v2700_v14 = vpop.f32.mrb[10].mxu0 }
  0xf8   : > { %2102 = vst.msk [vmem:[%s3100_s29 + $0x114] sm:$0xf] %vm2032_vm2, %v2557_v5  ;;  %v1170_v13 = vadd.f32 %v3087_v4, %v1169_v11  ;;  %v2764_v15 = vpop.f32.mrb[10].mxu1  ;;  %v1402_v16 = vmax.f32 %v922_v8, 0.0  ;;  %v925_v18 = vadd.f32 %v2700_v14, %v3087_v4  ;;  %v916_v20 = vpop.f32.mrb[11].mxu0 }
  0xf9   : > { %v1466_v17 = vmax.f32 %v1178_v9, 0.0  ;;  %v1181_v19 = vadd.f32 %v2764_v15, %v3087_v4  ;;  %v1172_v21 = vpop.f32.mrb[11].mxu1  ;;  %v1400_v22 = vmax.f32 %v914_v12, 0.0  ;;  %v917_v24 = vadd.f32 %v3087_v4, %v916_v20 }
  0xfa   : > { %v1464_v23 = vmax.f32 %v1170_v13, 0.0  ;;  %v1173_v25 = vadd.f32 %v3087_v4, %v1172_v21  ;;  %v2498_v26 = vpack.c.bf16 %v1402_v16, %v1402_v16  ;;  %v1403_v28 = vmax.f32 %v925_v18, 0.0 }
  0xfb   : > { %v2562_v27 = vpack.c.bf16 %v1466_v17, %v1466_v17  ;;  %v1467_v29 = vmax.f32 %v1181_v19, 0.0  ;;  %v2496_v30 = vpack.c.bf16 %v1400_v22, %v1400_v22  ;;  %v1401_v32 = vmax.f32 %v917_v24, 0.0 }
  0xfc   : > { %v2560_v31 = vpack.c.bf16 %v1464_v23, %v1464_v23  ;;  %v1465_v33 = vmax.f32 %v1173_v25, 0.0  ;;  %2043 = vst.msk [vmem:[%s3100_s29 + $0x28] sm:$0xf] %vm2032_vm2, %v2498_v26  ;;  %v2499_v34 = vpack.c.bf16 %v1403_v28, %v1403_v28 }
  0xfd   : > { %2107 = vst.msk [vmem:[%s3100_s29 + $0x128] sm:$0xf] %vm2032_vm2, %v2562_v27  ;;  %v2563_v35 = vpack.c.bf16 %v1467_v29, %v1467_v29  ;;  %2041 = vst.msk [vmem:[%s3100_s29 + $0x20] sm:$0xf] %vm2032_vm2, %v2496_v30  ;;  %v2497_v36 = vpack.c.bf16 %v1401_v32, %v1401_v32  ;;  %v2703_v38 = vpop.f32.mrb[12].mxu0 }
  0xfe   : > { %2105 = vst.msk [vmem:[%s3100_s29 + $0x120] sm:$0xf] %vm2032_vm2, %v2560_v31  ;;  %v2561_v37 = vpack.c.bf16 %v1465_v33, %v1465_v33  ;;  %v2767_v39 = vpop.f32.mrb[12].mxu1  ;;  %2044 = vst.msk [vmem:[%s3100_s29 + $0x2c] sm:$0xf] %vm2032_vm2, %v2499_v34  ;;  %v938_v40 = vadd.f32 %v2703_v38, %v3087_v4  ;;  %v929_v42 = vpop.f32.mrb[13].mxu0 }
  0xff   : > { %2108 = vst.msk [vmem:[%s3100_s29 + $0x12c] sm:$0xf] %vm2032_vm2, %v2563_v35  ;;  %v1194_v41 = vadd.f32 %v2767_v39, %v3087_v4  ;;  %v1185_v43 = vpop.f32.mrb[13].mxu1  ;;  %2042 = vst.msk [vmem:[%s3100_s29 + $0x24] sm:$0xf] %vm2032_vm2, %v2497_v36  ;;  %v930_v44 = vadd.f32 %v3087_v4, %v929_v42  ;;  %v2704_v46 = vpop.f32.mrb[14].mxu0 }
 0x100   : > { %2106 = vst.msk [vmem:[%s3100_s29 + $0x124] sm:$0xf] %vm2032_vm2, %v2561_v37  ;;  %v1186_v45 = vadd.f32 %v3087_v4, %v1185_v43  ;;  %v2768_v47 = vpop.f32.mrb[14].mxu1  ;;  %v1406_v48 = vmax.f32 %v938_v40, 0.0  ;;  %v941_v50 = vadd.f32 %v2704_v46, %v3087_v4  ;;  %v932_v52 = vpop.f32.mrb[15].mxu0 }
 0x101   : > { %v1470_v49 = vmax.f32 %v1194_v41, 0.0  ;;  %v1197_v51 = vadd.f32 %v2768_v47, %v3087_v4  ;;  %v1188_v53 = vpop.f32.mrb[15].mxu1  ;;  %v1404_v54 = vmax.f32 %v930_v44, 0.0  ;;  %v933_v56 = vadd.f32 %v3087_v4, %v932_v52 }
 0x102   : > { %v1468_v55 = vmax.f32 %v1186_v45, 0.0  ;;  %v1189_v57 = vadd.f32 %v3087_v4, %v1188_v53  ;;  %v2502_v58 = vpack.c.bf16 %v1406_v48, %v1406_v48  ;;  %v1407_v60 = vmax.f32 %v941_v50, 0.0 }
 0x103   : > { %v2566_v59 = vpack.c.bf16 %v1470_v49, %v1470_v49  ;;  %v1471_v61 = vmax.f32 %v1197_v51, 0.0  ;;  %v2500_v62 = vpack.c.bf16 %v1404_v54, %v1404_v54  ;;  %v1405_v0 = vmax.f32 %v933_v56, 0.0 }
 0x104   : > { %v2564_v63 = vpack.c.bf16 %v1468_v55, %v1468_v55  ;;  %v1469_v1 = vmax.f32 %v1189_v57, 0.0  ;;  %2047 = vst.msk [vmem:[%s3100_s29 + $0x38] sm:$0xf] %vm2032_vm2, %v2502_v58  ;;  %v2503_v2 = vpack.c.bf16 %v1407_v60, %v1407_v60 }
 0x105   : > { %2111 = vst.msk [vmem:[%s3100_s29 + $0x138] sm:$0xf] %vm2032_vm2, %v2566_v59  ;;  %v2567_v3 = vpack.c.bf16 %v1471_v61, %v1471_v61  ;;  %2045 = vst.msk [vmem:[%s3100_s29 + $0x30] sm:$0xf] %vm2032_vm2, %v2500_v62  ;;  %v2501_v5 = vpack.c.bf16 %v1405_v0, %v1405_v0  ;;  %v2707_v7 = vpop.f32.mrb[16].mxu0 }
 0x106   : > { %2109 = vst.msk [vmem:[%s3100_s29 + $0x130] sm:$0xf] %vm2032_vm2, %v2564_v63  ;;  %v2565_v6 = vpack.c.bf16 %v1469_v1, %v1469_v1  ;;  %v2771_v8 = vpop.f32.mrb[16].mxu1  ;;  %2048 = vst.msk [vmem:[%s3100_s29 + $0x3c] sm:$0xf] %vm2032_vm2, %v2503_v2  ;;  %v954_v9 = vadd.f32 %v2707_v7, %v3087_v4  ;;  %v945_v11 = vpop.f32.mrb[17].mxu0 }
 0x107   : > { %2112 = vst.msk [vmem:[%s3100_s29 + $0x13c] sm:$0xf] %vm2032_vm2, %v2567_v3  ;;  %v1210_v10 = vadd.f32 %v2771_v8, %v3087_v4  ;;  %v1201_v12 = vpop.f32.mrb[17].mxu1  ;;  %2046 = vst.msk [vmem:[%s3100_s29 + $0x34] sm:$0xf] %vm2032_vm2, %v2501_v5  ;;  %v946_v13 = vadd.f32 %v3087_v4, %v945_v11  ;;  %v2708_v15 = vpop.f32.mrb[18].mxu0 }
 0x108   : > { %2110 = vst.msk [vmem:[%s3100_s29 + $0x134] sm:$0xf] %vm2032_vm2, %v2565_v6  ;;  %v1202_v14 = vadd.f32 %v3087_v4, %v1201_v12  ;;  %v2772_v16 = vpop.f32.mrb[18].mxu1  ;;  %v1410_v17 = vmax.f32 %v954_v9, 0.0  ;;  %v957_v19 = vadd.f32 %v2708_v15, %v3087_v4  ;;  %v948_v21 = vpop.f32.mrb[19].mxu0 }
 0x109   : > { %v1474_v18 = vmax.f32 %v1210_v10, 0.0  ;;  %v1213_v20 = vadd.f32 %v2772_v16, %v3087_v4  ;;  %v1204_v22 = vpop.f32.mrb[19].mxu1  ;;  %v1408_v23 = vmax.f32 %v946_v13, 0.0  ;;  %v949_v25 = vadd.f32 %v3087_v4, %v948_v21 }
 0x10a   : > { %v1472_v24 = vmax.f32 %v1202_v14, 0.0  ;;  %v1205_v26 = vadd.f32 %v3087_v4, %v1204_v22  ;;  %v2506_v27 = vpack.c.bf16 %v1410_v17, %v1410_v17  ;;  %v1411_v29 = vmax.f32 %v957_v19, 0.0 }
 0x10b   : > { %v2570_v28 = vpack.c.bf16 %v1474_v18, %v1474_v18  ;;  %v1475_v30 = vmax.f32 %v1213_v20, 0.0  ;;  %v2504_v31 = vpack.c.bf16 %v1408_v23, %v1408_v23  ;;  %v1409_v33 = vmax.f32 %v949_v25, 0.0 }
 0x10c   : > { %v2568_v32 = vpack.c.bf16 %v1472_v24, %v1472_v24  ;;  %v1473_v34 = vmax.f32 %v1205_v26, 0.0  ;;  %2051 = vst.msk [vmem:[%s3100_s29 + $0x48] sm:$0xf] %vm2032_vm2, %v2506_v27  ;;  %v2507_v35 = vpack.c.bf16 %v1411_v29, %v1411_v29 }
 0x10d   : > { %2115 = vst.msk [vmem:[%s3100_s29 + $0x148] sm:$0xf] %vm2032_vm2, %v2570_v28  ;;  %v2571_v36 = vpack.c.bf16 %v1475_v30, %v1475_v30  ;;  %2049 = vst.msk [vmem:[%s3100_s29 + $0x40] sm:$0xf] %vm2032_vm2, %v2504_v31  ;;  %v2505_v37 = vpack.c.bf16 %v1409_v33, %v1409_v33  ;;  %v2711_v39 = vpop.f32.mrb[20].mxu0 }
 0x10e   : > { %2113 = vst.msk [vmem:[%s3100_s29 + $0x140] sm:$0xf] %vm2032_vm2, %v2568_v32  ;;  %v2569_v38 = vpack.c.bf16 %v1473_v34, %v1473_v34  ;;  %v2775_v40 = vpop.f32.mrb[20].mxu1  ;;  %2052 = vst.msk [vmem:[%s3100_s29 + $0x4c] sm:$0xf] %vm2032_vm2, %v2507_v35  ;;  %v970_v41 = vadd.f32 %v2711_v39, %v3087_v4  ;;  %v961_v43 = vpop.f32.mrb[21].mxu0 }
 0x10f   : > { %2116 = vst.msk [vmem:[%s3100_s29 + $0x14c] sm:$0xf] %vm2032_vm2, %v2571_v36  ;;  %v1226_v42 = vadd.f32 %v2775_v40, %v3087_v4  ;;  %v1217_v44 = vpop.f32.mrb[21].mxu1  ;;  %2050 = vst.msk [vmem:[%s3100_s29 + $0x44] sm:$0xf] %vm2032_vm2, %v2505_v37  ;;  %v962_v45 = vadd.f32 %v3087_v4, %v961_v43  ;;  %v2712_v47 = vpop.f32.mrb[22].mxu0 }
 0x110   : > { %2114 = vst.msk [vmem:[%s3100_s29 + $0x144] sm:$0xf] %vm2032_vm2, %v2569_v38  ;;  %v1218_v46 = vadd.f32 %v3087_v4, %v1217_v44  ;;  %v2776_v48 = vpop.f32.mrb[22].mxu1  ;;  %v1414_v49 = vmax.f32 %v970_v41, 0.0  ;;  %v973_v51 = vadd.f32 %v2712_v47, %v3087_v4  ;;  %v964_v53 = vpop.f32.mrb[23].mxu0 }
 0x111   : > { %v1478_v50 = vmax.f32 %v1226_v42, 0.0  ;;  %v1229_v52 = vadd.f32 %v2776_v48, %v3087_v4  ;;  %v1220_v54 = vpop.f32.mrb[23].mxu1  ;;  %v1412_v55 = vmax.f32 %v962_v45, 0.0  ;;  %v965_v57 = vadd.f32 %v3087_v4, %v964_v53 }
 0x112   : > { %v1476_v56 = vmax.f32 %v1218_v46, 0.0  ;;  %v1221_v58 = vadd.f32 %v3087_v4, %v1220_v54  ;;  %v2510_v59 = vpack.c.bf16 %v1414_v49, %v1414_v49  ;;  %v1415_v61 = vmax.f32 %v973_v51, 0.0 }
 0x113   : > { %v2574_v60 = vpack.c.bf16 %v1478_v50, %v1478_v50  ;;  %v1479_v62 = vmax.f32 %v1229_v52, 0.0  ;;  %v2508_v63 = vpack.c.bf16 %v1412_v55, %v1412_v55  ;;  %v1413_v1 = vmax.f32 %v965_v57, 0.0 }
 0x114   : > { %v2572_v0 = vpack.c.bf16 %v1476_v56, %v1476_v56  ;;  %v1477_v2 = vmax.f32 %v1221_v58, 0.0  ;;  %2055 = vst.msk [vmem:[%s3100_s29 + $0x58] sm:$0xf] %vm2032_vm2, %v2510_v59  ;;  %v2511_v3 = vpack.c.bf16 %v1415_v61, %v1415_v61 }
 0x115   : > { %2119 = vst.msk [vmem:[%s3100_s29 + $0x158] sm:$0xf] %vm2032_vm2, %v2574_v60  ;;  %v2575_v5 = vpack.c.bf16 %v1479_v62, %v1479_v62  ;;  %2053 = vst.msk [vmem:[%s3100_s29 + $0x50] sm:$0xf] %vm2032_vm2, %v2508_v63  ;;  %v2509_v6 = vpack.c.bf16 %v1413_v1, %v1413_v1  ;;  %v2715_v8 = vpop.f32.mrb[24].mxu0 }
 0x116   : > { %2117 = vst.msk [vmem:[%s3100_s29 + $0x150] sm:$0xf] %vm2032_vm2, %v2572_v0  ;;  %v2573_v7 = vpack.c.bf16 %v1477_v2, %v1477_v2  ;;  %v2779_v9 = vpop.f32.mrb[24].mxu1  ;;  %2056 = vst.msk [vmem:[%s3100_s29 + $0x5c] sm:$0xf] %vm2032_vm2, %v2511_v3  ;;  %v986_v10 = vadd.f32 %v2715_v8, %v3087_v4  ;;  %v977_v12 = vpop.f32.mrb[25].mxu0 }
 0x117   : > { %2120 = vst.msk [vmem:[%s3100_s29 + $0x15c] sm:$0xf] %vm2032_vm2, %v2575_v5  ;;  %v1242_v11 = vadd.f32 %v2779_v9, %v3087_v4  ;;  %v1233_v13 = vpop.f32.mrb[25].mxu1  ;;  %2054 = vst.msk [vmem:[%s3100_s29 + $0x54] sm:$0xf] %vm2032_vm2, %v2509_v6  ;;  %v978_v14 = vadd.f32 %v3087_v4, %v977_v12  ;;  %v2716_v16 = vpop.f32.mrb[26].mxu0 }
 0x118   : > { %2118 = vst.msk [vmem:[%s3100_s29 + $0x154] sm:$0xf] %vm2032_vm2, %v2573_v7  ;;  %v1234_v15 = vadd.f32 %v3087_v4, %v1233_v13  ;;  %v2780_v17 = vpop.f32.mrb[26].mxu1  ;;  %v1418_v18 = vmax.f32 %v986_v10, 0.0  ;;  %v989_v20 = vadd.f32 %v2716_v16, %v3087_v4  ;;  %v980_v22 = vpop.f32.mrb[27].mxu0 }
 0x119   : > { %v1482_v19 = vmax.f32 %v1242_v11, 0.0  ;;  %v1245_v21 = vadd.f32 %v2780_v17, %v3087_v4  ;;  %v1236_v23 = vpop.f32.mrb[27].mxu1  ;;  %v1416_v24 = vmax.f32 %v978_v14, 0.0  ;;  %v981_v26 = vadd.f32 %v3087_v4, %v980_v22 }
 0x11a   : > { %v1480_v25 = vmax.f32 %v1234_v15, 0.0  ;;  %v1237_v27 = vadd.f32 %v3087_v4, %v1236_v23  ;;  %v2514_v28 = vpack.c.bf16 %v1418_v18, %v1418_v18  ;;  %v1419_v30 = vmax.f32 %v989_v20, 0.0 }
 0x11b   : > { %v2578_v29 = vpack.c.bf16 %v1482_v19, %v1482_v19  ;;  %v1483_v31 = vmax.f32 %v1245_v21, 0.0  ;;  %v2512_v32 = vpack.c.bf16 %v1416_v24, %v1416_v24  ;;  %v1417_v34 = vmax.f32 %v981_v26, 0.0 }
 0x11c   : > { %v2576_v33 = vpack.c.bf16 %v1480_v25, %v1480_v25  ;;  %v1481_v35 = vmax.f32 %v1237_v27, 0.0  ;;  %2059 = vst.msk [vmem:[%s3100_s29 + $0x68] sm:$0xf] %vm2032_vm2, %v2514_v28  ;;  %v2515_v36 = vpack.c.bf16 %v1419_v30, %v1419_v30 }
 0x11d   : > { %2123 = vst.msk [vmem:[%s3100_s29 + $0x168] sm:$0xf] %vm2032_vm2, %v2578_v29  ;;  %v2579_v37 = vpack.c.bf16 %v1483_v31, %v1483_v31  ;;  %2057 = vst.msk [vmem:[%s3100_s29 + $0x60] sm:$0xf] %vm2032_vm2, %v2512_v32  ;;  %v2513_v38 = vpack.c.bf16 %v1417_v34, %v1417_v34  ;;  %v2719_v40 = vpop.f32.mrb[28].mxu0 }
 0x11e   : > { %2121 = vst.msk [vmem:[%s3100_s29 + $0x160] sm:$0xf] %vm2032_vm2, %v2576_v33  ;;  %v2577_v39 = vpack.c.bf16 %v1481_v35, %v1481_v35  ;;  %v2783_v41 = vpop.f32.mrb[28].mxu1  ;;  %2060 = vst.msk [vmem:[%s3100_s29 + $0x6c] sm:$0xf] %vm2032_vm2, %v2515_v36  ;;  %v1002_v42 = vadd.f32 %v2719_v40, %v3087_v4  ;;  %v993_v44 = vpop.f32.mrb[29].mxu0 }
 0x11f   : > { %2124 = vst.msk [vmem:[%s3100_s29 + $0x16c] sm:$0xf] %vm2032_vm2, %v2579_v37  ;;  %v1258_v43 = vadd.f32 %v2783_v41, %v3087_v4  ;;  %v1249_v45 = vpop.f32.mrb[29].mxu1  ;;  %2058 = vst.msk [vmem:[%s3100_s29 + $0x64] sm:$0xf] %vm2032_vm2, %v2513_v38  ;;  %v994_v46 = vadd.f32 %v3087_v4, %v993_v44  ;;  %v2720_v48 = vpop.f32.mrb[30].mxu0 }
 0x120   : > { %2122 = vst.msk [vmem:[%s3100_s29 + $0x164] sm:$0xf] %vm2032_vm2, %v2577_v39  ;;  %v1250_v47 = vadd.f32 %v3087_v4, %v1249_v45  ;;  %v2784_v49 = vpop.f32.mrb[30].mxu1  ;;  %v1422_v50 = vmax.f32 %v1002_v42, 0.0  ;;  %v1005_v52 = vadd.f32 %v2720_v48, %v3087_v4  ;;  %v996_v54 = vpop.f32.mrb[31].mxu0 }
 0x121   : > { %v1486_v51 = vmax.f32 %v1258_v43, 0.0  ;;  %v1261_v53 = vadd.f32 %v2784_v49, %v3087_v4  ;;  %v1252_v55 = vpop.f32.mrb[31].mxu1  ;;  %v1420_v56 = vmax.f32 %v994_v46, 0.0  ;;  %v997_v58 = vadd.f32 %v3087_v4, %v996_v54 }
 0x122   : > { %v1484_v57 = vmax.f32 %v1250_v47, 0.0  ;;  %v1253_v59 = vadd.f32 %v3087_v4, %v1252_v55  ;;  %v2518_v60 = vpack.c.bf16 %v1422_v50, %v1422_v50  ;;  %v1423_v62 = vmax.f32 %v1005_v52, 0.0 }
 0x123   : > { %v2582_v61 = vpack.c.bf16 %v1486_v51, %v1486_v51  ;;  %v1487_v63 = vmax.f32 %v1261_v53, 0.0  ;;  %v2516_v0 = vpack.c.bf16 %v1420_v56, %v1420_v56  ;;  %v1421_v2 = vmax.f32 %v997_v58, 0.0 }
 0x124   : > { %v2580_v1 = vpack.c.bf16 %v1484_v57, %v1484_v57  ;;  %v1485_v3 = vmax.f32 %v1253_v59, 0.0  ;;  %2063 = vst.msk [vmem:[%s3100_s29 + $0x78] sm:$0xf] %vm2032_vm2, %v2518_v60  ;;  %v2519_v5 = vpack.c.bf16 %v1423_v62, %v1423_v62 }
 0x125   : > { %2127 = vst.msk [vmem:[%s3100_s29 + $0x178] sm:$0xf] %vm2032_vm2, %v2582_v61  ;;  %v2583_v6 = vpack.c.bf16 %v1487_v63, %v1487_v63  ;;  %2061 = vst.msk [vmem:[%s3100_s29 + $0x70] sm:$0xf] %vm2032_vm2, %v2516_v0  ;;  %v2517_v7 = vpack.c.bf16 %v1421_v2, %v1421_v2  ;;  %v2723_v9 = vpop.f32.mrb[32].mxu0 }
 0x126   : > { %2125 = vst.msk [vmem:[%s3100_s29 + $0x170] sm:$0xf] %vm2032_vm2, %v2580_v1  ;;  %v2581_v8 = vpack.c.bf16 %v1485_v3, %v1485_v3  ;;  %v2787_v10 = vpop.f32.mrb[32].mxu1  ;;  %2064 = vst.msk [vmem:[%s3100_s29 + $0x7c] sm:$0xf] %vm2032_vm2, %v2519_v5  ;;  %v1018_v11 = vadd.f32 %v2723_v9, %v3087_v4  ;;  %v1009_v13 = vpop.f32.mrb[33].mxu0 }
 0x127   : > { %2128 = vst.msk [vmem:[%s3100_s29 + $0x17c] sm:$0xf] %vm2032_vm2, %v2583_v6  ;;  %v1274_v12 = vadd.f32 %v2787_v10, %v3087_v4  ;;  %v1265_v14 = vpop.f32.mrb[33].mxu1  ;;  %2062 = vst.msk [vmem:[%s3100_s29 + $0x74] sm:$0xf] %vm2032_vm2, %v2517_v7  ;;  %v1010_v15 = vadd.f32 %v3087_v4, %v1009_v13  ;;  %v2724_v17 = vpop.f32.mrb[34].mxu0 }
 0x128   : > { %2126 = vst.msk [vmem:[%s3100_s29 + $0x174] sm:$0xf] %vm2032_vm2, %v2581_v8  ;;  %v1266_v16 = vadd.f32 %v3087_v4, %v1265_v14  ;;  %v2788_v18 = vpop.f32.mrb[34].mxu1  ;;  %v1426_v19 = vmax.f32 %v1018_v11, 0.0  ;;  %v1021_v21 = vadd.f32 %v2724_v17, %v3087_v4  ;;  %v1012_v23 = vpop.f32.mrb[35].mxu0 }
 0x129   : > { %v1490_v20 = vmax.f32 %v1274_v12, 0.0  ;;  %v1277_v22 = vadd.f32 %v2788_v18, %v3087_v4  ;;  %v1268_v24 = vpop.f32.mrb[35].mxu1  ;;  %v1424_v25 = vmax.f32 %v1010_v15, 0.0  ;;  %v1013_v27 = vadd.f32 %v3087_v4, %v1012_v23 }
 0x12a   : > { %v1488_v26 = vmax.f32 %v1266_v16, 0.0  ;;  %v1269_v28 = vadd.f32 %v3087_v4, %v1268_v24  ;;  %v2522_v29 = vpack.c.bf16 %v1426_v19, %v1426_v19  ;;  %v1427_v31 = vmax.f32 %v1021_v21, 0.0 }
 0x12b   : > { %v2586_v30 = vpack.c.bf16 %v1490_v20, %v1490_v20  ;;  %v1491_v32 = vmax.f32 %v1277_v22, 0.0  ;;  %v2520_v33 = vpack.c.bf16 %v1424_v25, %v1424_v25  ;;  %v1425_v35 = vmax.f32 %v1013_v27, 0.0 }
 0x12c   : > { %v2584_v34 = vpack.c.bf16 %v1488_v26, %v1488_v26  ;;  %v1489_v36 = vmax.f32 %v1269_v28, 0.0  ;;  %2067 = vst.msk [vmem:[%s3100_s29 + $0x88] sm:$0xf] %vm2032_vm2, %v2522_v29  ;;  %v2523_v37 = vpack.c.bf16 %v1427_v31, %v1427_v31 }
 0x12d   : > { %2131 = vst.msk [vmem:[%s3100_s29 + $0x188] sm:$0xf] %vm2032_vm2, %v2586_v30  ;;  %v2587_v38 = vpack.c.bf16 %v1491_v32, %v1491_v32  ;;  %2065 = vst.msk [vmem:[%s3100_s29 + $0x80] sm:$0xf] %vm2032_vm2, %v2520_v33  ;;  %v2521_v39 = vpack.c.bf16 %v1425_v35, %v1425_v35  ;;  %v2727_v41 = vpop.f32.mrb[36].mxu0 }
 0x12e   : > { %2129 = vst.msk [vmem:[%s3100_s29 + $0x180] sm:$0xf] %vm2032_vm2, %v2584_v34  ;;  %v2585_v40 = vpack.c.bf16 %v1489_v36, %v1489_v36  ;;  %v2791_v42 = vpop.f32.mrb[36].mxu1  ;;  %2068 = vst.msk [vmem:[%s3100_s29 + $0x8c] sm:$0xf] %vm2032_vm2, %v2523_v37  ;;  %v1034_v43 = vadd.f32 %v2727_v41, %v3087_v4  ;;  %v1025_v45 = vpop.f32.mrb[37].mxu0 }
 0x12f   : > { %2132 = vst.msk [vmem:[%s3100_s29 + $0x18c] sm:$0xf] %vm2032_vm2, %v2587_v38  ;;  %v1290_v44 = vadd.f32 %v2791_v42, %v3087_v4  ;;  %v1281_v46 = vpop.f32.mrb[37].mxu1  ;;  %2066 = vst.msk [vmem:[%s3100_s29 + $0x84] sm:$0xf] %vm2032_vm2, %v2521_v39  ;;  %v1026_v47 = vadd.f32 %v3087_v4, %v1025_v45  ;;  %v2728_v49 = vpop.f32.mrb[38].mxu0 }
 0x130   : > { %2130 = vst.msk [vmem:[%s3100_s29 + $0x184] sm:$0xf] %vm2032_vm2, %v2585_v40  ;;  %v1282_v48 = vadd.f32 %v3087_v4, %v1281_v46  ;;  %v2792_v50 = vpop.f32.mrb[38].mxu1  ;;  %v1430_v51 = vmax.f32 %v1034_v43, 0.0  ;;  %v1037_v53 = vadd.f32 %v2728_v49, %v3087_v4  ;;  %v1028_v55 = vpop.f32.mrb[39].mxu0 }
 0x131   : > { %v1494_v52 = vmax.f32 %v1290_v44, 0.0  ;;  %v1293_v54 = vadd.f32 %v2792_v50, %v3087_v4  ;;  %v1284_v56 = vpop.f32.mrb[39].mxu1  ;;  %v1428_v57 = vmax.f32 %v1026_v47, 0.0  ;;  %v1029_v59 = vadd.f32 %v3087_v4, %v1028_v55 }
 0x132   : > { %v1492_v58 = vmax.f32 %v1282_v48, 0.0  ;;  %v1285_v60 = vadd.f32 %v3087_v4, %v1284_v56  ;;  %v2526_v61 = vpack.c.bf16 %v1430_v51, %v1430_v51  ;;  %v1431_v63 = vmax.f32 %v1037_v53, 0.0 }
 0x133   : > { %v2590_v62 = vpack.c.bf16 %v1494_v52, %v1494_v52  ;;  %v1495_v0 = vmax.f32 %v1293_v54, 0.0  ;;  %v2524_v1 = vpack.c.bf16 %v1428_v57, %v1428_v57  ;;  %v1429_v3 = vmax.f32 %v1029_v59, 0.0 }
 0x134   : > { %v2588_v2 = vpack.c.bf16 %v1492_v58, %v1492_v58  ;;  %v1493_v5 = vmax.f32 %v1285_v60, 0.0  ;;  %2071 = vst.msk [vmem:[%s3100_s29 + $0x98] sm:$0xf] %vm2032_vm2, %v2526_v61  ;;  %v2527_v6 = vpack.c.bf16 %v1431_v63, %v1431_v63 }
 0x135   : > { %2135 = vst.msk [vmem:[%s3100_s29 + $0x198] sm:$0xf] %vm2032_vm2, %v2590_v62  ;;  %v2591_v7 = vpack.c.bf16 %v1495_v0, %v1495_v0  ;;  %2069 = vst.msk [vmem:[%s3100_s29 + $0x90] sm:$0xf] %vm2032_vm2, %v2524_v1  ;;  %v2525_v8 = vpack.c.bf16 %v1429_v3, %v1429_v3  ;;  %v2731_v10 = vpop.f32.mrb[40].mxu0 }
 0x136   : > { %2133 = vst.msk [vmem:[%s3100_s29 + $0x190] sm:$0xf] %vm2032_vm2, %v2588_v2  ;;  %v2589_v9 = vpack.c.bf16 %v1493_v5, %v1493_v5  ;;  %v2795_v11 = vpop.f32.mrb[40].mxu1  ;;  %2072 = vst.msk [vmem:[%s3100_s29 + $0x9c] sm:$0xf] %vm2032_vm2, %v2527_v6  ;;  %v1050_v12 = vadd.f32 %v2731_v10, %v3087_v4  ;;  %v1041_v14 = vpop.f32.mrb[41].mxu0 }
 0x137   : > { %2136 = vst.msk [vmem:[%s3100_s29 + $0x19c] sm:$0xf] %vm2032_vm2, %v2591_v7  ;;  %v1306_v13 = vadd.f32 %v2795_v11, %v3087_v4  ;;  %v1297_v15 = vpop.f32.mrb[41].mxu1  ;;  %2070 = vst.msk [vmem:[%s3100_s29 + $0x94] sm:$0xf] %vm2032_vm2, %v2525_v8  ;;  %v1042_v16 = vadd.f32 %v3087_v4, %v1041_v14  ;;  %v2732_v18 = vpop.f32.mrb[42].mxu0 }
 0x138   : > { %2134 = vst.msk [vmem:[%s3100_s29 + $0x194] sm:$0xf] %vm2032_vm2, %v2589_v9  ;;  %v1298_v17 = vadd.f32 %v3087_v4, %v1297_v15  ;;  %v2796_v19 = vpop.f32.mrb[42].mxu1  ;;  %v1434_v20 = vmax.f32 %v1050_v12, 0.0  ;;  %v1053_v22 = vadd.f32 %v2732_v18, %v3087_v4  ;;  %v1044_v24 = vpop.f32.mrb[43].mxu0 }
 0x139   : > { %v1498_v21 = vmax.f32 %v1306_v13, 0.0  ;;  %v1309_v23 = vadd.f32 %v2796_v19, %v3087_v4  ;;  %v1300_v25 = vpop.f32.mrb[43].mxu1  ;;  %v1432_v26 = vmax.f32 %v1042_v16, 0.0  ;;  %v1045_v28 = vadd.f32 %v3087_v4, %v1044_v24 }
 0x13a   : > { %v1496_v27 = vmax.f32 %v1298_v17, 0.0  ;;  %v1301_v29 = vadd.f32 %v3087_v4, %v1300_v25  ;;  %v2530_v30 = vpack.c.bf16 %v1434_v20, %v1434_v20  ;;  %v1435_v32 = vmax.f32 %v1053_v22, 0.0 }
 0x13b   : > { %v2594_v31 = vpack.c.bf16 %v1498_v21, %v1498_v21  ;;  %v1499_v33 = vmax.f32 %v1309_v23, 0.0  ;;  %v2528_v34 = vpack.c.bf16 %v1432_v26, %v1432_v26  ;;  %v1433_v36 = vmax.f32 %v1045_v28, 0.0 }
 0x13c   : > { %v2592_v35 = vpack.c.bf16 %v1496_v27, %v1496_v27  ;;  %v1497_v37 = vmax.f32 %v1301_v29, 0.0  ;;  %2075 = vst.msk [vmem:[%s3100_s29 + $0xa8] sm:$0xf] %vm2032_vm2, %v2530_v30  ;;  %v2531_v38 = vpack.c.bf16 %v1435_v32, %v1435_v32 }
 0x13d   : > { %2139 = vst.msk [vmem:[%s3100_s29 + $0x1a8] sm:$0xf] %vm2032_vm2, %v2594_v31  ;;  %v2595_v39 = vpack.c.bf16 %v1499_v33, %v1499_v33  ;;  %2073 = vst.msk [vmem:[%s3100_s29 + $0xa0] sm:$0xf] %vm2032_vm2, %v2528_v34  ;;  %v2529_v40 = vpack.c.bf16 %v1433_v36, %v1433_v36  ;;  %v2735_v42 = vpop.f32.mrb[44].mxu0 }
 0x13e   : > { %2137 = vst.msk [vmem:[%s3100_s29 + $0x1a0] sm:$0xf] %vm2032_vm2, %v2592_v35  ;;  %v2593_v41 = vpack.c.bf16 %v1497_v37, %v1497_v37  ;;  %v2799_v43 = vpop.f32.mrb[44].mxu1  ;;  %2076 = vst.msk [vmem:[%s3100_s29 + $0xac] sm:$0xf] %vm2032_vm2, %v2531_v38  ;;  %v1066_v44 = vadd.f32 %v2735_v42, %v3087_v4  ;;  %v1057_v46 = vpop.f32.mrb[45].mxu0 }
 0x13f   : > { %2140 = vst.msk [vmem:[%s3100_s29 + $0x1ac] sm:$0xf] %vm2032_vm2, %v2595_v39  ;;  %v1322_v45 = vadd.f32 %v2799_v43, %v3087_v4  ;;  %v1313_v47 = vpop.f32.mrb[45].mxu1  ;;  %2074 = vst.msk [vmem:[%s3100_s29 + $0xa4] sm:$0xf] %vm2032_vm2, %v2529_v40  ;;  %v1058_v48 = vadd.f32 %v3087_v4, %v1057_v46  ;;  %v2736_v50 = vpop.f32.mrb[46].mxu0 }
 0x140   : > { %2138 = vst.msk [vmem:[%s3100_s29 + $0x1a4] sm:$0xf] %vm2032_vm2, %v2593_v41  ;;  %v1314_v49 = vadd.f32 %v3087_v4, %v1313_v47  ;;  %v2800_v51 = vpop.f32.mrb[46].mxu1  ;;  %v1438_v52 = vmax.f32 %v1066_v44, 0.0  ;;  %v1069_v54 = vadd.f32 %v2736_v50, %v3087_v4  ;;  %v1060_v56 = vpop.f32.mrb[47].mxu0 }
 0x141   : > { %v1502_v53 = vmax.f32 %v1322_v45, 0.0  ;;  %v1325_v55 = vadd.f32 %v2800_v51, %v3087_v4  ;;  %v1316_v57 = vpop.f32.mrb[47].mxu1  ;;  %v1436_v58 = vmax.f32 %v1058_v48, 0.0  ;;  %v1061_v60 = vadd.f32 %v3087_v4, %v1060_v56  ;;  %v3407_v44 = vld [vmem:[%s3490_s2] ss:$0 sm:$0xff] }
 0x142   : > { %v1500_v59 = vmax.f32 %v1314_v49, 0.0  ;;  %v1317_v61 = vadd.f32 %v3087_v4, %v1316_v57  ;;  %v2534_v62 = vpack.c.bf16 %v1438_v52, %v1438_v52  ;;  %v1439_v0 = vmax.f32 %v1069_v54, 0.0 }
 0x143   : > { %v2598_v63 = vpack.c.bf16 %v1502_v53, %v1502_v53  ;;  %v1503_v1 = vmax.f32 %v1325_v55, 0.0  ;;  %v2532_v2 = vpack.c.bf16 %v1436_v58, %v1436_v58  ;;  %v1437_v5 = vmax.f32 %v1061_v60, 0.0 }
 0x144   : > { %v2596_v3 = vpack.c.bf16 %v1500_v59, %v1500_v59  ;;  %v1501_v6 = vmax.f32 %v1317_v61, 0.0  ;;  %2079 = vst.msk [vmem:[%s3100_s29 + $0xb8] sm:$0xf] %vm2032_vm2, %v2534_v62  ;;  %v2535_v7 = vpack.c.bf16 %v1439_v0, %v1439_v0 }
 0x145   : > { %2143 = vst.msk [vmem:[%s3100_s29 + $0x1b8] sm:$0xf] %vm2032_vm2, %v2598_v63  ;;  %v2599_v8 = vpack.c.bf16 %v1503_v1, %v1503_v1  ;;  %2077 = vst.msk [vmem:[%s3100_s29 + $0xb0] sm:$0xf] %vm2032_vm2, %v2532_v2  ;;  %v2533_v9 = vpack.c.bf16 %v1437_v5, %v1437_v5  ;;  %v2739_v11 = vpop.f32.mrb[48].mxu0 }
 0x146   : > { %2141 = vst.msk [vmem:[%s3100_s29 + $0x1b0] sm:$0xf] %vm2032_vm2, %v2596_v3  ;;  %v2597_v10 = vpack.c.bf16 %v1501_v6, %v1501_v6  ;;  %v2803_v12 = vpop.f32.mrb[48].mxu1  ;;  %2080 = vst.msk [vmem:[%s3100_s29 + $0xbc] sm:$0xf] %vm2032_vm2, %v2535_v7  ;;  %v1082_v13 = vadd.f32 %v2739_v11, %v3087_v4  ;;  %v1073_v15 = vpop.f32.mrb[49].mxu0 }
 0x147   : > { %2144 = vst.msk [vmem:[%s3100_s29 + $0x1bc] sm:$0xf] %vm2032_vm2, %v2599_v8  ;;  %v1338_v14 = vadd.f32 %v2803_v12, %v3087_v4  ;;  %v1329_v16 = vpop.f32.mrb[49].mxu1  ;;  %2078 = vst.msk [vmem:[%s3100_s29 + $0xb4] sm:$0xf] %vm2032_vm2, %v2533_v9  ;;  %v1074_v17 = vadd.f32 %v3087_v4, %v1073_v15  ;;  %v2740_v19 = vpop.f32.mrb[50].mxu0 }
 0x148   : > { %2142 = vst.msk [vmem:[%s3100_s29 + $0x1b4] sm:$0xf] %vm2032_vm2, %v2597_v10  ;;  %v1330_v18 = vadd.f32 %v3087_v4, %v1329_v16  ;;  %v2804_v20 = vpop.f32.mrb[50].mxu1  ;;  %v1442_v21 = vmax.f32 %v1082_v13, 0.0  ;;  %v1085_v23 = vadd.f32 %v2740_v19, %v3087_v4  ;;  %v1076_v25 = vpop.f32.mrb[51].mxu0 }
 0x149   : > { %v1506_v22 = vmax.f32 %v1338_v14, 0.0  ;;  %v1341_v24 = vadd.f32 %v2804_v20, %v3087_v4  ;;  %v1332_v26 = vpop.f32.mrb[51].mxu1  ;;  %v1440_v27 = vmax.f32 %v1074_v17, 0.0  ;;  %v1077_v29 = vadd.f32 %v3087_v4, %v1076_v25 }
 0x14a   : > { %v1504_v28 = vmax.f32 %v1330_v18, 0.0  ;;  %v1333_v30 = vadd.f32 %v3087_v4, %v1332_v26  ;;  %v2538_v31 = vpack.c.bf16 %v1442_v21, %v1442_v21  ;;  %v1443_v33 = vmax.f32 %v1085_v23, 0.0 }
 0x14b   : > { %v2602_v32 = vpack.c.bf16 %v1506_v22, %v1506_v22  ;;  %v1507_v34 = vmax.f32 %v1341_v24, 0.0  ;;  %v2536_v35 = vpack.c.bf16 %v1440_v27, %v1440_v27  ;;  %v1441_v37 = vmax.f32 %v1077_v29, 0.0 }
 0x14c   : > { %v2600_v36 = vpack.c.bf16 %v1504_v28, %v1504_v28  ;;  %v1505_v38 = vmax.f32 %v1333_v30, 0.0  ;;  %2083 = vst.msk [vmem:[%s3100_s29 + $0xc8] sm:$0xf] %vm2032_vm2, %v2538_v31  ;;  %v2539_v39 = vpack.c.bf16 %v1443_v33, %v1443_v33 }
 0x14d   : > { %2147 = vst.msk [vmem:[%s3100_s29 + $0x1c8] sm:$0xf] %vm2032_vm2, %v2602_v32  ;;  %v2603_v40 = vpack.c.bf16 %v1507_v34, %v1507_v34  ;;  %2081 = vst.msk [vmem:[%s3100_s29 + $0xc0] sm:$0xf] %vm2032_vm2, %v2536_v35  ;;  %v2537_v4 = vpack.c.bf16 %v1441_v37, %v1441_v37  ;;  %v2743_v42 = vpop.f32.mrb[52].mxu0 }
 0x14e   : > { %2145 = vst.msk [vmem:[%s3100_s29 + $0x1c0] sm:$0xf] %vm2032_vm2, %v2600_v36  ;;  %v2601_v41 = vpack.c.bf16 %v1505_v38, %v1505_v38  ;;  %v2807_v43 = vpop.f32.mrb[52].mxu1  ;;  %2084 = vst.msk [vmem:[%s3100_s29 + $0xcc] sm:$0xf] %vm2032_vm2, %v2539_v39  ;;  %v1098_v45 = vadd.f32 %v3407_v44, %v2743_v42  ;;  %v1089_v47 = vpop.f32.mrb[53].mxu0 }
 0x14f   : > { %2148 = vst.msk [vmem:[%s3100_s29 + $0x1cc] sm:$0xf] %vm2032_vm2, %v2603_v40  ;;  %v1354_v46 = vadd.f32 %v3407_v44, %v2807_v43  ;;  %v1345_v48 = vpop.f32.mrb[53].mxu1  ;;  %2082 = vst.msk [vmem:[%s3100_s29 + $0xc4] sm:$0xf] %vm2032_vm2, %v2537_v4  ;;  %v1090_v49 = vadd.f32 %v3407_v44, %v1089_v47  ;;  %v2744_v51 = vpop.f32.mrb[54].mxu0 }
 0x150   : > { %2146 = vst.msk [vmem:[%s3100_s29 + $0x1c4] sm:$0xf] %vm2032_vm2, %v2601_v41  ;;  %v1346_v50 = vadd.f32 %v3407_v44, %v1345_v48  ;;  %v2808_v52 = vpop.f32.mrb[54].mxu1  ;;  %v1446_v53 = vmax.f32 %v1098_v45, 0.0  ;;  %v1101_v55 = vadd.f32 %v3407_v44, %v2744_v51  ;;  %v1092_v57 = vpop.f32.mrb[55].mxu0 }
 0x151   : > { %v1510_v54 = vmax.f32 %v1354_v46, 0.0  ;;  %v1357_v56 = vadd.f32 %v3407_v44, %v2808_v52  ;;  %v1348_v58 = vpop.f32.mrb[55].mxu1  ;;  %v1444_v59 = vmax.f32 %v1090_v49, 0.0  ;;  %v1093_v61 = vadd.f32 %v3407_v44, %v1092_v57 }
 0x152   : > { %v1508_v60 = vmax.f32 %v1346_v50, 0.0  ;;  %v1349_v62 = vadd.f32 %v3407_v44, %v1348_v58  ;;  %v2542_v63 = vpack.c.bf16 %v1446_v53, %v1446_v53  ;;  %v1447_v1 = vmax.f32 %v1101_v55, 0.0 }
 0x153   : > { %v2606_v0 = vpack.c.bf16 %v1510_v54, %v1510_v54  ;;  %v1511_v2 = vmax.f32 %v1357_v56, 0.0  ;;  %v2540_v3 = vpack.c.bf16 %v1444_v59, %v1444_v59  ;;  %v1445_v6 = vmax.f32 %v1093_v61, 0.0 }
 0x154   : > { %v2604_v5 = vpack.c.bf16 %v1508_v60, %v1508_v60  ;;  %v1509_v7 = vmax.f32 %v1349_v62, 0.0  ;;  %2087 = vst.msk [vmem:[%s3100_s29 + $0xd8] sm:$0xf] %vm2032_vm2, %v2542_v63  ;;  %v2543_v8 = vpack.c.bf16 %v1447_v1, %v1447_v1 }
 0x155   : > { %2151 = vst.msk [vmem:[%s3100_s29 + $0x1d8] sm:$0xf] %vm2032_vm2, %v2606_v0  ;;  %v2607_v9 = vpack.c.bf16 %v1511_v2, %v1511_v2  ;;  %2085 = vst.msk [vmem:[%s3100_s29 + $0xd0] sm:$0xf] %vm2032_vm2, %v2540_v3  ;;  %v2541_v10 = vpack.c.bf16 %v1445_v6, %v1445_v6  ;;  %v2747_v12 = vpop.f32.mrb[56].mxu0 }
 0x156   : > { %2149 = vst.msk [vmem:[%s3100_s29 + $0x1d0] sm:$0xf] %vm2032_vm2, %v2604_v5  ;;  %v2605_v11 = vpack.c.bf16 %v1509_v7, %v1509_v7  ;;  %v2811_v13 = vpop.f32.mrb[56].mxu1  ;;  %2088 = vst.msk [vmem:[%s3100_s29 + $0xdc] sm:$0xf] %vm2032_vm2, %v2543_v8  ;;  %v1114_v14 = vadd.f32 %v3407_v44, %v2747_v12  ;;  %v1105_v16 = vpop.f32.mrb[57].mxu0 }
 0x157   : > { %2152 = vst.msk [vmem:[%s3100_s29 + $0x1dc] sm:$0xf] %vm2032_vm2, %v2607_v9  ;;  %v1370_v15 = vadd.f32 %v3407_v44, %v2811_v13  ;;  %v1361_v17 = vpop.f32.mrb[57].mxu1  ;;  %2086 = vst.msk [vmem:[%s3100_s29 + $0xd4] sm:$0xf] %vm2032_vm2, %v2541_v10  ;;  %v1106_v18 = vadd.f32 %v3407_v44, %v1105_v16  ;;  %v2748_v20 = vpop.f32.mrb[58].mxu0 }
 0x158   : > { %2150 = vst.msk [vmem:[%s3100_s29 + $0x1d4] sm:$0xf] %vm2032_vm2, %v2605_v11  ;;  %v1362_v19 = vadd.f32 %v3407_v44, %v1361_v17  ;;  %v2812_v21 = vpop.f32.mrb[58].mxu1  ;;  %v1450_v22 = vmax.f32 %v1114_v14, 0.0  ;;  %v1117_v24 = vadd.f32 %v3407_v44, %v2748_v20  ;;  %v1108_v26 = vpop.f32.mrb[59].mxu0 }
 0x159   : > { %v1514_v23 = vmax.f32 %v1370_v15, 0.0  ;;  %v1373_v25 = vadd.f32 %v3407_v44, %v2812_v21  ;;  %v1364_v27 = vpop.f32.mrb[59].mxu1  ;;  %v1448_v28 = vmax.f32 %v1106_v18, 0.0  ;;  %v1109_v30 = vadd.f32 %v3407_v44, %v1108_v26 }
 0x15a   : > { %v1512_v29 = vmax.f32 %v1362_v19, 0.0  ;;  %v1365_v31 = vadd.f32 %v3407_v44, %v1364_v27  ;;  %v2546_v32 = vpack.c.bf16 %v1450_v22, %v1450_v22  ;;  %v1451_v34 = vmax.f32 %v1117_v24, 0.0 }
 0x15b   : > { %v2610_v33 = vpack.c.bf16 %v1514_v23, %v1514_v23  ;;  %v1515_v35 = vmax.f32 %v1373_v25, 0.0  ;;  %v2544_v36 = vpack.c.bf16 %v1448_v28, %v1448_v28  ;;  %v1449_v38 = vmax.f32 %v1109_v30, 0.0 }
 0x15c   : > { %v2608_v37 = vpack.c.bf16 %v1512_v29, %v1512_v29  ;;  %v1513_v39 = vmax.f32 %v1365_v31, 0.0  ;;  %2091 = vst.msk [vmem:[%s3100_s29 + $0xe8] sm:$0xf] %vm2032_vm2, %v2546_v32  ;;  %v2547_v40 = vpack.c.bf16 %v1451_v34, %v1451_v34 }
 0x15d   : > { %2155 = vst.msk [vmem:[%s3100_s29 + $0x1e8] sm:$0xf] %vm2032_vm2, %v2610_v33  ;;  %v2611_v4 = vpack.c.bf16 %v1515_v35, %v1515_v35  ;;  %2089 = vst.msk [vmem:[%s3100_s29 + $0xe0] sm:$0xf] %vm2032_vm2, %v2544_v36  ;;  %v2545_v41 = vpack.c.bf16 %v1449_v38, %v1449_v38  ;;  %v2751_v43 = vpop.f32.mrb[60].mxu0 }
 0x15e   : > { %2153 = vst.msk [vmem:[%s3100_s29 + $0x1e0] sm:$0xf] %vm2032_vm2, %v2608_v37  ;;  %v2609_v42 = vpack.c.bf16 %v1513_v39, %v1513_v39  ;;  %v2815_v45 = vpop.f32.mrb[60].mxu1  ;;  %2092 = vst.msk [vmem:[%s3100_s29 + $0xec] sm:$0xf] %vm2032_vm2, %v2547_v40  ;;  %v1130_v46 = vadd.f32 %v3407_v44, %v2751_v43  ;;  %v1121_v48 = vpop.f32.mrb[61].mxu0 }
 0x15f   : > { %2156 = vst.msk [vmem:[%s3100_s29 + $0x1ec] sm:$0xf] %vm2032_vm2, %v2611_v4  ;;  %v1386_v47 = vadd.f32 %v3407_v44, %v2815_v45  ;;  %v1377_v49 = vpop.f32.mrb[61].mxu1  ;;  %2090 = vst.msk [vmem:[%s3100_s29 + $0xe4] sm:$0xf] %vm2032_vm2, %v2545_v41  ;;  %v1122_v50 = vadd.f32 %v3407_v44, %v1121_v48  ;;  %v2752_v52 = vpop.f32.mrb[62].mxu0 }
 0x160   : > { %2154 = vst.msk [vmem:[%s3100_s29 + $0x1e4] sm:$0xf] %vm2032_vm2, %v2609_v42  ;;  %v1378_v51 = vadd.f32 %v3407_v44, %v1377_v49  ;;  %v2816_v53 = vpop.f32.mrb[62].mxu1  ;;  %v1454_v54 = vmax.f32 %v1130_v46, 0.0  ;;  %v1133_v56 = vadd.f32 %v3407_v44, %v2752_v52  ;;  %v1124_v58 = vpop.f32.mrb[63].mxu0 }
 0x161   : > { %v1518_v55 = vmax.f32 %v1386_v47, 0.0  ;;  %v1389_v57 = vadd.f32 %v3407_v44, %v2816_v53  ;;  %v1380_v59 = vpop.f32.mrb[63].mxu1  ;;  %v1452_v60 = vmax.f32 %v1122_v50, 0.0  ;;  %v1125_v62 = vadd.f32 %v3407_v44, %v1124_v58 }
 0x162   : > { %v1516_v61 = vmax.f32 %v1378_v51, 0.0  ;;  %v1381_v63 = vadd.f32 %v3407_v44, %v1380_v59  ;;  %v2550_v0 = vpack.c.bf16 %v1454_v54, %v1454_v54  ;;  %v1455_v2 = vmax.f32 %v1133_v56, 0.0 }
 0x163   : > { %v2614_v1 = vpack.c.bf16 %v1518_v55, %v1518_v55  ;;  %v1519_v3 = vmax.f32 %v1389_v57, 0.0  ;;  %v2548_v5 = vpack.c.bf16 %v1452_v60, %v1452_v60  ;;  %v1453_v7 = vmax.f32 %v1125_v62, 0.0 }
 0x164   : > { %v2612_v6 = vpack.c.bf16 %v1516_v61, %v1516_v61  ;;  %v1517_v8 = vmax.f32 %v1381_v63, 0.0  ;;  %2095 = vst.msk [vmem:[%s3100_s29 + $0xf8] sm:$0xf] %vm2032_vm2, %v2550_v0  ;;  %v2551_v9 = vpack.c.bf16 %v1455_v2, %v1455_v2 }
 0x165   : > { %2159 = vst.msk [vmem:[%s3100_s29 + $0x1f8] sm:$0xf] %vm2032_vm2, %v2614_v1  ;;  %v2615_v10 = vpack.c.bf16 %v1519_v3, %v1519_v3  ;;  %2093 = vst.msk [vmem:[%s3100_s29 + $0xf0] sm:$0xf] %vm2032_vm2, %v2548_v5  ;;  %v2549_v44 = vpack.c.bf16 %v1453_v7, %v1453_v7 }
 0x166   : > { %2157 = vst.msk [vmem:[%s3100_s29 + $0x1f0] sm:$0xf] %vm2032_vm2, %v2612_v6  ;;  %v2613_v11 = vpack.c.bf16 %v1517_v8, %v1517_v8  ;;  %2096 = vst.msk [vmem:[%s3100_s29 + $0xfc] sm:$0xf] %vm2032_vm2, %v2551_v9 }
 0x167   : > { %2160 = vst.msk [vmem:[%s3100_s29 + $0x1fc] sm:$0xf] %vm2032_vm2, %v2615_v10  ;;  %2094 = vst.msk [vmem:[%s3100_s29 + $0xf4] sm:$0xf] %vm2032_vm2, %v2549_v44 }
 0x168   : > { %2158 = vst.msk [vmem:[%s3100_s29 + $0x1f4] sm:$0xf] %vm2032_vm2, %v2613_v11 }
 0x169 PF: > { %s13_s12 = sadd.s32 1, %s2907_s12  }
 0x16a   : > { %p10_p4 = scmp.ge.s32.totalorder %s13_s12, 4  }
 0x16c   :  { %12 = sbr.rel (!%p10_p4) target bundleno = 1 (0x1), region = 62 }

// kernel: topdown_feature_head_forward.7
= control target key start
LH: loop header
LB: loop body
LE: loop exit
PB: predicated region body
PF: predicated region fallthrough
CT: control target
= control target key end

     0   :  { %s1038_s12 = smov 0   ;;  %s1214_s0 = inlined_call_operand.vmem [shape: bf16[512,72], index: 0, kind: input, shape index: {}]   ;;  %s1215_s1 = inlined_call_operand.vmem [shape: bf16[72,16], index: 1, kind: input, shape index: {}]   ;;  %s1216_s2 = inlined_call_operand.vmem [shape: f32[1,16], index: 2, kind: input, shape index: {}]   ;;  %s1217_s3 = inlined_call_operand.vmem [shape: bf16[512,16], index: 3, kind: output, shape index: {}]  }
   0x1 LB: > { %s793_s13 = sadd.s32 4294967295, %s1016_s12   ;;  %p797_p0 = scmp.ge.s32.totalorder %s1016_s12, 1  ;;  %s1016_s12 = sphi %s1038_s12, %s13_s12  }
   0x2   : > { %p138_p1 = scmp.lt.s32.totalorder %s1016_s12, 3 }
   0x4   : > { %p139_p2 = pnand %p797_p0, %p138_p1 }
   0x5   : > { %v989_v0 = vld [vmem:[%s1215_s1] sm:$0xff] (!%p139_p2)   ;;  %v990_v1 = vld [vmem:[%s1215_s1 + $0x8] sm:$0xff] (!%p139_p2)   ;;  %s798_s18 = sshll.u32 (!%p139_p2), %s793_s13, 5  ;;  %v991_v2 = vld [vmem:[%s1215_s1 + $0x10] sm:$0xff] (!%p139_p2)   ;;  %vm330_vm0 = vcmask (!%p139_p2), 588800   ;;  %vm379_vm1 = vcmask (!%p139_p2), 1043456  }
   0x6   : > { %142 = sbr.rel (%p139_p2) target bundleno = 272 (0x110), region = 32  ;;  %927 = vmatprep.subr.bf16.mxu0 (!%p139_p2), %v989_v0  ;;  %969 = vmatprep.subr.bf16.mxu1 (!%p139_p2), %v989_v0  ;;  %p163_p3 = scmp.lt.s32.totalorder (!%p139_p2), %s798_s18, 63  ;;  %v992_v3 = vld [vmem:[%s1215_s1 + $0x18] sm:$0xff] (!%p139_p2)   ;;  %v993_v6 = vld [vmem:[%s1215_s1 + $0x20] ss:$0 sps:$4 sm:$0xff] (!%p139_p2)   ;;  %vm704_vm2 = vcmask (!%p139_p2), 125952  }
   0x7   : > { %928 = vmatpush3.bf16.msra.mxu0 (!%p139_p2), %v989_v0  ;;  %974 = vmatpush3.bf16.msra.mxu1 (!%p139_p2), %v989_v0  ;;  %v381_v7 = vsel (!%p139_p2), %vm379_vm1, %v993_v6, 0  ;;  %v1106_v22 = vld [vmem:[%s1216_s2] ss:$0 sm:$0xff] (!%p139_p2) }
   0x8   : > { %929 = vmatprep.subr.bf16.mxu0 (!%p139_p2), %v990_v1  ;;  %970 = vmatprep.subr.bf16.mxu1 (!%p139_p2), %v990_v1 }
   0xb   : > { %930 = vmatpush3.bf16.msra.mxu0 (!%p139_p2), %v990_v1  ;;  %975 = vmatpush3.bf16.msra.mxu1 (!%p139_p2), %v990_v1 }
   0xc   : > { %931 = vmatprep.subr.bf16.mxu0 (!%p139_p2), %v991_v2  ;;  %971 = vmatprep.subr.bf16.mxu1 (!%p139_p2), %v991_v2 }
   0xd   : > { %s1219_s18 = smov (!%p163_p3, %s798_s18), 63 }
   0xe   : > { %s799_s21 = sshll.u32 %s1219_s18, 2 }
   0xf   : > { %s1066_s26 = scalar_lea.vmem %s1214_s0, %s799_s21  ;;  %932 = vmatpush3.bf16.msra.mxu0 %v991_v2  ;;  %976 = vmatpush3.bf16.msra.mxu1 %v991_v2  ;;  %s1119_s6 = scalar_lea.vmem %s1217_s3, %s799_s21 }
  0x10   : > { %v994_v4 = vld [vmem:[%s1066_s26] sm:$0xff]   ;;  %933 = vmatprep.subr.bf16.mxu0 %v992_v3  ;;  %972 = vmatprep.subr.bf16.mxu1 %v992_v3  ;;  %v996_v8 = vld [vmem:[%s1066_s26 + $0x8] sm:$0xff]   ;;  %v998_v10 = vld [vmem:[%s1066_s26 + $0x10] sm:$0xff]  }
  0x11   : > { %v995_v5 = vld [vmem:[%s1066_s26 + $0x40] sm:$0xff]   ;;  %937 = vmatprep.mubr.msk.bf16.mxu0 %vm330_vm0, %v994_v4  ;;  %v997_v9 = vld [vmem:[%s1066_s26 + $0x48] sm:$0xff]   ;;  %v999_v11 = vld [vmem:[%s1066_s26 + $0x50] sm:$0xff]  }
  0x12   : > { %953 = vmatprep.mubr.msk.bf16.mxu1 %vm330_vm0, %v995_v5  ;;  %v1000_v12 = vld [vmem:[%s1066_s26 + $0x18] sm:$0xff]   ;;  %v1002_v14 = vld [vmem:[%s1066_s26 + $0x20] sm:$0xff]   ;;  %v1004_v16 = vld [vmem:[%s1066_s26 + $0x28] sm:$0xff]  }
  0x13   : > { %934 = vmatpush3.bf16.msra.mxu0 %v992_v3  ;;  %977 = vmatpush3.bf16.msra.mxu1 %v992_v3  ;;  %v1001_v13 = vld [vmem:[%s1066_s26 + $0x58] sm:$0xff]   ;;  %v1003_v15 = vld [vmem:[%s1066_s26 + $0x60] sm:$0xff]   ;;  %v1005_v17 = vld [vmem:[%s1066_s26 + $0x68] sm:$0xff]  }
  0x14   : > { %979 = vmatprep.subr.msk.bf16.mxu0 %vm379_vm1, %v993_v6  ;;  %980 = vmatprep.subr.msk.bf16.mxu1 %vm379_vm1, %v993_v6  ;;  %v1006_v18 = vld [vmem:[%s1066_s26 + $0x30] sm:$0xff]   ;;  %v1008_v20 = vld [vmem:[%s1066_s26 + $0x38] sm:$0xff]  }
  0x15   : > { %v1007_v19 = vld [vmem:[%s1066_s26 + $0x70] sm:$0xff]   ;;  %v1009_v21 = vld [vmem:[%s1066_s26 + $0x78] sm:$0xff]  }
  0x17   : > { %936 = vmatpush3.bf16.msra.mxu0 %v381_v7  ;;  %978 = vmatpush3.bf16.msra.mxu1 %v381_v7 }
  0x1a   : > { %938 = vmatmul.mubr.msk.bf16.vlgmr.msra.gmra.mrb[0].mxu0 %vm330_vm0, %v996_v8  ;;  %954 = vmatmul.mubr.msk.bf16.vlgmr.msra.gmra.mrb[0].mxu1 %vm330_vm0, %v997_v9 }
  0x1b   : > { %941 = vmatprep.mubr.msk.bf16.mxu0 %vm330_vm0, %v998_v10  ;;  %957 = vmatprep.mubr.msk.bf16.mxu1 %vm330_vm0, %v999_v11 }
  0x22   : > { %942 = vmatmul.mubr.msk.bf16.gmra.mrb[4].mxu0 %vm330_vm0, %v1000_v12  ;;  %958 = vmatmul.mubr.msk.bf16.gmra.mrb[4].mxu1 %vm330_vm0, %v1001_v13 }
  0x23   : > { %945 = vmatprep.mubr.msk.bf16.mxu0 %vm330_vm0, %v1002_v14  ;;  %961 = vmatprep.mubr.msk.bf16.mxu1 %vm330_vm0, %v1003_v15 }
  0x2a   : > { %946 = vmatmul.mubr.msk.bf16.gmra.mrb[8].mxu0 %vm330_vm0, %v1004_v16  ;;  %962 = vmatmul.mubr.msk.bf16.gmra.mrb[8].mxu1 %vm330_vm0, %v1005_v17 }
  0x2b   : > { %949 = vmatprep.mubr.msk.bf16.mxu0 %vm330_vm0, %v1006_v18  ;;  %965 = vmatprep.mubr.msk.bf16.mxu1 %vm330_vm0, %v1007_v19 }
  0x32   : > { %950 = vmatmul.mubr.msk.bf16.gmra.mrb[12].mxu0 %vm330_vm0, %v1008_v20  ;;  %966 = vmatmul.mubr.msk.bf16.gmra.mrb[12].mxu1 %vm330_vm0, %v1009_v21 }
  0xed   : > { %v939_v23 = vpop.f32.mrb[0].mxu0  ;;  %v955_v24 = vpop.f32.mrb[0].mxu1 }
  0xee   : > { %v426_v25 = vadd.f32 %v939_v23, %v1106_v22  ;;  %v490_v26 = vadd.f32 %v955_v24, %v1106_v22  ;;  %v417_v27 = vpop.f32.mrb[1].mxu0  ;;  %v481_v28 = vpop.f32.mrb[1].mxu1 }
  0xef   : > { %v418_v29 = vadd.f32 %v1106_v22, %v417_v27  ;;  %v482_v30 = vadd.f32 %v1106_v22, %v481_v28  ;;  %v940_v31 = vpop.f32.mrb[2].mxu0  ;;  %v956_v32 = vpop.f32.mrb[2].mxu1 }
  0xf0   : > { %v546_v33 = vmax.f32 %v426_v25, 0.0  ;;  %v562_v34 = vmax.f32 %v490_v26, 0.0  ;;  %v429_v35 = vadd.f32 %v940_v31, %v1106_v22  ;;  %v493_v36 = vadd.f32 %v956_v32, %v1106_v22  ;;  %v420_v37 = vpop.f32.mrb[3].mxu0  ;;  %v484_v38 = vpop.f32.mrb[3].mxu1 }
  0xf1   : > { %v544_v39 = vmax.f32 %v418_v29, 0.0  ;;  %v560_v40 = vmax.f32 %v482_v30, 0.0  ;;  %v421_v41 = vadd.f32 %v1106_v22, %v420_v37  ;;  %v485_v42 = vadd.f32 %v1106_v22, %v484_v38 }
  0xf2   : > { %v876_v43 = vpack.c.bf16 %v546_v33, %v546_v33  ;;  %v892_v44 = vpack.c.bf16 %v562_v34, %v562_v34  ;;  %v547_v45 = vmax.f32 %v429_v35, 0.0  ;;  %v563_v46 = vmax.f32 %v493_v36, 0.0 }
  0xf3   : > { %v874_v47 = vpack.c.bf16 %v544_v39, %v544_v39  ;;  %v890_v48 = vpack.c.bf16 %v560_v40, %v560_v40  ;;  %v545_v49 = vmax.f32 %v421_v41, 0.0  ;;  %v561_v50 = vmax.f32 %v485_v42, 0.0 }
  0xf4   : > { %707 = vst.msk [vmem:[%s1119_s6 + $0x8] sm:$0xf] %vm704_vm2, %v876_v43  ;;  %723 = vst.msk [vmem:[%s1119_s6 + $0x48] sm:$0xf] %vm704_vm2, %v892_v44  ;;  %v877_v51 = vpack.c.bf16 %v547_v45, %v547_v45  ;;  %v893_v52 = vpack.c.bf16 %v563_v46, %v563_v46 }
  0xf5   : > { %705 = vst.msk [vmem:[%s1119_s6] sm:$0xf] %vm704_vm2, %v874_v47  ;;  %721 = vst.msk [vmem:[%s1119_s6 + $0x40] sm:$0xf] %vm704_vm2, %v890_v48  ;;  %v875_v53 = vpack.c.bf16 %v545_v49, %v545_v49  ;;  %v891_v54 = vpack.c.bf16 %v561_v50, %v561_v50  ;;  %v943_v55 = vpop.f32.mrb[4].mxu0  ;;  %v959_v56 = vpop.f32.mrb[4].mxu1 }
  0xf6   : > { %708 = vst.msk [vmem:[%s1119_s6 + $0xc] sm:$0xf] %vm704_vm2, %v877_v51  ;;  %724 = vst.msk [vmem:[%s1119_s6 + $0x4c] sm:$0xf] %vm704_vm2, %v893_v52  ;;  %v442_v57 = vadd.f32 %v943_v55, %v1106_v22  ;;  %v506_v58 = vadd.f32 %v959_v56, %v1106_v22  ;;  %v433_v59 = vpop.f32.mrb[5].mxu0  ;;  %v497_v60 = vpop.f32.mrb[5].mxu1 }
  0xf7   : > { %706 = vst.msk [vmem:[%s1119_s6 + $0x4] sm:$0xf] %vm704_vm2, %v875_v53  ;;  %722 = vst.msk [vmem:[%s1119_s6 + $0x44] sm:$0xf] %vm704_vm2, %v891_v54  ;;  %v434_v61 = vadd.f32 %v1106_v22, %v433_v59  ;;  %v498_v62 = vadd.f32 %v1106_v22, %v497_v60  ;;  %v944_v63 = vpop.f32.mrb[6].mxu0  ;;  %v960_v0 = vpop.f32.mrb[6].mxu1 }
  0xf8   : > { %v550_v1 = vmax.f32 %v442_v57, 0.0  ;;  %v566_v2 = vmax.f32 %v506_v58, 0.0  ;;  %v445_v3 = vadd.f32 %v944_v63, %v1106_v22  ;;  %v509_v4 = vadd.f32 %v960_v0, %v1106_v22  ;;  %v436_v5 = vpop.f32.mrb[7].mxu0  ;;  %v500_v6 = vpop.f32.mrb[7].mxu1 }
  0xf9   : > { %v548_v7 = vmax.f32 %v434_v61, 0.0  ;;  %v564_v8 = vmax.f32 %v498_v62, 0.0  ;;  %v437_v9 = vadd.f32 %v1106_v22, %v436_v5  ;;  %v501_v10 = vadd.f32 %v1106_v22, %v500_v6 }
  0xfa   : > { %v880_v11 = vpack.c.bf16 %v550_v1, %v550_v1  ;;  %v896_v12 = vpack.c.bf16 %v566_v2, %v566_v2  ;;  %v551_v13 = vmax.f32 %v445_v3, 0.0  ;;  %v567_v14 = vmax.f32 %v509_v4, 0.0 }
  0xfb   : > { %v878_v15 = vpack.c.bf16 %v548_v7, %v548_v7  ;;  %v894_v16 = vpack.c.bf16 %v564_v8, %v564_v8  ;;  %v549_v17 = vmax.f32 %v437_v9, 0.0  ;;  %v565_v18 = vmax.f32 %v501_v10, 0.0 }
  0xfc   : > { %711 = vst.msk [vmem:[%s1119_s6 + $0x18] sm:$0xf] %vm704_vm2, %v880_v11  ;;  %727 = vst.msk [vmem:[%s1119_s6 + $0x58] sm:$0xf] %vm704_vm2, %v896_v12  ;;  %v881_v19 = vpack.c.bf16 %v551_v13, %v551_v13  ;;  %v897_v20 = vpack.c.bf16 %v567_v14, %v567_v14 }
  0xfd   : > { %709 = vst.msk [vmem:[%s1119_s6 + $0x10] sm:$0xf] %vm704_vm2, %v878_v15  ;;  %725 = vst.msk [vmem:[%s1119_s6 + $0x50] sm:$0xf] %vm704_vm2, %v894_v16  ;;  %v879_v21 = vpack.c.bf16 %v549_v17, %v549_v17  ;;  %v895_v23 = vpack.c.bf16 %v565_v18, %v565_v18  ;;  %v947_v24 = vpop.f32.mrb[8].mxu0  ;;  %v963_v25 = vpop.f32.mrb[8].mxu1 }
  0xfe   : > { %712 = vst.msk [vmem:[%s1119_s6 + $0x1c] sm:$0xf] %vm704_vm2, %v881_v19  ;;  %728 = vst.msk [vmem:[%s1119_s6 + $0x5c] sm:$0xf] %vm704_vm2, %v897_v20  ;;  %v458_v26 = vadd.f32 %v947_v24, %v1106_v22  ;;  %v522_v27 = vadd.f32 %v963_v25, %v1106_v22  ;;  %v449_v28 = vpop.f32.mrb[9].mxu0  ;;  %v513_v29 = vpop.f32.mrb[9].mxu1 }
  0xff   : > { %710 = vst.msk [vmem:[%s1119_s6 + $0x14] sm:$0xf] %vm704_vm2, %v879_v21  ;;  %726 = vst.msk [vmem:[%s1119_s6 + $0x54] sm:$0xf] %vm704_vm2, %v895_v23  ;;  %v450_v30 = vadd.f32 %v1106_v22, %v449_v28  ;;  %v514_v31 = vadd.f32 %v1106_v22, %v513_v29  ;;  %v948_v32 = vpop.f32.mrb[10].mxu0  ;;  %v964_v33 = vpop.f32.mrb[10].mxu1 }
 0x100   : > { %v554_v34 = vmax.f32 %v458_v26, 0.0  ;;  %v570_v35 = vmax.f32 %v522_v27, 0.0  ;;  %v461_v36 = vadd.f32 %v948_v32, %v1106_v22  ;;  %v525_v37 = vadd.f32 %v964_v33, %v1106_v22  ;;  %v452_v38 = vpop.f32.mrb[11].mxu0  ;;  %v516_v39 = vpop.f32.mrb[11].mxu1 }
 0x101   : > { %v552_v40 = vmax.f32 %v450_v30, 0.0  ;;  %v568_v41 = vmax.f32 %v514_v31, 0.0  ;;  %v453_v42 = vadd.f32 %v1106_v22, %v452_v38  ;;  %v517_v43 = vadd.f32 %v1106_v22, %v516_v39 }
 0x102   : > { %v884_v44 = vpack.c.bf16 %v554_v34, %v554_v34  ;;  %v900_v45 = vpack.c.bf16 %v570_v35, %v570_v35  ;;  %v555_v46 = vmax.f32 %v461_v36, 0.0  ;;  %v571_v47 = vmax.f32 %v525_v37, 0.0 }
 0x103   : > { %v882_v48 = vpack.c.bf16 %v552_v40, %v552_v40  ;;  %v898_v49 = vpack.c.bf16 %v568_v41, %v568_v41  ;;  %v553_v50 = vmax.f32 %v453_v42, 0.0  ;;  %v569_v51 = vmax.f32 %v517_v43, 0.0 }
 0x104   : > { %715 = vst.msk [vmem:[%s1119_s6 + $0x28] sm:$0xf] %vm704_vm2, %v884_v44  ;;  %731 = vst.msk [vmem:[%s1119_s6 + $0x68] sm:$0xf] %vm704_vm2, %v900_v45  ;;  %v885_v52 = vpack.c.bf16 %v555_v46, %v555_v46  ;;  %v901_v53 = vpack.c.bf16 %v571_v47, %v571_v47 }
 0x105   : > { %713 = vst.msk [vmem:[%s1119_s6 + $0x20] sm:$0xf] %vm704_vm2, %v882_v48  ;;  %729 = vst.msk [vmem:[%s1119_s6 + $0x60] sm:$0xf] %vm704_vm2, %v898_v49  ;;  %v883_v54 = vpack.c.bf16 %v553_v50, %v553_v50  ;;  %v899_v55 = vpack.c.bf16 %v569_v51, %v569_v51  ;;  %v951_v56 = vpop.f32.mrb[12].mxu0  ;;  %v967_v57 = vpop.f32.mrb[12].mxu1 }
 0x106   : > { %716 = vst.msk [vmem:[%s1119_s6 + $0x2c] sm:$0xf] %vm704_vm2, %v885_v52  ;;  %732 = vst.msk [vmem:[%s1119_s6 + $0x6c] sm:$0xf] %vm704_vm2, %v901_v53  ;;  %v474_v58 = vadd.f32 %v951_v56, %v1106_v22  ;;  %v538_v59 = vadd.f32 %v967_v57, %v1106_v22  ;;  %v465_v60 = vpop.f32.mrb[13].mxu0  ;;  %v529_v61 = vpop.f32.mrb[13].mxu1 }
 0x107   : > { %714 = vst.msk [vmem:[%s1119_s6 + $0x24] sm:$0xf] %vm704_vm2, %v883_v54  ;;  %730 = vst.msk [vmem:[%s1119_s6 + $0x64] sm:$0xf] %vm704_vm2, %v899_v55  ;;  %v466_v62 = vadd.f32 %v1106_v22, %v465_v60  ;;  %v530_v63 = vadd.f32 %v1106_v22, %v529_v61  ;;  %v952_v0 = vpop.f32.mrb[14].mxu0  ;;  %v968_v1 = vpop.f32.mrb[14].mxu1 }
 0x108   : > { %v558_v2 = vmax.f32 %v474_v58, 0.0  ;;  %v574_v3 = vmax.f32 %v538_v59, 0.0  ;;  %v477_v4 = vadd.f32 %v952_v0, %v1106_v22  ;;  %v541_v5 = vadd.f32 %v968_v1, %v1106_v22  ;;  %v468_v6 = vpop.f32.mrb[15].mxu0  ;;  %v532_v7 = vpop.f32.mrb[15].mxu1 }
 0x109   : > { %v556_v8 = vmax.f32 %v466_v62, 0.0  ;;  %v572_v9 = vmax.f32 %v530_v63, 0.0  ;;  %v469_v10 = vadd.f32 %v1106_v22, %v468_v6  ;;  %v533_v11 = vadd.f32 %v1106_v22, %v532_v7 }
 0x10a   : > { %v888_v12 = vpack.c.bf16 %v558_v2, %v558_v2  ;;  %v904_v13 = vpack.c.bf16 %v574_v3, %v574_v3  ;;  %v559_v14 = vmax.f32 %v477_v4, 0.0  ;;  %v575_v15 = vmax.f32 %v541_v5, 0.0 }
 0x10b   : > { %v886_v16 = vpack.c.bf16 %v556_v8, %v556_v8  ;;  %v902_v17 = vpack.c.bf16 %v572_v9, %v572_v9  ;;  %v557_v18 = vmax.f32 %v469_v10, 0.0  ;;  %v573_v19 = vmax.f32 %v533_v11, 0.0 }
 0x10c   : > { %719 = vst.msk [vmem:[%s1119_s6 + $0x38] sm:$0xf] %vm704_vm2, %v888_v12  ;;  %735 = vst.msk [vmem:[%s1119_s6 + $0x78] sm:$0xf] %vm704_vm2, %v904_v13  ;;  %v889_v20 = vpack.c.bf16 %v559_v14, %v559_v14  ;;  %v905_v21 = vpack.c.bf16 %v575_v15, %v575_v15 }
 0x10d   : > { %717 = vst.msk [vmem:[%s1119_s6 + $0x30] sm:$0xf] %vm704_vm2, %v886_v16  ;;  %733 = vst.msk [vmem:[%s1119_s6 + $0x70] sm:$0xf] %vm704_vm2, %v902_v17  ;;  %v887_v22 = vpack.c.bf16 %v557_v18, %v557_v18  ;;  %v903_v23 = vpack.c.bf16 %v573_v19, %v573_v19 }
 0x10e   : > { %720 = vst.msk [vmem:[%s1119_s6 + $0x3c] sm:$0xf] %vm704_vm2, %v889_v20  ;;  %736 = vst.msk [vmem:[%s1119_s6 + $0x7c] sm:$0xf] %vm704_vm2, %v905_v21 }
 0x10f   : > { %718 = vst.msk [vmem:[%s1119_s6 + $0x34] sm:$0xf] %vm704_vm2, %v887_v22  ;;  %734 = vst.msk [vmem:[%s1119_s6 + $0x74] sm:$0xf] %vm704_vm2, %v903_v23 }
 0x110 PF: > { %s13_s12 = sadd.s32 1, %s1016_s12  }
 0x111   : > { %p10_p4 = scmp.ge.s32.totalorder %s13_s12, 4  }
 0x113   :  { %12 = sbr.rel (!%p10_p4) target bundleno = 1 (0x1), region = 62 }

// kernel: topdown_feature_head_forward.8
= control target key start
LH: loop header
LB: loop body
LE: loop exit
PB: predicated region body
PF: predicated region fallthrough
CT: control target
= control target key end

     0   :  { %s612_s12 = smov 0   ;;  %s695_s0 = inlined_call_operand.vmem [shape: bf16[128,144], index: 0, kind: input, shape index: {}]   ;;  %s696_s1 = inlined_call_operand.vmem [shape: bf16[144,32], index: 1, kind: input, shape index: {}]   ;;  %s697_s2 = inlined_call_operand.vmem [shape: f32[1,32], index: 2, kind: input, shape index: {}]   ;;  %s698_s3 = inlined_call_operand.vmem [shape: bf16[128,32], index: 3, kind: output, shape index: {}]  }
   0x1 LB: > { %s484_s13 = sadd.s32 4294967295, %s589_s12   ;;  %p488_p0 = scmp.ge.s32.totalorder %s589_s12, 1  ;;  %s589_s12 = sphi %s612_s12, %s13_s12  }
   0x2   : > { %p139_p1 = scmp.lt.s32.totalorder %s589_s12, 3 }
   0x4   : > { %p140_p2 = pnand %p488_p0, %p139_p1 }
   0x5   : > { %v562_v0 = vld [vmem:[%s696_s1] sm:$0xff] (!%p140_p2)   ;;  %v591_v1 = vmov (!%p140_p2), 0   ;;  %s489_s16 = sshll.u32 (!%p140_p2), %s484_s13, 3  ;;  %v563_v2 = vld [vmem:[%s696_s1 + $0x8] sm:$0xff] (!%p140_p2)   ;;  %v564_v3 = vld [vmem:[%s696_s1 + $0x10] sm:$0xff] (!%p140_p2)   ;;  %vm301_vm0 = vcmask (!%p140_p2), 130048  }
   0x6   : > { %143 = sbr.rel (%p140_p2) target bundleno = 271 (0x10f), region = 32  ;;  %314 = vmatprep.subr.bf16.mxu0 (!%p140_p2), %v591_v1  ;;  %535 = vmatprep.subr.bf16.mxu1 (!%p140_p2), %v591_v1  ;;  %p165_p3 = scmp.lt.s32.totalorder (!%p140_p2), %s489_s16, 15  ;;  %v565_v4 = vld [vmem:[%s696_s1 + $0x18] sm:$0xff] (!%p140_p2)   ;;  %v566_v7 = vld [vmem:[%s696_s1 + $0x20] sm:$0xff] (!%p140_p2)   ;;  %v567_v8 = vld [vmem:[%s696_s1 + $0x28] sm:$0xff] (!%p140_p2)   ;;  %vm419_vm1 = vcmask (!%p140_p2), 257024  }
   0x7   : > { %315 = vmatpush1.bf16.msra.mxu0 (!%p140_p2), %v562_v0  ;;  %544 = vmatpush1.bf16.msra.mxu1 (!%p140_p2), %v562_v0  ;;  %v568_v9 = vld [vmem:[%s696_s1 + $0x30] sm:$0xff] (!%p140_p2)   ;;  %v569_v10 = vld [vmem:[%s696_s1 + $0x38] sm:$0xff] (!%p140_p2)   ;;  %v570_v11 = vld [vmem:[%s696_s1 + $0x40] sm:$0xff] (!%p140_p2)  }
   0x8   : > { %316 = vmatprep.subr.bf16.mxu0 (!%p140_p2), %v591_v1  ;;  %536 = vmatprep.subr.bf16.mxu1 (!%p140_p2), %v591_v1  ;;  %v494_v18 = vld [vmem:[%s697_s2] ss:$0 sm:$0xff] (!%p140_p2) }
   0xb   : > { %317 = vmatpush1.bf16.msra.mxu0 (!%p140_p2), %v563_v2  ;;  %545 = vmatpush1.bf16.msra.mxu1 (!%p140_p2), %v563_v2 }
   0xc   : > { %318 = vmatprep.subr.bf16.mxu0 (!%p140_p2), %v591_v1  ;;  %537 = vmatprep.subr.bf16.mxu1 (!%p140_p2), %v591_v1 }
   0xd   : > { %s700_s16 = smov (!%p165_p3, %s489_s16), 15 }
   0xe   : > { %s526_s21 = sshll.u32 %s700_s16, 3  ;;  %s493_s13 = sshll.u32 %s700_s16, 2 }
   0xf   : > { %s635_s24 = scalar_lea.vmem %s695_s0, %s526_s21  ;;  %319 = vmatpush1.bf16.msra.mxu0 %v564_v3  ;;  %546 = vmatpush1.bf16.msra.mxu1 %v564_v3  ;;  %s674_s17 = scalar_lea.vmem %s698_s3, %s493_s13 }
  0x10   : > { %v573_v5 = vld [vmem:[%s635_s24 + $0x4] ss:$8 sps:$4 sm:$0xff]   ;;  %320 = vmatprep.subr.bf16.mxu0 %v591_v1  ;;  %538 = vmatprep.subr.bf16.mxu1 %v591_v1  ;;  %v571_v12 = vld [vmem:[%s635_s24] ss:$8 sps:$4 sm:$0xff]   ;;  %v577_v14 = vld [vmem:[%s635_s24 + $0x14] ss:$8 sps:$4 sm:$0xff]  }
  0x11   : > { %v576_v6 = vld [vmem:[%s635_s24 + $0x24] ss:$8 sps:$4 sm:$0xff]   ;;  %512 = vmatprep.mubr.msk.bf16.mxu0 %vm301_vm0, %v573_v5  ;;  %v574_v13 = vld [vmem:[%s635_s24 + $0x20] ss:$8 sps:$4 sm:$0xff]   ;;  %v579_v15 = vld [vmem:[%s635_s24 + $0x34] ss:$8 sps:$4 sm:$0xff]  }
  0x12   : > { %514 = vmatprep.mubr.msk.bf16.mxu1 %vm301_vm0, %v576_v6  ;;  %v581_v16 = vld [vmem:[%s635_s24 + $0x10] ss:$8 sps:$4 sm:$0xff]  }
  0x13   : > { %321 = vmatpush1.bf16.msra.mxu0 %v565_v4  ;;  %547 = vmatpush1.bf16.msra.mxu1 %v565_v4  ;;  %v582_v17 = vld [vmem:[%s635_s24 + $0x30] ss:$8 sps:$4 sm:$0xff]  }
  0x14   : > { %322 = vmatprep.subr.bf16.mxu0 %v591_v1  ;;  %539 = vmatprep.subr.bf16.mxu1 %v591_v1 }
  0x17   : > { %323 = vmatpush1.bf16.msra.mxu0 %v566_v7  ;;  %548 = vmatpush1.bf16.msra.mxu1 %v566_v7 }
  0x18   : > { %324 = vmatprep.subr.bf16.mxu0 %v591_v1  ;;  %540 = vmatprep.subr.bf16.mxu1 %v591_v1 }
  0x1b   : > { %325 = vmatpush1.bf16.msra.mxu0 %v567_v8  ;;  %549 = vmatpush1.bf16.msra.mxu1 %v567_v8 }
  0x1c   : > { %326 = vmatprep.subr.bf16.mxu0 %v591_v1  ;;  %541 = vmatprep.subr.bf16.mxu1 %v591_v1 }
  0x1f   : > { %327 = vmatpush1.bf16.msra.mxu0 %v568_v9  ;;  %550 = vmatpush1.bf16.msra.mxu1 %v568_v9 }
  0x20   : > { %328 = vmatprep.subr.bf16.mxu0 %v591_v1  ;;  %542 = vmatprep.subr.bf16.mxu1 %v591_v1 }
  0x23   : > { %329 = vmatpush1.bf16.msra.mxu0 %v569_v10  ;;  %551 = vmatpush1.bf16.msra.mxu1 %v569_v10 }
  0x24   : > { %330 = vmatprep.subr.bf16.mxu0 %v591_v1  ;;  %543 = vmatprep.subr.bf16.mxu1 %v591_v1 }
  0x27   : > { %331 = vmatpush1.bf16.msra.mxu0 %v570_v11  ;;  %552 = vmatpush1.bf16.msra.mxu1 %v570_v11 }
  0x2a   : > { %347 = vmatmul.mubr.bf16.vlgmr.msra.gmra.mrb[0].mxu0 %v571_v12  ;;  %363 = vmatmul.mubr.bf16.vlgmr.msra.gmra.mrb[0].mxu1 %v574_v13 }
  0x2b   : > { %513 = vmatprep.mubr.msk.bf16.mxu0 %vm301_vm0, %v577_v14  ;;  %515 = vmatprep.mubr.msk.bf16.mxu1 %vm301_vm0, %v579_v15 }
  0x32   : > { %355 = vmatmul.mubr.bf16.gmra.mrb[4].mxu0 %v581_v16  ;;  %371 = vmatmul.mubr.bf16.gmra.mrb[4].mxu1 %v582_v17 }
  0xfd   : > { %v348_v19 = vpop.f32.mrb[0].mxu0  ;;  %v364_v20 = vpop.f32.mrb[0].mxu1 }
  0xfe   : > { %v349_v21 = vadd.f32 %v494_v18, %v348_v19  ;;  %v365_v22 = vadd.f32 %v494_v18, %v364_v20  ;;  %v350_v23 = vpop.f32.mrb[1].mxu0  ;;  %v366_v24 = vpop.f32.mrb[1].mxu1 }
  0xff   : > { %v351_v25 = vpop.f32.mrb[2].mxu0  ;;  %v367_v26 = vpop.f32.mrb[2].mxu1 }
 0x100   : > { %v379_v27 = vmax.f32 %v349_v21, 0.0  ;;  %v383_v28 = vmax.f32 %v365_v22, 0.0  ;;  %v352_v29 = vadd.f32 %v494_v18, %v351_v25  ;;  %v368_v30 = vadd.f32 %v494_v18, %v367_v26  ;;  %v353_v31 = vpop.f32.mrb[3].mxu0  ;;  %v369_v32 = vpop.f32.mrb[3].mxu1 }
 0x102   : > { %v527_v33 = vpack.c.bf16 %v379_v27, %v379_v27  ;;  %v531_v34 = vpack.c.bf16 %v383_v28, %v383_v28  ;;  %v380_v35 = vmax.f32 %v352_v29, 0.0  ;;  %v384_v36 = vmax.f32 %v368_v30, 0.0 }
 0x104   : > { %420 = vst.msk [vmem:[%s674_s17] sm:$0xf] %vm419_vm1, %v527_v33  ;;  %424 = vst.msk [vmem:[%s674_s17 + $0x10] sm:$0xf] %vm419_vm1, %v531_v34  ;;  %v528_v37 = vpack.c.bf16 %v380_v35, %v380_v35  ;;  %v532_v38 = vpack.c.bf16 %v384_v36, %v384_v36 }
 0x105   : > { %v356_v39 = vpop.f32.mrb[4].mxu0  ;;  %v372_v40 = vpop.f32.mrb[4].mxu1 }
 0x106   : > { %421 = vst.msk [vmem:[%s674_s17 + $0x4] sm:$0xf] %vm419_vm1, %v528_v37  ;;  %425 = vst.msk [vmem:[%s674_s17 + $0x14] sm:$0xf] %vm419_vm1, %v532_v38  ;;  %v357_v41 = vadd.f32 %v494_v18, %v356_v39  ;;  %v373_v42 = vadd.f32 %v494_v18, %v372_v40  ;;  %v358_v43 = vpop.f32.mrb[5].mxu0  ;;  %v374_v44 = vpop.f32.mrb[5].mxu1 }
 0x107   : > { %v359_v45 = vpop.f32.mrb[6].mxu0  ;;  %v375_v46 = vpop.f32.mrb[6].mxu1 }
 0x108   : > { %v381_v47 = vmax.f32 %v357_v41, 0.0  ;;  %v385_v48 = vmax.f32 %v373_v42, 0.0  ;;  %v360_v49 = vadd.f32 %v494_v18, %v359_v45  ;;  %v376_v50 = vadd.f32 %v494_v18, %v375_v46  ;;  %v361_v51 = vpop.f32.mrb[7].mxu0  ;;  %v377_v52 = vpop.f32.mrb[7].mxu1 }
 0x10a   : > { %v529_v53 = vpack.c.bf16 %v381_v47, %v381_v47  ;;  %v533_v54 = vpack.c.bf16 %v385_v48, %v385_v48  ;;  %v382_v55 = vmax.f32 %v360_v49, 0.0  ;;  %v386_v56 = vmax.f32 %v376_v50, 0.0 }
 0x10c   : > { %422 = vst.msk [vmem:[%s674_s17 + $0x8] sm:$0xf] %vm419_vm1, %v529_v53  ;;  %426 = vst.msk [vmem:[%s674_s17 + $0x18] sm:$0xf] %vm419_vm1, %v533_v54  ;;  %v530_v57 = vpack.c.bf16 %v382_v55, %v382_v55  ;;  %v534_v58 = vpack.c.bf16 %v386_v56, %v386_v56 }
 0x10e   : > { %423 = vst.msk [vmem:[%s674_s17 + $0xc] sm:$0xf] %vm419_vm1, %v530_v57  ;;  %427 = vst.msk [vmem:[%s674_s17 + $0x1c] sm:$0xf] %vm419_vm1, %v534_v58 }
 0x10f PF: > { %s13_s12 = sadd.s32 1, %s589_s12  }
 0x110   : > { %p10_p4 = scmp.ge.s32.totalorder %s13_s12, 4  }
 0x112   :  { %12 = sbr.rel (!%p10_p4) target bundleno = 1 (0x1), region = 62 }

// kernel: topdown_feature_head_forward.9
= control target key start
LH: loop header
LB: loop body
LE: loop exit
PB: predicated region body
PF: predicated region fallthrough
CT: control target
= control target key end

     0   :  { %s769_s12 = smov 0   ;;  %s851_s0 = inlined_call_operand.vmem [shape: bf16[4,128,128], index: 0, kind: input, shape index: {}]   ;;  %s852_s1 = inlined_call_operand.vmem [shape: bf16[4,128,32], index: 1, kind: input, shape index: {}]   ;;  %s853_s2 = inlined_call_operand.vmem [shape: f32[1,32], index: 2, kind: input, shape index: {}]   ;;  %s854_s3 = inlined_call_operand.vmem [shape: bf16[4,128,32], index: 3, kind: output, shape index: {}]  }
   0x1 LB: > { %s588_s13 = sadd.s32 4294967295, %s747_s12   ;;  %p592_p0 = scmp.ge.s32.totalorder %s747_s12, 1  ;;  %s747_s12 = sphi %s769_s12, %s13_s12  }
   0x2   : > { %p147_p1 = scmp.lt.s32.totalorder %s747_s12, 5 }
   0x4   : > { %p148_p2 = pnand %p592_p0, %p147_p1 }
   0x5   : > { %p176_p3 = scmp.lt.s32.totalorder (!%p148_p2), %s588_s13, 3  ;;  %v599_v16 = vld [vmem:[%s853_s2] ss:$0 sm:$0xff] (!%p148_p2)  ;;  %vm504_vm0 = vcmask (!%p148_p2), 257024  }
   0x6   : > { %151 = sbr.rel (%p148_p2) target bundleno = 279 (0x117), region = 32 }
   0xd   : > { %s856_s13 = smov (!%p176_p3, %s588_s13), 3 }
   0xe   : > { %s777_s14 = sshll.u32 %s856_s13, 6 }
   0xf   : > { %s783_s17 = scalar_lea.vmem %s852_s1, %s777_s14  ;;  %s792_s20 = scalar_lea.vmem %s851_s0, %s777_s14 }
  0x10   : > { %v725_v0 = vld [vmem:[%s783_s17] sm:$0xff]   ;;  %v726_v1 = vld [vmem:[%s783_s17 + $0x8] sm:$0xff]   ;;  %v727_v2 = vld [vmem:[%s783_s17 + $0x10] sm:$0xff]   ;;  %s814_s25 = scalar_lea.vmem %s854_s3, %s777_s14 }
  0x11   : > { %669 = vmatprep.subr.bf16.mxu0 %v725_v0  ;;  %701 = vmatprep.subr.bf16.mxu1 %v725_v0  ;;  %v728_v3 = vld [vmem:[%s783_s17 + $0x18] sm:$0xff]   ;;  %v733_v4 = vld [vmem:[%s792_s20] sm:$0xff]   ;;  %v730_v7 = vld [vmem:[%s783_s17 + $0x28] sm:$0xff]  }
  0x12   : > { %670 = vmatpush3.bf16.msra.mxu0 %v725_v0  ;;  %709 = vmatpush3.bf16.msra.mxu1 %v725_v0  ;;  %v734_v5 = vld [vmem:[%s792_s20 + $0x20] sm:$0xff]   ;;  %v731_v8 = vld [vmem:[%s783_s17 + $0x30] sm:$0xff]   ;;  %v732_v9 = vld [vmem:[%s783_s17 + $0x38] sm:$0xff]  }
  0x13   : > { %671 = vmatprep.subr.bf16.mxu0 %v726_v1  ;;  %702 = vmatprep.subr.bf16.mxu1 %v726_v1  ;;  %v729_v6 = vld [vmem:[%s783_s17 + $0x20] sm:$0xff]   ;;  %v735_v10 = vld [vmem:[%s792_s20 + $0x8] sm:$0xff]   ;;  %v737_v12 = vld [vmem:[%s792_s20 + $0x10] sm:$0xff]  }
  0x14   : > { %685 = vmatprep.mubr.bf16.mxu0 %v733_v4  ;;  %693 = vmatprep.mubr.bf16.mxu1 %v734_v5  ;;  %v736_v11 = vld [vmem:[%s792_s20 + $0x28] sm:$0xff]   ;;  %v738_v13 = vld [vmem:[%s792_s20 + $0x30] sm:$0xff]   ;;  %v739_v14 = vld [vmem:[%s792_s20 + $0x18] sm:$0xff]  }
  0x15   : > { %v740_v15 = vld [vmem:[%s792_s20 + $0x38] sm:$0xff]  }
  0x16   : > { %672 = vmatpush3.bf16.msra.mxu0 %v726_v1  ;;  %710 = vmatpush3.bf16.msra.mxu1 %v726_v1 }
  0x17   : > { %673 = vmatprep.subr.bf16.mxu0 %v727_v2  ;;  %703 = vmatprep.subr.bf16.mxu1 %v727_v2 }
  0x1a   : > { %674 = vmatpush3.bf16.msra.mxu0 %v727_v2  ;;  %711 = vmatpush3.bf16.msra.mxu1 %v727_v2 }
  0x1b   : > { %675 = vmatprep.subr.bf16.mxu0 %v728_v3  ;;  %704 = vmatprep.subr.bf16.mxu1 %v728_v3 }
  0x1e   : > { %676 = vmatpush3.bf16.msra.mxu0 %v728_v3  ;;  %712 = vmatpush3.bf16.msra.mxu1 %v728_v3 }
  0x1f   : > { %677 = vmatprep.subr.bf16.mxu0 %v729_v6  ;;  %705 = vmatprep.subr.bf16.mxu1 %v729_v6 }
  0x22   : > { %678 = vmatpush3.bf16.msra.mxu0 %v729_v6  ;;  %713 = vmatpush3.bf16.msra.mxu1 %v729_v6 }
  0x23   : > { %679 = vmatprep.subr.bf16.mxu0 %v730_v7  ;;  %706 = vmatprep.subr.bf16.mxu1 %v730_v7 }
  0x26   : > { %680 = vmatpush3.bf16.msra.mxu0 %v730_v7  ;;  %714 = vmatpush3.bf16.msra.mxu1 %v730_v7 }
  0x27   : > { %681 = vmatprep.subr.bf16.mxu0 %v731_v8  ;;  %707 = vmatprep.subr.bf16.mxu1 %v731_v8 }
  0x2a   : > { %682 = vmatpush3.bf16.msra.mxu0 %v731_v8  ;;  %715 = vmatpush3.bf16.msra.mxu1 %v731_v8 }
  0x2b   : > { %683 = vmatprep.subr.bf16.mxu0 %v732_v9  ;;  %708 = vmatprep.subr.bf16.mxu1 %v732_v9 }
  0x2e   : > { %684 = vmatpush3.bf16.msra.mxu0 %v732_v9  ;;  %716 = vmatpush3.bf16.msra.mxu1 %v732_v9 }
  0x31   : > { %686 = vmatmul.mubr.bf16.vlgmr.msra.gmra.mrb[0].mxu0 %v735_v10  ;;  %694 = vmatmul.mubr.bf16.vlgmr.msra.gmra.mrb[0].mxu1 %v736_v11 }
  0x32   : > { %689 = vmatprep.mubr.bf16.mxu0 %v737_v12  ;;  %697 = vmatprep.mubr.bf16.mxu1 %v738_v13 }
  0x39   : > { %690 = vmatmul.mubr.bf16.gmra.mrb[4].mxu0 %v739_v14  ;;  %698 = vmatmul.mubr.bf16.gmra.mrb[4].mxu1 %v740_v15 }
 0x104   : > { %v687_v17 = vpop.f32.mrb[0].mxu0  ;;  %v695_v18 = vpop.f32.mrb[0].mxu1 }
 0x105   : > { %v370_v19 = vadd.f32 %v687_v17, %v599_v16  ;;  %v402_v20 = vadd.f32 %v695_v18, %v599_v16  ;;  %v361_v21 = vpop.f32.mrb[1].mxu0  ;;  %v393_v22 = vpop.f32.mrb[1].mxu1 }
 0x106   : > { %v362_v23 = vadd.f32 %v599_v16, %v361_v21  ;;  %v394_v24 = vadd.f32 %v599_v16, %v393_v22  ;;  %v688_v25 = vpop.f32.mrb[2].mxu0  ;;  %v696_v26 = vpop.f32.mrb[2].mxu1 }
 0x107   : > { %v426_v27 = vmax.f32 %v370_v19, 0.0  ;;  %v434_v28 = vmax.f32 %v402_v20, 0.0  ;;  %v373_v29 = vadd.f32 %v688_v25, %v599_v16  ;;  %v405_v30 = vadd.f32 %v696_v26, %v599_v16  ;;  %v364_v31 = vpop.f32.mrb[3].mxu0  ;;  %v396_v32 = vpop.f32.mrb[3].mxu1 }
 0x108   : > { %v424_v33 = vmax.f32 %v362_v23, 0.0  ;;  %v432_v34 = vmax.f32 %v394_v24, 0.0  ;;  %v365_v35 = vadd.f32 %v599_v16, %v364_v31  ;;  %v397_v36 = vadd.f32 %v599_v16, %v396_v32 }
 0x109   : > { %v639_v37 = vpack.c.bf16 %v426_v27, %v426_v27  ;;  %v647_v38 = vpack.c.bf16 %v434_v28, %v434_v28  ;;  %v427_v39 = vmax.f32 %v373_v29, 0.0  ;;  %v435_v40 = vmax.f32 %v405_v30, 0.0 }
 0x10a   : > { %v637_v41 = vpack.c.bf16 %v424_v33, %v424_v33  ;;  %v645_v42 = vpack.c.bf16 %v432_v34, %v432_v34  ;;  %v425_v43 = vmax.f32 %v365_v35, 0.0  ;;  %v433_v44 = vmax.f32 %v397_v36, 0.0 }
 0x10b   : > { %507 = vst.msk [vmem:[%s814_s25 + $0x8] sm:$0xf] %vm504_vm0, %v639_v37  ;;  %515 = vst.msk [vmem:[%s814_s25 + $0x28] sm:$0xf] %vm504_vm0, %v647_v38  ;;  %v640_v45 = vpack.c.bf16 %v427_v39, %v427_v39  ;;  %v648_v46 = vpack.c.bf16 %v435_v40, %v435_v40 }
 0x10c   : > { %505 = vst.msk [vmem:[%s814_s25] sm:$0xf] %vm504_vm0, %v637_v41  ;;  %513 = vst.msk [vmem:[%s814_s25 + $0x20] sm:$0xf] %vm504_vm0, %v645_v42  ;;  %v638_v47 = vpack.c.bf16 %v425_v43, %v425_v43  ;;  %v646_v48 = vpack.c.bf16 %v433_v44, %v433_v44  ;;  %v691_v49 = vpop.f32.mrb[4].mxu0  ;;  %v699_v50 = vpop.f32.mrb[4].mxu1 }
 0x10d   : > { %508 = vst.msk [vmem:[%s814_s25 + $0xc] sm:$0xf] %vm504_vm0, %v640_v45  ;;  %516 = vst.msk [vmem:[%s814_s25 + $0x2c] sm:$0xf] %vm504_vm0, %v648_v46  ;;  %v386_v51 = vadd.f32 %v691_v49, %v599_v16  ;;  %v418_v52 = vadd.f32 %v699_v50, %v599_v16  ;;  %v377_v53 = vpop.f32.mrb[5].mxu0  ;;  %v409_v54 = vpop.f32.mrb[5].mxu1 }
 0x10e   : > { %506 = vst.msk [vmem:[%s814_s25 + $0x4] sm:$0xf] %vm504_vm0, %v638_v47  ;;  %514 = vst.msk [vmem:[%s814_s25 + $0x24] sm:$0xf] %vm504_vm0, %v646_v48  ;;  %v378_v55 = vadd.f32 %v599_v16, %v377_v53  ;;  %v410_v56 = vadd.f32 %v599_v16, %v409_v54  ;;  %v692_v57 = vpop.f32.mrb[6].mxu0  ;;  %v700_v58 = vpop.f32.mrb[6].mxu1 }
 0x10f   : > { %v430_v59 = vmax.f32 %v386_v51, 0.0  ;;  %v438_v60 = vmax.f32 %v418_v52, 0.0  ;;  %v389_v61 = vadd.f32 %v692_v57, %v599_v16  ;;  %v421_v62 = vadd.f32 %v700_v58, %v599_v16  ;;  %v380_v63 = vpop.f32.mrb[7].mxu0  ;;  %v412_v0 = vpop.f32.mrb[7].mxu1 }
 0x110   : > { %v428_v1 = vmax.f32 %v378_v55, 0.0  ;;  %v436_v2 = vmax.f32 %v410_v56, 0.0  ;;  %v381_v3 = vadd.f32 %v599_v16, %v380_v63  ;;  %v413_v4 = vadd.f32 %v599_v16, %v412_v0 }
 0x111   : > { %v643_v5 = vpack.c.bf16 %v430_v59, %v430_v59  ;;  %v651_v6 = vpack.c.bf16 %v438_v60, %v438_v60  ;;  %v431_v7 = vmax.f32 %v389_v61, 0.0  ;;  %v439_v8 = vmax.f32 %v421_v62, 0.0 }
 0x112   : > { %v641_v9 = vpack.c.bf16 %v428_v1, %v428_v1  ;;  %v649_v10 = vpack.c.bf16 %v436_v2, %v436_v2  ;;  %v429_v11 = vmax.f32 %v381_v3, 0.0  ;;  %v437_v12 = vmax.f32 %v413_v4, 0.0 }
 0x113   : > { %511 = vst.msk [vmem:[%s814_s25 + $0x18] sm:$0xf] %vm504_vm0, %v643_v5  ;;  %519 = vst.msk [vmem:[%s814_s25 + $0x38] sm:$0xf] %vm504_vm0, %v651_v6  ;;  %v644_v13 = vpack.c.bf16 %v431_v7, %v431_v7  ;;  %v652_v14 = vpack.c.bf16 %v439_v8, %v439_v8 }
 0x114   : > { %509 = vst.msk [vmem:[%s814_s25 + $0x10] sm:$0xf] %vm504_vm0, %v641_v9  ;;  %517 = vst.msk [vmem:[%s814_s25 + $0x30] sm:$0xf] %vm504_vm0, %v649_v10  ;;  %v642_v15 = vpack.c.bf16 %v429_v11, %v429_v11  ;;  %v650_v16 = vpack.c.bf16 %v437_v12, %v437_v12 }
 0x115   : > { %512 = vst.msk [vmem:[%s814_s25 + $0x1c] sm:$0xf] %vm504_vm0, %v644_v13  ;;  %520 = vst.msk [vmem:[%s814_s25 + $0x3c] sm:$0xf] %vm504_vm0, %v652_v14 }
 0x116   : > { %510 = vst.msk [vmem:[%s814_s25 + $0x14] sm:$0xf] %vm504_vm0, %v642_v15  ;;  %518 = vst.msk [vmem:[%s814_s25 + $0x34] sm:$0xf] %vm504_vm0, %v650_v16 }
 0x117 PF: > { %s13_s12 = sadd.s32 1, %s747_s12  }
 0x118   : > { %p10_p4 = scmp.ge.s32.totalorder %s13_s12, 6  }
 0x11a   :  { %12 = sbr.rel (!%p10_p4) target bundleno = 1 (0x1), region = 65 }

// kernel: topdown_feature_head_forward.10
= control target key start
LH: loop header
LB: loop body
LE: loop exit
PB: predicated region body
PF: predicated region fallthrough
CT: control target
= control target key end

     0   :  { %s1657_s12 = smov 0   ;;  %s1928_s0 = inlined_call_operand.vmem [shape: bf16[4,512,128], index: 0, kind: input, shape index: {}]   ;;  %s1929_s1 = inlined_call_operand.vmem [shape: bf16[4,128,32], index: 1, kind: input, shape index: {}]   ;;  %s1930_s2 = inlined_call_operand.vmem [shape: f32[1,32], index: 2, kind: input, shape index: {}]   ;;  %s1931_s3 = inlined_call_operand.vmem [shape: bf16[4,512,32], index: 3, kind: output, shape index: {}]  }
   0x1 LB: > { %s1260_s13 = sadd.s32 4294967295, %s1635_s12   ;;  %p1264_p0 = scmp.ge.s32.totalorder %s1635_s12, 1  ;;  %s1635_s12 = sphi %s1657_s12, %s13_s12  }
   0x2   : > { %p147_p1 = scmp.lt.s32.totalorder %s1635_s12, 5 }
   0x4   : > { %p148_p2 = pnand %p1264_p0, %p147_p1 }
   0x5   : > { %p176_p3 = scmp.lt.s32.totalorder (!%p148_p2), %s1260_s13, 3  ;;  %v1724_v40 = vld [vmem:[%s1930_s2] ss:$0 sm:$0xff] (!%p148_p2)  ;;  %vm1128_vm0 = vcmask (!%p148_p2), 257024  }
   0x6   : > { %151 = sbr.rel (%p148_p2) target bundleno = 327 (0x147), region = 32 }
   0xd   : > { %s1933_s13 = smov (!%p176_p3, %s1260_s13), 3 }
   0xe   : > { %s1379_s14 = sshll.u32 %s1933_s13, 6  ;;  %s1378_s18 = sshll.u32 %s1933_s13, 8 }
   0xf   : > { %s1671_s17 = scalar_lea.vmem %s1929_s1, %s1379_s14  ;;  %s1682_s21 = scalar_lea.vmem %s1928_s0, %s1378_s18 }
  0x10   : > { %v1589_v0 = vld [vmem:[%s1671_s17] sm:$0xff]   ;;  %v1590_v1 = vld [vmem:[%s1671_s17 + $0x8] sm:$0xff]   ;;  %v1591_v2 = vld [vmem:[%s1671_s17 + $0x10] sm:$0xff]   ;;  %s1737_s26 = scalar_lea.vmem %s1931_s3, %s1378_s18 }
  0x11   : > { %1485 = vmatprep.subr.bf16.mxu0 %v1589_v0  ;;  %1565 = vmatprep.subr.bf16.mxu1 %v1589_v0  ;;  %v1592_v3 = vld [vmem:[%s1671_s17 + $0x18] sm:$0xff]   ;;  %v1597_v4 = vld [vmem:[%s1682_s21] sm:$0xff]   ;;  %v1594_v7 = vld [vmem:[%s1671_s17 + $0x28] sm:$0xff]  }
  0x12   : > { %1486 = vmatpush3.bf16.msra.mxu0 %v1589_v0  ;;  %1573 = vmatpush3.bf16.msra.mxu1 %v1589_v0  ;;  %v1598_v5 = vld [vmem:[%s1682_s21 + $0x80] sm:$0xff]   ;;  %v1595_v8 = vld [vmem:[%s1671_s17 + $0x30] sm:$0xff]   ;;  %v1596_v9 = vld [vmem:[%s1671_s17 + $0x38] sm:$0xff]  }
  0x13   : > { %1487 = vmatprep.subr.bf16.mxu0 %v1590_v1  ;;  %1566 = vmatprep.subr.bf16.mxu1 %v1590_v1  ;;  %v1593_v6 = vld [vmem:[%s1671_s17 + $0x20] sm:$0xff]   ;;  %v1599_v10 = vld [vmem:[%s1682_s21 + $0x8] sm:$0xff]   ;;  %v1601_v12 = vld [vmem:[%s1682_s21 + $0x10] sm:$0xff]  }
  0x14   : > { %1501 = vmatprep.mubr.bf16.mxu0 %v1597_v4  ;;  %1533 = vmatprep.mubr.bf16.mxu1 %v1598_v5  ;;  %v1600_v11 = vld [vmem:[%s1682_s21 + $0x88] sm:$0xff]   ;;  %v1602_v13 = vld [vmem:[%s1682_s21 + $0x90] sm:$0xff]   ;;  %v1603_v14 = vld [vmem:[%s1682_s21 + $0x18] sm:$0xff]  }
  0x15   : > { %v1604_v15 = vld [vmem:[%s1682_s21 + $0x98] sm:$0xff]   ;;  %v1605_v16 = vld [vmem:[%s1682_s21 + $0x20] sm:$0xff]   ;;  %v1607_v18 = vld [vmem:[%s1682_s21 + $0x28] sm:$0xff]  }
  0x16   : > { %1488 = vmatpush3.bf16.msra.mxu0 %v1590_v1  ;;  %1574 = vmatpush3.bf16.msra.mxu1 %v1590_v1  ;;  %v1606_v17 = vld [vmem:[%s1682_s21 + $0xa0] sm:$0xff]   ;;  %v1608_v19 = vld [vmem:[%s1682_s21 + $0xa8] sm:$0xff]   ;;  %v1609_v20 = vld [vmem:[%s1682_s21 + $0x30] sm:$0xff]  }
  0x17   : > { %1489 = vmatprep.subr.bf16.mxu0 %v1591_v2  ;;  %1567 = vmatprep.subr.bf16.mxu1 %v1591_v2  ;;  %v1610_v21 = vld [vmem:[%s1682_s21 + $0xb0] sm:$0xff]   ;;  %v1611_v22 = vld [vmem:[%s1682_s21 + $0x38] sm:$0xff]   ;;  %v1613_v24 = vld [vmem:[%s1682_s21 + $0x40] sm:$0xff]  }
  0x18   : > { %v1612_v23 = vld [vmem:[%s1682_s21 + $0xb8] sm:$0xff]   ;;  %v1614_v25 = vld [vmem:[%s1682_s21 + $0xc0] sm:$0xff]   ;;  %v1615_v26 = vld [vmem:[%s1682_s21 + $0x48] sm:$0xff]  }
  0x19   : > { %v1616_v27 = vld [vmem:[%s1682_s21 + $0xc8] sm:$0xff]   ;;  %v1617_v28 = vld [vmem:[%s1682_s21 + $0x50] sm:$0xff]   ;;  %v1619_v30 = vld [vmem:[%s1682_s21 + $0x58] sm:$0xff]  }
  0x1a   : > { %1490 = vmatpush3.bf16.msra.mxu0 %v1591_v2  ;;  %1575 = vmatpush3.bf16.msra.mxu1 %v1591_v2  ;;  %v1618_v29 = vld [vmem:[%s1682_s21 + $0xd0] sm:$0xff]   ;;  %v1620_v31 = vld [vmem:[%s1682_s21 + $0xd8] sm:$0xff]   ;;  %v1621_v32 = vld [vmem:[%s1682_s21 + $0x60] sm:$0xff]  }
  0x1b   : > { %1491 = vmatprep.subr.bf16.mxu0 %v1592_v3  ;;  %1568 = vmatprep.subr.bf16.mxu1 %v1592_v3  ;;  %v1622_v33 = vld [vmem:[%s1682_s21 + $0xe0] sm:$0xff]   ;;  %v1623_v34 = vld [vmem:[%s1682_s21 + $0x68] sm:$0xff]   ;;  %v1625_v36 = vld [vmem:[%s1682_s21 + $0x70] sm:$0xff]  }
  0x1c   : > { %v1624_v35 = vld [vmem:[%s1682_s21 + $0xe8] sm:$0xff]   ;;  %v1626_v37 = vld [vmem:[%s1682_s21 + $0xf0] sm:$0xff]   ;;  %v1627_v38 = vld [vmem:[%s1682_s21 + $0x78] sm:$0xff]  }
  0x1d   : > { %v1628_v39 = vld [vmem:[%s1682_s21 + $0xf8] sm:$0xff]  }
  0x1e   : > { %1492 = vmatpush3.bf16.msra.mxu0 %v1592_v3  ;;  %1576 = vmatpush3.bf16.msra.mxu1 %v1592_v3 }
  0x1f   : > { %1493 = vmatprep.subr.bf16.mxu0 %v1593_v6  ;;  %1569 = vmatprep.subr.bf16.mxu1 %v1593_v6 }
  0x22   : > { %1494 = vmatpush3.bf16.msra.mxu0 %v1593_v6  ;;  %1577 = vmatpush3.bf16.msra.mxu1 %v1593_v6 }
  0x23   : > { %1495 = vmatprep.subr.bf16.mxu0 %v1594_v7  ;;  %1570 = vmatprep.subr.bf16.mxu1 %v1594_v7 }
  0x26   : > { %1496 = vmatpush3.bf16.msra.mxu0 %v1594_v7  ;;  %1578 = vmatpush3.bf16.msra.mxu1 %v1594_v7 }
  0x27   : > { %1497 = vmatprep.subr.bf16.mxu0 %v1595_v8  ;;  %1571 = vmatprep.subr.bf16.mxu1 %v1595_v8 }
  0x2a   : > { %1498 = vmatpush3.bf16.msra.mxu0 %v1595_v8  ;;  %1579 = vmatpush3.bf16.msra.mxu1 %v1595_v8 }
  0x2b   : > { %1499 = vmatprep.subr.bf16.mxu0 %v1596_v9  ;;  %1572 = vmatprep.subr.bf16.mxu1 %v1596_v9 }
  0x2e   : > { %1500 = vmatpush3.bf16.msra.mxu0 %v1596_v9  ;;  %1580 = vmatpush3.bf16.msra.mxu1 %v1596_v9 }
  0x31   : > { %1502 = vmatmul.mubr.bf16.vlgmr.msra.gmra.mrb[0].mxu0 %v1599_v10  ;;  %1534 = vmatmul.mubr.bf16.vlgmr.msra.gmra.mrb[0].mxu1 %v1600_v11 }
  0x32   : > { %1505 = vmatprep.mubr.bf16.mxu0 %v1601_v12  ;;  %1537 = vmatprep.mubr.bf16.mxu1 %v1602_v13 }
  0x39   : > { %1506 = vmatmul.mubr.bf16.gmra.mrb[4].mxu0 %v1603_v14  ;;  %1538 = vmatmul.mubr.bf16.gmra.mrb[4].mxu1 %v1604_v15 }
  0x3a   : > { %1509 = vmatprep.mubr.bf16.mxu0 %v1605_v16  ;;  %1541 = vmatprep.mubr.bf16.mxu1 %v1606_v17 }
  0x41   : > { %1510 = vmatmul.mubr.bf16.gmra.mrb[8].mxu0 %v1607_v18  ;;  %1542 = vmatmul.mubr.bf16.gmra.mrb[8].mxu1 %v1608_v19 }
  0x42   : > { %1513 = vmatprep.mubr.bf16.mxu0 %v1609_v20  ;;  %1545 = vmatprep.mubr.bf16.mxu1 %v1610_v21 }
  0x49   : > { %1514 = vmatmul.mubr.bf16.gmra.mrb[12].mxu0 %v1611_v22  ;;  %1546 = vmatmul.mubr.bf16.gmra.mrb[12].mxu1 %v1612_v23 }
  0x4a   : > { %1517 = vmatprep.mubr.bf16.mxu0 %v1613_v24  ;;  %1549 = vmatprep.mubr.bf16.mxu1 %v1614_v25 }
  0x51   : > { %1518 = vmatmul.mubr.bf16.gmra.mrb[16].mxu0 %v1615_v26  ;;  %1550 = vmatmul.mubr.bf16.gmra.mrb[16].mxu1 %v1616_v27 }
  0x52   : > { %1521 = vmatprep.mubr.bf16.mxu0 %v1617_v28  ;;  %1553 = vmatprep.mubr.bf16.mxu1 %v1618_v29 }
  0x59   : > { %1522 = vmatmul.mubr.bf16.gmra.mrb[20].mxu0 %v1619_v30  ;;  %1554 = vmatmul.mubr.bf16.gmra.mrb[20].mxu1 %v1620_v31 }
  0x5a   : > { %1525 = vmatprep.mubr.bf16.mxu0 %v1621_v32  ;;  %1557 = vmatprep.mubr.bf16.mxu1 %v1622_v33 }
  0x61   : > { %1526 = vmatmul.mubr.bf16.gmra.mrb[24].mxu0 %v1623_v34  ;;  %1558 = vmatmul.mubr.bf16.gmra.mrb[24].mxu1 %v1624_v35 }
  0x62   : > { %1529 = vmatprep.mubr.bf16.mxu0 %v1625_v36  ;;  %1561 = vmatprep.mubr.bf16.mxu1 %v1626_v37 }
  0x69   : > { %1530 = vmatmul.mubr.bf16.gmra.mrb[28].mxu0 %v1627_v38  ;;  %1562 = vmatmul.mubr.bf16.gmra.mrb[28].mxu1 %v1628_v39 }
 0x104   : > { %v1503_v41 = vpop.f32.mrb[0].mxu0  ;;  %v1535_v42 = vpop.f32.mrb[0].mxu1 }
 0x105   : > { %v562_v43 = vadd.f32 %v1503_v41, %v1724_v40  ;;  %v690_v44 = vadd.f32 %v1535_v42, %v1724_v40  ;;  %v553_v45 = vpop.f32.mrb[1].mxu0  ;;  %v681_v46 = vpop.f32.mrb[1].mxu1 }
 0x106   : > { %v554_v47 = vadd.f32 %v1724_v40, %v553_v45  ;;  %v682_v48 = vadd.f32 %v1724_v40, %v681_v46  ;;  %v1504_v49 = vpop.f32.mrb[2].mxu0  ;;  %v1536_v50 = vpop.f32.mrb[2].mxu1 }
 0x107   : > { %v810_v51 = vmax.f32 %v562_v43, 0.0  ;;  %v842_v52 = vmax.f32 %v690_v44, 0.0  ;;  %v565_v53 = vadd.f32 %v1504_v49, %v1724_v40  ;;  %v693_v54 = vadd.f32 %v1536_v50, %v1724_v40  ;;  %v556_v55 = vpop.f32.mrb[3].mxu0  ;;  %v684_v56 = vpop.f32.mrb[3].mxu1 }
 0x108   : > { %v808_v57 = vmax.f32 %v554_v47, 0.0  ;;  %v840_v58 = vmax.f32 %v682_v48, 0.0  ;;  %v557_v59 = vadd.f32 %v1724_v40, %v556_v55  ;;  %v685_v60 = vadd.f32 %v1724_v40, %v684_v56 }
 0x109   : > { %v1383_v61 = vpack.c.bf16 %v810_v51, %v810_v51  ;;  %v1415_v62 = vpack.c.bf16 %v842_v52, %v842_v52  ;;  %v811_v63 = vmax.f32 %v565_v53, 0.0  ;;  %v843_v0 = vmax.f32 %v693_v54, 0.0 }
 0x10a   : > { %v1381_v1 = vpack.c.bf16 %v808_v57, %v808_v57  ;;  %v1413_v2 = vpack.c.bf16 %v840_v58, %v840_v58  ;;  %v809_v3 = vmax.f32 %v557_v59, 0.0  ;;  %v841_v4 = vmax.f32 %v685_v60, 0.0 }
 0x10b   : > { %1131 = vst.msk [vmem:[%s1737_s26 + $0x8] sm:$0xf] %vm1128_vm0, %v1383_v61  ;;  %1163 = vst.msk [vmem:[%s1737_s26 + $0x88] sm:$0xf] %vm1128_vm0, %v1415_v62  ;;  %v1384_v5 = vpack.c.bf16 %v811_v63, %v811_v63  ;;  %v1416_v6 = vpack.c.bf16 %v843_v0, %v843_v0 }
 0x10c   : > { %1129 = vst.msk [vmem:[%s1737_s26] sm:$0xf] %vm1128_vm0, %v1381_v1  ;;  %1161 = vst.msk [vmem:[%s1737_s26 + $0x80] sm:$0xf] %vm1128_vm0, %v1413_v2  ;;  %v1382_v7 = vpack.c.bf16 %v809_v3, %v809_v3  ;;  %v1414_v8 = vpack.c.bf16 %v841_v4, %v841_v4  ;;  %v1507_v9 = vpop.f32.mrb[4].mxu0  ;;  %v1539_v10 = vpop.f32.mrb[4].mxu1 }
 0x10d   : > { %1132 = vst.msk [vmem:[%s1737_s26 + $0xc] sm:$0xf] %vm1128_vm0, %v1384_v5  ;;  %1164 = vst.msk [vmem:[%s1737_s26 + $0x8c] sm:$0xf] %vm1128_vm0, %v1416_v6  ;;  %v578_v11 = vadd.f32 %v1507_v9, %v1724_v40  ;;  %v706_v12 = vadd.f32 %v1539_v10, %v1724_v40  ;;  %v569_v13 = vpop.f32.mrb[5].mxu0  ;;  %v697_v14 = vpop.f32.mrb[5].mxu1 }
 0x10e   : > { %1130 = vst.msk [vmem:[%s1737_s26 + $0x4] sm:$0xf] %vm1128_vm0, %v1382_v7  ;;  %1162 = vst.msk [vmem:[%s1737_s26 + $0x84] sm:$0xf] %vm1128_vm0, %v1414_v8  ;;  %v570_v15 = vadd.f32 %v1724_v40, %v569_v13  ;;  %v698_v16 = vadd.f32 %v1724_v40, %v697_v14  ;;  %v1508_v17 = vpop.f32.mrb[6].mxu0  ;;  %v1540_v18 = vpop.f32.mrb[6].mxu1 }
 0x10f   : > { %v814_v19 = vmax.f32 %v578_v11, 0.0  ;;  %v846_v20 = vmax.f32 %v706_v12, 0.0  ;;  %v581_v21 = vadd.f32 %v1508_v17, %v1724_v40  ;;  %v709_v22 = vadd.f32 %v1540_v18, %v1724_v40  ;;  %v572_v23 = vpop.f32.mrb[7].mxu0  ;;  %v700_v24 = vpop.f32.mrb[7].mxu1 }
 0x110   : > { %v812_v25 = vmax.f32 %v570_v15, 0.0  ;;  %v844_v26 = vmax.f32 %v698_v16, 0.0  ;;  %v573_v27 = vadd.f32 %v1724_v40, %v572_v23  ;;  %v701_v28 = vadd.f32 %v1724_v40, %v700_v24 }
 0x111   : > { %v1387_v29 = vpack.c.bf16 %v814_v19, %v814_v19  ;;  %v1419_v30 = vpack.c.bf16 %v846_v20, %v846_v20  ;;  %v815_v31 = vmax.f32 %v581_v21, 0.0  ;;  %v847_v32 = vmax.f32 %v709_v22, 0.0 }
 0x112   : > { %v1385_v33 = vpack.c.bf16 %v812_v25, %v812_v25  ;;  %v1417_v34 = vpack.c.bf16 %v844_v26, %v844_v26  ;;  %v813_v35 = vmax.f32 %v573_v27, 0.0  ;;  %v845_v36 = vmax.f32 %v701_v28, 0.0 }
 0x113   : > { %1135 = vst.msk [vmem:[%s1737_s26 + $0x18] sm:$0xf] %vm1128_vm0, %v1387_v29  ;;  %1167 = vst.msk [vmem:[%s1737_s26 + $0x98] sm:$0xf] %vm1128_vm0, %v1419_v30  ;;  %v1388_v37 = vpack.c.bf16 %v815_v31, %v815_v31  ;;  %v1420_v38 = vpack.c.bf16 %v847_v32, %v847_v32 }
 0x114   : > { %1133 = vst.msk [vmem:[%s1737_s26 + $0x10] sm:$0xf] %vm1128_vm0, %v1385_v33  ;;  %1165 = vst.msk [vmem:[%s1737_s26 + $0x90] sm:$0xf] %vm1128_vm0, %v1417_v34  ;;  %v1386_v39 = vpack.c.bf16 %v813_v35, %v813_v35  ;;  %v1418_v41 = vpack.c.bf16 %v845_v36, %v845_v36  ;;  %v1511_v42 = vpop.f32.mrb[8].mxu0  ;;  %v1543_v43 = vpop.f32.mrb[8].mxu1 }
 0x115   : > { %1136 = vst.msk [vmem:[%s1737_s26 + $0x1c] sm:$0xf] %vm1128_vm0, %v1388_v37  ;;  %1168 = vst.msk [vmem:[%s1737_s26 + $0x9c] sm:$0xf] %vm1128_vm0, %v1420_v38  ;;  %v594_v44 = vadd.f32 %v1511_v42, %v1724_v40  ;;  %v722_v45 = vadd.f32 %v1543_v43, %v1724_v40  ;;  %v585_v46 = vpop.f32.mrb[9].mxu0  ;;  %v713_v47 = vpop.f32.mrb[9].mxu1 }
 0x116   : > { %1134 = vst.msk [vmem:[%s1737_s26 + $0x14] sm:$0xf] %vm1128_vm0, %v1386_v39  ;;  %1166 = vst.msk [vmem:[%s1737_s26 + $0x94] sm:$0xf] %vm1128_vm0, %v1418_v41  ;;  %v586_v48 = vadd.f32 %v1724_v40, %v585_v46  ;;  %v714_v49 = vadd.f32 %v1724_v40, %v713_v47  ;;  %v1512_v50 = vpop.f32.mrb[10].mxu0  ;;  %v1544_v51 = vpop.f32.mrb[10].mxu1 }
 0x117   : > { %v818_v52 = vmax.f32 %v594_v44, 0.0  ;;  %v850_v53 = vmax.f32 %v722_v45, 0.0  ;;  %v597_v54 = vadd.f32 %v1512_v50, %v1724_v40  ;;  %v725_v55 = vadd.f32 %v1544_v51, %v1724_v40  ;;  %v588_v56 = vpop.f32.mrb[11].mxu0  ;;  %v716_v57 = vpop.f32.mrb[11].mxu1 }
 0x118   : > { %v816_v58 = vmax.f32 %v586_v48, 0.0  ;;  %v848_v59 = vmax.f32 %v714_v49, 0.0  ;;  %v589_v60 = vadd.f32 %v1724_v40, %v588_v56  ;;  %v717_v61 = vadd.f32 %v1724_v40, %v716_v57 }
 0x119   : > { %v1391_v62 = vpack.c.bf16 %v818_v52, %v818_v52  ;;  %v1423_v63 = vpack.c.bf16 %v850_v53, %v850_v53  ;;  %v819_v0 = vmax.f32 %v597_v54, 0.0  ;;  %v851_v1 = vmax.f32 %v725_v55, 0.0 }
 0x11a   : > { %v1389_v2 = vpack.c.bf16 %v816_v58, %v816_v58  ;;  %v1421_v3 = vpack.c.bf16 %v848_v59, %v848_v59  ;;  %v817_v4 = vmax.f32 %v589_v60, 0.0  ;;  %v849_v5 = vmax.f32 %v717_v61, 0.0 }
 0x11b   : > { %1139 = vst.msk [vmem:[%s1737_s26 + $0x28] sm:$0xf] %vm1128_vm0, %v1391_v62  ;;  %1171 = vst.msk [vmem:[%s1737_s26 + $0xa8] sm:$0xf] %vm1128_vm0, %v1423_v63  ;;  %v1392_v6 = vpack.c.bf16 %v819_v0, %v819_v0  ;;  %v1424_v7 = vpack.c.bf16 %v851_v1, %v851_v1 }
 0x11c   : > { %1137 = vst.msk [vmem:[%s1737_s26 + $0x20] sm:$0xf] %vm1128_vm0, %v1389_v2  ;;  %1169 = vst.msk [vmem:[%s1737_s26 + $0xa0] sm:$0xf] %vm1128_vm0, %v1421_v3  ;;  %v1390_v8 = vpack.c.bf16 %v817_v4, %v817_v4  ;;  %v1422_v9 = vpack.c.bf16 %v849_v5, %v849_v5  ;;  %v1515_v10 = vpop.f32.mrb[12].mxu0  ;;  %v1547_v11 = vpop.f32.mrb[12].mxu1 }
 0x11d   : > { %1140 = vst.msk [vmem:[%s1737_s26 + $0x2c] sm:$0xf] %vm1128_vm0, %v1392_v6  ;;  %1172 = vst.msk [vmem:[%s1737_s26 + $0xac] sm:$0xf] %vm1128_vm0, %v1424_v7  ;;  %v610_v12 = vadd.f32 %v1515_v10, %v1724_v40  ;;  %v738_v13 = vadd.f32 %v1547_v11, %v1724_v40  ;;  %v601_v14 = vpop.f32.mrb[13].mxu0  ;;  %v729_v15 = vpop.f32.mrb[13].mxu1 }
 0x11e   : > { %1138 = vst.msk [vmem:[%s1737_s26 + $0x24] sm:$0xf] %vm1128_vm0, %v1390_v8  ;;  %1170 = vst.msk [vmem:[%s1737_s26 + $0xa4] sm:$0xf] %vm1128_vm0, %v1422_v9  ;;  %v602_v16 = vadd.f32 %v1724_v40, %v601_v14  ;;  %v730_v17 = vadd.f32 %v1724_v40, %v729_v15  ;;  %v1516_v18 = vpop.f32.mrb[14].mxu0  ;;  %v1548_v19 = vpop.f32.mrb[14].mxu1 }
 0x11f   : > { %v822_v20 = vmax.f32 %v610_v12, 0.0  ;;  %v854_v21 = vmax.f32 %v738_v13, 0.0  ;;  %v613_v22 = vadd.f32 %v1516_v18, %v1724_v40  ;;  %v741_v23 = vadd.f32 %v1548_v19, %v1724_v40  ;;  %v604_v24 = vpop.f32.mrb[15].mxu0  ;;  %v732_v25 = vpop.f32.mrb[15].mxu1 }
 0x120   : > { %v820_v26 = vmax.f32 %v602_v16, 0.0  ;;  %v852_v27 = vmax.f32 %v730_v17, 0.0  ;;  %v605_v28 = vadd.f32 %v1724_v40, %v604_v24  ;;  %v733_v29 = vadd.f32 %v1724_v40, %v732_v25 }
 0x121   : > { %v1395_v30 = vpack.c.bf16 %v822_v20, %v822_v20  ;;  %v1427_v31 = vpack.c.bf16 %v854_v21, %v854_v21  ;;  %v823_v32 = vmax.f32 %v613_v22, 0.0  ;;  %v855_v33 = vmax.f32 %v741_v23, 0.0 }
 0x122   : > { %v1393_v34 = vpack.c.bf16 %v820_v26, %v820_v26  ;;  %v1425_v35 = vpack.c.bf16 %v852_v27, %v852_v27  ;;  %v821_v36 = vmax.f32 %v605_v28, 0.0  ;;  %v853_v37 = vmax.f32 %v733_v29, 0.0 }
 0x123   : > { %1143 = vst.msk [vmem:[%s1737_s26 + $0x38] sm:$0xf] %vm1128_vm0, %v1395_v30  ;;  %1175 = vst.msk [vmem:[%s1737_s26 + $0xb8] sm:$0xf] %vm1128_vm0, %v1427_v31  ;;  %v1396_v38 = vpack.c.bf16 %v823_v32, %v823_v32  ;;  %v1428_v39 = vpack.c.bf16 %v855_v33, %v855_v33 }
 0x124   : > { %1141 = vst.msk [vmem:[%s1737_s26 + $0x30] sm:$0xf] %vm1128_vm0, %v1393_v34  ;;  %1173 = vst.msk [vmem:[%s1737_s26 + $0xb0] sm:$0xf] %vm1128_vm0, %v1425_v35  ;;  %v1394_v41 = vpack.c.bf16 %v821_v36, %v821_v36  ;;  %v1426_v42 = vpack.c.bf16 %v853_v37, %v853_v37  ;;  %v1519_v43 = vpop.f32.mrb[16].mxu0  ;;  %v1551_v44 = vpop.f32.mrb[16].mxu1 }
 0x125   : > { %1144 = vst.msk [vmem:[%s1737_s26 + $0x3c] sm:$0xf] %vm1128_vm0, %v1396_v38  ;;  %1176 = vst.msk [vmem:[%s1737_s26 + $0xbc] sm:$0xf] %vm1128_vm0, %v1428_v39  ;;  %v626_v45 = vadd.f32 %v1519_v43, %v1724_v40  ;;  %v754_v46 = vadd.f32 %v1551_v44, %v1724_v40  ;;  %v617_v47 = vpop.f32.mrb[17].mxu0  ;;  %v745_v48 = vpop.f32.mrb[17].mxu1 }
 0x126   : > { %1142 = vst.msk [vmem:[%s1737_s26 + $0x34] sm:$0xf] %vm1128_vm0, %v1394_v41  ;;  %1174 = vst.msk [vmem:[%s1737_s26 + $0xb4] sm:$0xf] %vm1128_vm0, %v1426_v42  ;;  %v618_v49 = vadd.f32 %v1724_v40, %v617_v47  ;;  %v746_v50 = vadd.f32 %v1724_v40, %v745_v48  ;;  %v1520_v51 = vpop.f32.mrb[18].mxu0  ;;  %v1552_v52 = vpop.f32.mrb[18].mxu1 }
 0x127   : > { %v826_v53 = vmax.f32 %v626_v45, 0.0  ;;  %v858_v54 = vmax.f32 %v754_v46, 0.0  ;;  %v629_v55 = vadd.f32 %v1520_v51, %v1724_v40  ;;  %v757_v56 = vadd.f32 %v1552_v52, %v1724_v40  ;;  %v620_v57 = vpop.f32.mrb[19].mxu0  ;;  %v748_v58 = vpop.f32.mrb[19].mxu1 }
 0x128   : > { %v824_v59 = vmax.f32 %v618_v49, 0.0  ;;  %v856_v60 = vmax.f32 %v746_v50, 0.0  ;;  %v621_v61 = vadd.f32 %v1724_v40, %v620_v57  ;;  %v749_v62 = vadd.f32 %v1724_v40, %v748_v58 }
 0x129   : > { %v1399_v63 = vpack.c.bf16 %v826_v53, %v826_v53  ;;  %v1431_v0 = vpack.c.bf16 %v858_v54, %v858_v54  ;;  %v827_v1 = vmax.f32 %v629_v55, 0.0  ;;  %v859_v2 = vmax.f32 %v757_v56, 0.0 }
 0x12a   : > { %v1397_v3 = vpack.c.bf16 %v824_v59, %v824_v59  ;;  %v1429_v4 = vpack.c.bf16 %v856_v60, %v856_v60  ;;  %v825_v5 = vmax.f32 %v621_v61, 0.0  ;;  %v857_v6 = vmax.f32 %v749_v62, 0.0 }
 0x12b   : > { %1147 = vst.msk [vmem:[%s1737_s26 + $0x48] sm:$0xf] %vm1128_vm0, %v1399_v63  ;;  %1179 = vst.msk [vmem:[%s1737_s26 + $0xc8] sm:$0xf] %vm1128_vm0, %v1431_v0  ;;  %v1400_v7 = vpack.c.bf16 %v827_v1, %v827_v1  ;;  %v1432_v8 = vpack.c.bf16 %v859_v2, %v859_v2 }
 0x12c   : > { %1145 = vst.msk [vmem:[%s1737_s26 + $0x40] sm:$0xf] %vm1128_vm0, %v1397_v3  ;;  %1177 = vst.msk [vmem:[%s1737_s26 + $0xc0] sm:$0xf] %vm1128_vm0, %v1429_v4  ;;  %v1398_v9 = vpack.c.bf16 %v825_v5, %v825_v5  ;;  %v1430_v10 = vpack.c.bf16 %v857_v6, %v857_v6  ;;  %v1523_v11 = vpop.f32.mrb[20].mxu0  ;;  %v1555_v12 = vpop.f32.mrb[20].mxu1 }
 0x12d   : > { %1148 = vst.msk [vmem:[%s1737_s26 + $0x4c] sm:$0xf] %vm1128_vm0, %v1400_v7  ;;  %1180 = vst.msk [vmem:[%s1737_s26 + $0xcc] sm:$0xf] %vm1128_vm0, %v1432_v8  ;;  %v642_v13 = vadd.f32 %v1523_v11, %v1724_v40  ;;  %v770_v14 = vadd.f32 %v1555_v12, %v1724_v40  ;;  %v633_v15 = vpop.f32.mrb[21].mxu0  ;;  %v761_v16 = vpop.f32.mrb[21].mxu1 }
 0x12e   : > { %1146 = vst.msk [vmem:[%s1737_s26 + $0x44] sm:$0xf] %vm1128_vm0, %v1398_v9  ;;  %1178 = vst.msk [vmem:[%s1737_s26 + $0xc4] sm:$0xf] %vm1128_vm0, %v1430_v10  ;;  %v634_v17 = vadd.f32 %v1724_v40, %v633_v15  ;;  %v762_v18 = vadd.f32 %v1724_v40, %v761_v16  ;;  %v1524_v19 = vpop.f32.mrb[22].mxu0  ;;  %v1556_v20 = vpop.f32.mrb[22].mxu1 }
 0x12f   : > { %v830_v21 = vmax.f32 %v642_v13, 0.0  ;;  %v862_v22 = vmax.f32 %v770_v14, 0.0  ;;  %v645_v23 = vadd.f32 %v1524_v19, %v1724_v40  ;;  %v773_v24 = vadd.f32 %v1556_v20, %v1724_v40  ;;  %v636_v25 = vpop.f32.mrb[23].mxu0  ;;  %v764_v26 = vpop.f32.mrb[23].mxu1 }
 0x130   : > { %v828_v27 = vmax.f32 %v634_v17, 0.0  ;;  %v860_v28 = vmax.f32 %v762_v18, 0.0  ;;  %v637_v29 = vadd.f32 %v1724_v40, %v636_v25  ;;  %v765_v30 = vadd.f32 %v1724_v40, %v764_v26 }
 0x131   : > { %v1403_v31 = vpack.c.bf16 %v830_v21, %v830_v21  ;;  %v1435_v32 = vpack.c.bf16 %v862_v22, %v862_v22  ;;  %v831_v33 = vmax.f32 %v645_v23, 0.0  ;;  %v863_v34 = vmax.f32 %v773_v24, 0.0 }
 0x132   : > { %v1401_v35 = vpack.c.bf16 %v828_v27, %v828_v27  ;;  %v1433_v36 = vpack.c.bf16 %v860_v28, %v860_v28  ;;  %v829_v37 = vmax.f32 %v637_v29, 0.0  ;;  %v861_v38 = vmax.f32 %v765_v30, 0.0 }
 0x133   : > { %1151 = vst.msk [vmem:[%s1737_s26 + $0x58] sm:$0xf] %vm1128_vm0, %v1403_v31  ;;  %1183 = vst.msk [vmem:[%s1737_s26 + $0xd8] sm:$0xf] %vm1128_vm0, %v1435_v32  ;;  %v1404_v39 = vpack.c.bf16 %v831_v33, %v831_v33  ;;  %v1436_v41 = vpack.c.bf16 %v863_v34, %v863_v34 }
 0x134   : > { %1149 = vst.msk [vmem:[%s1737_s26 + $0x50] sm:$0xf] %vm1128_vm0, %v1401_v35  ;;  %1181 = vst.msk [vmem:[%s1737_s26 + $0xd0] sm:$0xf] %vm1128_vm0, %v1433_v36  ;;  %v1402_v42 = vpack.c.bf16 %v829_v37, %v829_v37  ;;  %v1434_v43 = vpack.c.bf16 %v861_v38, %v861_v38  ;;  %v1527_v44 = vpop.f32.mrb[24].mxu0  ;;  %v1559_v45 = vpop.f32.mrb[24].mxu1 }
 0x135   : > { %1152 = vst.msk [vmem:[%s1737_s26 + $0x5c] sm:$0xf] %vm1128_vm0, %v1404_v39  ;;  %1184 = vst.msk [vmem:[%s1737_s26 + $0xdc] sm:$0xf] %vm1128_vm0, %v1436_v41  ;;  %v658_v46 = vadd.f32 %v1527_v44, %v1724_v40  ;;  %v786_v47 = vadd.f32 %v1559_v45, %v1724_v40  ;;  %v649_v48 = vpop.f32.mrb[25].mxu0  ;;  %v777_v49 = vpop.f32.mrb[25].mxu1 }
 0x136   : > { %1150 = vst.msk [vmem:[%s1737_s26 + $0x54] sm:$0xf] %vm1128_vm0, %v1402_v42  ;;  %1182 = vst.msk [vmem:[%s1737_s26 + $0xd4] sm:$0xf] %vm1128_vm0, %v1434_v43  ;;  %v650_v50 = vadd.f32 %v1724_v40, %v649_v48  ;;  %v778_v51 = vadd.f32 %v1724_v40, %v777_v49  ;;  %v1528_v52 = vpop.f32.mrb[26].mxu0  ;;  %v1560_v53 = vpop.f32.mrb[26].mxu1 }
 0x137   : > { %v834_v54 = vmax.f32 %v658_v46, 0.0  ;;  %v866_v55 = vmax.f32 %v786_v47, 0.0  ;;  %v661_v56 = vadd.f32 %v1528_v52, %v1724_v40  ;;  %v789_v57 = vadd.f32 %v1560_v53, %v1724_v40  ;;  %v652_v58 = vpop.f32.mrb[27].mxu0  ;;  %v780_v59 = vpop.f32.mrb[27].mxu1 }
 0x138   : > { %v832_v60 = vmax.f32 %v650_v50, 0.0  ;;  %v864_v61 = vmax.f32 %v778_v51, 0.0  ;;  %v653_v62 = vadd.f32 %v1724_v40, %v652_v58  ;;  %v781_v63 = vadd.f32 %v1724_v40, %v780_v59 }
 0x139   : > { %v1407_v0 = vpack.c.bf16 %v834_v54, %v834_v54  ;;  %v1439_v1 = vpack.c.bf16 %v866_v55, %v866_v55  ;;  %v835_v2 = vmax.f32 %v661_v56, 0.0  ;;  %v867_v3 = vmax.f32 %v789_v57, 0.0 }
 0x13a   : > { %v1405_v4 = vpack.c.bf16 %v832_v60, %v832_v60  ;;  %v1437_v5 = vpack.c.bf16 %v864_v61, %v864_v61  ;;  %v833_v6 = vmax.f32 %v653_v62, 0.0  ;;  %v865_v7 = vmax.f32 %v781_v63, 0.0 }
 0x13b   : > { %1155 = vst.msk [vmem:[%s1737_s26 + $0x68] sm:$0xf] %vm1128_vm0, %v1407_v0  ;;  %1187 = vst.msk [vmem:[%s1737_s26 + $0xe8] sm:$0xf] %vm1128_vm0, %v1439_v1  ;;  %v1408_v8 = vpack.c.bf16 %v835_v2, %v835_v2  ;;  %v1440_v9 = vpack.c.bf16 %v867_v3, %v867_v3 }
 0x13c   : > { %1153 = vst.msk [vmem:[%s1737_s26 + $0x60] sm:$0xf] %vm1128_vm0, %v1405_v4  ;;  %1185 = vst.msk [vmem:[%s1737_s26 + $0xe0] sm:$0xf] %vm1128_vm0, %v1437_v5  ;;  %v1406_v10 = vpack.c.bf16 %v833_v6, %v833_v6  ;;  %v1438_v11 = vpack.c.bf16 %v865_v7, %v865_v7  ;;  %v1531_v12 = vpop.f32.mrb[28].mxu0  ;;  %v1563_v13 = vpop.f32.mrb[28].mxu1 }
 0x13d   : > { %1156 = vst.msk [vmem:[%s1737_s26 + $0x6c] sm:$0xf] %vm1128_vm0, %v1408_v8  ;;  %1188 = vst.msk [vmem:[%s1737_s26 + $0xec] sm:$0xf] %vm1128_vm0, %v1440_v9  ;;  %v674_v14 = vadd.f32 %v1531_v12, %v1724_v40  ;;  %v802_v15 = vadd.f32 %v1563_v13, %v1724_v40  ;;  %v665_v16 = vpop.f32.mrb[29].mxu0  ;;  %v793_v17 = vpop.f32.mrb[29].mxu1 }
 0x13e   : > { %1154 = vst.msk [vmem:[%s1737_s26 + $0x64] sm:$0xf] %vm1128_vm0, %v1406_v10  ;;  %1186 = vst.msk [vmem:[%s1737_s26 + $0xe4] sm:$0xf] %vm1128_vm0, %v1438_v11  ;;  %v666_v18 = vadd.f32 %v1724_v40, %v665_v16  ;;  %v794_v19 = vadd.f32 %v1724_v40, %v793_v17  ;;  %v1532_v20 = vpop.f32.mrb[30].mxu0  ;;  %v1564_v21 = vpop.f32.mrb[30].mxu1 }
 0x13f   : > { %v838_v22 = vmax.f32 %v674_v14, 0.0  ;;  %v870_v23 = vmax.f32 %v802_v15, 0.0  ;;  %v677_v24 = vadd.f32 %v1532_v20, %v1724_v40  ;;  %v805_v25 = vadd.f32 %v1564_v21, %v1724_v40  ;;  %v668_v26 = vpop.f32.mrb[31].mxu0  ;;  %v796_v27 = vpop.f32.mrb[31].mxu1 }
 0x140   : > { %v836_v28 = vmax.f32 %v666_v18, 0.0  ;;  %v868_v29 = vmax.f32 %v794_v19, 0.0  ;;  %v669_v30 = vadd.f32 %v1724_v40, %v668_v26  ;;  %v797_v31 = vadd.f32 %v1724_v40, %v796_v27 }
 0x141   : > { %v1411_v32 = vpack.c.bf16 %v838_v22, %v838_v22  ;;  %v1443_v33 = vpack.c.bf16 %v870_v23, %v870_v23  ;;  %v839_v34 = vmax.f32 %v677_v24, 0.0  ;;  %v871_v35 = vmax.f32 %v805_v25, 0.0 }
 0x142   : > { %v1409_v36 = vpack.c.bf16 %v836_v28, %v836_v28  ;;  %v1441_v37 = vpack.c.bf16 %v868_v29, %v868_v29  ;;  %v837_v38 = vmax.f32 %v669_v30, 0.0  ;;  %v869_v39 = vmax.f32 %v797_v31, 0.0 }
 0x143   : > { %1159 = vst.msk [vmem:[%s1737_s26 + $0x78] sm:$0xf] %vm1128_vm0, %v1411_v32  ;;  %1191 = vst.msk [vmem:[%s1737_s26 + $0xf8] sm:$0xf] %vm1128_vm0, %v1443_v33  ;;  %v1412_v41 = vpack.c.bf16 %v839_v34, %v839_v34  ;;  %v1444_v42 = vpack.c.bf16 %v871_v35, %v871_v35 }
 0x144   : > { %1157 = vst.msk [vmem:[%s1737_s26 + $0x70] sm:$0xf] %vm1128_vm0, %v1409_v36  ;;  %1189 = vst.msk [vmem:[%s1737_s26 + $0xf0] sm:$0xf] %vm1128_vm0, %v1441_v37  ;;  %v1410_v40 = vpack.c.bf16 %v837_v38, %v837_v38  ;;  %v1442_v43 = vpack.c.bf16 %v869_v39, %v869_v39 }
 0x145   : > { %1160 = vst.msk [vmem:[%s1737_s26 + $0x7c] sm:$0xf] %vm1128_vm0, %v1412_v41  ;;  %1192 = vst.msk [vmem:[%s1737_s26 + $0xfc] sm:$0xf] %vm1128_vm0, %v1444_v42 }
 0x146   : > { %1158 = vst.msk [vmem:[%s1737_s26 + $0x74] sm:$0xf] %vm1128_vm0, %v1410_v40  ;;  %1190 = vst.msk [vmem:[%s1737_s26 + $0xf4] sm:$0xf] %vm1128_vm0, %v1442_v43 }
 0x147 PF: > { %s13_s12 = sadd.s32 1, %s1635_s12  }
 0x148   : > { %p10_p4 = scmp.ge.s32.totalorder %s13_s12, 6  }
 0x14a   :  { %12 = sbr.rel (!%p10_p4) target bundleno = 1 (0x1), region = 65 }

// kernel: topdown_feature_head_forward.11
= control target key start
LH: loop header
LB: loop body
LE: loop exit
PB: predicated region body
PF: predicated region fallthrough
CT: control target
= control target key end

     0   :  { %s5484_s27 = smov 0   ;;  %s5486_s28 = smov 0   ;;  %s6620_s0 = inlined_call_operand.vmem [shape: bf16[4,2048,128], index: 0, kind: input, shape index: {}]   ;;  %s6621_s1 = inlined_call_operand.vmem [shape: bf16[4,128,32], index: 1, kind: input, shape index: {}]   ;;  %s6622_s2 = inlined_call_operand.vmem [shape: f32[1,32], index: 2, kind: input, shape index: {}]   ;;  %s6623_s3 = inlined_call_operand.vmem [shape: bf16[32,8], index: 3, kind: input, shape index: {}]   ;;  %s6624_s4 = inlined_call_operand.vmem [shape: f32[1,8], index: 4, kind: input, shape index: {}]   ;;  %s6625_s5 = inlined_call_operand.vmem [shape: bf16[4,2048,8], index: 5, kind: input, shape index: {}]   ;;  %s6626_s6 = inlined_call_operand.vmem [shape: bf16[4,128,1024], index: 6, kind: input, shape index: {}]   ;;  %s6627_s7 = inlined_call_operand.vmem [shape: f32[128,1], index: 7, kind: input, shape index: {}]   ;;  %s6628_s8 = inlined_call_operand.vmem [shape: f32[2,128,8], index: 8, kind: output, shape index: {}]  }
   0x1   :  { %s5488_s29 = smov 0   ;;  %s5490_s30 = smov 0  }
   0x2   :  { %s5492_s9 = smov 0  }
   0x3 LB: > { %6630 = sst [smem:[#allocation3_spill]] %s5431_s30  ;;  %s27_s10 = sadd.s32 1, %s5427_s29  ;;  %s5435_s9 = sphi %s5492_s9, %s18_s9   ;;  %s5431_s30 = sphi %s5490_s30, %s6635_s30   ;;  %s5427_s29 = sphi %s5488_s29, %s6637_s29   ;;  %s5423_s28 = sphi %s5486_s28, %s6633_s28   ;;  %s5419_s27 = sphi %s5484_s27, %s6636_s27  }
   0x4   : > { %s30_s11 = sadd.s32 1, %s5431_s30  ;;  %p28_p0 = scmp.ge.s32.totalorder %s27_s10, 4 }
   0x5   : > { %p4048_p1 = scmp.ge.s32.totalorder %s5435_s9, 1  ;;  %p318_p2 = scmp.lt.s32.totalorder %s5435_s9, 9 }
   0x6   : > { %s6639_s10 = smov (%p28_p0, %s27_s10), 0  ;;  %s6641_s11 = smov (!%p28_p0, %s30_s11), %s5431_s30 }
   0x7   : > { %6631 = sst [smem:[#allocation4_spill]] %s6639_s10  ;;  %p319_p3 = pnand %p4048_p1, %p318_p2 }
   0x8   : > { %p32_p4 = scmp.ge.s32.totalorder %s6641_s11, 2  ;;  %s4049_s12 = sshll.u32 (!%p319_p3), %s5423_s28, 7 }
   0x9   : > { %322 = sbr.rel (%p319_p3) target bundleno = 1185 (0x4a1), region = 52  ;;  %p376_p5 = scmp.lt.s32.totalorder (!%p319_p3), %s5419_s27, 3 }
   0xa   : > { %s6643_s11 = smov (%p32_p4, %s6641_s11), 0  ;;  %p378_p6 = scmp.lt.s32.totalorder (!%p319_p3), %s4049_s12, 255 }
   0xb   : > { %6632 = sst [smem:[#allocation5_spill]] %s6643_s11  ;;  %p405_p7 = scmp.lt.s32.totalorder (!%p319_p3), %s5423_s28, 1 }
   0xc   : > { %p4061_p8 = scmp.ne.s32.totalorder (!%p319_p3), %s5419_s27, 0 }
  0x10   : > { %s377_s13 = scalar_select %p376_p5, %s5419_s27, 3 }
  0x11   : > { %s6645_s12 = smov (!%p378_p6, %s4049_s12), 255  ;;  %s6647_s28 = smov (!%p405_p7, %s5423_s28), 1 }
  0x12   : > { %s4050_s14 = sshll.u32 %s377_s13, 8  ;;  %s4269_s15 = sshll.u32 %s377_s13, 6  ;;  %vm415_vm0 = vcmask (!%p4061_p8), 64512   ;;  %v5437_v0 = vmov (!%p4061_p8), 0.0  }
  0x13   : > { %s381_s16 = sadd.s32 %s4050_s14, %s6645_s12  ;;  %s5525_s19 = scalar_lea.vmem %s6621_s1, %s4269_s15  ;;  %416 = vst.msk [vmem:[#allocation2] sm:$0xff] (!%p4061_p8), %vm415_vm0, %v5437_v0  ;;  %417 = vst.msk [vmem:[#allocation2 + $0x8] sm:$0xff] (!%p4061_p8), %vm415_vm0, %v5437_v0 }
  0x14   : > { %s4051_s20 = sshll.u32 %s381_s16, 2  ;;  %s4270_s21 = sshll.u32 %s377_s13, 9  ;;  %418 = vst.msk [vmem:[#allocation2 + $0x10] sm:$0xff] (!%p4061_p8), %vm415_vm0, %v5437_v0  ;;  %419 = vst.msk [vmem:[#allocation2 + $0x18] sm:$0xff] (!%p4061_p8), %vm415_vm0, %v5437_v0 }
  0x15   : > { %s5530_s24 = scalar_lea.vmem %s6620_s0, %s4051_s20  ;;  %s5535_s11 = scalar_lea.vmem %s6625_s5, %s4051_s20  ;;  %420 = vst.msk [vmem:[#allocation2 + $0x20] sm:$0xff] (!%p4061_p8), %vm415_vm0, %v5437_v0  ;;  %421 = vst.msk [vmem:[#allocation2 + $0x28] sm:$0xff] (!%p4061_p8), %vm415_vm0, %v5437_v0 }
  0x16   : > { %s5540_s12 = scalar_lea.vmem %s6626_s6, %s4270_s21  ;;  %s4271_s14 = sshll.u32 %s6647_s28, 7  ;;  %422 = vst.msk [vmem:[#allocation2 + $0x30] sm:$0xff] (!%p4061_p8), %vm415_vm0, %v5437_v0  ;;  %423 = vst.msk [vmem:[#allocation2 + $0x38] sm:$0xff] (!%p4061_p8), %vm415_vm0, %v5437_v0 }
  0x17   : > { %s5546_s13 = scalar_lea.vmem %s6628_s8, %s4271_s14  ;;  %414 = sbr.rel (%p4061_p8) target bundleno = 30 (0x1e), region = 56  ;;  %424 = vst.msk [vmem:[#allocation2 + $0x40] sm:$0xff] (!%p4061_p8), %vm415_vm0, %v5437_v0  ;;  %425 = vst.msk [vmem:[#allocation2 + $0x48] sm:$0xff] (!%p4061_p8), %vm415_vm0, %v5437_v0 }
  0x18   : > { %426 = vst.msk [vmem:[#allocation2 + $0x50] sm:$0xff] (!%p4061_p8), %vm415_vm0, %v5437_v0  ;;  %427 = vst.msk [vmem:[#allocation2 + $0x58] sm:$0xff] (!%p4061_p8), %vm415_vm0, %v5437_v0 }
  0x19   : > { %428 = vst.msk [vmem:[#allocation2 + $0x60] sm:$0xff] (!%p4061_p8), %vm415_vm0, %v5437_v0  ;;  %429 = vst.msk [vmem:[#allocation2 + $0x68] sm:$0xff] (!%p4061_p8), %vm415_vm0, %v5437_v0 }
  0x1a   : > { %430 = vst.msk [vmem:[#allocation2 + $0x70] sm:$0xff] (!%p4061_p8), %vm415_vm0, %v5437_v0  ;;  %431 = vst.msk [vmem:[#allocation2 + $0x78] sm:$0xff] (!%p4061_p8), %vm415_vm0, %v5437_v0 }
  0x1e PF: > { %v5319_v1 = vld [vmem:[%s5525_s19] sm:$0xff]   ;;  %v5320_v2 = vld [vmem:[%s5525_s19 + $0x8] sm:$0xff]   ;;  %v5321_v3 = vld [vmem:[%s5525_s19 + $0x10] sm:$0xff]   ;;  %vm1775_vm1 = vcmask 261120   ;;  %vm3765_vm2 = vcmask 64512   ;;  %p4266_p9 = scmp.ne.s32.totalorder %s5419_s27, 3 }
  0x1f   : > { %4985 = vmatprep.subr.bf16.mxu0 %v5319_v1  ;;  %v5322_v4 = vld [vmem:[%s5525_s19 + $0x18] sm:$0xff]   ;;  %v5327_v5 = vld [vmem:[%s5530_s24] sm:$0xff]   ;;  %v5324_v7 = vld [vmem:[%s5525_s19 + $0x28] sm:$0xff]  }
  0x20   : > { %4986 = vmatpush3.bf16.msra.mxu0 %v5319_v1  ;;  %5001 = vmatprep.mubr.bf16.mxu0 %v5327_v5  ;;  %v5323_v6 = vld [vmem:[%s5525_s19 + $0x20] sm:$0xff]   ;;  %v5325_v8 = vld [vmem:[%s5525_s19 + $0x30] sm:$0xff]   ;;  %v5326_v9 = vld [vmem:[%s5525_s19 + $0x38] sm:$0xff]  }
  0x21   : > { %4987 = vmatprep.subr.bf16.mxu0 %v5320_v2  ;;  %v5328_v10 = vld [vmem:[%s5530_s24 + $0x8] sm:$0xff]   ;;  %v5329_v11 = vld [vmem:[%s5530_s24 + $0x10] sm:$0xff]   ;;  %v5330_v12 = vld [vmem:[%s5530_s24 + $0x18] sm:$0xff]  }
  0x22   : > { %v5331_v13 = vld [vmem:[%s5530_s24 + $0x20] sm:$0xff]   ;;  %v5332_v14 = vld [vmem:[%s5530_s24 + $0x28] sm:$0xff]   ;;  %v5333_v15 = vld [vmem:[%s5530_s24 + $0x30] sm:$0xff]  }
  0x23   : > { %v5334_v16 = vld [vmem:[%s5530_s24 + $0x38] sm:$0xff]   ;;  %v5335_v17 = vld [vmem:[%s5530_s24 + $0x40] sm:$0xff]   ;;  %v5336_v18 = vld [vmem:[%s5530_s24 + $0x48] sm:$0xff]  }
  0x24   : > { %4988 = vmatpush3.bf16.msra.mxu0 %v5320_v2  ;;  %v5337_v19 = vld [vmem:[%s5530_s24 + $0x50] sm:$0xff]   ;;  %v5338_v20 = vld [vmem:[%s5530_s24 + $0x58] sm:$0xff]   ;;  %v5339_v21 = vld [vmem:[%s5530_s24 + $0x60] sm:$0xff]  }
  0x25   : > { %4989 = vmatprep.subr.bf16.mxu0 %v5321_v3  ;;  %v5340_v22 = vld [vmem:[%s5530_s24 + $0x68] sm:$0xff]   ;;  %v5341_v23 = vld [vmem:[%s5530_s24 + $0x70] sm:$0xff]   ;;  %v5342_v24 = vld [vmem:[%s5530_s24 + $0x78] sm:$0xff]  }
  0x26   : > { %v5343_v25 = vld [vmem:[%s5530_s24 + $0x80] sm:$0xff]   ;;  %v5344_v26 = vld [vmem:[%s5530_s24 + $0x88] sm:$0xff]   ;;  %v5345_v27 = vld [vmem:[%s5530_s24 + $0x90] sm:$0xff]  }
  0x27   : > { %v5346_v28 = vld [vmem:[%s5530_s24 + $0x98] sm:$0xff]   ;;  %v5347_v29 = vld [vmem:[%s5530_s24 + $0xa0] sm:$0xff]   ;;  %v5348_v30 = vld [vmem:[%s5530_s24 + $0xa8] sm:$0xff]  }
  0x28   : > { %4990 = vmatpush3.bf16.msra.mxu0 %v5321_v3  ;;  %v5349_v31 = vld [vmem:[%s5530_s24 + $0xb0] sm:$0xff]   ;;  %v5350_v32 = vld [vmem:[%s5530_s24 + $0xb8] sm:$0xff]   ;;  %v5361_v33 = vld [vmem:[%s6623_s3] sm:$0xff]  }
  0x29   : > { %4991 = vmatprep.subr.bf16.mxu0 %v5322_v4  ;;  %v5351_v34 = vld [vmem:[%s5530_s24 + $0xc0] sm:$0xff]   ;;  %5129 = vmatprep.subr.bf16.mxu1 %v5361_v33  ;;  %v5364_v35 = vld [vmem:[%s6623_s3 + $0x8] sm:$0xff]   ;;  %v5353_v37 = vld [vmem:[%s5530_s24 + $0xd0] sm:$0xff]  }
  0x2a   : > { %5130 = vmatpush3.bf16.msra.mxu1 %v5361_v33  ;;  %v5352_v36 = vld [vmem:[%s5530_s24 + $0xc8] sm:$0xff]   ;;  %v5354_v38 = vld [vmem:[%s5530_s24 + $0xd8] sm:$0xff]   ;;  %v5355_v39 = vld [vmem:[%s5530_s24 + $0xe0] sm:$0xff]  }
  0x2b   : > { %5131 = vmatprep.subr.bf16.mxu1 %v5364_v35  ;;  %v5356_v40 = vld [vmem:[%s5530_s24 + $0xe8] sm:$0xff]   ;;  %v5357_v41 = vld [vmem:[%s5530_s24 + $0xf0] sm:$0xff]   ;;  %v5358_v42 = vld [vmem:[%s5530_s24 + $0xf8] sm:$0xff]  }
  0x2c   : > { %4992 = vmatpush3.bf16.msra.mxu0 %v5322_v4  ;;  %v5359_v43 = vld [vmem:[%s5530_s24 + $0x100] sm:$0xff]   ;;  %v5360_v44 = vld [vmem:[%s5530_s24 + $0x108] sm:$0xff]   ;;  %v5362_v45 = vld [vmem:[%s5530_s24 + $0x110] sm:$0xff]  }
  0x2d   : > { %4993 = vmatprep.subr.bf16.mxu0 %v5323_v6  ;;  %v5363_v46 = vld [vmem:[%s5530_s24 + $0x118] sm:$0xff]   ;;  %v5365_v47 = vld [vmem:[%s5530_s24 + $0x120] sm:$0xff]   ;;  %v5366_v48 = vld [vmem:[%s5530_s24 + $0x128] sm:$0xff]  }
  0x2e   : > { %5132 = vmatpush3.bf16.msra.mxu1 %v5364_v35  ;;  %v5367_v49 = vld [vmem:[%s5530_s24 + $0x130] sm:$0xff]   ;;  %v5368_v50 = vld [vmem:[%s5530_s24 + $0x138] sm:$0xff]   ;;  %v5369_v51 = vld [vmem:[%s5530_s24 + $0x140] sm:$0xff]  }
  0x2f   : > { %v5370_v52 = vld [vmem:[%s5530_s24 + $0x148] sm:$0xff]   ;;  %v5371_v53 = vld [vmem:[%s5530_s24 + $0x150] sm:$0xff]   ;;  %v5372_v54 = vld [vmem:[%s5530_s24 + $0x158] sm:$0xff]  }
  0x30   : > { %4994 = vmatpush3.bf16.msra.mxu0 %v5323_v6  ;;  %v5373_v55 = vld [vmem:[%s5530_s24 + $0x160] sm:$0xff]   ;;  %v5374_v56 = vld [vmem:[%s5530_s24 + $0x168] sm:$0xff]   ;;  %v5375_v57 = vld [vmem:[%s5530_s24 + $0x170] sm:$0xff]  }
  0x31   : > { %4995 = vmatprep.subr.bf16.mxu0 %v5324_v7  ;;  %v5376_v58 = vld [vmem:[%s5530_s24 + $0x178] sm:$0xff]   ;;  %v5377_v59 = vld [vmem:[%s5530_s24 + $0x180] sm:$0xff]   ;;  %v5378_v60 = vld [vmem:[%s5530_s24 + $0x188] sm:$0xff]  }
  0x32   : > { %v5379_v61 = vld [vmem:[%s5530_s24 + $0x190] sm:$0xff]   ;;  %v5380_v62 = vld [vmem:[%s5530_s24 + $0x198] sm:$0xff]   ;;  %v5381_v63 = vld [vmem:[%s5530_s24 + $0x1a0] sm:$0xff]  }
  0x33   : > { %v5382_v0 = vld [vmem:[%s5530_s24 + $0x1a8] sm:$0xff]   ;;  %v5383_v1 = vld [vmem:[%s5530_s24 + $0x1b0] sm:$0xff]   ;;  %v5637_v2 = vld [vmem:[%s6622_s2] ss:$0 sm:$0xff] }
  0x34   : > { %4996 = vmatpush3.bf16.msra.mxu0 %v5324_v7  ;;  %v5384_v6 = vld [vmem:[%s5530_s24 + $0x1b8] sm:$0xff]  }
  0x35   : > { %4997 = vmatprep.subr.bf16.mxu0 %v5325_v8 }
  0x38   : > { %4998 = vmatpush3.bf16.msra.mxu0 %v5325_v8 }
  0x39   : > { %4999 = vmatprep.subr.bf16.mxu0 %v5326_v9 }
  0x3c   : > { %5000 = vmatpush3.bf16.msra.mxu0 %v5326_v9  ;;  %v5385_v9 = vld [vmem:[%s5530_s24 + $0x1c0] sm:$0xff]  }
  0x3f   : > { %5002 = vmatmul.mubr.bf16.vlgmr.msra.gmra.mrb[0].mxu0 %v5328_v10 }
  0x40   : > { %5005 = vmatprep.mubr.bf16.mxu0 %v5329_v11 }
  0x47   : > { %5006 = vmatmul.mubr.bf16.gmra.mrb[4].mxu0 %v5330_v12 }
  0x48   : > { %5009 = vmatprep.mubr.bf16.mxu0 %v5331_v13 }
  0x4f   : > { %5010 = vmatmul.mubr.bf16.gmra.mrb[8].mxu0 %v5332_v14 }
  0x50   : > { %5013 = vmatprep.mubr.bf16.mxu0 %v5333_v15 }
  0x57   : > { %5014 = vmatmul.mubr.bf16.gmra.mrb[12].mxu0 %v5334_v16 }
  0x58   : > { %5017 = vmatprep.mubr.bf16.mxu0 %v5335_v17 }
  0x5f   : > { %5018 = vmatmul.mubr.bf16.gmra.mrb[16].mxu0 %v5336_v18 }
  0x60   : > { %5021 = vmatprep.mubr.bf16.mxu0 %v5337_v19 }
  0x67   : > { %5022 = vmatmul.mubr.bf16.gmra.mrb[20].mxu0 %v5338_v20 }
  0x68   : > { %5025 = vmatprep.mubr.bf16.mxu0 %v5339_v21 }
  0x6f   : > { %5026 = vmatmul.mubr.bf16.gmra.mrb[24].mxu0 %v5340_v22  ;;  %v5386_v22 = vld [vmem:[%s5530_s24 + $0x1c8] sm:$0xff]  }
  0x70   : > { %5029 = vmatprep.mubr.bf16.mxu0 %v5341_v23 }
  0x77   : > { %5030 = vmatmul.mubr.bf16.gmra.mrb[28].mxu0 %v5342_v24 }
  0x78   : > { %5033 = vmatprep.mubr.bf16.mxu0 %v5343_v25  ;;  %v5387_v25 = vld [vmem:[%s5530_s24 + $0x1d0] sm:$0xff]  }
  0x7f   : > { %5034 = vmatmul.mubr.bf16.gmra.mrb[32].mxu0 %v5344_v26 }
  0x80   : > { %5037 = vmatprep.mubr.bf16.mxu0 %v5345_v27 }
  0x87   : > { %5038 = vmatmul.mubr.bf16.gmra.mrb[36].mxu0 %v5346_v28 }
  0x88   : > { %5041 = vmatprep.mubr.bf16.mxu0 %v5347_v29 }
  0x8f   : > { %5042 = vmatmul.mubr.bf16.gmra.mrb[40].mxu0 %v5348_v30 }
  0x90   : > { %5045 = vmatprep.mubr.bf16.mxu0 %v5349_v31 }
  0x97   : > { %5046 = vmatmul.mubr.bf16.gmra.mrb[44].mxu0 %v5350_v32 }
  0x98   : > { %5049 = vmatprep.mubr.bf16.mxu0 %v5351_v34 }
  0x9f   : > { %5050 = vmatmul.mubr.bf16.gmra.mrb[48].mxu0 %v5352_v36 }
  0xa0   : > { %5053 = vmatprep.mubr.bf16.mxu0 %v5353_v37 }
  0xa7   : > { %5054 = vmatmul.mubr.bf16.gmra.mrb[52].mxu0 %v5354_v38  ;;  %v5388_v38 = vld [vmem:[%s5530_s24 + $0x1d8] sm:$0xff]  }
  0xa8   : > { %5057 = vmatprep.mubr.bf16.mxu0 %v5355_v39 }
  0xaf   : > { %5058 = vmatmul.mubr.bf16.gmra.mrb[56].mxu0 %v5356_v40 }
  0xb0   : > { %5061 = vmatprep.mubr.bf16.mxu0 %v5357_v41  ;;  %v5389_v41 = vld [vmem:[%s5530_s24 + $0x1e0] sm:$0xff]  }
  0xb7   : > { %5062 = vmatmul.mubr.bf16.gmra.mrb[60].mxu0 %v5358_v42 }
  0xb8   : > { %5065 = vmatprep.mubr.bf16.mxu0 %v5359_v43 }
  0xbf   : > { %5066 = vmatmul.mubr.bf16.gmra.mrb[64].mxu0 %v5360_v44 }
  0xc0   : > { %5069 = vmatprep.mubr.bf16.mxu0 %v5362_v45 }
  0xc7   : > { %5070 = vmatmul.mubr.bf16.gmra.mrb[68].mxu0 %v5363_v46 }
  0xc8   : > { %5073 = vmatprep.mubr.bf16.mxu0 %v5365_v47 }
  0xcf   : > { %5074 = vmatmul.mubr.bf16.gmra.mrb[72].mxu0 %v5366_v48 }
  0xd0   : > { %5077 = vmatprep.mubr.bf16.mxu0 %v5367_v49 }
  0xd7   : > { %5078 = vmatmul.mubr.bf16.gmra.mrb[76].mxu0 %v5368_v50 }
  0xd8   : > { %5081 = vmatprep.mubr.bf16.mxu0 %v5369_v51 }
  0xdf   : > { %5082 = vmatmul.mubr.bf16.gmra.mrb[80].mxu0 %v5370_v52 }
  0xe0   : > { %5085 = vmatprep.mubr.bf16.mxu0 %v5371_v53 }
  0xe7   : > { %5086 = vmatmul.mubr.bf16.gmra.mrb[84].mxu0 %v5372_v54  ;;  %v5390_v54 = vld [vmem:[%s5530_s24 + $0x1e8] sm:$0xff]  }
  0xe8   : > { %5089 = vmatprep.mubr.bf16.mxu0 %v5373_v55 }
  0xef   : > { %5090 = vmatmul.mubr.bf16.gmra.mrb[88].mxu0 %v5374_v56 }
  0xf0   : > { %5093 = vmatprep.mubr.bf16.mxu0 %v5375_v57  ;;  %v5391_v57 = vld [vmem:[%s5530_s24 + $0x1f0] sm:$0xff]  }
  0xf7   : > { %5094 = vmatmul.mubr.bf16.gmra.mrb[92].mxu0 %v5376_v58 }
  0xf8   : > { %5097 = vmatprep.mubr.bf16.mxu0 %v5377_v59 }
  0xff   : > { %5098 = vmatmul.mubr.bf16.gmra.mrb[96].mxu0 %v5378_v60 }
 0x100   : > { %5101 = vmatprep.mubr.bf16.mxu0 %v5379_v61 }
 0x107   : > { %5102 = vmatmul.mubr.bf16.gmra.mrb[100].mxu0 %v5380_v62 }
 0x108   : > { %5105 = vmatprep.mubr.bf16.mxu0 %v5381_v63 }
 0x10f   : > { %5106 = vmatmul.mubr.bf16.gmra.mrb[104].mxu0 %v5382_v0 }
 0x110   : > { %5109 = vmatprep.mubr.bf16.mxu0 %v5383_v1 }
 0x112   : > { %v5003_v3 = vpop.f32.mrb[0].mxu0 }
 0x113   : > { %v1058_v4 = vadd.f32 %v5003_v3, %v5637_v2  ;;  %v1049_v5 = vpop.f32.mrb[1].mxu0 }
 0x114   : > { %v1050_v7 = vadd.f32 %v5637_v2, %v1049_v5  ;;  %v5004_v8 = vpop.f32.mrb[2].mxu0 }
 0x115   : > { %v1061_v10 = vadd.f32 %v5004_v8, %v5637_v2  ;;  %v1052_v11 = vpop.f32.mrb[3].mxu0  ;;  %v1562_v13 = vmax.f32 %v1058_v4, 0.0 }
 0x116   : > { %v1053_v12 = vadd.f32 %v5637_v2, %v1052_v11  ;;  %v1560_v15 = vmax.f32 %v1050_v7, 0.0  ;;  %v5392_v7 = vld [vmem:[%s5530_s24 + $0x1f8] sm:$0xff]  }
 0x117   : > { %v1563_v14 = vmax.f32 %v1061_v10, 0.0  ;;  %5110 = vmatmul.mubr.bf16.gmra.mrb[108].mxu0 %v5384_v6 }
 0x118   : > { %v1561_v16 = vmax.f32 %v1053_v12, 0.0  ;;  %5113 = vmatprep.mubr.bf16.mxu0 %v5385_v9 }
 0x119   : > { %v1689_v17 = vpack.c.bf16 %v1563_v14, %v1562_v13 }
 0x11a   : > { %v5007_v18 = vpop.f32.mrb[4].mxu0  ;;  %v1688_v19 = vpack.c.bf16 %v1561_v16, %v1560_v15 }
 0x11b   : > { %v1074_v20 = vadd.f32 %v5007_v18, %v5637_v2  ;;  %v1065_v21 = vpop.f32.mrb[5].mxu0 }
 0x11c   : > { %v1066_v23 = vadd.f32 %v5637_v2, %v1065_v21  ;;  %v5008_v24 = vpop.f32.mrb[6].mxu0  ;;  %5133 = vmatprep.mubr.msk.bf16.mxu1 %vm1775_vm1, %v1688_v19 }
 0x11d   : > { %v1077_v26 = vadd.f32 %v5008_v24, %v5637_v2  ;;  %v1068_v27 = vpop.f32.mrb[7].mxu0  ;;  %5134 = vmatmul.mubr.msk.bf16.vlgmr.msra.gmra.mrb[0].mxu1 %vm1775_vm1, %v1689_v17  ;;  %v1566_v29 = vmax.f32 %v1074_v20, 0.0 }
 0x11e   : > { %v1069_v28 = vadd.f32 %v5637_v2, %v1068_v27  ;;  %v1564_v31 = vmax.f32 %v1066_v23, 0.0 }
 0x11f   : > { %v1567_v30 = vmax.f32 %v1077_v26, 0.0  ;;  %5114 = vmatmul.mubr.bf16.gmra.mrb[112].mxu0 %v5386_v22 }
 0x120   : > { %v1565_v32 = vmax.f32 %v1069_v28, 0.0  ;;  %5117 = vmatprep.mubr.bf16.mxu0 %v5387_v25 }
 0x121   : > { %v1691_v33 = vpack.c.bf16 %v1567_v30, %v1566_v29 }
 0x122   : > { %v1690_v34 = vpack.c.bf16 %v1565_v32, %v1564_v31  ;;  %v5011_v35 = vpop.f32.mrb[8].mxu0 }
 0x123   : > { %v1090_v36 = vadd.f32 %v5011_v35, %v5637_v2  ;;  %v1081_v37 = vpop.f32.mrb[9].mxu0 }
 0x124   : > { %v1082_v39 = vadd.f32 %v5637_v2, %v1081_v37  ;;  %v5012_v40 = vpop.f32.mrb[10].mxu0  ;;  %5137 = vmatprep.mubr.msk.bf16.mxu1 %vm1775_vm1, %v1690_v34 }
 0x125   : > { %v1093_v42 = vadd.f32 %v5012_v40, %v5637_v2  ;;  %v1084_v43 = vpop.f32.mrb[11].mxu0  ;;  %5138 = vmatmul.mubr.msk.bf16.gmra.mrb[4].mxu1 %vm1775_vm1, %v1691_v33  ;;  %v1570_v45 = vmax.f32 %v1090_v36, 0.0 }
 0x126   : > { %v1085_v44 = vadd.f32 %v5637_v2, %v1084_v43  ;;  %v1568_v47 = vmax.f32 %v1082_v39, 0.0 }
 0x127   : > { %v1571_v46 = vmax.f32 %v1093_v42, 0.0  ;;  %5118 = vmatmul.mubr.bf16.gmra.mrb[116].mxu0 %v5388_v38 }
 0x128   : > { %v1569_v48 = vmax.f32 %v1085_v44, 0.0  ;;  %5121 = vmatprep.mubr.bf16.mxu0 %v5389_v41 }
 0x129   : > { %v1693_v49 = vpack.c.bf16 %v1571_v46, %v1570_v45 }
 0x12a   : > { %v1692_v50 = vpack.c.bf16 %v1569_v48, %v1568_v47  ;;  %v5015_v51 = vpop.f32.mrb[12].mxu0 }
 0x12b   : > { %v1106_v52 = vadd.f32 %v5015_v51, %v5637_v2  ;;  %v1097_v53 = vpop.f32.mrb[13].mxu0 }
 0x12c   : > { %v1098_v55 = vadd.f32 %v5637_v2, %v1097_v53  ;;  %v5016_v56 = vpop.f32.mrb[14].mxu0  ;;  %5141 = vmatprep.mubr.msk.bf16.mxu1 %vm1775_vm1, %v1692_v50 }
 0x12d   : > { %v1109_v58 = vadd.f32 %v5016_v56, %v5637_v2  ;;  %v1100_v59 = vpop.f32.mrb[15].mxu0  ;;  %5142 = vmatmul.mubr.msk.bf16.gmra.mrb[8].mxu1 %vm1775_vm1, %v1693_v49  ;;  %v1574_v61 = vmax.f32 %v1106_v52, 0.0 }
 0x12e   : > { %v1101_v60 = vadd.f32 %v5637_v2, %v1100_v59  ;;  %v1572_v63 = vmax.f32 %v1098_v55, 0.0 }
 0x12f   : > { %v1575_v62 = vmax.f32 %v1109_v58, 0.0  ;;  %5122 = vmatmul.mubr.bf16.gmra.mrb[120].mxu0 %v5390_v54 }
 0x130   : > { %v1573_v0 = vmax.f32 %v1101_v60, 0.0  ;;  %5125 = vmatprep.mubr.bf16.mxu0 %v5391_v57 }
 0x131   : > { %v1695_v1 = vpack.c.bf16 %v1575_v62, %v1574_v61 }
 0x132   : > { %v1694_v3 = vpack.c.bf16 %v1573_v0, %v1572_v63  ;;  %v5019_v4 = vpop.f32.mrb[16].mxu0 }
 0x133   : > { %v1122_v5 = vadd.f32 %v5019_v4, %v5637_v2  ;;  %v1113_v6 = vpop.f32.mrb[17].mxu0 }
 0x134   : > { %v1114_v8 = vadd.f32 %v5637_v2, %v1113_v6  ;;  %v5020_v9 = vpop.f32.mrb[18].mxu0  ;;  %5145 = vmatprep.mubr.msk.bf16.mxu1 %vm1775_vm1, %v1694_v3 }
 0x135   : > { %v1125_v10 = vadd.f32 %v5020_v9, %v5637_v2  ;;  %v1116_v11 = vpop.f32.mrb[19].mxu0  ;;  %5146 = vmatmul.mubr.msk.bf16.gmra.mrb[12].mxu1 %vm1775_vm1, %v1695_v1  ;;  %v1578_v13 = vmax.f32 %v1122_v5, 0.0 }
 0x136   : > { %v1117_v12 = vadd.f32 %v5637_v2, %v1116_v11  ;;  %v1576_v15 = vmax.f32 %v1114_v8, 0.0 }
 0x137   : > { %v1579_v14 = vmax.f32 %v1125_v10, 0.0  ;;  %5126 = vmatmul.mubr.bf16.gmra.mrb[124].mxu0 %v5392_v7 }
 0x138   : > { %v1577_v16 = vmax.f32 %v1117_v12, 0.0 }
 0x139   : > { %v1697_v17 = vpack.c.bf16 %v1579_v14, %v1578_v13 }
 0x13a   : > { %v1696_v18 = vpack.c.bf16 %v1577_v16, %v1576_v15  ;;  %v5023_v19 = vpop.f32.mrb[20].mxu0 }
 0x13b   : > { %v1138_v20 = vadd.f32 %v5023_v19, %v5637_v2  ;;  %v1129_v21 = vpop.f32.mrb[21].mxu0 }
 0x13c   : > { %v1130_v22 = vadd.f32 %v5637_v2, %v1129_v21  ;;  %v5024_v23 = vpop.f32.mrb[22].mxu0  ;;  %5149 = vmatprep.mubr.msk.bf16.mxu1 %vm1775_vm1, %v1696_v18 }
 0x13d   : > { %v1141_v24 = vadd.f32 %v5024_v23, %v5637_v2  ;;  %v1132_v25 = vpop.f32.mrb[23].mxu0  ;;  %5150 = vmatmul.mubr.msk.bf16.gmra.mrb[16].mxu1 %vm1775_vm1, %v1697_v17  ;;  %v1582_v27 = vmax.f32 %v1138_v20, 0.0 }
 0x13e   : > { %v1133_v26 = vadd.f32 %v5637_v2, %v1132_v25  ;;  %v1580_v29 = vmax.f32 %v1130_v22, 0.0 }
 0x13f   : > { %v1583_v28 = vmax.f32 %v1141_v24, 0.0 }
 0x140   : > { %v1581_v30 = vmax.f32 %v1133_v26, 0.0 }
 0x141   : > { %v1699_v31 = vpack.c.bf16 %v1583_v28, %v1582_v27 }
 0x142   : > { %v1698_v32 = vpack.c.bf16 %v1581_v30, %v1580_v29  ;;  %v5027_v33 = vpop.f32.mrb[24].mxu0 }
 0x143   : > { %v1154_v34 = vadd.f32 %v5027_v33, %v5637_v2  ;;  %v1145_v35 = vpop.f32.mrb[25].mxu0 }
 0x144   : > { %v1146_v36 = vadd.f32 %v5637_v2, %v1145_v35  ;;  %v5028_v37 = vpop.f32.mrb[26].mxu0  ;;  %5153 = vmatprep.mubr.msk.bf16.mxu1 %vm1775_vm1, %v1698_v32 }
 0x145   : > { %v1157_v38 = vadd.f32 %v5028_v37, %v5637_v2  ;;  %v1148_v39 = vpop.f32.mrb[27].mxu0  ;;  %5154 = vmatmul.mubr.msk.bf16.gmra.mrb[20].mxu1 %vm1775_vm1, %v1699_v31  ;;  %v1586_v41 = vmax.f32 %v1154_v34, 0.0 }
 0x146   : > { %v1149_v40 = vadd.f32 %v5637_v2, %v1148_v39  ;;  %v1584_v43 = vmax.f32 %v1146_v36, 0.0 }
 0x147   : > { %v1587_v42 = vmax.f32 %v1157_v38, 0.0 }
 0x148   : > { %v1585_v44 = vmax.f32 %v1149_v40, 0.0 }
 0x149   : > { %v1701_v45 = vpack.c.bf16 %v1587_v42, %v1586_v41 }
 0x14a   : > { %v1700_v46 = vpack.c.bf16 %v1585_v44, %v1584_v43  ;;  %v5031_v47 = vpop.f32.mrb[28].mxu0 }
 0x14b   : > { %v1170_v48 = vadd.f32 %v5031_v47, %v5637_v2  ;;  %v1161_v49 = vpop.f32.mrb[29].mxu0 }
 0x14c   : > { %v1162_v50 = vadd.f32 %v5637_v2, %v1161_v49  ;;  %v5032_v51 = vpop.f32.mrb[30].mxu0  ;;  %5157 = vmatprep.mubr.msk.bf16.mxu1 %vm1775_vm1, %v1700_v46 }
 0x14d   : > { %v1173_v52 = vadd.f32 %v5032_v51, %v5637_v2  ;;  %v1164_v53 = vpop.f32.mrb[31].mxu0  ;;  %5158 = vmatmul.mubr.msk.bf16.gmra.mrb[24].mxu1 %vm1775_vm1, %v1701_v45  ;;  %v1590_v55 = vmax.f32 %v1170_v48, 0.0 }
 0x14e   : > { %v1165_v54 = vadd.f32 %v5637_v2, %v1164_v53  ;;  %v1588_v57 = vmax.f32 %v1162_v50, 0.0 }
 0x14f   : > { %v1591_v56 = vmax.f32 %v1173_v52, 0.0 }
 0x150   : > { %v1589_v58 = vmax.f32 %v1165_v54, 0.0 }
 0x151   : > { %v1703_v59 = vpack.c.bf16 %v1591_v56, %v1590_v55 }
 0x152   : > { %v1702_v60 = vpack.c.bf16 %v1589_v58, %v1588_v57  ;;  %v5035_v61 = vpop.f32.mrb[32].mxu0 }
 0x153   : > { %v1186_v62 = vadd.f32 %v5035_v61, %v5637_v2  ;;  %v1177_v63 = vpop.f32.mrb[33].mxu0 }
 0x154   : > { %v1178_v0 = vadd.f32 %v5637_v2, %v1177_v63  ;;  %v5036_v1 = vpop.f32.mrb[34].mxu0  ;;  %5161 = vmatprep.mubr.msk.bf16.mxu1 %vm1775_vm1, %v1702_v60 }
 0x155   : > { %v1189_v3 = vadd.f32 %v5036_v1, %v5637_v2  ;;  %v1180_v4 = vpop.f32.mrb[35].mxu0  ;;  %5162 = vmatmul.mubr.msk.bf16.gmra.mrb[28].mxu1 %vm1775_vm1, %v1703_v59  ;;  %v1594_v6 = vmax.f32 %v1186_v62, 0.0 }
 0x156   : > { %v1181_v5 = vadd.f32 %v5637_v2, %v1180_v4  ;;  %v1592_v8 = vmax.f32 %v1178_v0, 0.0 }
 0x157   : > { %v1595_v7 = vmax.f32 %v1189_v3, 0.0 }
 0x158   : > { %v1593_v9 = vmax.f32 %v1181_v5, 0.0 }
 0x159   : > { %v1705_v10 = vpack.c.bf16 %v1595_v7, %v1594_v6 }
 0x15a   : > { %v1704_v11 = vpack.c.bf16 %v1593_v9, %v1592_v8  ;;  %v5039_v12 = vpop.f32.mrb[36].mxu0 }
 0x15b   : > { %v1202_v13 = vadd.f32 %v5039_v12, %v5637_v2  ;;  %v1193_v14 = vpop.f32.mrb[37].mxu0 }
 0x15c   : > { %v1194_v15 = vadd.f32 %v5637_v2, %v1193_v14  ;;  %v5040_v16 = vpop.f32.mrb[38].mxu0  ;;  %5165 = vmatprep.mubr.msk.bf16.mxu1 %vm1775_vm1, %v1704_v11 }
 0x15d   : > { %v1205_v17 = vadd.f32 %v5040_v16, %v5637_v2  ;;  %v1196_v18 = vpop.f32.mrb[39].mxu0  ;;  %5166 = vmatmul.mubr.msk.bf16.gmra.mrb[32].mxu1 %vm1775_vm1, %v1705_v10  ;;  %v1598_v20 = vmax.f32 %v1202_v13, 0.0 }
 0x15e   : > { %v1197_v19 = vadd.f32 %v5637_v2, %v1196_v18  ;;  %v1596_v22 = vmax.f32 %v1194_v15, 0.0 }
 0x15f   : > { %v1599_v21 = vmax.f32 %v1205_v17, 0.0 }
 0x160   : > { %v1597_v23 = vmax.f32 %v1197_v19, 0.0 }
 0x161   : > { %v1707_v24 = vpack.c.bf16 %v1599_v21, %v1598_v20 }
 0x162   : > { %v1706_v25 = vpack.c.bf16 %v1597_v23, %v1596_v22  ;;  %v5043_v26 = vpop.f32.mrb[40].mxu0 }
 0x163   : > { %v1218_v27 = vadd.f32 %v5043_v26, %v5637_v2  ;;  %v1209_v28 = vpop.f32.mrb[41].mxu0 }
 0x164   : > { %v1210_v29 = vadd.f32 %v5637_v2, %v1209_v28  ;;  %v5044_v30 = vpop.f32.mrb[42].mxu0  ;;  %5169 = vmatprep.mubr.msk.bf16.mxu1 %vm1775_vm1, %v1706_v25 }
 0x165   : > { %v1221_v31 = vadd.f32 %v5044_v30, %v5637_v2  ;;  %v1212_v32 = vpop.f32.mrb[43].mxu0  ;;  %5170 = vmatmul.mubr.msk.bf16.gmra.mrb[36].mxu1 %vm1775_vm1, %v1707_v24  ;;  %v1602_v34 = vmax.f32 %v1218_v27, 0.0 }
 0x166   : > { %v1213_v33 = vadd.f32 %v5637_v2, %v1212_v32  ;;  %v1600_v36 = vmax.f32 %v1210_v29, 0.0 }
 0x167   : > { %v1603_v35 = vmax.f32 %v1221_v31, 0.0 }
 0x168   : > { %v1601_v37 = vmax.f32 %v1213_v33, 0.0 }
 0x169   : > { %v1709_v38 = vpack.c.bf16 %v1603_v35, %v1602_v34 }
 0x16a   : > { %v1708_v39 = vpack.c.bf16 %v1601_v37, %v1600_v36  ;;  %v5047_v40 = vpop.f32.mrb[44].mxu0 }
 0x16b   : > { %v1234_v41 = vadd.f32 %v5047_v40, %v5637_v2  ;;  %v1225_v42 = vpop.f32.mrb[45].mxu0 }
 0x16c   : > { %v1226_v43 = vadd.f32 %v5637_v2, %v1225_v42  ;;  %v5048_v44 = vpop.f32.mrb[46].mxu0  ;;  %5173 = vmatprep.mubr.msk.bf16.mxu1 %vm1775_vm1, %v1708_v39 }
 0x16d   : > { %v1237_v45 = vadd.f32 %v5048_v44, %v5637_v2  ;;  %v1228_v46 = vpop.f32.mrb[47].mxu0  ;;  %5174 = vmatmul.mubr.msk.bf16.gmra.mrb[40].mxu1 %vm1775_vm1, %v1709_v38  ;;  %v1606_v48 = vmax.f32 %v1234_v41, 0.0 }
 0x16e   : > { %v1229_v47 = vadd.f32 %v5637_v2, %v1228_v46  ;;  %v1604_v50 = vmax.f32 %v1226_v43, 0.0 }
 0x16f   : > { %v1607_v49 = vmax.f32 %v1237_v45, 0.0 }
 0x170   : > { %v1605_v51 = vmax.f32 %v1229_v47, 0.0 }
 0x171   : > { %v1711_v52 = vpack.c.bf16 %v1607_v49, %v1606_v48 }
 0x172   : > { %v1710_v53 = vpack.c.bf16 %v1605_v51, %v1604_v50  ;;  %v5051_v54 = vpop.f32.mrb[48].mxu0 }
 0x173   : > { %v1250_v55 = vadd.f32 %v5051_v54, %v5637_v2  ;;  %v1241_v56 = vpop.f32.mrb[49].mxu0 }
 0x174   : > { %v1242_v57 = vadd.f32 %v5637_v2, %v1241_v56  ;;  %v5052_v58 = vpop.f32.mrb[50].mxu0  ;;  %5177 = vmatprep.mubr.msk.bf16.mxu1 %vm1775_vm1, %v1710_v53 }
 0x175   : > { %v1253_v59 = vadd.f32 %v5052_v58, %v5637_v2  ;;  %v1244_v60 = vpop.f32.mrb[51].mxu0  ;;  %5178 = vmatmul.mubr.msk.bf16.gmra.mrb[44].mxu1 %vm1775_vm1, %v1711_v52  ;;  %v1610_v62 = vmax.f32 %v1250_v55, 0.0 }
 0x176   : > { %v1245_v61 = vadd.f32 %v5637_v2, %v1244_v60  ;;  %v1608_v0 = vmax.f32 %v1242_v57, 0.0 }
 0x177   : > { %v1611_v63 = vmax.f32 %v1253_v59, 0.0 }
 0x178   : > { %v1609_v1 = vmax.f32 %v1245_v61, 0.0 }
 0x179   : > { %v1713_v3 = vpack.c.bf16 %v1611_v63, %v1610_v62 }
 0x17a   : > { %v1712_v4 = vpack.c.bf16 %v1609_v1, %v1608_v0  ;;  %v5055_v5 = vpop.f32.mrb[52].mxu0 }
 0x17b   : > { %v1266_v6 = vadd.f32 %v5055_v5, %v5637_v2  ;;  %v1257_v7 = vpop.f32.mrb[53].mxu0 }
 0x17c   : > { %v1258_v8 = vadd.f32 %v5637_v2, %v1257_v7  ;;  %v5056_v9 = vpop.f32.mrb[54].mxu0  ;;  %5181 = vmatprep.mubr.msk.bf16.mxu1 %vm1775_vm1, %v1712_v4 }
 0x17d   : > { %v1269_v10 = vadd.f32 %v5056_v9, %v5637_v2  ;;  %v1260_v11 = vpop.f32.mrb[55].mxu0  ;;  %5182 = vmatmul.mubr.msk.bf16.gmra.mrb[48].mxu1 %vm1775_vm1, %v1713_v3  ;;  %v1614_v13 = vmax.f32 %v1266_v6, 0.0 }
 0x17e   : > { %v1261_v12 = vadd.f32 %v5637_v2, %v1260_v11  ;;  %v1612_v15 = vmax.f32 %v1258_v8, 0.0 }
 0x17f   : > { %v1615_v14 = vmax.f32 %v1269_v10, 0.0 }
 0x180   : > { %v1613_v16 = vmax.f32 %v1261_v12, 0.0 }
 0x181   : > { %v1715_v17 = vpack.c.bf16 %v1615_v14, %v1614_v13 }
 0x182   : > { %v1714_v18 = vpack.c.bf16 %v1613_v16, %v1612_v15  ;;  %v5059_v19 = vpop.f32.mrb[56].mxu0 }
 0x183   : > { %v1282_v20 = vadd.f32 %v5059_v19, %v5637_v2  ;;  %v1273_v21 = vpop.f32.mrb[57].mxu0 }
 0x184   : > { %v1274_v22 = vadd.f32 %v5637_v2, %v1273_v21  ;;  %v5060_v23 = vpop.f32.mrb[58].mxu0  ;;  %5185 = vmatprep.mubr.msk.bf16.mxu1 %vm1775_vm1, %v1714_v18 }
 0x185   : > { %v1285_v24 = vadd.f32 %v5060_v23, %v5637_v2  ;;  %v1276_v25 = vpop.f32.mrb[59].mxu0  ;;  %5186 = vmatmul.mubr.msk.bf16.gmra.mrb[52].mxu1 %vm1775_vm1, %v1715_v17  ;;  %v1618_v27 = vmax.f32 %v1282_v20, 0.0 }
 0x186   : > { %v1277_v26 = vadd.f32 %v5637_v2, %v1276_v25  ;;  %v1616_v29 = vmax.f32 %v1274_v22, 0.0 }
 0x187   : > { %v1619_v28 = vmax.f32 %v1285_v24, 0.0 }
 0x188   : > { %v1617_v30 = vmax.f32 %v1277_v26, 0.0 }
 0x189   : > { %v1717_v31 = vpack.c.bf16 %v1619_v28, %v1618_v27 }
 0x18a   : > { %v1716_v32 = vpack.c.bf16 %v1617_v30, %v1616_v29  ;;  %v5063_v33 = vpop.f32.mrb[60].mxu0 }
 0x18b   : > { %v1298_v34 = vadd.f32 %v5063_v33, %v5637_v2  ;;  %v1289_v35 = vpop.f32.mrb[61].mxu0 }
 0x18c   : > { %v1290_v36 = vadd.f32 %v5637_v2, %v1289_v35  ;;  %v5064_v37 = vpop.f32.mrb[62].mxu0  ;;  %5189 = vmatprep.mubr.msk.bf16.mxu1 %vm1775_vm1, %v1716_v32 }
 0x18d   : > { %v1301_v38 = vadd.f32 %v5064_v37, %v5637_v2  ;;  %v1292_v39 = vpop.f32.mrb[63].mxu0  ;;  %5190 = vmatmul.mubr.msk.bf16.gmra.mrb[56].mxu1 %vm1775_vm1, %v1717_v31  ;;  %v1622_v41 = vmax.f32 %v1298_v34, 0.0 }
 0x18e   : > { %v1293_v40 = vadd.f32 %v5637_v2, %v1292_v39  ;;  %v1620_v43 = vmax.f32 %v1290_v36, 0.0 }
 0x18f   : > { %v1623_v42 = vmax.f32 %v1301_v38, 0.0 }
 0x190   : > { %v1621_v44 = vmax.f32 %v1293_v40, 0.0 }
 0x191   : > { %v1719_v45 = vpack.c.bf16 %v1623_v42, %v1622_v41 }
 0x192   : > { %v1718_v46 = vpack.c.bf16 %v1621_v44, %v1620_v43  ;;  %v5067_v47 = vpop.f32.mrb[64].mxu0 }
 0x193   : > { %v1314_v48 = vadd.f32 %v5067_v47, %v5637_v2  ;;  %v1305_v49 = vpop.f32.mrb[65].mxu0 }
 0x194   : > { %5193 = vmatprep.mubr.msk.bf16.mxu1 %vm1775_vm1, %v1718_v46  ;;  %v1306_v50 = vadd.f32 %v5637_v2, %v1305_v49  ;;  %v5068_v51 = vpop.f32.mrb[66].mxu0 }
 0x195   : > { %5194 = vmatmul.mubr.msk.bf16.gmra.mrb[60].mxu1 %vm1775_vm1, %v1719_v45  ;;  %v1317_v52 = vadd.f32 %v5068_v51, %v5637_v2  ;;  %v1308_v53 = vpop.f32.mrb[67].mxu0  ;;  %v1626_v55 = vmax.f32 %v1314_v48, 0.0 }
 0x196   : > { %v1309_v54 = vadd.f32 %v5637_v2, %v1308_v53  ;;  %v1624_v57 = vmax.f32 %v1306_v50, 0.0 }
 0x197   : > { %v1627_v56 = vmax.f32 %v1317_v52, 0.0 }
 0x198   : > { %v1625_v58 = vmax.f32 %v1309_v54, 0.0 }
 0x199   : > { %v1721_v59 = vpack.c.bf16 %v1627_v56, %v1626_v55 }
 0x19a   : > { %v1720_v60 = vpack.c.bf16 %v1625_v58, %v1624_v57  ;;  %v5071_v61 = vpop.f32.mrb[68].mxu0 }
 0x19b   : > { %v1330_v62 = vadd.f32 %v5071_v61, %v5637_v2  ;;  %v1321_v63 = vpop.f32.mrb[69].mxu0 }
 0x19c   : > { %v1322_v0 = vadd.f32 %v5637_v2, %v1321_v63  ;;  %v5072_v1 = vpop.f32.mrb[70].mxu0  ;;  %5197 = vmatprep.mubr.msk.bf16.mxu1 %vm1775_vm1, %v1720_v60 }
 0x19d   : > { %v1333_v3 = vadd.f32 %v5072_v1, %v5637_v2  ;;  %v1324_v4 = vpop.f32.mrb[71].mxu0  ;;  %5198 = vmatmul.mubr.msk.bf16.gmra.mrb[64].mxu1 %vm1775_vm1, %v1721_v59  ;;  %v1630_v6 = vmax.f32 %v1330_v62, 0.0 }
 0x19e   : > { %v1325_v5 = vadd.f32 %v5637_v2, %v1324_v4  ;;  %v1628_v8 = vmax.f32 %v1322_v0, 0.0 }
 0x19f   : > { %v1631_v7 = vmax.f32 %v1333_v3, 0.0 }
 0x1a0   : > { %v1629_v9 = vmax.f32 %v1325_v5, 0.0 }
 0x1a1   : > { %v1723_v10 = vpack.c.bf16 %v1631_v7, %v1630_v6 }
 0x1a2   : > { %v1722_v11 = vpack.c.bf16 %v1629_v9, %v1628_v8  ;;  %v5075_v12 = vpop.f32.mrb[72].mxu0 }
 0x1a3   : > { %v1346_v13 = vadd.f32 %v5075_v12, %v5637_v2  ;;  %v1337_v14 = vpop.f32.mrb[73].mxu0 }
 0x1a4   : > { %v1338_v15 = vadd.f32 %v5637_v2, %v1337_v14  ;;  %v5076_v16 = vpop.f32.mrb[74].mxu0  ;;  %5201 = vmatprep.mubr.msk.bf16.mxu1 %vm1775_vm1, %v1722_v11 }
 0x1a5   : > { %v1349_v17 = vadd.f32 %v5076_v16, %v5637_v2  ;;  %v1340_v18 = vpop.f32.mrb[75].mxu0  ;;  %5202 = vmatmul.mubr.msk.bf16.gmra.mrb[68].mxu1 %vm1775_vm1, %v1723_v10  ;;  %v1634_v20 = vmax.f32 %v1346_v13, 0.0 }
 0x1a6   : > { %v1341_v19 = vadd.f32 %v5637_v2, %v1340_v18  ;;  %v1632_v22 = vmax.f32 %v1338_v15, 0.0 }
 0x1a7   : > { %v1635_v21 = vmax.f32 %v1349_v17, 0.0 }
 0x1a8   : > { %v1633_v23 = vmax.f32 %v1341_v19, 0.0 }
 0x1a9   : > { %v1725_v24 = vpack.c.bf16 %v1635_v21, %v1634_v20 }
 0x1aa   : > { %v1724_v25 = vpack.c.bf16 %v1633_v23, %v1632_v22  ;;  %v5079_v26 = vpop.f32.mrb[76].mxu0 }
 0x1ab   : > { %v1362_v27 = vadd.f32 %v5079_v26, %v5637_v2  ;;  %v1353_v28 = vpop.f32.mrb[77].mxu0 }
 0x1ac   : > { %v1354_v29 = vadd.f32 %v5637_v2, %v1353_v28  ;;  %v5080_v30 = vpop.f32.mrb[78].mxu0  ;;  %5205 = vmatprep.mubr.msk.bf16.mxu1 %vm1775_vm1, %v1724_v25 }
 0x1ad   : > { %v1365_v31 = vadd.f32 %v5080_v30, %v5637_v2  ;;  %v1356_v32 = vpop.f32.mrb[79].mxu0  ;;  %5206 = vmatmul.mubr.msk.bf16.gmra.mrb[72].mxu1 %vm1775_vm1, %v1725_v24  ;;  %v1638_v34 = vmax.f32 %v1362_v27, 0.0 }
 0x1ae   : > { %v1357_v33 = vadd.f32 %v5637_v2, %v1356_v32  ;;  %v1636_v36 = vmax.f32 %v1354_v29, 0.0 }
 0x1af   : > { %v1639_v35 = vmax.f32 %v1365_v31, 0.0 }
 0x1b0   : > { %v1637_v37 = vmax.f32 %v1357_v33, 0.0 }
 0x1b1   : > { %v1727_v38 = vpack.c.bf16 %v1639_v35, %v1638_v34 }
 0x1b2   : > { %v1726_v39 = vpack.c.bf16 %v1637_v37, %v1636_v36  ;;  %v5083_v40 = vpop.f32.mrb[80].mxu0 }
 0x1b3   : > { %v1378_v41 = vadd.f32 %v5083_v40, %v5637_v2  ;;  %v1369_v42 = vpop.f32.mrb[81].mxu0 }
 0x1b4   : > { %v1370_v43 = vadd.f32 %v5637_v2, %v1369_v42  ;;  %v5084_v44 = vpop.f32.mrb[82].mxu0  ;;  %5209 = vmatprep.mubr.msk.bf16.mxu1 %vm1775_vm1, %v1726_v39 }
 0x1b5   : > { %v1381_v45 = vadd.f32 %v5084_v44, %v5637_v2  ;;  %v1372_v46 = vpop.f32.mrb[83].mxu0  ;;  %5210 = vmatmul.mubr.msk.bf16.gmra.mrb[76].mxu1 %vm1775_vm1, %v1727_v38  ;;  %v1642_v48 = vmax.f32 %v1378_v41, 0.0 }
 0x1b6   : > { %v1373_v47 = vadd.f32 %v5637_v2, %v1372_v46  ;;  %v1640_v50 = vmax.f32 %v1370_v43, 0.0 }
 0x1b7   : > { %v1643_v49 = vmax.f32 %v1381_v45, 0.0 }
 0x1b8   : > { %v1641_v51 = vmax.f32 %v1373_v47, 0.0 }
 0x1b9   : > { %v1729_v52 = vpack.c.bf16 %v1643_v49, %v1642_v48 }
 0x1ba   : > { %v1728_v53 = vpack.c.bf16 %v1641_v51, %v1640_v50  ;;  %v5087_v54 = vpop.f32.mrb[84].mxu0 }
 0x1bb   : > { %v1394_v55 = vadd.f32 %v5087_v54, %v5637_v2  ;;  %v1385_v56 = vpop.f32.mrb[85].mxu0 }
 0x1bc   : > { %v1386_v57 = vadd.f32 %v5637_v2, %v1385_v56  ;;  %v5088_v58 = vpop.f32.mrb[86].mxu0  ;;  %5213 = vmatprep.mubr.msk.bf16.mxu1 %vm1775_vm1, %v1728_v53 }
 0x1bd   : > { %v1397_v59 = vadd.f32 %v5088_v58, %v5637_v2  ;;  %v1388_v60 = vpop.f32.mrb[87].mxu0  ;;  %5214 = vmatmul.mubr.msk.bf16.gmra.mrb[80].mxu1 %vm1775_vm1, %v1729_v52  ;;  %v1646_v62 = vmax.f32 %v1394_v55, 0.0 }
 0x1be   : > { %v1389_v61 = vadd.f32 %v5637_v2, %v1388_v60  ;;  %v1644_v0 = vmax.f32 %v1386_v57, 0.0 }
 0x1bf   : > { %v1647_v63 = vmax.f32 %v1397_v59, 0.0 }
 0x1c0   : > { %v1645_v1 = vmax.f32 %v1389_v61, 0.0 }
 0x1c1   : > { %v1731_v3 = vpack.c.bf16 %v1647_v63, %v1646_v62 }
 0x1c2   : > { %v1730_v4 = vpack.c.bf16 %v1645_v1, %v1644_v0  ;;  %v5091_v5 = vpop.f32.mrb[88].mxu0 }
 0x1c3   : > { %v1410_v6 = vadd.f32 %v5091_v5, %v5637_v2  ;;  %v1401_v7 = vpop.f32.mrb[89].mxu0 }
 0x1c4   : > { %v1402_v8 = vadd.f32 %v5637_v2, %v1401_v7  ;;  %v5092_v9 = vpop.f32.mrb[90].mxu0  ;;  %5217 = vmatprep.mubr.msk.bf16.mxu1 %vm1775_vm1, %v1730_v4 }
 0x1c5   : > { %v1413_v10 = vadd.f32 %v5092_v9, %v5637_v2  ;;  %v1404_v11 = vpop.f32.mrb[91].mxu0  ;;  %5218 = vmatmul.mubr.msk.bf16.gmra.mrb[84].mxu1 %vm1775_vm1, %v1731_v3  ;;  %v1650_v13 = vmax.f32 %v1410_v6, 0.0 }
 0x1c6   : > { %v1405_v12 = vadd.f32 %v5637_v2, %v1404_v11  ;;  %v1648_v15 = vmax.f32 %v1402_v8, 0.0 }
 0x1c7   : > { %v1651_v14 = vmax.f32 %v1413_v10, 0.0 }
 0x1c8   : > { %v1649_v16 = vmax.f32 %v1405_v12, 0.0 }
 0x1c9   : > { %v1733_v17 = vpack.c.bf16 %v1651_v14, %v1650_v13 }
 0x1ca   : > { %v1732_v18 = vpack.c.bf16 %v1649_v16, %v1648_v15  ;;  %v5095_v19 = vpop.f32.mrb[92].mxu0 }
 0x1cb   : > { %v1426_v20 = vadd.f32 %v5095_v19, %v5637_v2  ;;  %v1417_v21 = vpop.f32.mrb[93].mxu0  ;;  %v5816_v19 = vld [vmem:[%s6624_s4] ss:$0 sm:$0xff] }
 0x1cc   : > { %v1418_v22 = vadd.f32 %v5637_v2, %v1417_v21  ;;  %v5096_v23 = vpop.f32.mrb[94].mxu0  ;;  %5221 = vmatprep.mubr.msk.bf16.mxu1 %vm1775_vm1, %v1732_v18 }
 0x1cd   : > { %v1429_v24 = vadd.f32 %v5096_v23, %v5637_v2  ;;  %v1420_v25 = vpop.f32.mrb[95].mxu0  ;;  %5222 = vmatmul.mubr.msk.bf16.gmra.mrb[88].mxu1 %vm1775_vm1, %v1733_v17  ;;  %v1654_v27 = vmax.f32 %v1426_v20, 0.0  ;;  %v4528_v20 = vld [vmem:[%s5535_s11 + $0x8] sm:$0xff]  }
 0x1ce   : > { %v1421_v26 = vadd.f32 %v5637_v2, %v1420_v25  ;;  %v1652_v29 = vmax.f32 %v1418_v22, 0.0  ;;  %v4273_v22 = vld [vmem:[%s5535_s11] sm:$0xff]  }
 0x1cf   : > { %v1655_v28 = vmax.f32 %v1429_v24, 0.0 }
 0x1d0   : > { %v1653_v30 = vmax.f32 %v1421_v26, 0.0 }
 0x1d1   : > { %v1735_v31 = vpack.c.bf16 %v1655_v28, %v1654_v27 }
 0x1d2   : > { %v1734_v32 = vpack.c.bf16 %v1653_v30, %v1652_v29  ;;  %v5099_v33 = vpop.f32.mrb[96].mxu0  ;;  %v4278_v29 = vunpack.c.l.bf16 %v4528_v20 }
 0x1d3   : > { %v1442_v34 = vadd.f32 %v5099_v33, %v5637_v2  ;;  %v1433_v35 = vpop.f32.mrb[97].mxu0 }
 0x1d4   : > { %v1434_v36 = vadd.f32 %v5637_v2, %v1433_v35  ;;  %v5100_v37 = vpop.f32.mrb[98].mxu0  ;;  %5225 = vmatprep.mubr.msk.bf16.mxu1 %vm1775_vm1, %v1734_v32 }
 0x1d5   : > { %v1445_v38 = vadd.f32 %v5100_v37, %v5637_v2  ;;  %v1436_v39 = vpop.f32.mrb[99].mxu0  ;;  %5226 = vmatmul.mubr.msk.bf16.gmra.mrb[92].mxu1 %vm1775_vm1, %v1735_v31  ;;  %v1658_v41 = vmax.f32 %v1442_v34, 0.0  ;;  %v4279_v31 = vunpack.c.h.bf16 %v4528_v20  ;;  %v4274_v34 = vunpack.c.l.bf16 %v4273_v22 }
 0x1d6   : > { %v1437_v40 = vadd.f32 %v5637_v2, %v1436_v39  ;;  %v1656_v43 = vmax.f32 %v1434_v36, 0.0  ;;  %v4275_v36 = vunpack.c.h.bf16 %v4273_v22 }
 0x1d7   : > { %v1659_v42 = vmax.f32 %v1445_v38, 0.0 }
 0x1d8   : > { %v1657_v44 = vmax.f32 %v1437_v40, 0.0 }
 0x1d9   : > { %v1737_v45 = vpack.c.bf16 %v1659_v42, %v1658_v41 }
 0x1da   : > { %v1736_v46 = vpack.c.bf16 %v1657_v44, %v1656_v43  ;;  %v5103_v47 = vpop.f32.mrb[100].mxu0 }
 0x1db   : > { %v1458_v48 = vadd.f32 %v5103_v47, %v5637_v2  ;;  %v1449_v49 = vpop.f32.mrb[101].mxu0 }
 0x1dc   : > { %v1450_v50 = vadd.f32 %v5637_v2, %v1449_v49  ;;  %v5104_v51 = vpop.f32.mrb[102].mxu0  ;;  %5229 = vmatprep.mubr.msk.bf16.mxu1 %vm1775_vm1, %v1736_v46 }
 0x1dd   : > { %v1461_v52 = vadd.f32 %v5104_v51, %v5637_v2  ;;  %v1452_v53 = vpop.f32.mrb[103].mxu0  ;;  %5230 = vmatmul.mubr.msk.bf16.gmra.mrb[96].mxu1 %vm1775_vm1, %v1737_v45  ;;  %v1662_v55 = vmax.f32 %v1458_v48, 0.0 }
 0x1de   : > { %v1453_v54 = vadd.f32 %v5637_v2, %v1452_v53  ;;  %v1660_v57 = vmax.f32 %v1450_v50, 0.0 }
 0x1df   : > { %v1663_v56 = vmax.f32 %v1461_v52, 0.0  ;;  %v4530_v52 = vld [vmem:[%s5535_s11 + $0x18] sm:$0xff]  }
 0x1e0   : > { %v1661_v58 = vmax.f32 %v1453_v54, 0.0 }
 0x1e1   : > { %v1739_v59 = vpack.c.bf16 %v1663_v56, %v1662_v55  ;;  %v4529_v55 = vld [vmem:[%s5535_s11 + $0x10] sm:$0xff]  }
 0x1e2   : > { %v1738_v60 = vpack.c.bf16 %v1661_v58, %v1660_v57  ;;  %v5107_v61 = vpop.f32.mrb[104].mxu0 }
 0x1e3   : > { %v1474_v62 = vadd.f32 %v5107_v61, %v5637_v2  ;;  %v1465_v63 = vpop.f32.mrb[105].mxu0 }
 0x1e4   : > { %v1466_v0 = vadd.f32 %v5637_v2, %v1465_v63  ;;  %v5108_v1 = vpop.f32.mrb[106].mxu0  ;;  %5233 = vmatprep.mubr.msk.bf16.mxu1 %vm1775_vm1, %v1738_v60  ;;  %v4286_v63 = vunpack.c.l.bf16 %v4530_v52 }
 0x1e5   : > { %v1477_v3 = vadd.f32 %v5108_v1, %v5637_v2  ;;  %v1468_v4 = vpop.f32.mrb[107].mxu0  ;;  %5234 = vmatmul.mubr.msk.bf16.gmra.mrb[100].mxu1 %vm1775_vm1, %v1739_v59  ;;  %v1666_v6 = vmax.f32 %v1474_v62, 0.0  ;;  %v4287_v1 = vunpack.c.h.bf16 %v4530_v52 }
 0x1e6   : > { %v1469_v5 = vadd.f32 %v5637_v2, %v1468_v4  ;;  %v1664_v8 = vmax.f32 %v1466_v0, 0.0  ;;  %v4282_v4 = vunpack.c.l.bf16 %v4529_v55 }
 0x1e7   : > { %v1667_v7 = vmax.f32 %v1477_v3, 0.0 }
 0x1e8   : > { %v1665_v9 = vmax.f32 %v1469_v5, 0.0 }
 0x1e9   : > { %v1741_v10 = vpack.c.bf16 %v1667_v7, %v1666_v6  ;;  %v4283_v6 = vunpack.c.h.bf16 %v4529_v55 }
 0x1ea   : > { %v1740_v11 = vpack.c.bf16 %v1665_v9, %v1664_v8  ;;  %v5111_v12 = vpop.f32.mrb[108].mxu0 }
 0x1eb   : > { %v1490_v13 = vadd.f32 %v5111_v12, %v5637_v2  ;;  %v1481_v14 = vpop.f32.mrb[109].mxu0 }
 0x1ec   : > { %v1482_v15 = vadd.f32 %v5637_v2, %v1481_v14  ;;  %v5112_v16 = vpop.f32.mrb[110].mxu0  ;;  %5237 = vmatprep.mubr.msk.bf16.mxu1 %vm1775_vm1, %v1740_v11  ;;  %v5851_v11 = vld [vmem:[%s6622_s2] ss:$0 sm:$0xff] }
 0x1ed   : > { %v1493_v17 = vadd.f32 %v5112_v16, %v5637_v2  ;;  %v1484_v18 = vpop.f32.mrb[111].mxu0  ;;  %5238 = vmatmul.mubr.msk.bf16.gmra.mrb[104].mxu1 %vm1775_vm1, %v1741_v10  ;;  %v1670_v23 = vmax.f32 %v1490_v13, 0.0 }
 0x1ee   : > { %v1485_v21 = vadd.f32 %v5637_v2, %v1484_v18  ;;  %v1668_v26 = vmax.f32 %v1482_v15, 0.0 }
 0x1ef   : > { %v1671_v24 = vmax.f32 %v1493_v17, 0.0 }
 0x1f0   : > { %v5135_v25 = vpop.f32.mrb[0].mxu1  ;;  %v1669_v27 = vmax.f32 %v1485_v21, 0.0 }
 0x1f1   : > { %v2011_v28 = vadd.f32 %v5135_v25, %v5816_v19  ;;  %v2002_v30 = vpop.f32.mrb[1].mxu1  ;;  %v1743_v32 = vpack.c.bf16 %v1671_v24, %v1670_v23  ;;  %v4532_v24 = vld [vmem:[%s5535_s11 + $0x28] sm:$0xff]  }
 0x1f2   : > { %v2003_v33 = vadd.f32 %v5816_v19, %v2002_v30  ;;  %v5136_v35 = vpop.f32.mrb[2].mxu1  ;;  %v1742_v37 = vpack.c.bf16 %v1669_v27, %v1668_v26  ;;  %v5115_v38 = vpop.f32.mrb[112].mxu0  ;;  %v4531_v27 = vld [vmem:[%s5535_s11 + $0x20] sm:$0xff]  }
 0x1f3   : > { %v2014_v39 = vadd.f32 %v5136_v35, %v5816_v19  ;;  %v2005_v40 = vpop.f32.mrb[3].mxu1  ;;  %v1506_v41 = vadd.f32 %v5115_v38, %v5637_v2  ;;  %v1497_v42 = vpop.f32.mrb[113].mxu0  ;;  %v5828_v46 = vmul.f32 %v4278_v29, %v2011_v28  ;;  %v4294_v35 = vunpack.c.l.bf16 %v4532_v24 }
 0x1f4   : > { %v2006_v43 = vadd.f32 %v5816_v19, %v2005_v40  ;;  %v1498_v44 = vadd.f32 %v5637_v2, %v1497_v42  ;;  %v5116_v45 = vpop.f32.mrb[114].mxu0  ;;  %5241 = vmatprep.mubr.msk.bf16.mxu1 %vm1775_vm1, %v1742_v37  ;;  %v5834_v50 = vmul.f32 %v4274_v34, %v2003_v33  ;;  %v4295_v37 = vunpack.c.h.bf16 %v4532_v24 }
 0x1f5   : > { %v5830_v47 = vmul.f32 %v4279_v31, %v2014_v39  ;;  %v1509_v48 = vadd.f32 %v5116_v45, %v5637_v2  ;;  %v1500_v49 = vpop.f32.mrb[115].mxu0  ;;  %5242 = vmatmul.mubr.msk.bf16.gmra.mrb[108].mxu1 %vm1775_vm1, %v1743_v32  ;;  %v1674_v56 = vmax.f32 %v1506_v41, 0.0  ;;  %v4290_v40 = vunpack.c.l.bf16 %v4531_v27 }
 0x1f6   : > { %v5836_v51 = vmul.f32 %v4275_v36, %v2006_v43  ;;  %v1501_v53 = vadd.f32 %v5637_v2, %v1500_v49  ;;  %v1672_v60 = vmax.f32 %v1498_v44, 0.0  ;;  %v4291_v42 = vunpack.c.h.bf16 %v4531_v27 }
 0x1f7   : > { %v2898_v54 = vpack.c.bf16 %v5830_v47, %v5828_v46  ;;  %v1675_v57 = vmax.f32 %v1509_v48, 0.0 }
 0x1f8   : > { %v2897_v58 = vpack.c.bf16 %v5836_v51, %v5834_v50  ;;  %v5139_v59 = vpop.f32.mrb[4].mxu1  ;;  %v1673_v61 = vmax.f32 %v1501_v53, 0.0 }
 0x1f9   : > { %v2027_v62 = vadd.f32 %v5139_v59, %v5816_v19  ;;  %v2018_v0 = vpop.f32.mrb[5].mxu1  ;;  %v1745_v3 = vpack.c.bf16 %v1675_v57, %v1674_v56 }
 0x1fa   : > { %v2019_v2 = vadd.f32 %v5816_v19, %v2018_v0  ;;  %v5140_v5 = vpop.f32.mrb[6].mxu1  ;;  %v1744_v7 = vpack.c.bf16 %v1673_v61, %v1672_v60  ;;  %v5119_v8 = vpop.f32.mrb[116].mxu0  ;;  %v4534_v0 = vld [vmem:[%s5535_s11 + $0x38] sm:$0xff]  }
 0x1fb   : > { %v2030_v9 = vadd.f32 %v5140_v5, %v5816_v19  ;;  %v2021_v10 = vpop.f32.mrb[7].mxu1  ;;  %v1522_v12 = vadd.f32 %v5851_v11, %v5119_v8  ;;  %v1513_v13 = vpop.f32.mrb[117].mxu0  ;;  %v5857_v17 = vmul.f32 %v4286_v63, %v2027_v62 }
 0x1fc   : > { %v2022_v14 = vadd.f32 %v5816_v19, %v2021_v10  ;;  %v1514_v15 = vadd.f32 %v5851_v11, %v1513_v13  ;;  %v5120_v16 = vpop.f32.mrb[118].mxu0  ;;  %5245 = vmatprep.mubr.msk.bf16.mxu1 %vm1775_vm1, %v1744_v7  ;;  %v5863_v22 = vmul.f32 %v4282_v4, %v2019_v2  ;;  %v4533_v2 = vld [vmem:[%s5535_s11 + $0x30] sm:$0xff]  }
 0x1fd   : > { %v5859_v18 = vmul.f32 %v4287_v1, %v2030_v9  ;;  %v1525_v20 = vadd.f32 %v5851_v11, %v5120_v16  ;;  %v1516_v21 = vpop.f32.mrb[119].mxu0  ;;  %5246 = vmatmul.mubr.msk.bf16.gmra.mrb[112].mxu1 %vm1775_vm1, %v1745_v3  ;;  %v1678_v28 = vmax.f32 %v1522_v12, 0.0  ;;  %v4302_v12 = vunpack.c.l.bf16 %v4534_v0 }
 0x1fe   : > { %v5865_v23 = vmul.f32 %v4283_v6, %v2022_v14  ;;  %v1517_v25 = vadd.f32 %v5851_v11, %v1516_v21  ;;  %v1676_v32 = vmax.f32 %v1514_v15, 0.0  ;;  %v4303_v14 = vunpack.c.h.bf16 %v4534_v0 }
 0x1ff   : > { %v2900_v26 = vpack.c.bf16 %v5859_v18, %v5857_v17  ;;  %v1679_v29 = vmax.f32 %v1525_v20, 0.0  ;;  %v4298_v20 = vunpack.c.l.bf16 %v4533_v2  ;;  %v4299_v24 = vunpack.c.h.bf16 %v4533_v2 }
 0x200   : > { %v2899_v30 = vpack.c.bf16 %v5865_v23, %v5863_v22  ;;  %v5143_v31 = vpop.f32.mrb[8].mxu1  ;;  %v1677_v33 = vmax.f32 %v1517_v25, 0.0  ;;  %v4541_v22 = vld [vmem:[%s5535_s11 + $0x70] sm:$0xff]  }
 0x201   : > { %v2043_v34 = vadd.f32 %v5143_v31, %v5816_v19  ;;  %v2034_v36 = vpop.f32.mrb[9].mxu1  ;;  %v1747_v38 = vpack.c.bf16 %v1679_v29, %v1678_v28 }
 0x202   : > { %v2035_v39 = vadd.f32 %v5816_v19, %v2034_v36  ;;  %v5144_v41 = vpop.f32.mrb[10].mxu1  ;;  %v1746_v43 = vpack.c.bf16 %v1677_v33, %v1676_v32  ;;  %v5123_v44 = vpop.f32.mrb[120].mxu0 }
 0x203   : > { %v2046_v45 = vadd.f32 %v5144_v41, %v5816_v19  ;;  %v2037_v48 = vpop.f32.mrb[11].mxu1  ;;  %v1538_v49 = vadd.f32 %v5851_v11, %v5123_v44  ;;  %v1529_v52 = vpop.f32.mrb[121].mxu0  ;;  %v5881_v57 = vmul.f32 %v4294_v35, %v2043_v34 }
 0x204   : > { %v2038_v53 = vadd.f32 %v5816_v19, %v2037_v48  ;;  %v1530_v55 = vadd.f32 %v5851_v11, %v1529_v52  ;;  %v5124_v56 = vpop.f32.mrb[122].mxu0  ;;  %5249 = vmatprep.mubr.msk.bf16.mxu1 %vm1775_vm1, %v1746_v43  ;;  %v5887_v62 = vmul.f32 %v4290_v40, %v2035_v39  ;;  %v4535_v43 = vld [vmem:[%s5535_s11 + $0x40] sm:$0xff]  }
 0x205   : > { %v5883_v59 = vmul.f32 %v4295_v37, %v2046_v45  ;;  %v1541_v60 = vadd.f32 %v5851_v11, %v5124_v56  ;;  %v1532_v61 = vpop.f32.mrb[123].mxu0  ;;  %5250 = vmatmul.mubr.msk.bf16.gmra.mrb[116].mxu1 %vm1775_vm1, %v1747_v38  ;;  %v1682_v4 = vmax.f32 %v1538_v49, 0.0  ;;  %v4536_v38 = vld [vmem:[%s5535_s11 + $0x48] sm:$0xff]   ;;  %v5921_v52 = vld [vmem:[%s5540_s12] sm:$0xff] }
 0x206   : > { %v5889_v63 = vmul.f32 %v4291_v42, %v2038_v53  ;;  %v1533_v1 = vadd.f32 %v5851_v11, %v1532_v61  ;;  %v1680_v8 = vmax.f32 %v1530_v55, 0.0  ;;  %v5924_v53 = vld [vmem:[%s5540_s12 + $0x20] sm:$0xff] }
 0x207   : > { %v2902_v3 = vpack.c.bf16 %v5883_v59, %v5881_v57  ;;  %v1683_v5 = vmax.f32 %v1541_v60, 0.0  ;;  %v4310_v60 = vunpack.c.l.bf16 %v4536_v38 }
 0x208   : > { %v2901_v6 = vpack.c.bf16 %v5889_v63, %v5887_v62  ;;  %v5147_v7 = vpop.f32.mrb[12].mxu1  ;;  %v1681_v9 = vmax.f32 %v1533_v1, 0.0 }
 0x209   : > { %v2059_v10 = vadd.f32 %v5147_v7, %v5816_v19  ;;  %v2050_v13 = vpop.f32.mrb[13].mxu1  ;;  %v1749_v15 = vpack.c.bf16 %v1683_v5, %v1682_v4  ;;  %v4311_v4 = vunpack.c.h.bf16 %v4536_v38 }
 0x20a   : > { %v2051_v16 = vadd.f32 %v5816_v19, %v2050_v13  ;;  %v5148_v21 = vpop.f32.mrb[14].mxu1  ;;  %v1748_v25 = vpack.c.bf16 %v1681_v9, %v1680_v8  ;;  %v5127_v27 = vpop.f32.mrb[124].mxu0  ;;  %v4307_v9 = vunpack.c.h.bf16 %v4535_v43 }
 0x20b   : > { %v2062_v28 = vadd.f32 %v5148_v21, %v5816_v19  ;;  %v2053_v29 = vpop.f32.mrb[15].mxu1  ;;  %v1554_v31 = vadd.f32 %v5851_v11, %v5127_v27  ;;  %v1545_v32 = vpop.f32.mrb[125].mxu0  ;;  %v5905_v36 = vmul.f32 %v4302_v12, %v2059_v10  ;;  %v4203_v12 = vcombine.high %v5921_v52, %v5924_v53  ;;  %v4537_v27 = vld [vmem:[%s5535_s11 + $0x50] sm:$0xff]  }
 0x20c   : > { %v2054_v33 = vadd.f32 %v5816_v19, %v2053_v29  ;;  %v1546_v34 = vadd.f32 %v5851_v11, %v1545_v32  ;;  %v5128_v35 = vpop.f32.mrb[126].mxu0  ;;  %5253 = vmatprep.mubr.msk.bf16.mxu1 %vm1775_vm1, %v1748_v25  ;;  %v5912_v41 = vmul.f32 %v4298_v20, %v2051_v16  ;;  %v4538_v25 = vld [vmem:[%s5535_s11 + $0x58] sm:$0xff]  }
 0x20d   : > { %v5907_v37 = vmul.f32 %v4303_v14, %v2062_v28  ;;  %v1557_v39 = vadd.f32 %v5851_v11, %v5128_v35  ;;  %v1548_v40 = vpop.f32.mrb[127].mxu0  ;;  %5254 = vmatmul.mubr.msk.bf16.gmra.mrb[120].mxu1 %vm1775_vm1, %v1749_v15  ;;  %v1686_v48 = vmax.f32 %v1554_v31, 0.0  ;;  %v4319_v35 = vunpack.c.h.bf16 %v4538_v25 }
 0x20e   : > { %v5914_v42 = vmul.f32 %v4299_v24, %v2054_v33  ;;  %v1549_v44 = vadd.f32 %v5851_v11, %v1548_v40  ;;  %v1684_v61 = vmax.f32 %v1546_v34, 0.0  ;;  %v4306_v11 = vunpack.c.l.bf16 %v4535_v43 }
 0x20f   : > { %v2904_v45 = vpack.c.bf16 %v5907_v37, %v5905_v36  ;;  %v1687_v49 = vmax.f32 %v1557_v39, 0.0  ;;  %v4318_v33 = vunpack.c.l.bf16 %v4538_v25  ;;  %v4314_v39 = vunpack.c.l.bf16 %v4537_v27 }
 0x210   : > { %v2903_v55 = vpack.c.bf16 %v5914_v42, %v5912_v41  ;;  %v5151_v56 = vpop.f32.mrb[16].mxu1  ;;  %v1685_v0 = vmax.f32 %v1549_v44, 0.0  ;;  %v4315_v43 = vunpack.c.h.bf16 %v4537_v27  ;;  %v4542_v27 = vld [vmem:[%s5535_s11 + $0x78] sm:$0xff]   ;;  %v6005_v41 = vld [vmem:[%s5540_s12 + $0x10] sm:$0xff] }
 0x211   : > { %v2075_v1 = vadd.f32 %v5151_v56, %v5816_v19  ;;  %v2066_v2 = vpop.f32.mrb[17].mxu1  ;;  %v1751_v5 = vpack.c.bf16 %v1687_v49, %v1686_v48  ;;  %v6008_v42 = vld [vmem:[%s5540_s12 + $0x30] sm:$0xff] }
 0x212   : > { %v2067_v7 = vadd.f32 %v5816_v19, %v2066_v2  ;;  %v5152_v8 = vpop.f32.mrb[18].mxu1  ;;  %v1750_v10 = vpack.c.bf16 %v1685_v0, %v1684_v61  ;;  %v4539_v2 = vld [vmem:[%s5535_s11 + $0x60] sm:$0xff]  }
 0x213   : > { %v2078_v13 = vadd.f32 %v5152_v8, %v5816_v19  ;;  %v2069_v14 = vpop.f32.mrb[19].mxu1  ;;  %v2787_v16 = vmul.f32 %v4310_v60, %v2075_v1  ;;  %v4540_v1 = vld [vmem:[%s5535_s11 + $0x68] sm:$0xff]  }
 0x214   : > { %v2070_v15 = vadd.f32 %v5816_v19, %v2069_v14  ;;  %5257 = vmatprep.mubr.msk.bf16.mxu1 %vm1775_vm1, %v1750_v10  ;;  %v2785_v21 = vmul.f32 %v4306_v11, %v2067_v7  ;;  %v4326_v51 = vunpack.c.l.bf16 %v4540_v1  ;;  %v4327_v7 = vunpack.c.h.bf16 %v4540_v1 }
 0x215   : > { %v2788_v20 = vmul.f32 %v4311_v4, %v2078_v13  ;;  %5258 = vmatmul.mubr.msk.bf16.gmra.mrb[124].mxu1 %vm1775_vm1, %v1751_v5  ;;  %v5960_v13 = vld [vmem:[%s5540_s12 + $0x28] sm:$0xff] }
 0x216   : > { %v2786_v24 = vmul.f32 %v4307_v9, %v2070_v15  ;;  %3393 = vmatprep.mubr.bf16.mxu1 %v4203_v12  ;;  %v4322_v9 = vunpack.c.l.bf16 %v4539_v2  ;;  %v4323_v12 = vunpack.c.h.bf16 %v4539_v2 }
 0x217   : > { %v2906_v28 = vpack.c.bf16 %v2788_v20, %v2787_v16 }
 0x218   : > { %v5155_v29 = vpop.f32.mrb[20].mxu1  ;;  %v2905_v31 = vpack.c.bf16 %v2786_v24, %v2785_v21 }
 0x219   : > { %v2091_v32 = vadd.f32 %v5155_v29, %v5816_v19  ;;  %v2082_v34 = vpop.f32.mrb[21].mxu1 }
 0x21a   : > { %v2083_v38 = vadd.f32 %v5816_v19, %v2082_v34  ;;  %v5156_v40 = vpop.f32.mrb[22].mxu1  ;;  %4729 = vmatprep.subr.bf16.mxu1 %v2905_v31  ;;  %v4334_v31 = vunpack.c.l.bf16 %v4542_v27 }
 0x21b   : > { %v2094_v44 = vadd.f32 %v5156_v40, %v5816_v19  ;;  %v2085_v48 = vpop.f32.mrb[23].mxu1  ;;  %4730 = vmatpush3.bf16.msra.mxu1 %v2897_v58  ;;  %v2791_v56 = vmul.f32 %v4318_v33, %v2091_v32  ;;  %v4335_v33 = vunpack.c.h.bf16 %v4542_v27 }
 0x21c   : > { %v2086_v49 = vadd.f32 %v5816_v19, %v2085_v48  ;;  %4731 = vmatprep.subr.bf16.mxu1 %v2906_v28  ;;  %v2789_v61 = vmul.f32 %v4314_v39, %v2083_v38  ;;  %v4331_v39 = vunpack.c.h.bf16 %v4541_v22 }
 0x21d   : > { %v2792_v60 = vmul.f32 %v4319_v35, %v2094_v44  ;;  %v4330_v35 = vunpack.c.l.bf16 %v4541_v22 }
 0x21e   : > { %v2790_v0 = vmul.f32 %v4315_v43, %v2086_v49  ;;  %v4544_v49 = vld [vmem:[%s5535_s11 + $0x88] sm:$0xff]  }
 0x21f   : > { %4732 = vmatpush3.bf16.msra.mxu1 %v2898_v54  ;;  %v2908_v11 = vpack.c.bf16 %v2792_v60, %v2791_v56  ;;  %v5957_v54 = vld [vmem:[%s5540_s12 + $0x8] sm:$0xff]  ;;  %v4543_v56 = vld [vmem:[%s5535_s11 + $0x80] sm:$0xff]   ;;  %v4342_v63 = vunpack.c.l.bf16 %v4544_v49  ;;  %v4343_v1 = vunpack.c.h.bf16 %v4544_v49 }
 0x220   : > { %v5159_v4 = vpop.f32.mrb[24].mxu1  ;;  %v2907_v5 = vpack.c.bf16 %v2790_v0, %v2789_v61  ;;  %v4205_v15 = vcombine.high %v5957_v54, %v5960_v13  ;;  %v4204_v21 = vcombine.low %v5957_v54, %v5960_v13  ;;  %v4339_v57 = vunpack.c.h.bf16 %v4543_v56  ;;  %v4563_v13 = vld [vmem:[%s5535_s11 + $0x120] sm:$0xff]  }
 0x221   : > { %v2107_v50 = vadd.f32 %v5159_v4, %v5816_v19  ;;  %v2098_v58 = vpop.f32.mrb[25].mxu1 }
 0x222   : > { %v2099_v8 = vadd.f32 %v5816_v19, %v2098_v58  ;;  %v5160_v10 = vpop.f32.mrb[26].mxu1  ;;  %4733 = vmatprep.subr.bf16.mxu1 %v2907_v5  ;;  %3490 = vmatprep.mubr.bf16.mxu0 %v4205_v15 }
 0x223   : > { %v2110_v46 = vadd.f32 %v5160_v10, %v5816_v19  ;;  %v2101_v47 = vpop.f32.mrb[27].mxu1  ;;  %4734 = vmatpush3.bf16.msra.mxu1 %v2899_v30  ;;  %v2795_v16 = vmul.f32 %v4326_v51, %v2107_v50  ;;  %v2985_v50 = vld [vmem:[%s5540_s12 + $0x40] sm:$0xff]  ;;  %v4546_v10 = vld [vmem:[%s5535_s11 + $0x98] sm:$0xff]  }
 0x224   : > { %v2102_v14 = vadd.f32 %v5816_v19, %v2101_v47  ;;  %4735 = vmatprep.subr.bf16.mxu1 %v2908_v11  ;;  %v2793_v24 = vmul.f32 %v4322_v9, %v2099_v8  ;;  %v4338_v11 = vunpack.c.l.bf16 %v4543_v56  ;;  %v2989_v51 = vld [vmem:[%s5540_s12 + $0x60] sm:$0xff] }
 0x225   : > { %v2796_v20 = vmul.f32 %v4327_v7, %v2110_v46  ;;  %v4545_v46 = vld [vmem:[%s5535_s11 + $0x90] sm:$0xff]   ;;  %v4211_v47 = vcombine.high %v2985_v50, %v2989_v51 }
 0x226   : > { %v2794_v25 = vmul.f32 %v4323_v12, %v2102_v14  ;;  %v4202_v12 = vcombine.low %v5921_v52, %v5924_v53  ;;  %v4206_v52 = vcombine.low %v6005_v41, %v6008_v42  ;;  %v4346_v37 = vunpack.c.l.bf16 %v4545_v46 }
 0x227   : > { %4736 = vmatpush3.bf16.msra.mxu1 %v2900_v26  ;;  %v2910_v23 = vpack.c.bf16 %v2796_v20, %v2795_v16  ;;  %v4350_v16 = vunpack.c.l.bf16 %v4546_v10 }
 0x228   : > { %v5163_v30 = vpop.f32.mrb[28].mxu1  ;;  %v2909_v28 = vpack.c.bf16 %v2794_v25, %v2793_v24  ;;  %v4351_v24 = vunpack.c.h.bf16 %v4546_v10  ;;  %v4347_v25 = vunpack.c.h.bf16 %v4545_v46 }
 0x229   : > { %v2123_v29 = vadd.f32 %v5163_v30, %v5816_v19  ;;  %v2114_v32 = vpop.f32.mrb[29].mxu1  ;;  %v2993_v30 = vld [vmem:[%s5540_s12 + $0x80] sm:$0xff] }
 0x22a   : > { %v2115_v34 = vadd.f32 %v5816_v19, %v2114_v32  ;;  %v5164_v38 = vpop.f32.mrb[30].mxu1  ;;  %4737 = vmatprep.subr.bf16.mxu1 %v2909_v28  ;;  %v2997_v28 = vld [vmem:[%s5540_s12 + $0xa0] sm:$0xff] }
 0x22b   : > { %v2126_v17 = vadd.f32 %v5164_v38, %v5816_v19  ;;  %v2117_v18 = vpop.f32.mrb[31].mxu1  ;;  %4738 = vmatpush3.bf16.msra.mxu1 %v2901_v6  ;;  %v2799_v40 = vmul.f32 %v4334_v31, %v2123_v29 }
 0x22c   : > { %v2118_v26 = vadd.f32 %v5816_v19, %v2117_v18  ;;  %4739 = vmatprep.subr.bf16.mxu1 %v2910_v23  ;;  %v2797_v44 = vmul.f32 %v4330_v35, %v2115_v34  ;;  %v4548_v34 = vld [vmem:[%s5535_s11 + $0xa8] sm:$0xff]   ;;  %v4210_v35 = vcombine.low %v2985_v50, %v2989_v51  ;;  %v4549_v50 = vld [vmem:[%s5535_s11 + $0xb0] sm:$0xff]  }
 0x22d   : > { %v2800_v43 = vmul.f32 %v4335_v33, %v2126_v17  ;;  %v4219_v17 = vcombine.high %v2993_v30, %v2997_v28 }
 0x22e   : > { %v2798_v48 = vmul.f32 %v4331_v39, %v2118_v26  ;;  %v4547_v39 = vld [vmem:[%s5535_s11 + $0xa0] sm:$0xff]  }
 0x22f   : > { %4740 = vmatpush3.bf16.msra.mxu1 %v2902_v3  ;;  %v2912_v60 = vpack.c.bf16 %v2800_v43, %v2799_v40  ;;  %v4358_v43 = vunpack.c.l.bf16 %v4548_v34  ;;  %v4354_v56 = vunpack.c.l.bf16 %v4547_v39 }
 0x230   : > { %v5167_v61 = vpop.f32.mrb[32].mxu1  ;;  %v2911_v0 = vpack.c.bf16 %v2798_v48, %v2797_v44  ;;  %v4359_v48 = vunpack.c.h.bf16 %v4548_v34 }
 0x231   : > { %v2139_v62 = vadd.f32 %v5167_v61, %v5816_v19  ;;  %v2130_v6 = vpop.f32.mrb[33].mxu1  ;;  %v4355_v61 = vunpack.c.h.bf16 %v4547_v39 }
 0x232   : > { %v2131_v2 = vadd.f32 %v5816_v19, %v2130_v6  ;;  %v5168_v4 = vpop.f32.mrb[34].mxu1  ;;  %4741 = vmatprep.subr.bf16.mxu1 %v2911_v0  ;;  %v3001_v6 = vld [vmem:[%s5540_s12 + $0xc0] sm:$0xff] }
 0x233   : > { %v2142_v59 = vadd.f32 %v5168_v4, %v5816_v19  ;;  %v2133_v3 = vpop.f32.mrb[35].mxu1  ;;  %4742 = vmatpush3.bf16.msra.mxu1 %v2903_v55  ;;  %v5993_v58 = vmul.f32 %v4342_v63, %v2139_v62 }
 0x234   : > { %v2134_v5 = vadd.f32 %v5816_v19, %v2133_v3  ;;  %4743 = vmatprep.subr.bf16.mxu1 %v2912_v60  ;;  %v5997_v8 = vmul.f32 %v4338_v11, %v2131_v2  ;;  %v4218_v3 = vcombine.low %v2993_v30, %v2997_v28 }
 0x235   : > { %v5995_v7 = vmul.f32 %v4343_v1, %v2142_v59  ;;  %v3005_v1 = vld [vmem:[%s5540_s12 + $0xe0] sm:$0xff]  ;;  %v4550_v59 = vld [vmem:[%s5535_s11 + $0xb8] sm:$0xff]  }
 0x236   : > { %v5999_v9 = vmul.f32 %v4339_v57, %v2134_v5  ;;  %v4227_v51 = vcombine.high %v3001_v6, %v3005_v1  ;;  %v4226_v39 = vcombine.low %v3001_v6, %v3005_v1 }
 0x237   : > { %v2914_v55 = vpack.c.bf16 %v5995_v7, %v5993_v58  ;;  %4744 = vmatpush3.bf16.msra.mxu1 %v2904_v45 }
 0x238   : > { %v2913_v14 = vpack.c.bf16 %v5999_v9, %v5997_v8  ;;  %v5171_v15 = vpop.f32.mrb[36].mxu1 }
 0x239   : > { %v2155_v53 = vadd.f32 %v5171_v15, %v5816_v19  ;;  %v2146_v20 = vpop.f32.mrb[37].mxu1 }
 0x23a   : > { %v2147_v36 = vadd.f32 %v5816_v19, %v2146_v20  ;;  %v5172_v45 = vpop.f32.mrb[38].mxu1  ;;  %3394 = vmatmul.mubr.bf16.vlgmr.msra.gmra.mrb[128].mxu1 %v4202_v12  ;;  %v4362_v20 = vunpack.c.l.bf16 %v4549_v50 }
 0x23b   : > { %v2158_v27 = vadd.f32 %v5172_v45, %v5816_v19  ;;  %v2149_v22 = vpop.f32.mrb[39].mxu1  ;;  %3401 = vmatprep.mubr.bf16.mxu1 %v4211_v47  ;;  %v6026_v29 = vmul.f32 %v4350_v16, %v2155_v53  ;;  %v4366_v47 = vunpack.c.l.bf16 %v4550_v59  ;;  %v4367_v53 = vunpack.c.h.bf16 %v4550_v59 }
 0x23c   : > { %v2150_v23 = vadd.f32 %v5816_v19, %v2149_v22  ;;  %v6030_v32 = vmul.f32 %v4346_v37, %v2147_v36  ;;  %v4363_v36 = vunpack.c.h.bf16 %v4549_v50  ;;  %v3013_v22 = vld [vmem:[%s5540_s12 + $0x120] sm:$0xff] }
 0x23d   : > { %v6028_v31 = vmul.f32 %v4351_v24, %v2158_v27  ;;  %v3009_v27 = vld [vmem:[%s5540_s12 + $0x100] sm:$0xff] }
 0x23e   : > { %v6032_v33 = vmul.f32 %v4347_v25, %v2150_v23  ;;  %v3021_v50 = vld [vmem:[%s5540_s12 + $0x160] sm:$0xff] }
 0x23f   : > { %v2916_v38 = vpack.c.bf16 %v6028_v31, %v6026_v29 }
 0x240   : > { %v2915_v18 = vpack.c.bf16 %v6032_v33, %v6030_v32  ;;  %v5175_v26 = vpop.f32.mrb[40].mxu1 }
 0x241   : > { %v2171_v40 = vadd.f32 %v5175_v26, %v5816_v19  ;;  %v2162_v44 = vpop.f32.mrb[41].mxu1  ;;  %v4551_v26 = vld [vmem:[%s5535_s11 + $0xc0] sm:$0xff]  }
 0x242   : > { %v2163_v49 = vadd.f32 %v5816_v19, %v2162_v44  ;;  %v5176_v60 = vpop.f32.mrb[42].mxu1  ;;  %3402 = vmatmul.mubr.bf16.gmra.mrb[132].mxu1 %v4210_v35  ;;  %v4552_v35 = vld [vmem:[%s5535_s11 + $0xc8] sm:$0xff]  }
 0x243   : > { %v2174_v0 = vadd.f32 %v5176_v60, %v5816_v19  ;;  %v2165_v62 = vpop.f32.mrb[43].mxu1  ;;  %3409 = vmatprep.mubr.bf16.mxu1 %v4219_v17  ;;  %v6046_v2 = vmul.f32 %v4358_v43, %v2171_v40  ;;  %v4235_v40 = vcombine.high %v3009_v27, %v3013_v22  ;;  %v4375_v60 = vunpack.c.h.bf16 %v4552_v35 }
 0x244   : > { %v2166_v63 = vadd.f32 %v5816_v19, %v2165_v62  ;;  %v6050_v4 = vmul.f32 %v4354_v56, %v2163_v49  ;;  %v4374_v49 = vunpack.c.l.bf16 %v4552_v35 }
 0x245   : > { %v6048_v11 = vmul.f32 %v4359_v48, %v2174_v0  ;;  %v4370_v0 = vunpack.c.l.bf16 %v4551_v26 }
 0x246   : > { %v6052_v57 = vmul.f32 %v4355_v61, %v2166_v63  ;;  %v4371_v63 = vunpack.c.h.bf16 %v4551_v26 }
 0x247   : > { %v2918_v5 = vpack.c.bf16 %v6048_v11, %v6046_v2 }
 0x248   : > { %v2917_v10 = vpack.c.bf16 %v6052_v57, %v6050_v4  ;;  %v5179_v12 = vpop.f32.mrb[44].mxu1  ;;  %v4207_v4 = vcombine.high %v6005_v41, %v6008_v42 }
 0x249   : > { %v2187_v46 = vadd.f32 %v5179_v12, %v5816_v19  ;;  %v2178_v15 = vpop.f32.mrb[45].mxu1 }
 0x24a   : > { %v2179_v16 = vadd.f32 %v5816_v19, %v2178_v15  ;;  %v5180_v24 = vpop.f32.mrb[46].mxu1  ;;  %3410 = vmatmul.mubr.bf16.gmra.mrb[136].mxu1 %v4218_v3  ;;  %v3017_v3 = vld [vmem:[%s5540_s12 + $0x140] sm:$0xff]  ;;  %v4554_v15 = vld [vmem:[%s5535_s11 + $0xd8] sm:$0xff]  }
 0x24b   : > { %v2190_v37 = vadd.f32 %v5180_v24, %v5816_v19  ;;  %v2181_v45 = vpop.f32.mrb[47].mxu1  ;;  %3417 = vmatprep.mubr.bf16.mxu1 %v4227_v51  ;;  %v6066_v23 = vmul.f32 %v4366_v47, %v2187_v46  ;;  %v4243_v24 = vcombine.high %v3017_v3, %v3021_v50 }
 0x24c   : > { %v2182_v25 = vadd.f32 %v5816_v19, %v2181_v45  ;;  %v6070_v28 = vmul.f32 %v4362_v20, %v2179_v16  ;;  %v4553_v16 = vld [vmem:[%s5535_s11 + $0xd0] sm:$0xff]  }
 0x24d   : > { %v6068_v30 = vmul.f32 %v4367_v53, %v2190_v37  ;;  %v4234_v53 = vcombine.low %v3009_v27, %v3013_v22 }
 0x24e   : > { %v6072_v34 = vmul.f32 %v4363_v36, %v2182_v25  ;;  %v4382_v25 = vunpack.c.l.bf16 %v4554_v15 }
 0x24f   : > { %v2920_v17 = vpack.c.bf16 %v6068_v30, %v6066_v23 }
 0x250   : > { %v2919_v43 = vpack.c.bf16 %v6072_v34, %v6070_v28  ;;  %v5183_v44 = vpop.f32.mrb[48].mxu1  ;;  %v4562_v28 = vld [vmem:[%s5535_s11 + $0x118] sm:$0xff]  }
 0x251   : > { %v2203_v48 = vadd.f32 %v5183_v44, %v5816_v19  ;;  %v2194_v56 = vpop.f32.mrb[49].mxu1  ;;  %v6149_v34 = vld [vmem:[%s5540_s12 + $0x18] sm:$0xff]  ;;  %v4414_v30 = vunpack.c.l.bf16 %v4562_v28 }
 0x252   : > { %v2195_v61 = vadd.f32 %v5816_v19, %v2194_v56  ;;  %v5184_v62 = vpop.f32.mrb[50].mxu1  ;;  %3418 = vmatmul.mubr.bf16.gmra.mrb[140].mxu1 %v4226_v39  ;;  %v4383_v39 = vunpack.c.h.bf16 %v4554_v15  ;;  %v3025_v56 = vld [vmem:[%s5540_s12 + $0x180] sm:$0xff] }
 0x253   : > { %v2206_v6 = vadd.f32 %v5184_v62, %v5816_v19  ;;  %v2197_v1 = vpop.f32.mrb[51].mxu1  ;;  %3425 = vmatprep.mubr.bf16.mxu1 %v4235_v40  ;;  %v2819_v51 = vmul.f32 %v4374_v49, %v2203_v48  ;;  %v4378_v40 = vunpack.c.l.bf16 %v4553_v16  ;;  %v4379_v48 = vunpack.c.h.bf16 %v4553_v16 }
 0x254   : > { %v2198_v59 = vadd.f32 %v5816_v19, %v2197_v1  ;;  %v2817_v46 = vmul.f32 %v4370_v0, %v2195_v61  ;;  %v4242_v1 = vcombine.low %v3017_v3, %v3021_v50 }
 0x255   : > { %v2820_v12 = vmul.f32 %v4375_v60, %v2206_v6  ;;  %v3029_v60 = vld [vmem:[%s5540_s12 + $0x1a0] sm:$0xff]  ;;  %v4556_v6 = vld [vmem:[%s5535_s11 + $0xe8] sm:$0xff]  }
 0x256   : > { %v2818_v47 = vmul.f32 %v4371_v63, %v2198_v59  ;;  %v4555_v59 = vld [vmem:[%s5535_s11 + $0xe0] sm:$0xff]   ;;  %v4251_v8 = vcombine.high %v3025_v56, %v3029_v60  ;;  %v4391_v15 = vunpack.c.h.bf16 %v4556_v6 }
 0x257   : > { %v2922_v20 = vpack.c.bf16 %v2820_v12, %v2819_v51  ;;  %v4386_v16 = vunpack.c.l.bf16 %v4555_v59  ;;  %v4387_v58 = vunpack.c.h.bf16 %v4555_v59 }
 0x258   : > { %v5187_v36 = vpop.f32.mrb[52].mxu1  ;;  %v2921_v37 = vpack.c.bf16 %v2818_v47, %v2817_v46  ;;  %v4390_v46 = vunpack.c.l.bf16 %v4556_v6 }
 0x259   : > { %v2219_v45 = vadd.f32 %v5187_v36, %v5816_v19  ;;  %v2210_v35 = vpop.f32.mrb[53].mxu1 }
 0x25a   : > { %v2211_v26 = vadd.f32 %v5816_v19, %v2210_v35  ;;  %v5188_v44 = vpop.f32.mrb[54].mxu1  ;;  %4793 = vmatprep.subr.bf16.mxu0 %v2921_v37  ;;  %3426 = vmatmul.mubr.bf16.gmra.mrb[144].mxu1 %v4234_v53  ;;  %v4558_v35 = vld [vmem:[%s5535_s11 + $0xf8] sm:$0xff]  }
 0x25b   : > { %v2222_v27 = vadd.f32 %v5188_v44, %v5816_v19  ;;  %v2213_v22 = vpop.f32.mrb[55].mxu1  ;;  %4794 = vmatpush3.bf16.msra.mxu0 %v2913_v14  ;;  %3433 = vmatprep.mubr.bf16.mxu1 %v4243_v24  ;;  %v2823_v61 = vmul.f32 %v4382_v25, %v2219_v45  ;;  %v3037_v24 = vld [vmem:[%s5540_s12 + $0x1e0] sm:$0xff] }
 0x25c   : > { %v2214_v49 = vadd.f32 %v5816_v19, %v2213_v22  ;;  %4795 = vmatprep.subr.bf16.mxu0 %v2922_v20  ;;  %v2821_v62 = vmul.f32 %v4378_v40, %v2211_v26  ;;  %v3033_v20 = vld [vmem:[%s5540_s12 + $0x1c0] sm:$0xff]  ;;  %v4557_v26 = vld [vmem:[%s5535_s11 + $0xf0] sm:$0xff]   ;;  %v4399_v22 = vunpack.c.h.bf16 %v4558_v35 }
 0x25d   : > { %v2824_v0 = vmul.f32 %v4383_v39, %v2222_v27  ;;  %v4250_v39 = vcombine.low %v3025_v56, %v3029_v60  ;;  %v4259_v32 = vcombine.high %v3033_v20, %v3037_v24  ;;  %v4395_v56 = vunpack.c.h.bf16 %v4557_v26 }
 0x25e   : > { %v2822_v63 = vmul.f32 %v4379_v48, %v2214_v49  ;;  %v4398_v48 = vunpack.c.l.bf16 %v4558_v35  ;;  %v4258_v59 = vcombine.low %v3033_v20, %v3037_v24  ;;  %v4561_v24 = vld [vmem:[%s5535_s11 + $0x110] sm:$0xff]   ;;  %v6167_v35 = vld [vmem:[%s6624_s4] ss:$0 sm:$0xff] }
 0x25f   : > { %4796 = vmatpush3.bf16.msra.mxu0 %v2914_v55  ;;  %v2924_v51 = vpack.c.bf16 %v2824_v0, %v2823_v61  ;;  %v4394_v61 = vunpack.c.l.bf16 %v4557_v26 }
 0x260   : > { %v5191_v9 = vpop.f32.mrb[56].mxu1  ;;  %v2923_v14 = vpack.c.bf16 %v2822_v63, %v2821_v62 }
 0x261   : > { %v2235_v12 = vadd.f32 %v5191_v9, %v5816_v19  ;;  %v2226_v47 = vpop.f32.mrb[57].mxu1 }
 0x262   : > { %v2227_v53 = vadd.f32 %v5816_v19, %v2226_v47  ;;  %v5192_v3 = vpop.f32.mrb[58].mxu1  ;;  %4797 = vmatprep.subr.bf16.mxu0 %v2923_v14  ;;  %3434 = vmatmul.mubr.bf16.gmra.mrb[148].mxu1 %v4242_v1  ;;  %v4560_v1 = vld [vmem:[%s5535_s11 + $0x108] sm:$0xff]  }
 0x263   : > { %v2238_v7 = vadd.f32 %v5192_v3, %v5816_v19  ;;  %v2229_v55 = vpop.f32.mrb[59].mxu1  ;;  %4798 = vmatpush3.bf16.msra.mxu0 %v2915_v18  ;;  %3441 = vmatprep.mubr.bf16.mxu1 %v4251_v8  ;;  %v2827_v36 = vmul.f32 %v4390_v46, %v2235_v12  ;;  %v4559_v8 = vld [vmem:[%s5535_s11 + $0x100] sm:$0xff]   ;;  %v4406_v14 = vunpack.c.l.bf16 %v4560_v1  ;;  %v4407_v46 = vunpack.c.h.bf16 %v4560_v1  ;;  %v2986_v3 = vld [vmem:[%s5540_s12 + $0x48] sm:$0xff] }
 0x264   : > { %v2230_v50 = vadd.f32 %v5816_v19, %v2229_v55  ;;  %4799 = vmatprep.subr.bf16.mxu0 %v2924_v51  ;;  %v2825_v45 = vmul.f32 %v4386_v16, %v2227_v53  ;;  %v4403_v11 = vunpack.c.h.bf16 %v4559_v8 }
 0x265   : > { %v2828_v37 = vmul.f32 %v4391_v15, %v2238_v7  ;;  %v4402_v15 = vunpack.c.l.bf16 %v4559_v8 }
 0x266   : > { %v2826_v25 = vmul.f32 %v4387_v58, %v2230_v50  ;;  %v2990_v58 = vld [vmem:[%s5540_s12 + $0x68] sm:$0xff] }
 0x267   : > { %4800 = vmatpush3.bf16.msra.mxu0 %v2916_v38  ;;  %v2926_v40 = vpack.c.bf16 %v2828_v37, %v2827_v36  ;;  %v4213_v36 = vcombine.high %v2986_v3, %v2990_v58 }
 0x268   : > { %v5195_v33 = vpop.f32.mrb[60].mxu1  ;;  %v2925_v18 = vpack.c.bf16 %v2826_v25, %v2825_v45 }
 0x269   : > { %v2251_v44 = vadd.f32 %v5195_v33, %v5816_v19  ;;  %v2242_v27 = vpop.f32.mrb[61].mxu1  ;;  %v4411_v33 = vunpack.c.h.bf16 %v4561_v24 }
 0x26a   : > { %v2243_v49 = vadd.f32 %v5816_v19, %v2242_v27  ;;  %v5196_v0 = vpop.f32.mrb[62].mxu1  ;;  %4801 = vmatprep.subr.bf16.mxu0 %v2925_v18  ;;  %3442 = vmatmul.mubr.bf16.gmra.mrb[152].mxu1 %v4250_v39  ;;  %v4415_v39 = vunpack.c.h.bf16 %v4562_v28  ;;  %v2994_v27 = vld [vmem:[%s5540_s12 + $0x88] sm:$0xff] }
 0x26b   : > { %v2254_v29 = vadd.f32 %v5196_v0, %v5816_v19  ;;  %v2245_v31 = vpop.f32.mrb[63].mxu1  ;;  %4802 = vmatpush3.bf16.msra.mxu0 %v2917_v10  ;;  %3449 = vmatprep.mubr.bf16.mxu1 %v4259_v32  ;;  %v2831_v60 = vmul.f32 %v4398_v48, %v2251_v44 }
 0x26c   : > { %v2246_v38 = vadd.f32 %v5816_v19, %v2245_v31  ;;  %4803 = vmatprep.subr.bf16.mxu0 %v2926_v40  ;;  %v2829_v63 = vmul.f32 %v4394_v61, %v2243_v49  ;;  %v4410_v40 = vunpack.c.l.bf16 %v4561_v24  ;;  %v4212_v31 = vcombine.low %v2986_v3, %v2990_v58 }
 0x26d   : > { %v2832_v62 = vmul.f32 %v4399_v22, %v2254_v29  ;;  %v2998_v22 = vld [vmem:[%s5540_s12 + $0xa8] sm:$0xff] }
 0x26e   : > { %v2830_v6 = vmul.f32 %v4395_v56, %v2246_v38  ;;  %v4564_v29 = vld [vmem:[%s5535_s11 + $0x128] sm:$0xff]  }
 0x26f   : > { %4804 = vmatpush3.bf16.msra.mxu0 %v2918_v5  ;;  %v2928_v51 = vpack.c.bf16 %v2832_v62, %v2831_v60  ;;  %v4423_v1 = vunpack.c.h.bf16 %v4564_v29 }
 0x270   : > { %v2927_v57 = vpack.c.bf16 %v2830_v6, %v2829_v63  ;;  %v5199_v10 = vpop.f32.mrb[64].mxu1  ;;  %v4422_v63 = vunpack.c.l.bf16 %v4564_v29 }
 0x271   : > { %v2267_v9 = vadd.f32 %v5199_v10, %v5816_v19  ;;  %v2258_v12 = vpop.f32.mrb[65].mxu1 }
 0x272   : > { %4805 = vmatprep.subr.bf16.mxu0 %v2927_v57  ;;  %v2259_v47 = vadd.f32 %v5816_v19, %v2258_v12  ;;  %v5200_v2 = vpop.f32.mrb[66].mxu1  ;;  %3450 = vmatmul.mubr.bf16.gmra.mrb[156].mxu1 %v4258_v59  ;;  %v3006_v12 = vld [vmem:[%s5540_s12 + $0xe8] sm:$0xff] }
 0x273   : > { %4806 = vmatpush3.bf16.msra.mxu0 %v2919_v43  ;;  %v2270_v5 = vadd.f32 %v5200_v2, %v5816_v19  ;;  %v2261_v53 = vpop.f32.mrb[67].mxu1  ;;  %3587 = vmatprep.mubr.bf16.mxu1 %v4207_v4  ;;  %v6139_v7 = vmul.f32 %v4406_v14, %v2267_v9  ;;  %v6152_v43 = vld [vmem:[%s5540_s12 + $0x38] sm:$0xff]  ;;  %v4419_v4 = vunpack.c.h.bf16 %v4563_v13  ;;  %v3002_v14 = vld [vmem:[%s5540_s12 + $0xc8] sm:$0xff] }
 0x274   : > { %4807 = vmatprep.subr.bf16.mxu0 %v2928_v51  ;;  %v2262_v16 = vadd.f32 %v5816_v19, %v2261_v53  ;;  %v6143_v50 = vmul.f32 %v4402_v15, %v2259_v47  ;;  %v4208_v37 = vcombine.low %v6149_v34, %v6152_v43  ;;  %v4418_v51 = vunpack.c.l.bf16 %v4563_v13 }
 0x275   : > { %v6141_v55 = vmul.f32 %v4407_v46, %v2270_v5  ;;  %v4220_v5 = vcombine.low %v2994_v27, %v2998_v22  ;;  %v4229_v3 = vcombine.high %v3002_v14, %v3006_v12  ;;  %v4228_v13 = vcombine.low %v3002_v14, %v3006_v12 }
 0x276   : > { %v6145_v20 = vmul.f32 %v4403_v11, %v2262_v16  ;;  %v4566_v11 = vld [vmem:[%s5535_s11 + $0x138] sm:$0xff]   ;;  %v4565_v16 = vld [vmem:[%s5535_s11 + $0x130] sm:$0xff]  }
 0x277   : > { %4808 = vmatpush3.bf16.msra.mxu0 %v2920_v17  ;;  %v2930_v19 = vpack.c.bf16 %v6141_v55, %v6139_v7 }
 0x278   : > { %v2929_v45 = vpack.c.bf16 %v6145_v20, %v6143_v50  ;;  %v5203_v25 = vpop.f32.mrb[68].mxu1 }
 0x279   : > { %v2283_v23 = vadd.f32 %v6167_v35, %v5203_v25  ;;  %v2274_v17 = vpop.f32.mrb[69].mxu1 }
 0x27a   : > { %v2275_v26 = vadd.f32 %v6167_v35, %v2274_v17  ;;  %v5204_v32 = vpop.f32.mrb[70].mxu1  ;;  %3491 = vmatmul.mubr.bf16.vlgmr.msra.gmra.mrb[128].mxu0 %v4204_v21  ;;  %v4221_v21 = vcombine.high %v2994_v27, %v2998_v22  ;;  %v4426_v17 = vunpack.c.l.bf16 %v4565_v16 }
 0x27b   : > { %v2286_v18 = vadd.f32 %v6167_v35, %v5204_v32  ;;  %v2277_v44 = vpop.f32.mrb[71].mxu1  ;;  %3498 = vmatprep.mubr.bf16.mxu0 %v4213_v36  ;;  %v6178_v49 = vmul.f32 %v4414_v30, %v2283_v23  ;;  %v4430_v36 = vunpack.c.l.bf16 %v4566_v11  ;;  %v4431_v23 = vunpack.c.h.bf16 %v4566_v11 }
 0x27c   : > { %v2278_v48 = vadd.f32 %v6167_v35, %v2277_v44  ;;  %v6182_v0 = vmul.f32 %v4410_v40, %v2275_v26  ;;  %v4427_v26 = vunpack.c.h.bf16 %v4565_v16  ;;  %v3014_v44 = vld [vmem:[%s5540_s12 + $0x128] sm:$0xff] }
 0x27d   : > { %v6180_v61 = vmul.f32 %v4415_v39, %v2286_v18  ;;  %v3010_v18 = vld [vmem:[%s5540_s12 + $0x108] sm:$0xff] }
 0x27e   : > { %v6184_v56 = vmul.f32 %v4411_v33, %v2278_v48  ;;  %v3022_v16 = vld [vmem:[%s5540_s12 + $0x168] sm:$0xff] }
 0x27f   : > { %v2932_v54 = vpack.c.bf16 %v6180_v61, %v6178_v49 }
 0x280   : > { %v2931_v38 = vpack.c.bf16 %v6184_v56, %v6182_v0  ;;  %v5207_v60 = vpop.f32.mrb[72].mxu1 }
 0x281   : > { %v2299_v62 = vadd.f32 %v6167_v35, %v5207_v60  ;;  %v2290_v6 = vpop.f32.mrb[73].mxu1  ;;  %v4567_v60 = vld [vmem:[%s5535_s11 + $0x140] sm:$0xff]  }
 0x282   : > { %v2291_v59 = vadd.f32 %v6167_v35, %v2290_v6  ;;  %v5208_v8 = vpop.f32.mrb[74].mxu1  ;;  %3499 = vmatmul.mubr.bf16.gmra.mrb[132].mxu0 %v4212_v31  ;;  %v4568_v31 = vld [vmem:[%s5535_s11 + $0x148] sm:$0xff]  }
 0x283   : > { %v2302_v57 = vadd.f32 %v6167_v35, %v5208_v8  ;;  %v2293_v10 = vpop.f32.mrb[75].mxu1  ;;  %3506 = vmatprep.mubr.bf16.mxu0 %v4221_v21  ;;  %v6198_v46 = vmul.f32 %v4422_v63, %v2299_v62  ;;  %v4237_v62 = vcombine.high %v3010_v18, %v3014_v44  ;;  %v4439_v8 = vunpack.c.h.bf16 %v4568_v31 }
 0x284   : > { %v2294_v9 = vadd.f32 %v6167_v35, %v2293_v10  ;;  %v6202_v15 = vmul.f32 %v4418_v51, %v2291_v59  ;;  %v4438_v59 = vunpack.c.l.bf16 %v4568_v31 }
 0x285   : > { %v6200_v47 = vmul.f32 %v4423_v1, %v2302_v57  ;;  %v4434_v57 = vunpack.c.l.bf16 %v4567_v60 }
 0x286   : > { %v6204_v2 = vmul.f32 %v4419_v4, %v2294_v9  ;;  %v4435_v9 = vunpack.c.h.bf16 %v4567_v60 }
 0x287   : > { %v2934_v53 = vpack.c.bf16 %v6200_v47, %v6198_v46 }
 0x288   : > { %v2933_v58 = vpack.c.bf16 %v6204_v2, %v6202_v15  ;;  %v5211_v28 = vpop.f32.mrb[76].mxu1  ;;  %v4209_v15 = vcombine.high %v6149_v34, %v6152_v43  ;;  %v3012_v34 = vld [vmem:[%s5540_s12 + $0x118] sm:$0xff] }
 0x289   : > { %v2315_v24 = vadd.f32 %v6167_v35, %v5211_v28  ;;  %v2306_v25 = vpop.f32.mrb[77].mxu1  ;;  %v3016_v43 = vld [vmem:[%s5540_s12 + $0x138] sm:$0xff] }
 0x28a   : > { %v2307_v30 = vadd.f32 %v6167_v35, %v2306_v25  ;;  %v5212_v39 = vpop.f32.mrb[78].mxu1  ;;  %3507 = vmatmul.mubr.bf16.gmra.mrb[136].mxu0 %v4220_v5  ;;  %v3018_v5 = vld [vmem:[%s5540_s12 + $0x148] sm:$0xff]  ;;  %v4570_v25 = vld [vmem:[%s5535_s11 + $0x158] sm:$0xff]  }
 0x28b   : > { %v2318_v40 = vadd.f32 %v6167_v35, %v5212_v39  ;;  %v2309_v32 = vpop.f32.mrb[79].mxu1  ;;  %3514 = vmatprep.mubr.bf16.mxu0 %v4229_v3  ;;  %v6218_v48 = vmul.f32 %v4430_v36, %v2315_v24  ;;  %v4245_v39 = vcombine.high %v3018_v5, %v3022_v16 }
 0x28c   : > { %v2310_v33 = vadd.f32 %v6167_v35, %v2309_v32  ;;  %v6222_v22 = vmul.f32 %v4426_v17, %v2307_v30  ;;  %v4569_v30 = vld [vmem:[%s5535_s11 + $0x150] sm:$0xff]  }
 0x28d   : > { %v6220_v27 = vmul.f32 %v4431_v23, %v2318_v40  ;;  %v4236_v23 = vcombine.low %v3010_v18, %v3014_v44 }
 0x28e   : > { %v6224_v29 = vmul.f32 %v4427_v26, %v2310_v33  ;;  %v4446_v33 = vunpack.c.l.bf16 %v4570_v25 }
 0x28f   : > { %v2936_v21 = vpack.c.bf16 %v6220_v27, %v6218_v48 }
 0x290   : > { %v2935_v63 = vpack.c.bf16 %v6224_v29, %v6222_v22  ;;  %v5215_v6 = vpop.f32.mrb[80].mxu1  ;;  %v4577_v29 = vld [vmem:[%s5535_s11 + $0x190] sm:$0xff]  }
 0x291   : > { %v2331_v1 = vadd.f32 %v6167_v35, %v5215_v6  ;;  %v2322_v51 = vpop.f32.mrb[81].mxu1  ;;  %v4475_v27 = vunpack.c.h.bf16 %v4577_v29 }
 0x292   : > { %v2323_v4 = vadd.f32 %v6167_v35, %v2322_v51  ;;  %v5216_v10 = vpop.f32.mrb[82].mxu1  ;;  %3515 = vmatmul.mubr.bf16.gmra.mrb[140].mxu0 %v4228_v13  ;;  %v4447_v13 = vunpack.c.h.bf16 %v4570_v25  ;;  %v3026_v51 = vld [vmem:[%s5540_s12 + $0x188] sm:$0xff] }
 0x293   : > { %v2334_v14 = vadd.f32 %v6167_v35, %v5216_v10  ;;  %v2325_v12 = vpop.f32.mrb[83].mxu1  ;;  %3522 = vmatprep.mubr.bf16.mxu0 %v4237_v62  ;;  %v2851_v3 = vmul.f32 %v4438_v59, %v2331_v1  ;;  %v4442_v62 = vunpack.c.l.bf16 %v4569_v30  ;;  %v4443_v1 = vunpack.c.h.bf16 %v4569_v30 }
 0x294   : > { %v2326_v11 = vadd.f32 %v6167_v35, %v2325_v12  ;;  %v2849_v24 = vmul.f32 %v4434_v57, %v2323_v4  ;;  %v4244_v12 = vcombine.low %v3018_v5, %v3022_v16 }
 0x295   : > { %v2852_v28 = vmul.f32 %v4439_v8, %v2334_v14  ;;  %v3030_v8 = vld [vmem:[%s5540_s12 + $0x1a8] sm:$0xff] }
 0x296   : > { %v2850_v36 = vmul.f32 %v4435_v9, %v2326_v11  ;;  %v4572_v14 = vld [vmem:[%s5535_s11 + $0x168] sm:$0xff]   ;;  %v4571_v11 = vld [vmem:[%s5535_s11 + $0x160] sm:$0xff]   ;;  %v4253_v50 = vcombine.high %v3026_v51, %v3030_v8 }
 0x297   : > { %v2938_v17 = vpack.c.bf16 %v2852_v28, %v2851_v3  ;;  %v4455_v25 = vunpack.c.h.bf16 %v4572_v14  ;;  %v4450_v30 = vunpack.c.l.bf16 %v4571_v11  ;;  %v4451_v7 = vunpack.c.h.bf16 %v4571_v11 }
 0x298   : > { %v5219_v26 = vpop.f32.mrb[84].mxu1  ;;  %v2937_v40 = vpack.c.bf16 %v2850_v36, %v2849_v24  ;;  %v4454_v24 = vunpack.c.l.bf16 %v4572_v14 }
 0x299   : > { %v2347_v32 = vadd.f32 %v6167_v35, %v5219_v26  ;;  %v2338_v31 = vpop.f32.mrb[85].mxu1 }
 0x29a   : > { %v2339_v60 = vadd.f32 %v6167_v35, %v2338_v31  ;;  %v5220_v6 = vpop.f32.mrb[86].mxu1  ;;  %4857 = vmatprep.subr.bf16.mxu1 %v2937_v40  ;;  %3523 = vmatmul.mubr.bf16.gmra.mrb[144].mxu0 %v4236_v23  ;;  %v4574_v31 = vld [vmem:[%s5535_s11 + $0x178] sm:$0xff]  }
 0x29b   : > { %v2350_v18 = vadd.f32 %v6167_v35, %v5220_v6  ;;  %v2341_v44 = vpop.f32.mrb[87].mxu1  ;;  %4858 = vmatpush3.bf16.msra.mxu1 %v2929_v45  ;;  %3530 = vmatprep.mubr.bf16.mxu0 %v4245_v39  ;;  %v2855_v4 = vmul.f32 %v4446_v33, %v2347_v32  ;;  %v3038_v39 = vld [vmem:[%s5540_s12 + $0x1e8] sm:$0xff] }
 0x29c   : > { %v2342_v59 = vadd.f32 %v6167_v35, %v2341_v44  ;;  %4859 = vmatprep.subr.bf16.mxu1 %v2938_v17  ;;  %v2853_v10 = vmul.f32 %v4442_v62, %v2339_v60  ;;  %v3034_v17 = vld [vmem:[%s5540_s12 + $0x1c8] sm:$0xff]  ;;  %v4573_v60 = vld [vmem:[%s5535_s11 + $0x170] sm:$0xff]   ;;  %v4463_v44 = vunpack.c.h.bf16 %v4574_v31 }
 0x29d   : > { %v2856_v57 = vmul.f32 %v4447_v13, %v2350_v18  ;;  %v4252_v13 = vcombine.low %v3026_v51, %v3030_v8  ;;  %v4261_v0 = vcombine.high %v3034_v17, %v3038_v39  ;;  %v4459_v51 = vunpack.c.h.bf16 %v4573_v60 }
 0x29e   : > { %v2854_v9 = vmul.f32 %v4443_v1, %v2342_v59  ;;  %v4462_v1 = vunpack.c.l.bf16 %v4574_v31  ;;  %v4260_v11 = vcombine.low %v3034_v17, %v3038_v39  ;;  %v4578_v39 = vld [vmem:[%s5535_s11 + $0x198] sm:$0xff]  }
 0x29f   : > { %4860 = vmatpush3.bf16.msra.mxu1 %v2930_v19  ;;  %v2940_v3 = vpack.c.bf16 %v2856_v57, %v2855_v4  ;;  %v4458_v4 = vunpack.c.l.bf16 %v4573_v60 }
 0x2a0   : > { %v5223_v20 = vpop.f32.mrb[88].mxu1  ;;  %v2939_v45 = vpack.c.bf16 %v2854_v9, %v2853_v10 }
 0x2a1   : > { %v2363_v28 = vadd.f32 %v6167_v35, %v5223_v20  ;;  %v2354_v36 = vpop.f32.mrb[89].mxu1 }
 0x2a2   : > { %v2355_v23 = vadd.f32 %v6167_v35, %v2354_v36  ;;  %v5224_v5 = vpop.f32.mrb[90].mxu1  ;;  %4861 = vmatprep.subr.bf16.mxu1 %v2939_v45  ;;  %3531 = vmatmul.mubr.bf16.gmra.mrb[148].mxu0 %v4244_v12  ;;  %v4576_v12 = vld [vmem:[%s5535_s11 + $0x188] sm:$0xff]  }
 0x2a3   : > { %v2366_v55 = vadd.f32 %v6167_v35, %v5224_v5  ;;  %v2357_v19 = vpop.f32.mrb[91].mxu1  ;;  %4862 = vmatpush3.bf16.msra.mxu1 %v2931_v38  ;;  %3538 = vmatprep.mubr.bf16.mxu0 %v4253_v50  ;;  %v2859_v26 = vmul.f32 %v4454_v24, %v2363_v28  ;;  %v4575_v50 = vld [vmem:[%s5535_s11 + $0x180] sm:$0xff]   ;;  %v4470_v45 = vunpack.c.l.bf16 %v4576_v12  ;;  %v4471_v24 = vunpack.c.h.bf16 %v4576_v12  ;;  %v2987_v5 = vld [vmem:[%s5540_s12 + $0x50] sm:$0xff] }
 0x2a4   : > { %v2358_v16 = vadd.f32 %v6167_v35, %v2357_v19  ;;  %4863 = vmatprep.subr.bf16.mxu1 %v2940_v3  ;;  %v2857_v32 = vmul.f32 %v4450_v30, %v2355_v23  ;;  %v4467_v47 = vunpack.c.h.bf16 %v4575_v50 }
 0x2a5   : > { %v2860_v40 = vmul.f32 %v4455_v25, %v2366_v55  ;;  %v4466_v25 = vunpack.c.l.bf16 %v4575_v50 }
 0x2a6   : > { %v2858_v33 = vmul.f32 %v4451_v7, %v2358_v16  ;;  %v2991_v7 = vld [vmem:[%s5540_s12 + $0x70] sm:$0xff] }
 0x2a7   : > { %4864 = vmatpush3.bf16.msra.mxu1 %v2932_v54  ;;  %v2942_v62 = vpack.c.bf16 %v2860_v40, %v2859_v26 }
 0x2a8   : > { %v5227_v56 = vpop.f32.mrb[92].mxu1  ;;  %v2941_v38 = vpack.c.bf16 %v2858_v33, %v2857_v32  ;;  %v4478_v33 = vunpack.c.l.bf16 %v4578_v39 }
 0x2a9   : > { %v2379_v6 = vadd.f32 %v6167_v35, %v5227_v56  ;;  %v2370_v18 = vpop.f32.mrb[93].mxu1 }
 0x2aa   : > { %v2371_v59 = vadd.f32 %v6167_v35, %v2370_v18  ;;  %v5228_v57 = vpop.f32.mrb[94].mxu1  ;;  %4865 = vmatprep.subr.bf16.mxu1 %v2941_v38  ;;  %3539 = vmatmul.mubr.bf16.gmra.mrb[152].mxu0 %v4252_v13  ;;  %v4479_v13 = vunpack.c.h.bf16 %v4578_v39  ;;  %v2995_v38 = vld [vmem:[%s5540_s12 + $0x90] sm:$0xff] }
 0x2ab   : > { %v2382_v49 = vadd.f32 %v6167_v35, %v5228_v57  ;;  %v2373_v61 = vpop.f32.mrb[95].mxu1  ;;  %4866 = vmatpush3.bf16.msra.mxu1 %v2933_v58  ;;  %3546 = vmatprep.mubr.bf16.mxu0 %v4261_v0  ;;  %v2863_v8 = vmul.f32 %v4462_v1, %v2379_v6  ;;  %v2999_v6 = vld [vmem:[%s5540_s12 + $0xb0] sm:$0xff]  ;;  %v4214_v57 = vcombine.low %v2987_v5, %v2991_v7 }
 0x2ac   : > { %v2374_v54 = vadd.f32 %v6167_v35, %v2373_v61  ;;  %4867 = vmatprep.subr.bf16.mxu1 %v2942_v62  ;;  %v2861_v9 = vmul.f32 %v4458_v4, %v2371_v59  ;;  %v4474_v62 = vunpack.c.l.bf16 %v4577_v29  ;;  %v4580_v4 = vld [vmem:[%s5535_s11 + $0x1a8] sm:$0xff]   ;;  %v4223_v61 = vcombine.high %v2995_v38, %v2999_v6 }
 0x2ad   : > { %v2864_v10 = vmul.f32 %v4463_v44, %v2382_v49  ;;  %v4579_v49 = vld [vmem:[%s5535_s11 + $0x1a0] sm:$0xff]  }
 0x2ae   : > { %v2862_v14 = vmul.f32 %v4459_v51, %v2374_v54  ;;  %v4486_v54 = vunpack.c.l.bf16 %v4580_v4 }
 0x2af   : > { %4868 = vmatpush3.bf16.msra.mxu1 %v2934_v53  ;;  %v2944_v3 = vpack.c.bf16 %v2864_v10, %v2863_v8  ;;  %v4487_v10 = vunpack.c.h.bf16 %v4580_v4 }
 0x2b0   : > { %v2943_v2 = vpack.c.bf16 %v2862_v14, %v2861_v9  ;;  %v5231_v58 = vpop.f32.mrb[96].mxu1  ;;  %v4482_v14 = vunpack.c.l.bf16 %v4579_v49 }
 0x2b1   : > { %v2395_v20 = vadd.f32 %v6167_v35, %v5231_v58  ;;  %v2386_v28 = vpop.f32.mrb[97].mxu1  ;;  %v3007_v58 = vld [vmem:[%s5540_s12 + $0xf0] sm:$0xff] }
 0x2b2   : > { %4869 = vmatprep.subr.bf16.mxu1 %v2943_v2  ;;  %v2387_v36 = vadd.f32 %v6167_v35, %v2386_v28  ;;  %v5232_v46 = vpop.f32.mrb[98].mxu1  ;;  %3547 = vmatmul.mubr.bf16.gmra.mrb[156].mxu0 %v4260_v11  ;;  %v4483_v11 = vunpack.c.h.bf16 %v4579_v49  ;;  %v3003_v2 = vld [vmem:[%s5540_s12 + $0xd0] sm:$0xff] }
 0x2b3   : > { %4870 = vmatpush3.bf16.msra.mxu1 %v2935_v63  ;;  %v2398_v53 = vadd.f32 %v6167_v35, %v5232_v46  ;;  %v2389_v23 = vpop.f32.mrb[99].mxu1  ;;  %3684 = vmatprep.mubr.bf16.mxu0 %v4209_v15  ;;  %v2867_v55 = vmul.f32 %v4470_v45, %v2395_v20  ;;  %v4215_v63 = vcombine.high %v2987_v5, %v2991_v7 }
 0x2b4   : > { %4871 = vmatprep.subr.bf16.mxu1 %v2944_v3  ;;  %v2390_v30 = vadd.f32 %v6167_v35, %v2389_v23  ;;  %v2865_v16 = vmul.f32 %v4466_v25, %v2387_v36  ;;  %v4582_v36 = vld [vmem:[%s5535_s11 + $0x1b8] sm:$0xff]   ;;  %v4222_v25 = vcombine.low %v2995_v38, %v2999_v6 }
 0x2b5   : > { %v2868_v19 = vmul.f32 %v4471_v24, %v2398_v53  ;;  %v4231_v53 = vcombine.high %v3003_v2, %v3007_v58  ;;  %v4494_v7 = vunpack.c.l.bf16 %v4582_v36 }
 0x2b6   : > { %v2866_v17 = vmul.f32 %v4467_v47, %v2390_v30  ;;  %v4581_v47 = vld [vmem:[%s5535_s11 + $0x1b0] sm:$0xff]  }
 0x2b7   : > { %4872 = vmatpush3.bf16.msra.mxu1 %v2936_v21  ;;  %v6295_v22 = vpack.c.bf16 %v2868_v19, %v2867_v55  ;;  %v4495_v19 = vunpack.c.h.bf16 %v4582_v36  ;;  %v4491_v29 = vunpack.c.h.bf16 %v4581_v47 }
 0x2b8   : > { %v6298_v26 = vpack.c.bf16 %v2866_v17, %v2865_v16  ;;  %v5235_v40 = vpop.f32.mrb[100].mxu1  ;;  %v4490_v17 = vunpack.c.l.bf16 %v4581_v47 }
 0x2b9   : > { %v2411_v32 = vadd.f32 %v6167_v35, %v5235_v40  ;;  %v2402_v31 = vpop.f32.mrb[101].mxu1 }
 0x2ba   : > { %v2403_v60 = vadd.f32 %v6167_v35, %v2402_v31  ;;  %v5236_v48 = vpop.f32.mrb[102].mxu1  ;;  %3588 = vmatmul.mubr.bf16.vlgmr.msra.gmra.mrb[160].mxu1 %v4206_v52  ;;  %v3015_v31 = vld [vmem:[%s5540_s12 + $0x130] sm:$0xff] }
 0x2bb   : > { %v2414_v21 = vadd.f32 %v6167_v35, %v5236_v48  ;;  %v2405_v0 = vpop.f32.mrb[103].mxu1  ;;  %3595 = vmatprep.mubr.bf16.mxu1 %v4215_v63  ;;  %v2871_v1 = vmul.f32 %v4478_v33, %v2411_v32  ;;  %v3011_v33 = vld [vmem:[%s5540_s12 + $0x110] sm:$0xff] }
 0x2bc   : > { %v2406_v56 = vadd.f32 %v6167_v35, %v2405_v0  ;;  %v2869_v44 = vmul.f32 %v4474_v62, %v2403_v60  ;;  %v4239_v38 = vcombine.high %v3011_v33, %v3015_v31 }
 0x2bd   : > { %v2872_v18 = vmul.f32 %v4479_v13, %v2414_v21  ;;  %v4230_v21 = vcombine.low %v3003_v2, %v3007_v58  ;;  %v3023_v2 = vld [vmem:[%s5540_s12 + $0x170] sm:$0xff] }
 0x2be   : > { %v2870_v59 = vmul.f32 %v4475_v27, %v2406_v56  ;;  %v4584_v27 = vld [vmem:[%s5535_s11 + $0x1c8] sm:$0xff]   ;;  %v4583_v56 = vld [vmem:[%s5535_s11 + $0x1c0] sm:$0xff]  }
 0x2bf   : > { %v6310_v51 = vpack.c.bf16 %v2872_v18, %v2871_v1  ;;  %v4503_v4 = vunpack.c.h.bf16 %v4584_v27  ;;  %v4498_v49 = vunpack.c.l.bf16 %v4583_v56 }
 0x2c0   : > { %v6313_v41 = vpack.c.bf16 %v2870_v59, %v2869_v44  ;;  %v5239_v42 = vpop.f32.mrb[104].mxu1  ;;  %v4502_v44 = vunpack.c.l.bf16 %v4584_v27 }
 0x2c1   : > { %v2427_v52 = vadd.f32 %v6167_v35, %v5239_v42  ;;  %v2418_v8 = vpop.f32.mrb[105].mxu1  ;;  %v4499_v42 = vunpack.c.h.bf16 %v4583_v56 }
 0x2c2   : > { %v2419_v9 = vadd.f32 %v6167_v35, %v2418_v8  ;;  %v5240_v12 = vpop.f32.mrb[106].mxu1  ;;  %3596 = vmatmul.mubr.bf16.gmra.mrb[164].mxu1 %v4214_v57 }
 0x2c3   : > { %v2430_v3 = vadd.f32 %v6167_v35, %v5240_v12  ;;  %v2421_v50 = vpop.f32.mrb[107].mxu1  ;;  %3603 = vmatprep.mubr.bf16.mxu1 %v4223_v61  ;;  %v2875_v20 = vmul.f32 %v4486_v54, %v2427_v52 }
 0x2c4   : > { %v2422_v15 = vadd.f32 %v6167_v35, %v2421_v50  ;;  %v2873_v28 = vmul.f32 %v4482_v14, %v2419_v9 }
 0x2c5   : > { %v2876_v45 = vmul.f32 %v4487_v10, %v2430_v3  ;;  %v4585_v3 = vld [vmem:[%s5535_s11 + $0x1d0] sm:$0xff]  }
 0x2c6   : > { %v2874_v24 = vmul.f32 %v4483_v11, %v2422_v15  ;;  %v4586_v11 = vld [vmem:[%s5535_s11 + $0x1d8] sm:$0xff]   ;;  %v3019_v15 = vld [vmem:[%s5540_s12 + $0x150] sm:$0xff] }
 0x2c7   : > { %v6322_v46 = vpack.c.bf16 %v2876_v45, %v2875_v20  ;;  %v4511_v36 = vunpack.c.h.bf16 %v4586_v11  ;;  %v4246_v56 = vcombine.low %v3019_v15, %v3023_v2 }
 0x2c8   : > { %v6325_v23 = vpack.c.bf16 %v2874_v24, %v2873_v28  ;;  %v5243_v30 = vpop.f32.mrb[108].mxu1  ;;  %v4510_v28 = vunpack.c.l.bf16 %v4586_v11 }
 0x2c9   : > { %v2443_v5 = vadd.f32 %v6167_v35, %v5243_v30  ;;  %v2434_v55 = vpop.f32.mrb[109].mxu1 }
 0x2ca   : > { %v2435_v16 = vadd.f32 %v6167_v35, %v2434_v55  ;;  %v5244_v39 = vpop.f32.mrb[110].mxu1  ;;  %3604 = vmatmul.mubr.bf16.gmra.mrb[168].mxu1 %v4222_v25  ;;  %v4238_v25 = vcombine.low %v3011_v33, %v3015_v31  ;;  %v3027_v31 = vld [vmem:[%s5540_s12 + $0x190] sm:$0xff] }
 0x2cb   : > { %v2446_v63 = vadd.f32 %v6167_v35, %v5244_v39  ;;  %v2437_v40 = vpop.f32.mrb[111].mxu1  ;;  %3611 = vmatprep.mubr.bf16.mxu1 %v4231_v53  ;;  %v2879_v13 = vmul.f32 %v4494_v7, %v2443_v5  ;;  %v4506_v53 = vunpack.c.l.bf16 %v4585_v3  ;;  %v4507_v5 = vunpack.c.h.bf16 %v4585_v3 }
 0x2cc   : > { %v2438_v32 = vadd.f32 %v6167_v35, %v2437_v40  ;;  %v2877_v62 = vmul.f32 %v4490_v17, %v2435_v16  ;;  %v4247_v7 = vcombine.high %v3019_v15, %v3023_v2  ;;  %v4588_v40 = vld [vmem:[%s5535_s11 + $0x1e8] sm:$0xff]  }
 0x2cd   : > { %v2880_v60 = vmul.f32 %v4495_v19, %v2446_v63 }
 0x2ce   : > { %v2878_v48 = vmul.f32 %v4491_v29, %v2438_v32  ;;  %v4587_v32 = vld [vmem:[%s5535_s11 + $0x1e0] sm:$0xff]  }
 0x2cf   : > { %v6334_v0 = vpack.c.bf16 %v2880_v60, %v2879_v13 }
 0x2d0   : > { %v6337_v6 = vpack.c.bf16 %v2878_v48, %v2877_v62  ;;  %v5247_v1 = vpop.f32.mrb[112].mxu1  ;;  %v4518_v48 = vunpack.c.l.bf16 %v4588_v40 }
 0x2d1   : > { %v2459_v18 = vadd.f32 %v6167_v35, %v5247_v1  ;;  %v2450_v59 = vpop.f32.mrb[113].mxu1  ;;  %v4514_v1 = vunpack.c.l.bf16 %v4587_v32 }
 0x2d2   : > { %v2451_v57 = vadd.f32 %v6167_v35, %v2450_v59  ;;  %v5248_v61 = vpop.f32.mrb[114].mxu1  ;;  %3612 = vmatmul.mubr.bf16.gmra.mrb[172].mxu1 %v4230_v21  ;;  %v4519_v21 = vunpack.c.h.bf16 %v4588_v40 }
 0x2d3   : > { %v2462_v52 = vadd.f32 %v6167_v35, %v5248_v61  ;;  %v2453_v54 = vpop.f32.mrb[115].mxu1  ;;  %3619 = vmatprep.mubr.bf16.mxu1 %v4239_v38  ;;  %v2883_v10 = vmul.f32 %v4502_v44, %v2459_v18  ;;  %v4515_v44 = vunpack.c.h.bf16 %v4587_v32 }
 0x2d4   : > { %v2454_v8 = vadd.f32 %v6167_v35, %v2453_v54  ;;  %v2881_v14 = vmul.f32 %v4498_v49, %v2451_v57  ;;  %v4590_v54 = vld [vmem:[%s5535_s11 + $0x1f8] sm:$0xff]  }
 0x2d5   : > { %v2884_v9 = vmul.f32 %v4503_v4, %v2462_v52  ;;  %v4526_v3 = vunpack.c.l.bf16 %v4590_v54  ;;  %v4527_v15 = vunpack.c.h.bf16 %v4590_v54 }
 0x2d6   : > { %v2882_v12 = vmul.f32 %v4499_v42, %v2454_v8  ;;  %v4589_v8 = vld [vmem:[%s5535_s11 + $0x1f0] sm:$0xff]  }
 0x2d7   : > { %v2954_v50 = vpack.c.bf16 %v2884_v9, %v2883_v10  ;;  %v3035_v9 = vld [vmem:[%s5540_s12 + $0x1d0] sm:$0xff] }
 0x2d8   : > { %v5251_v58 = vpop.f32.mrb[116].mxu1  ;;  %v2953_v20 = vpack.c.bf16 %v2882_v12, %v2881_v14 }
 0x2d9   : > { %v2475_v45 = vadd.f32 %v6167_v35, %v5251_v58  ;;  %v2466_v24 = vpop.f32.mrb[117].mxu1 }
 0x2da   : > { %v2467_v47 = vadd.f32 %v6167_v35, %v2466_v24  ;;  %v5252_v30 = vpop.f32.mrb[118].mxu1  ;;  %4921 = vmatprep.subr.bf16.mxu0 %v2953_v20  ;;  %5261 = vmatprep.subr.bf16.mxu1 %v2953_v20  ;;  %v4522_v20 = vunpack.c.l.bf16 %v4589_v8 }
 0x2db   : > { %v2478_v55 = vadd.f32 %v6167_v35, %v5252_v30  ;;  %v2469_v19 = vpop.f32.mrb[119].mxu1  ;;  %4922 = vmatpush3.bf16.msra.mxu0 %v6298_v26  ;;  %5269 = vmatpush3.bf16.msra.mxu1 %v6298_v26  ;;  %v2887_v17 = vmul.f32 %v4510_v28, %v2475_v45  ;;  %v3031_v26 = vld [vmem:[%s5540_s12 + $0x1b0] sm:$0xff]  ;;  %v4523_v28 = vunpack.c.h.bf16 %v4589_v8 }
 0x2dc   : > { %v2470_v16 = vadd.f32 %v6167_v35, %v2469_v19  ;;  %4923 = vmatprep.subr.bf16.mxu0 %v2954_v50  ;;  %5262 = vmatprep.subr.bf16.mxu1 %v2954_v50  ;;  %v2885_v29 = vmul.f32 %v4506_v53, %v2467_v47  ;;  %v4254_v2 = vcombine.low %v3027_v31, %v3031_v26  ;;  %v3040_v19 = vld [vmem:[%s5540_s12 + $0x1f8] sm:$0xff] }
 0x2dd   : > { %v2888_v39 = vmul.f32 %v4511_v36, %v2478_v55  ;;  %3620 = vmatmul.mubr.bf16.gmra.mrb[176].mxu1 %v4238_v25  ;;  %v3036_v55 = vld [vmem:[%s5540_s12 + $0x1d8] sm:$0xff] }
 0x2de   : > { %v2886_v63 = vmul.f32 %v4507_v5, %v2470_v16  ;;  %3627 = vmatprep.mubr.bf16.mxu1 %v4247_v7 }
 0x2df   : > { %4924 = vmatpush3.bf16.msra.mxu0 %v6295_v22  ;;  %5270 = vmatpush3.bf16.msra.mxu1 %v6295_v22  ;;  %v2956_v33 = vpack.c.bf16 %v2888_v39, %v2887_v17  ;;  %v4255_v22 = vcombine.high %v3027_v31, %v3031_v26  ;;  %v2988_v17 = vld [vmem:[%s5540_s12 + $0x58] sm:$0xff] }
 0x2e0   : > { %v5255_v13 = vpop.f32.mrb[120].mxu1  ;;  %v2955_v60 = vpack.c.bf16 %v2886_v63, %v2885_v29  ;;  %v2992_v39 = vld [vmem:[%s5540_s12 + $0x78] sm:$0xff]  ;;  %v4264_v29 = vcombine.low %v3036_v55, %v3040_v19 }
 0x2e1   : > { %v2491_v62 = vadd.f32 %v6167_v35, %v5255_v13  ;;  %v2482_v27 = vpop.f32.mrb[121].mxu1  ;;  %v3000_v63 = vld [vmem:[%s5540_s12 + $0xb8] sm:$0xff]  ;;  %v4216_v40 = vcombine.low %v2988_v17, %v2992_v39 }
 0x2e2   : > { %v2483_v38 = vadd.f32 %v6167_v35, %v2482_v27  ;;  %v5256_v18 = vpop.f32.mrb[122].mxu1  ;;  %4925 = vmatprep.subr.bf16.mxu0 %v2955_v60  ;;  %5263 = vmatprep.subr.bf16.mxu1 %v2955_v60  ;;  %v3008_v31 = vld [vmem:[%s5540_s12 + $0xf8] sm:$0xff] }
 0x2e3   : > { %v2494_v59 = vadd.f32 %v6167_v35, %v5256_v18  ;;  %v2485_v4 = vpop.f32.mrb[123].mxu1  ;;  %4926 = vmatpush3.bf16.msra.mxu0 %v6313_v41  ;;  %5271 = vmatpush3.bf16.msra.mxu1 %v6313_v41  ;;  %v2891_v49 = vmul.f32 %v4518_v48, %v2491_v62  ;;  %v3039_v41 = vld [vmem:[%s5540_s12 + $0x1f0] sm:$0xff]  ;;  %v4241_v62 = vcombine.high %v3012_v34, %v3016_v43 }
 0x2e4   : > { %v2486_v57 = vadd.f32 %v6167_v35, %v2485_v4  ;;  %4927 = vmatprep.subr.bf16.mxu0 %v2956_v33  ;;  %5264 = vmatprep.subr.bf16.mxu1 %v2956_v33  ;;  %v2889_v42 = vmul.f32 %v4514_v1, %v2483_v38  ;;  %v4263_v24 = vcombine.high %v3035_v9, %v3039_v41  ;;  %v3004_v33 = vld [vmem:[%s5540_s12 + $0xd8] sm:$0xff] }
 0x2e5   : > { %v2892_v61 = vmul.f32 %v4519_v21, %v2494_v59  ;;  %3628 = vmatmul.mubr.bf16.gmra.mrb[180].mxu1 %v4246_v56  ;;  %v4262_v16 = vcombine.low %v3035_v9, %v3039_v41  ;;  %v4232_v13 = vcombine.low %v3004_v33, %v3008_v31  ;;  %v3020_v38 = vld [vmem:[%s5540_s12 + $0x158] sm:$0xff] }
 0x2e6   : > { %v2890_v52 = vmul.f32 %v4515_v44, %v2486_v57  ;;  %3635 = vmatprep.mubr.bf16.mxu1 %v4255_v22  ;;  %v3024_v1 = vld [vmem:[%s5540_s12 + $0x178] sm:$0xff]  ;;  %v4240_v44 = vcombine.low %v3012_v34, %v3016_v43 }
 0x2e7   : > { %4928 = vmatpush3.bf16.msra.mxu0 %v6310_v51  ;;  %5272 = vmatpush3.bf16.msra.mxu1 %v6310_v51  ;;  %v2958_v10 = vpack.c.bf16 %v2892_v61, %v2891_v49  ;;  %v4249_v59 = vcombine.high %v3020_v38, %v3024_v1  ;;  %v4248_v8 = vcombine.low %v3020_v38, %v3024_v1 }
 0x2e8   : > { %v5259_v14 = vpop.f32.mrb[124].mxu1  ;;  %v2957_v12 = vpack.c.bf16 %v2890_v52, %v2889_v42  ;;  %v3028_v42 = vld [vmem:[%s5540_s12 + $0x198] sm:$0xff] }
 0x2e9   : > { %v2507_v11 = vadd.f32 %v6167_v35, %v5259_v14  ;;  %v2498_v50 = vpop.f32.mrb[125].mxu1  ;;  %v3032_v52 = vld [vmem:[%s5540_s12 + $0x1b8] sm:$0xff] }
 0x2ea   : > { %v2499_v58 = vadd.f32 %v6167_v35, %v2498_v50  ;;  %v5260_v45 = vpop.f32.mrb[126].mxu1  ;;  %4929 = vmatprep.subr.bf16.mxu0 %v2957_v12  ;;  %5265 = vmatprep.subr.bf16.mxu1 %v2957_v12  ;;  %v4257_v9 = vcombine.high %v3028_v42, %v3032_v52  ;;  %v4256_v50 = vcombine.low %v3028_v42, %v3032_v52 }
 0x2eb   : > { %v2510_v51 = vadd.f32 %v6167_v35, %v5260_v45  ;;  %v2501_v36 = vpop.f32.mrb[127].mxu1  ;;  %4930 = vmatpush3.bf16.msra.mxu0 %v6325_v23  ;;  %5273 = vmatpush3.bf16.msra.mxu1 %v6325_v23  ;;  %v2895_v47 = vmul.f32 %v4526_v3, %v2507_v11 }
 0x2ec   : > { %v2502_v25 = vadd.f32 %v6167_v35, %v2501_v36  ;;  %4931 = vmatprep.subr.bf16.mxu0 %v2958_v10  ;;  %5266 = vmatprep.subr.bf16.mxu1 %v2958_v10  ;;  %v2893_v30 = vmul.f32 %v4522_v20, %v2499_v58  ;;  %v4265_v35 = vcombine.high %v3036_v55, %v3040_v19 }
 0x2ed   : > { %v2896_v53 = vmul.f32 %v4527_v15, %v2510_v51  ;;  %3636 = vmatmul.mubr.bf16.gmra.mrb[184].mxu1 %v4254_v2 }
 0x2ee   : > { %v2894_v5 = vmul.f32 %v4523_v28, %v2502_v25  ;;  %3643 = vmatprep.mubr.bf16.mxu1 %v4263_v24 }
 0x2ef   : > { %4932 = vmatpush3.bf16.msra.mxu0 %v6322_v46  ;;  %5274 = vmatpush3.bf16.msra.mxu1 %v6322_v46  ;;  %v2960_v7 = vpack.c.bf16 %v2896_v53, %v2895_v47  ;;  %v4217_v46 = vcombine.high %v2988_v17, %v2992_v39 }
 0x2f0   : > { %v2959_v23 = vpack.c.bf16 %v2894_v5, %v2893_v30 }
 0x2f2   : > { %4933 = vmatprep.subr.bf16.mxu0 %v2959_v23  ;;  %5267 = vmatprep.subr.bf16.mxu1 %v2959_v23 }
 0x2f3   : > { %4934 = vmatpush3.bf16.msra.mxu0 %v6337_v6  ;;  %5275 = vmatpush3.bf16.msra.mxu1 %v6337_v6  ;;  %v2996_v6 = vld [vmem:[%s5540_s12 + $0x98] sm:$0xff] }
 0x2f4   : > { %4935 = vmatprep.subr.bf16.mxu0 %v2960_v7  ;;  %5268 = vmatprep.subr.bf16.mxu1 %v2960_v7  ;;  %v4225_v32 = vcombine.high %v2996_v6, %v3000_v63  ;;  %v4224_v26 = vcombine.low %v2996_v6, %v3000_v63 }
 0x2f5   : > { %3644 = vmatmul.mubr.bf16.gmra.mrb[188].mxu1 %v4262_v16 }
 0x2f6   : > { %3740 = vmatprep.mubr.bf16.mxu1 %v4265_v35 }
 0x2f7   : > { %4936 = vmatpush3.bf16.msra.mxu0 %v6334_v0  ;;  %5276 = vmatpush3.bf16.msra.mxu1 %v6334_v0  ;;  %v4233_v0 = vcombine.high %v3004_v33, %v3008_v31 }
 0x2fa   : > { %3685 = vmatmul.mubr.bf16.vlgmr.msra.gmra.mrb[160].mxu0 %v4208_v37 }
 0x2fb   : > { %3692 = vmatprep.mubr.bf16.mxu0 %v4217_v46 }
 0x2fd   : > { %3741 = vmatmul.mubr.bf16.vlgmr.msra.gmra.mrb[192].mxu1 %v4264_v29 }
 0x302   : > { %3693 = vmatmul.mubr.bf16.gmra.mrb[164].mxu0 %v4216_v40 }
 0x303   : > { %3700 = vmatprep.mubr.bf16.mxu0 %v4225_v32 }
 0x30a   : > { %3701 = vmatmul.mubr.bf16.gmra.mrb[168].mxu0 %v4224_v26 }
 0x30b   : > { %3708 = vmatprep.mubr.bf16.mxu0 %v4233_v0 }
 0x30d   : > { %v4745_v37 = vpop.f32.mrb[128].mxu1 }
 0x30e   : > { %v4746_v60 = vpop.f32.mrb[129].mxu1 }
 0x30f   : > { %v6396_v48 = vadd.f32 %v4746_v60, %v4745_v37  ;;  %v4748_v27 = vpop.f32.mrb[130].mxu1 }
 0x310   : > { %v4749_v21 = vpop.f32.mrb[131].mxu1 }
 0x311   : > { %v6398_v56 = vadd.f32 %v4749_v21, %v4748_v27 }
 0x312   : > { %3709 = vmatmul.mubr.bf16.gmra.mrb[172].mxu0 %v4232_v13 }
 0x313   : > { %3716 = vmatprep.mubr.bf16.mxu0 %v4241_v62 }
 0x315   : > { %v4751_v18 = vpop.f32.mrb[132].mxu1 }
 0x316   : > { %v4752_v22 = vpop.f32.mrb[133].mxu1 }
 0x317   : > { %v6402_v4 = vadd.f32 %v4752_v22, %v4751_v18  ;;  %v4754_v57 = vpop.f32.mrb[134].mxu1 }
 0x318   : > { %v4755_v49 = vpop.f32.mrb[135].mxu1 }
 0x319   : > { %v4756_v61 = vadd.f32 %v4755_v49, %v4754_v57 }
 0x31a   : > { %3717 = vmatmul.mubr.bf16.gmra.mrb[176].mxu0 %v4240_v44 }
 0x31b   : > { %3724 = vmatprep.mubr.bf16.mxu0 %v4249_v59 }
 0x31d   : > { %v4757_v54 = vpop.f32.mrb[136].mxu1 }
 0x31e   : > { %v4758_v10 = vpop.f32.mrb[137].mxu1 }
 0x31f   : > { %v4759_v41 = vadd.f32 %v4758_v10, %v4757_v54  ;;  %v4760_v14 = vpop.f32.mrb[138].mxu1 }
 0x320   : > { %v4761_v12 = vpop.f32.mrb[139].mxu1 }
 0x321   : > { %v4762_v11 = vadd.f32 %v4761_v12, %v4760_v14 }
 0x322   : > { %3725 = vmatmul.mubr.bf16.gmra.mrb[180].mxu0 %v4248_v8 }
 0x323   : > { %3732 = vmatprep.mubr.bf16.mxu0 %v4257_v9 }
 0x325   : > { %v4763_v3 = vpop.f32.mrb[140].mxu1 }
 0x326   : > { %v4764_v15 = vpop.f32.mrb[141].mxu1 }
 0x327   : > { %v4765_v2 = vadd.f32 %v4764_v15, %v4763_v3  ;;  %v4766_v58 = vpop.f32.mrb[142].mxu1 }
 0x328   : > { %v4767_v20 = vpop.f32.mrb[143].mxu1 }
 0x329   : > { %v4768_v45 = vadd.f32 %v4767_v20, %v4766_v58 }
 0x32a   : > { %3733 = vmatmul.mubr.bf16.gmra.mrb[184].mxu0 %v4256_v50 }
 0x32d   : > { %v4769_v28 = vpop.f32.mrb[144].mxu1 }
 0x32e   : > { %v4770_v24 = vpop.f32.mrb[145].mxu1 }
 0x32f   : > { %v4771_v51 = vadd.f32 %v4770_v24, %v4769_v28  ;;  %v4772_v36 = vpop.f32.mrb[146].mxu1 }
 0x330   : > { %v4773_v25 = vpop.f32.mrb[147].mxu1 }
 0x331   : > { %v4774_v47 = vadd.f32 %v4773_v25, %v4772_v36 }
 0x335   : > { %v4775_v53 = vpop.f32.mrb[148].mxu1 }
 0x336   : > { %v4776_v30 = vpop.f32.mrb[149].mxu1 }
 0x337   : > { %v4777_v5 = vadd.f32 %v4776_v30, %v4775_v53  ;;  %v4778_v7 = vpop.f32.mrb[150].mxu1 }
 0x338   : > { %v4779_v55 = vpop.f32.mrb[151].mxu1 }
 0x339   : > { %v4780_v19 = vadd.f32 %v4779_v55, %v4778_v7 }
 0x33d   : > { %v4781_v23 = vpop.f32.mrb[152].mxu1 }
 0x33e   : > { %v4782_v16 = vpop.f32.mrb[153].mxu1 }
 0x33f   : > { %v6406_v35 = vadd.f32 %v4782_v16, %v4781_v23  ;;  %v4784_v17 = vpop.f32.mrb[154].mxu1 }
 0x340   : > { %v4785_v39 = vpop.f32.mrb[155].mxu1 }
 0x341   : > { %v4786_v46 = vadd.f32 %v4785_v39, %v4784_v17 }
 0x345   : > { %v4787_v29 = vpop.f32.mrb[156].mxu1 }
 0x346   : > { %v4788_v6 = vpop.f32.mrb[157].mxu1 }
 0x347   : > { %v6408_v63 = vadd.f32 %v4788_v6, %v4787_v29  ;;  %v4790_v40 = vpop.f32.mrb[158].mxu1 }
 0x348   : > { %v4791_v32 = vpop.f32.mrb[159].mxu1 }
 0x349   : > { %v6410_v33 = vadd.f32 %v4791_v32, %v4790_v40 }
 0x34d   : > { %v4809_v31 = vpop.f32.mrb[128].mxu0 }
 0x34e   : > { %v4810_v26 = vpop.f32.mrb[129].mxu0 }
 0x34f   : > { %v4811_v0 = vadd.f32 %v4810_v26, %v4809_v31  ;;  %v4812_v34 = vpop.f32.mrb[130].mxu0 }
 0x350   : > { %v4813_v43 = vpop.f32.mrb[131].mxu0 }
 0x351   : > { %v6413_v37 = vadd.f32 %v4811_v0, %v6396_v48  ;;  %v4814_v13 = vadd.f32 %v4813_v43, %v4812_v34 }
 0x353   : > { %v6416_v60 = vadd.f32 %v4814_v13, %v6398_v56 }
 0x355   : > { %v4815_v62 = vpop.f32.mrb[132].mxu0 }
 0x356   : > { %v4816_v27 = vpop.f32.mrb[133].mxu0 }
 0x357   : > { %v4817_v21 = vadd.f32 %v4816_v27, %v4815_v62  ;;  %v4818_v38 = vpop.f32.mrb[134].mxu0 }
 0x358   : > { %v4819_v1 = vpop.f32.mrb[135].mxu0 }
 0x359   : > { %v6419_v18 = vadd.f32 %v4817_v21, %v6402_v4  ;;  %v4820_v44 = vadd.f32 %v4819_v1, %v4818_v38 }
 0x35b   : > { %v6421_v22 = vadd.f32 %v4820_v44, %v4756_v61 }
 0x35d   : > { %v4821_v59 = vpop.f32.mrb[136].mxu0 }
 0x35e   : > { %v4822_v57 = vpop.f32.mrb[137].mxu0 }
 0x35f   : > { %v4823_v49 = vadd.f32 %v4822_v57, %v4821_v59  ;;  %v4824_v48 = vpop.f32.mrb[138].mxu0 }
 0x360   : > { %v4825_v42 = vpop.f32.mrb[139].mxu0 }
 0x361   : > { %v6423_v52 = vadd.f32 %v4823_v49, %v4759_v41  ;;  %v4826_v56 = vadd.f32 %v4825_v42, %v4824_v48 }
 0x363   : > { %v6425_v54 = vadd.f32 %v4826_v56, %v4762_v11 }
 0x365   : > { %v4827_v8 = vpop.f32.mrb[140].mxu0 }
 0x366   : > { %v4828_v10 = vpop.f32.mrb[141].mxu0 }
 0x367   : > { %v4829_v9 = vadd.f32 %v4828_v10, %v4827_v8  ;;  %v4830_v14 = vpop.f32.mrb[142].mxu0 }
 0x368   : > { %v4831_v12 = vpop.f32.mrb[143].mxu0 }
 0x369   : > { %v6427_v4 = vadd.f32 %v4829_v9, %v4765_v2  ;;  %v4832_v3 = vadd.f32 %v4831_v12, %v4830_v14 }
 0x36b   : > { %v6429_v61 = vadd.f32 %v4832_v3, %v4768_v45 }
 0x36d   : > { %v4833_v50 = vpop.f32.mrb[144].mxu0 }
 0x36e   : > { %v4834_v15 = vpop.f32.mrb[145].mxu0 }
 0x36f   : > { %v4835_v58 = vadd.f32 %v4834_v15, %v4833_v50  ;;  %v4836_v20 = vpop.f32.mrb[146].mxu0 }
 0x370   : > { %v4837_v28 = vpop.f32.mrb[147].mxu0 }
 0x371   : > { %v6431_v41 = vadd.f32 %v4835_v58, %v4771_v51  ;;  %v4838_v24 = vadd.f32 %v4837_v28, %v4836_v20 }
 0x373   : > { %v6433_v11 = vadd.f32 %v4838_v24, %v4774_v47 }
 0x375   : > { %v4839_v36 = vpop.f32.mrb[148].mxu0 }
 0x376   : > { %v4840_v25 = vpop.f32.mrb[149].mxu0 }
 0x377   : > { %v4841_v53 = vadd.f32 %v4840_v25, %v4839_v36  ;;  %v4842_v30 = vpop.f32.mrb[150].mxu0 }
 0x378   : > { %v4843_v7 = vpop.f32.mrb[151].mxu0 }
 0x379   : > { %v6435_v2 = vadd.f32 %v4841_v53, %v4777_v5  ;;  %v4844_v55 = vadd.f32 %v4843_v7, %v4842_v30 }
 0x37b   : > { %v6437_v45 = vadd.f32 %v4844_v55, %v4780_v19 }
 0x37d   : > { %v4845_v23 = vpop.f32.mrb[152].mxu0 }
 0x37e   : > { %v4846_v16 = vpop.f32.mrb[153].mxu0 }
 0x37f   : > { %v4847_v17 = vadd.f32 %v4846_v16, %v4845_v23  ;;  %v4848_v39 = vpop.f32.mrb[154].mxu0 }
 0x380   : > { %v4849_v29 = vpop.f32.mrb[155].mxu0 }
 0x381   : > { %v6440_v51 = vadd.f32 %v4847_v17, %v6406_v35  ;;  %v4850_v47 = vadd.f32 %v4849_v29, %v4848_v39 }
 0x383   : > { %v6442_v6 = vadd.f32 %v4850_v47, %v4786_v46 }
 0x385   : > { %v4851_v40 = vpop.f32.mrb[156].mxu0 }
 0x386   : > { %v4852_v32 = vpop.f32.mrb[157].mxu0 }
 0x387   : > { %v4853_v31 = vadd.f32 %v4852_v32, %v4851_v40  ;;  %v4854_v26 = vpop.f32.mrb[158].mxu0 }
 0x388   : > { %v4855_v5 = vpop.f32.mrb[159].mxu0 }
 0x389   : > { %v6445_v0 = vadd.f32 %v4853_v31, %v6408_v63  ;;  %v4856_v19 = vadd.f32 %v4855_v5, %v4854_v26 }
 0x38b   : > { %v6448_v34 = vadd.f32 %v4856_v19, %v6410_v33 }
 0x38d   : > { %v4873_v43 = vpop.f32.mrb[160].mxu1 }
 0x38e   : > { %v4874_v13 = vpop.f32.mrb[161].mxu1 }
 0x38f   : > { %v4875_v62 = vadd.f32 %v4874_v13, %v4873_v43  ;;  %v4876_v35 = vpop.f32.mrb[162].mxu1 }
 0x390   : > { %v4877_v27 = vpop.f32.mrb[163].mxu1 }
 0x391   : > { %v6451_v46 = vadd.f32 %v4875_v62, %v6413_v37  ;;  %v4878_v21 = vadd.f32 %v4877_v27, %v4876_v35 }
 0x393   : > { %v6454_v38 = vadd.f32 %v4878_v21, %v6416_v60 }
 0x395   : > { %v4879_v1 = vpop.f32.mrb[164].mxu1 }
 0x396   : > { %v4880_v44 = vpop.f32.mrb[165].mxu1 }
 0x397   : > { %v4881_v63 = vadd.f32 %v4880_v44, %v4879_v1  ;;  %v4882_v59 = vpop.f32.mrb[166].mxu1 }
 0x398   : > { %v4883_v57 = vpop.f32.mrb[167].mxu1 }
 0x399   : > { %v6457_v33 = vadd.f32 %v4881_v63, %v6419_v18  ;;  %v4884_v49 = vadd.f32 %v4883_v57, %v4882_v59 }
 0x39b   : > { %v6460_v48 = vadd.f32 %v4884_v49, %v6421_v22 }
 0x39d   : > { %v4885_v42 = vpop.f32.mrb[168].mxu1 }
 0x39e   : > { %v4886_v56 = vpop.f32.mrb[169].mxu1 }
 0x39f   : > { %v4887_v37 = vadd.f32 %v4886_v56, %v4885_v42  ;;  %v4888_v8 = vpop.f32.mrb[170].mxu1  ;;  %v2962_v42 = vld [vmem:[#allocation2 + $0x8] sm:$0xff] }
 0x3a0   : > { %v4889_v10 = vpop.f32.mrb[171].mxu1 }
 0x3a1   : > { %v6463_v60 = vadd.f32 %v4887_v37, %v6423_v52  ;;  %v4890_v9 = vadd.f32 %v4889_v10, %v4888_v8  ;;  %v2975_v10 = vld [vmem:[#allocation2 + $0x70] sm:$0xff] }
 0x3a3   : > { %v6466_v14 = vadd.f32 %v4890_v9, %v6425_v54 }
 0x3a5   : > { %v4891_v12 = vpop.f32.mrb[172].mxu1 }
 0x3a6   : > { %v4892_v3 = vpop.f32.mrb[173].mxu1 }
 0x3a7   : > { %v4893_v18 = vadd.f32 %v4892_v3, %v4891_v12  ;;  %v4894_v50 = vpop.f32.mrb[174].mxu1 }
 0x3a8   : > { %v4895_v15 = vpop.f32.mrb[175].mxu1 }
 0x3a9   : > { %v6469_v22 = vadd.f32 %v4893_v18, %v6427_v4  ;;  %v4896_v58 = vadd.f32 %v4895_v15, %v4894_v50  ;;  %v2976_v50 = vld [vmem:[#allocation2 + $0x78] sm:$0xff] }
 0x3ab   : > { %v6472_v20 = vadd.f32 %v4896_v58, %v6429_v61 }
 0x3b0   : > { %v4897_v28 = vpop.f32.mrb[176].mxu1 }
 0x3b1   : > { %v4898_v24 = vpop.f32.mrb[177].mxu1 }
 0x3b2   : > { %v4899_v52 = vadd.f32 %v4898_v24, %v4897_v28  ;;  %v4900_v36 = vpop.f32.mrb[178].mxu1 }
 0x3b3   : > { %v4901_v25 = vpop.f32.mrb[179].mxu1 }
 0x3b4   : > { %v6475_v54 = vadd.f32 %v4899_v52, %v6431_v41  ;;  %v4902_v53 = vadd.f32 %v4901_v25, %v4900_v36  ;;  %v2963_v52 = vld [vmem:[#allocation2 + $0x10] sm:$0xff] }
 0x3b6   : > { %v6478_v30 = vadd.f32 %v4902_v53, %v6433_v11 }
 0x3b8   : > { %v4903_v7 = vpop.f32.mrb[180].mxu1 }
 0x3b9   : > { %v4904_v55 = vpop.f32.mrb[181].mxu1 }
 0x3ba   : > { %v4905_v4 = vadd.f32 %v4904_v55, %v4903_v7  ;;  %v4906_v23 = vpop.f32.mrb[182].mxu1  ;;  %v2964_v7 = vld [vmem:[#allocation2 + $0x18] sm:$0xff] }
 0x3bb   : > { %v4907_v16 = vpop.f32.mrb[183].mxu1 }
 0x3bc   : > { %v6481_v61 = vadd.f32 %v4905_v4, %v6435_v2  ;;  %v4908_v17 = vadd.f32 %v4907_v16, %v4906_v23 }
 0x3be   : > { %v6484_v39 = vadd.f32 %v4908_v17, %v6437_v45 }
 0x3c0   : > { %v4909_v29 = vpop.f32.mrb[184].mxu1 }
 0x3c1   : > { %v4910_v47 = vpop.f32.mrb[185].mxu1 }
 0x3c2   : > { %v4911_v41 = vadd.f32 %v4910_v47, %v4909_v29  ;;  %v4912_v40 = vpop.f32.mrb[186].mxu1 }
 0x3c3   : > { %v4913_v32 = vpop.f32.mrb[187].mxu1 }
 0x3c4   : > { %v6487_v11 = vadd.f32 %v4911_v41, %v6440_v51  ;;  %v4914_v31 = vadd.f32 %v4913_v32, %v4912_v40  ;;  %v2961_v51 = vld [vmem:[#allocation2] sm:$0xff] }
 0x3c5   : > { %v2965_v41 = vld [vmem:[#allocation2 + $0x20] sm:$0xff] }
 0x3c6   : > { %v6490_v26 = vadd.f32 %v4914_v31, %v6442_v6  ;;  %v2966_v31 = vld [vmem:[#allocation2 + $0x28] sm:$0xff] }
 0x3c8   : > { %v4915_v5 = vpop.f32.mrb[188].mxu1 }
 0x3c9   : > { %v4916_v19 = vpop.f32.mrb[189].mxu1 }
 0x3ca   : > { %v4917_v2 = vadd.f32 %v4916_v19, %v4915_v5  ;;  %v4918_v43 = vpop.f32.mrb[190].mxu1 }
 0x3cb   : > { %v4919_v13 = vpop.f32.mrb[191].mxu1 }
 0x3cc   : > { %v3646_v45 = vadd.f32 %v4917_v2, %v6445_v0  ;;  %v4920_v62 = vadd.f32 %v4919_v13, %v4918_v43 }
 0x3cd   : > { %v4937_v35 = vpop.f32.mrb[160].mxu0 }
 0x3ce   : > { %v4938_v27 = vpop.f32.mrb[161].mxu0  ;;  %v3649_v21 = vadd.f32 %v4920_v62, %v6448_v34  ;;  %v2967_v62 = vld [vmem:[#allocation2 + $0x30] sm:$0xff] }
 0x3cf   : > { %v4939_v1 = vadd.f32 %v4938_v27, %v4937_v35  ;;  %v4940_v44 = vpop.f32.mrb[162].mxu0 }
 0x3d0   : > { %v4941_v63 = vpop.f32.mrb[163].mxu0  ;;  %v4979_v59 = vpop.f32.mrb[192].mxu1 }
 0x3d1   : > { %v3687_v6 = vadd.f32 %v4939_v1, %v6451_v46  ;;  %v4942_v57 = vadd.f32 %v4941_v63, %v4940_v44  ;;  %v4980_v49 = vpop.f32.mrb[193].mxu1 }
 0x3d2   : > { %v4981_v56 = vadd.f32 %v4980_v49, %v4979_v59  ;;  %v4982_v37 = vpop.f32.mrb[194].mxu1 }
 0x3d3   : > { %v3749_v8 = vadd.f32 %v3687_v6, %v2961_v51  ;;  %v3690_v0 = vadd.f32 %v4942_v57, %v6454_v38  ;;  %v4983_v9 = vpop.f32.mrb[195].mxu1  ;;  %v2969_v57 = vld [vmem:[#allocation2 + $0x40] sm:$0xff] }
 0x3d4   : > { %v3743_v12 = vadd.f32 %v4981_v56, %v3646_v45  ;;  %v4984_v34 = vadd.f32 %v4983_v9, %v4982_v37 }
 0x3d5   : > { %3766 = vst.msk [vmem:[#allocation2] sm:$0xff] %vm3765_vm2, %v3749_v8  ;;  %v3750_v3 = vadd.f32 %v3690_v0, %v2962_v42  ;;  %v4943_v18 = vpop.f32.mrb[164].mxu0 }
 0x3d6   : > { %v4944_v15 = vpop.f32.mrb[165].mxu0  ;;  %v3763_v46 = vadd.f32 %v3743_v12, %v2975_v10  ;;  %v3746_v58 = vadd.f32 %v4984_v34, %v3649_v21  ;;  %v2971_v34 = vld [vmem:[#allocation2 + $0x50] sm:$0xff] }
 0x3d7   : > { %3767 = vst.msk [vmem:[#allocation2 + $0x8] sm:$0xff] %vm3765_vm2, %v3750_v3  ;;  %v4945_v28 = vadd.f32 %v4944_v15, %v4943_v18  ;;  %v4946_v24 = vpop.f32.mrb[166].mxu0 }
 0x3d8   : > { %v4947_v36 = vpop.f32.mrb[167].mxu0  ;;  %3780 = vst.msk [vmem:[#allocation2 + $0x70] sm:$0xff] %vm3765_vm2, %v3763_v46  ;;  %v3764_v38 = vadd.f32 %v3746_v58, %v2976_v50 }
 0x3d9   : > { %v3695_v25 = vadd.f32 %v4945_v28, %v6457_v33  ;;  %v4948_v53 = vadd.f32 %v4947_v36, %v4946_v24  ;;  %v2973_v36 = vld [vmem:[#allocation2 + $0x60] sm:$0xff] }
 0x3da   : > { %3781 = vst.msk [vmem:[#allocation2 + $0x78] sm:$0xff] %vm3765_vm2, %v3764_v38 }
 0x3db   : > { %v3751_v55 = vadd.f32 %v3695_v25, %v2963_v52  ;;  %v3698_v4 = vadd.f32 %v4948_v53, %v6460_v48 }
 0x3dd   : > { %3768 = vst.msk [vmem:[#allocation2 + $0x10] sm:$0xff] %vm3765_vm2, %v3751_v55  ;;  %v3752_v23 = vadd.f32 %v3698_v4, %v2964_v7  ;;  %v4949_v16 = vpop.f32.mrb[168].mxu0  ;;  %v3804_v4 = vld [vmem:[%s6627_s7 + $0x10] sm:$0xff] (!%p4266_p9) }
 0x3de   : > { %v4950_v17 = vpop.f32.mrb[169].mxu0 }
 0x3df   : > { %3769 = vst.msk [vmem:[#allocation2 + $0x18] sm:$0xff] %vm3765_vm2, %v3752_v23  ;;  %v4951_v29 = vadd.f32 %v4950_v17, %v4949_v16  ;;  %v4952_v47 = vpop.f32.mrb[170].mxu0  ;;  %v5438_v23 = vmov (!%p4266_p9), 0   ;;  %v3803_v16 = vld [vmem:[%s6627_s7 + $0x8] sm:$0xff] (!%p4266_p9) }
 0x3e0   : > { %v4953_v40 = vpop.f32.mrb[171].mxu0  ;;  %5396 = vset.pattern.permute.xlu1 (!%p4266_p9), %v5438_v23  ;;  %5395 = vset.pattern.permute.xlu0 (!%p4266_p9), %v5438_v23  ;;  %v3807_v17 = vld [vmem:[%s6627_s7 + $0x28] sm:$0xff] (!%p4266_p9) }
 0x3e1   : > { %v3703_v33 = vadd.f32 %v4951_v29, %v6463_v60  ;;  %v4954_v32 = vadd.f32 %v4953_v40, %v4952_v47  ;;  %v2968_v60 = vld [vmem:[#allocation2 + $0x38] sm:$0xff]  ;;  %3830 = vperm.xlu1 (!%p4266_p9), %5396, %v3804_v4   ;;  %v3806_v29 = vld [vmem:[%s6627_s7 + $0x20] sm:$0xff] (!%p4266_p9)  ;;  %v3811_v40 = vld [vmem:[%s6627_s7 + $0x48] sm:$0xff] (!%p4266_p9) }
 0x3e2   : > { %v3809_v47 = vld [vmem:[%s6627_s7 + $0x38] sm:$0xff] (!%p4266_p9) }
 0x3e3   : > { %v3753_v5 = vadd.f32 %v3703_v33, %v2965_v41  ;;  %v3706_v19 = vadd.f32 %v4954_v32, %v6466_v14  ;;  %v3808_v41 = vld [vmem:[%s6627_s7 + $0x30] sm:$0xff] (!%p4266_p9)  ;;  %v3810_v33 = vld [vmem:[%s6627_s7 + $0x40] sm:$0xff] (!%p4266_p9)  ;;  %v3813_v32 = vld [vmem:[%s6627_s7 + $0x58] sm:$0xff] (!%p4266_p9) }
 0x3e5   : > { %3770 = vst.msk [vmem:[#allocation2 + $0x20] sm:$0xff] %vm3765_vm2, %v3753_v5  ;;  %v3754_v48 = vadd.f32 %v3706_v19, %v2966_v31  ;;  %v4955_v2 = vpop.f32.mrb[172].mxu0  ;;  %v3812_v31 = vld [vmem:[%s6627_s7 + $0x50] sm:$0xff] (!%p4266_p9)  ;;  %v3815_v5 = vld [vmem:[%s6627_s7 + $0x68] sm:$0xff] (!%p4266_p9)  ;;  %v3814_v19 = vld [vmem:[%s6627_s7 + $0x60] sm:$0xff] (!%p4266_p9) }
 0x3e6   : > { %v4956_v43 = vpop.f32.mrb[173].mxu0 }
 0x3e7   : > { %3771 = vst.msk [vmem:[#allocation2 + $0x28] sm:$0xff] %vm3765_vm2, %v3754_v48  ;;  %v4957_v13 = vadd.f32 %v4956_v43, %v4955_v2  ;;  %v4958_v45 = vpop.f32.mrb[174].mxu0  ;;  %v3817_v48 = vld [vmem:[%s6627_s7 + $0x78] sm:$0xff] (!%p4266_p9)  ;;  %v3816_v2 = vld [vmem:[%s6627_s7 + $0x70] sm:$0xff] (!%p4266_p9) }
 0x3e8   : > { %v4959_v35 = vpop.f32.mrb[175].mxu0  ;;  %v3788_v43 = vld [vmem:[#allocation2 + $0x10] sm:$0xff] (!%p4266_p9) }
 0x3e9   : > { %v3711_v27 = vadd.f32 %v4957_v13, %v6469_v22  ;;  %v4960_v21 = vadd.f32 %v4959_v35, %v4958_v45  ;;  %v2970_v22 = vld [vmem:[#allocation2 + $0x48] sm:$0xff]  ;;  %v3786_v13 = vld [vmem:[#allocation2] sm:$0xff] (!%p4266_p9) }
 0x3eb   : > { %v3755_v1 = vadd.f32 %v3711_v27, %v2967_v62  ;;  %v3714_v44 = vadd.f32 %v4960_v21, %v6472_v20  ;;  %v3789_v21 = vld [vmem:[#allocation2 + $0x18] sm:$0xff] (!%p4266_p9) }
 0x3ed   : > { %3772 = vst.msk [vmem:[#allocation2 + $0x30] sm:$0xff] %vm3765_vm2, %v3755_v1  ;;  %v3756_v14 = vadd.f32 %v3714_v44, %v2968_v60  ;;  %v4961_v51 = vpop.f32.mrb[176].mxu0  ;;  %v3787_v60 = vld [vmem:[#allocation2 + $0x8] sm:$0xff] (!%p4266_p9) }
 0x3ee   : > { %v4962_v63 = vpop.f32.mrb[177].mxu0 }
 0x3ef   : > { %3773 = vst.msk [vmem:[#allocation2 + $0x38] sm:$0xff] %vm3765_vm2, %v3756_v14  ;;  %v4963_v59 = vadd.f32 %v4962_v63, %v4961_v51  ;;  %v4964_v6 = vpop.f32.mrb[178].mxu0  ;;  %v3791_v63 = vld [vmem:[#allocation2 + $0x28] sm:$0xff] (!%p4266_p9) }
 0x3f0   : > { %v4965_v49 = vpop.f32.mrb[179].mxu0 }
 0x3f1   : > { %v3719_v42 = vadd.f32 %v4963_v59, %v6475_v54  ;;  %v4966_v56 = vadd.f32 %v4965_v49, %v4964_v6  ;;  %v2972_v54 = vld [vmem:[#allocation2 + $0x58] sm:$0xff]  ;;  %v3790_v59 = vld [vmem:[#allocation2 + $0x20] sm:$0xff] (!%p4266_p9) }
 0x3f3   : > { %v3757_v37 = vadd.f32 %v3719_v42, %v2969_v57  ;;  %v3722_v8 = vadd.f32 %v4966_v56, %v6478_v30 }
 0x3f5   : > { %3774 = vst.msk [vmem:[#allocation2 + $0x40] sm:$0xff] %vm3765_vm2, %v3757_v37  ;;  %v3758_v20 = vadd.f32 %v3722_v8, %v2970_v22  ;;  %v4967_v0 = vpop.f32.mrb[180].mxu0  ;;  %v3792_v22 = vld [vmem:[#allocation2 + $0x30] sm:$0xff] (!%p4266_p9) }
 0x3f6   : > { %v4968_v10 = vpop.f32.mrb[181].mxu0  ;;  %v3793_v56 = vld [vmem:[#allocation2 + $0x38] sm:$0xff] (!%p4266_p9) }
 0x3f7   : > { %3775 = vst.msk [vmem:[#allocation2 + $0x48] sm:$0xff] %vm3765_vm2, %v3758_v20  ;;  %v4969_v9 = vadd.f32 %v4968_v10, %v4967_v0  ;;  %v4970_v12 = vpop.f32.mrb[182].mxu0 }
 0x3f8   : > { %v4971_v3 = vpop.f32.mrb[183].mxu0 }
 0x3f9   : > { %v3727_v18 = vadd.f32 %v4969_v9, %v6481_v61  ;;  %v4972_v50 = vadd.f32 %v4971_v3, %v4970_v12  ;;  %v2974_v61 = vld [vmem:[#allocation2 + $0x68] sm:$0xff] }
 0x3fb   : > { %v3759_v15 = vadd.f32 %v3727_v18, %v2971_v34  ;;  %v3730_v46 = vadd.f32 %v4972_v50, %v6484_v39 }
 0x3fc   : > { %v3794_v9 = vld [vmem:[#allocation2 + $0x40] sm:$0xff] (!%p4266_p9) }
 0x3fd   : > { %3776 = vst.msk [vmem:[#allocation2 + $0x50] sm:$0xff] %vm3765_vm2, %v3759_v15  ;;  %v3760_v30 = vadd.f32 %v3730_v46, %v2972_v54  ;;  %v4973_v58 = vpop.f32.mrb[184].mxu0 }
 0x3fe   : > { %v4974_v28 = vpop.f32.mrb[185].mxu0  ;;  %v3795_v10 = vld [vmem:[#allocation2 + $0x48] sm:$0xff] (!%p4266_p9) }
 0x3ff   : > { %3777 = vst.msk [vmem:[#allocation2 + $0x58] sm:$0xff] %vm3765_vm2, %v3760_v30  ;;  %v4975_v24 = vadd.f32 %v4974_v28, %v4973_v58  ;;  %v4976_v52 = vpop.f32.mrb[186].mxu0 }
 0x400   : > { %v4977_v38 = vpop.f32.mrb[187].mxu0 }
 0x401   : > { %v3735_v25 = vadd.f32 %v4975_v24, %v6487_v11  ;;  %v4978_v53 = vadd.f32 %v4977_v38, %v4976_v52  ;;  %3785 = sbr.rel (%p4266_p9) target bundleno = 1185 (0x4a1), region = 60  ;;  %v3802_v11 = vld [vmem:[%s6627_s7] sm:$0xff] (!%p4266_p9) }
 0x402   : > { %3820 = vperm.xlu0 (!%p4266_p9), %5395, %v3802_v11  }
 0x403   : > { %v3761_v7 = vadd.f32 %v3735_v25, %v2973_v36  ;;  %v3738_v55 = vadd.f32 %v4978_v53, %v6490_v26  ;;  %v3805_v26 = vld [vmem:[%s6627_s7 + $0x18] sm:$0xff] (!%p4266_p9) }
 0x404   : > { %3835 = vperm.xlu1 (!%p4266_p9), %5396, %v3805_v26   ;;  %v3796_v54 = vld [vmem:[#allocation2 + $0x50] sm:$0xff] (!%p4266_p9)  ;;  %v3801_v53 = vld [vmem:[#allocation2 + $0x78] sm:$0xff] (!%p4266_p9) }
 0x405   : > { %3778 = vst.msk [vmem:[#allocation2 + $0x60] sm:$0xff] %vm3765_vm2, %v3761_v7  ;;  %v3762_v39 = vadd.f32 %v3738_v55, %v2974_v61  ;;  %v3800_v61 = vld [vmem:[#allocation2 + $0x70] sm:$0xff] (!%p4266_p9) }
 0x406   : > { %3825 = vperm.xlu0 (!%p4266_p9), %5395, %v3803_v16   ;;  %v3797_v50 = vld [vmem:[#allocation2 + $0x58] sm:$0xff] (!%p4266_p9) }
 0x407   : > { %3779 = vst.msk [vmem:[#allocation2 + $0x68] sm:$0xff] %vm3765_vm2, %v3762_v39 }
 0x408   : > { %3845 = vperm.xlu1 %5396, %v3807_v17  }
 0x40a   : > { %3840 = vperm.xlu0 %5395, %v3806_v29  }
 0x40c   : > { %3855 = vperm.xlu1 %5396, %v3809_v47   ;;  %v3798_v24 = vld [vmem:[#allocation2 + $0x60] sm:$0xff] }
 0x40e   : > { %3850 = vperm.xlu0 %5395, %v3808_v41   ;;  %v3799_v28 = vld [vmem:[#allocation2 + $0x68] sm:$0xff] }
 0x410   : > { %3865 = vperm.xlu1 %5396, %v3811_v40  }
 0x412   : > { %3860 = vperm.xlu0 %5395, %v3810_v33  }
 0x414   : > { %3875 = vperm.xlu1 %5396, %v3813_v32  }
 0x416   : > { %3870 = vperm.xlu0 %5395, %v3812_v31  }
 0x418   : > { %3885 = vperm.xlu1 %5396, %v3815_v5  }
 0x41a   : > { %3880 = vperm.xlu0 %5395, %v3814_v19  }
 0x41c   : > { %3895 = vperm.xlu1 %5396, %v3817_v48  }
 0x41e   : > { %3890 = vperm.xlu0 %5395, %v3816_v2  }
 0x460   : > { %v3831_v45 = vpop.permute.xlu1 %3830 }
 0x461   : > { %v3900_v35 = vadd.f32 %v3831_v45, %v3788_v43 }
 0x463   : > { %3916 = vst.msk [vmem:[%s5546_s13 + $0x10] sm:$0xff] %vm3765_vm2, %v3900_v35 }
 0x481   : > { %v3821_v62 = vpop.permute.xlu0 %3820 }
 0x482   : > { %v3898_v27 = vadd.f32 %v3821_v62, %v3786_v13 }
 0x483   : > { %v3836_v1 = vpop.permute.xlu1 %3835 }
 0x484   : > { %3914 = vst.msk [vmem:[%s5546_s13] sm:$0xff] %vm3765_vm2, %v3898_v27  ;;  %v3901_v14 = vadd.f32 %v3836_v1, %v3789_v21 }
 0x485   : > { %v3826_v44 = vpop.permute.xlu0 %3825 }
 0x486   : > { %v3899_v51 = vadd.f32 %v3826_v44, %v3787_v60  ;;  %3917 = vst.msk [vmem:[%s5546_s13 + $0x18] sm:$0xff] %vm3765_vm2, %v3901_v14 }
 0x487   : > { %v3846_v6 = vpop.permute.xlu1 %3845 }
 0x488   : > { %3915 = vst.msk [vmem:[%s5546_s13 + $0x8] sm:$0xff] %vm3765_vm2, %v3899_v51  ;;  %v3903_v49 = vadd.f32 %v3846_v6, %v3791_v63 }
 0x489   : > { %v3841_v57 = vpop.permute.xlu0 %3840 }
 0x48a   : > { %v3902_v42 = vadd.f32 %v3841_v57, %v3790_v59  ;;  %3919 = vst.msk [vmem:[%s5546_s13 + $0x28] sm:$0xff] %vm3765_vm2, %v3903_v49 }
 0x48b   : > { %v3856_v37 = vpop.permute.xlu1 %3855 }
 0x48c   : > { %3918 = vst.msk [vmem:[%s5546_s13 + $0x20] sm:$0xff] %vm3765_vm2, %v3902_v42  ;;  %v3905_v20 = vadd.f32 %v3856_v37, %v3793_v56 }
 0x48d   : > { %v3851_v8 = vpop.permute.xlu0 %3850 }
 0x48e   : > { %v3904_v0 = vadd.f32 %v3851_v8, %v3792_v22  ;;  %3921 = vst.msk [vmem:[%s5546_s13 + $0x38] sm:$0xff] %vm3765_vm2, %v3905_v20 }
 0x48f   : > { %v3866_v12 = vpop.permute.xlu1 %3865 }
 0x490   : > { %3920 = vst.msk [vmem:[%s5546_s13 + $0x30] sm:$0xff] %vm3765_vm2, %v3904_v0  ;;  %v3907_v3 = vadd.f32 %v3866_v12, %v3795_v10 }
 0x491   : > { %v3861_v34 = vpop.permute.xlu0 %3860 }
 0x492   : > { %v3906_v18 = vadd.f32 %v3861_v34, %v3794_v9  ;;  %3923 = vst.msk [vmem:[%s5546_s13 + $0x48] sm:$0xff] %vm3765_vm2, %v3907_v3 }
 0x493   : > { %v3876_v15 = vpop.permute.xlu1 %3875 }
 0x494   : > { %3922 = vst.msk [vmem:[%s5546_s13 + $0x40] sm:$0xff] %vm3765_vm2, %v3906_v18  ;;  %v3909_v30 = vadd.f32 %v3876_v15, %v3797_v50 }
 0x495   : > { %v3871_v46 = vpop.permute.xlu0 %3870 }
 0x496   : > { %v3908_v58 = vadd.f32 %v3871_v46, %v3796_v54  ;;  %3925 = vst.msk [vmem:[%s5546_s13 + $0x58] sm:$0xff] %vm3765_vm2, %v3909_v30 }
 0x497   : > { %v3886_v52 = vpop.permute.xlu1 %3885 }
 0x498   : > { %3924 = vst.msk [vmem:[%s5546_s13 + $0x50] sm:$0xff] %vm3765_vm2, %v3908_v58  ;;  %v3911_v38 = vadd.f32 %v3886_v52, %v3799_v28 }
 0x499   : > { %v3881_v36 = vpop.permute.xlu0 %3880 }
 0x49a   : > { %v3910_v25 = vadd.f32 %v3881_v36, %v3798_v24  ;;  %3927 = vst.msk [vmem:[%s5546_s13 + $0x68] sm:$0xff] %vm3765_vm2, %v3911_v38 }
 0x49b   : > { %v3896_v7 = vpop.permute.xlu1 %3895 }
 0x49c   : > { %3926 = vst.msk [vmem:[%s5546_s13 + $0x60] sm:$0xff] %vm3765_vm2, %v3910_v25  ;;  %v3913_v39 = vadd.f32 %v3896_v7, %v3801_v53 }
 0x49d   : > { %v3891_v55 = vpop.permute.xlu0 %3890 }
 0x49e   : > { %v3912_v4 = vadd.f32 %v3891_v55, %v3800_v61  ;;  %3929 = vst.msk [vmem:[%s5546_s13 + $0x78] sm:$0xff] %vm3765_vm2, %v3913_v39 }
 0x4a0   : > { %3928 = vst.msk [vmem:[%s5546_s13 + $0x70] sm:$0xff] %vm3765_vm2, %v3912_v4 }
 0x4a1 PF: > { %s18_s9 = sadd.s32 1, %s5435_s9   ;;  %s6633_s28 = sld [smem:[#allocation3_spill]] }
 0x4a2   : > { %p15_p10 = scmp.ge.s32.totalorder %s18_s9, 10   ;;  %s6634_s20 = sld [smem:[#allocation4_spill]] }
 0x4a3   : > { %s6635_s30 = sld [smem:[#allocation5_spill]]  ;;  %s6636_s27 = smov %s5427_s29 }
 0x4a4   :  { %17 = sbr.rel (!%p15_p10) target bundleno = 3 (0x3), region = 99 }
 0x4a8   : > { %s6637_s29 = smov %s6634_s20 }

</bundles_post_ra>
